<compile_context>
chip_gen: v7x
topology: tpu7x:2x2x1
jax: 0.10.0
libtpu: 0.0.40
codegen_flags: <defaults>
</compile_context>

<pallas_src>
import functools
import math

import jax
import jax.numpy as jnp
import numpy as np
from jax import lax
from jax.experimental import pallas as pl
from jax.experimental.pallas import tpu as pltpu

_GYRO_SUB_BLOCKS = 4     # 128-lane sub-blocks per grid step (amortizes step overhead)
_ACC_TILE_T = 256        # accel time tile: matches 256x256 MXU, bounds VMEM on v7x


# --------------------------------------------------------------------------- #
# In-kernel math helpers.  Operands are (8, 128) float32 planes; a "3x3
# rotation matrix" is a nested 3x3 Python list of such planes, i.e. a batch of
# 1024 rotations laid out over sublanes x lanes (pure VPU arithmetic).
# --------------------------------------------------------------------------- #
def _acos_poly(x):
    """arccos via Abramowitz & Stegun 4.4.46 (|err| <= 2e-8); only sqrt/mul/add."""
    x = jnp.clip(x, -1.0, 1.0)
    ax = jnp.abs(x)
    p = (((((((-0.0012624911) * ax + 0.0066700901) * ax - 0.0170881256) * ax
            + 0.0308918810) * ax - 0.0501743046) * ax + 0.0889789874) * ax
         - 0.2145988016) * ax + 1.5707963050
    r = jnp.sqrt(jnp.maximum(1.0 - ax, 0.0)) * p
    return jnp.where(x < 0.0, math.pi - r, r)


def _exp_coeffs(x, y, z):
    """Rodrigues coefficients sin(a)/a and (1-cos a)/a^2 from a single sin().

    Uses sin(a) = 2*sin(a/2)*cos(a/2) with cos(a/2) = sqrt(1-sin^2(a/2)),
    valid for a <= pi (always true for per-sample gyro increments dt*w).
    """
    a2 = x * x + y * y + z * z
    a = jnp.sqrt(a2)
    sh = jnp.sin(0.5 * a)                                   # only transcendental
    ch = jnp.sqrt(jnp.maximum(1.0 - sh * sh, 0.0))
    small = a < 1e-7
    safe_a = jnp.where(small, 1.0, a)
    sc = jnp.where(small, 1.0 - a2 * (1.0 / 6.0), 2.0 * sh * ch / safe_a)
    cc = jnp.where(small, 0.5 - a2 * (1.0 / 24.0), 2.0 * sh * sh / (safe_a * safe_a))
    return sc, cc


def _rodrigues(x, y, z, s, c):
    """SO3.exp: R = I + s*K + c*K^2, K = skew([x,y,z])."""
    xx, yy, zz = x * x, y * y, z * z
    xy, xz, yz = x * y, x * z, y * z
    return [
        [1.0 - c * (yy + zz), -s * z + c * xy,      s * y + c * xz],
        [s * z + c * xy,       1.0 - c * (xx + zz), -s * x + c * yz],
        [-s * y + c * xz,      s * x + c * yz,      1.0 - c * (xx + yy)],
    ]


def _mm3(A, B):      # A @ B
    return [[sum(A[i][k] * B[k][j] for k in range(3)) for j in range(3)]
            for i in range(3)]


def _mtm3(A, B):     # bmtm: A^T @ B
    return [[sum(A[k][i] * B[k][j] for k in range(3)) for j in range(3)]
            for i in range(3)]


def _so3_log(R):
    """SO3.log -> axis-angle vector as 3 planes (EUP rsqrt for 1/sin)."""
    tr = R[0][0] + R[1][1] + R[2][2]
    c = jnp.clip(0.5 * (tr - 1.0), -1.0, 1.0)
    theta = _acos_poly(c)
    inv_sn = lax.rsqrt(jnp.maximum(1.0 - c * c, 1e-30))     # 1/sin(theta)
    # TODO(synk): like the f64 reference, the theta -> pi branch is not special-cased.
    factor = jnp.where(theta < 1e-2,
                       1.0 + theta * theta * (1.0 / 6.0),   # theta/sin(theta) Taylor
                       theta * inv_sn)
    wx = 0.5 * factor * (R[2][1] - R[1][2])
    wy = 0.5 * factor * (R[0][2] - R[2][0])
    wz = 0.5 * factor * (R[1][0] - R[0][1])
    return (wx, wy, wz)


def _smooth_l1(x):
    """torch.nn.SmoothL1Loss elementwise term (beta=1), target = 0."""
    ax = jnp.abs(x)
    return jnp.where(ax < 1.0, 0.5 * x * x, ax - 0.5)


# --------------------------------------------------------------------------- #
# Gyro-loss kernel.
# --------------------------------------------------------------------------- #
def _make_gyro_kernel(F, N0, inv_h, scale16, scale32, sub_blocks):
    def kernel(hat_ref, gt_ref, m2_ref, out_ref):

        def rot(ref, p, off):                         # SO3.exp of sample p (one vreg/plane)
            x = ref[3 * p + 0, :, pl.ds(off, 128)]
            y = ref[3 * p + 1, :, pl.ds(off, 128)]
            z = ref[3 * p + 2, :, pl.ds(off, 128)]
            sc, cc = _exp_coeffs(x, y, z)
            return _rodrigues(x, y, z, sc, cc)

        def sub_block(j, acc):
            off = pl.multiple_of(j * 128, 128)
            m2 = m2_ref[:, pl.ds(off, 128)]           # (8, 128); -1 marks padding
            valid = m2 >= 0.0
            w16 = [jnp.where(jnp.logical_and(2.0 * m2 + float(h) >= float(N0), valid),
                             scale16, 0.0) for h in (0, 1)]
            w32 = jnp.where(jnp.logical_and(m2 >= float(N0), valid), scale32, 0.0)

            # P0 / P1 = in-order products of the two adjacent min-freq half groups,
            # Pf = max-freq group product (== repeated [::2].bmm([1::2]) folds).
            P0 = rot(hat_ref, 0, off)
            for p in range(1, F):
                P0 = _mm3(P0, rot(hat_ref, p, off))
            P1 = rot(hat_ref, F, off)
            for p in range(F + 1, 2 * F):
                P1 = _mm3(P1, rot(hat_ref, p, off))
            Q0 = rot(gt_ref, 0, off)
            Q1 = rot(gt_ref, 1, off)

            for P, Q, wgt in ((P0, Q0, w16[0]), (P1, Q1, w16[1])):
                for comp in _so3_log(_mtm3(P, Q)):
                    acc = acc + _smooth_l1(comp * inv_h) * wgt

            Pf = _mm3(P0, P1)
            Qf = _mm3(Q0, Q1)                         # drot_16[::2] @ drot_16[1::2]
            for comp in _so3_log(_mtm3(Pf, Qf)):
                acc = acc + _smooth_l1(comp * inv_h) * w32
            return acc

        acc = lax.fori_loop(0, sub_blocks, sub_block, jnp.zeros((8, 128), jnp.float32))
        out_ref[...] = acc                            # raw (8,128) partial; summed outside

    return kernel


def gyro_loss_pallas(w_hat, dw_16, *, dt, min_N, max_N, w, huber, N0):
    assert max_N == min_N + 1, "reference loop is only well-defined for max_N == min_N + 1"
    B, S, _ = w_hat.shape
    F, F2 = 2 ** min_N, 2 ** max_N
    assert S % F2 == 0 and S // F2 > N0
    M, M2 = S // F, S // F2
    G2 = B * M2

    lanes_needed = -(-G2 // 8)
    sub = max(1, min(_GYRO_SUB_BLOCKS, -(-lanes_needed // 128)))
    LB = sub * 128
    G2p = -(-G2 // (8 * LB)) * (8 * LB)               # pad groups to full lane blocks
    L = G2p // 8
    num_blocks = L // LB

    # predicted per-sample increments, packed (F2*3, 8, L); row = 3*p + comp
    dwh = (dt * w_hat.astype(jnp.float32)).reshape(G2, F2, 3)
    hat = jnp.transpose(dwh, (1, 2, 0)).reshape(F2 * 3, G2)
    hat = jnp.pad(hat, ((0, 0), (0, G2p - G2))).reshape(F2 * 3, 8, L)

    # ground-truth increments subsampled at min_train_freq, packed (6, 8, L)
    dwg = dw_16.astype(jnp.float32)[:, ::F].reshape(G2, 2, 3)
    gt = jnp.transpose(dwg, (1, 2, 0)).reshape(6, G2)
    gt = jnp.pad(gt, ((0, 0), (0, G2p - G2))).reshape(6, 8, L)

    # per-group within-sequence index m2 (=-1 on padding); masks built in-kernel
    m2 = np.full((G2p,), -1.0, np.float32)
    m2[:G2] = (np.arange(G2) % M2).astype(np.float32)
    m2 = m2.reshape(8, L)

    count16 = float(B * (M - N0) * 3)
    count32 = float(B * (M2 - N0) * 3)
    scale16 = float(w) * float(huber) ** 2 / count16
    scale32 = float(w) * float(huber) ** 2 / (count32 * float(2 ** (max_N - min_N) * 2))

    kernel = _make_gyro_kernel(F=F, N0=N0, inv_h=1.0 / float(huber),
                               scale16=scale16, scale32=scale32, sub_blocks=sub)
    out = pl.pallas_call(
        kernel,
        out_shape=jax.ShapeDtypeStruct((8, num_blocks * 128), jnp.float32),
        grid=(num_blocks,),
        in_specs=[pl.BlockSpec((F2 * 3, 8, LB), lambda i: (0, 0, i)),
                  pl.BlockSpec((6, 8, LB), lambda i: (0, 0, i)),
                  pl.BlockSpec((8, LB), lambda i: (0, i))],
        out_specs=pl.BlockSpec((8, 128), lambda i: (0, i)),
        compiler_params=pltpu.CompilerParams(
            dimension_semantics=("parallel",),
            vmem_limit_bytes=32 * 1024 * 1024),
    )(hat, gt, jnp.asarray(m2))
    return jnp.sum(out)


# --------------------------------------------------------------------------- #
# Accel-loss kernel: time-tiled, no global cumsum.  Per time block j the
# window delta-v is dv = a_cur @ BAND_ws + a_prev @ CROSS_ws (dt folded into
# the constant band matrices), normalized with rsqrt and fed to SmoothL1.
# --------------------------------------------------------------------------- #
def _make_accel_kernel(keys, n, b_pad, tile_t):
    n_win = len(keys)
    coefs = [math.log(float(ws)) * 10.0 / float(n - ws) for ws in keys]

    def kernel(*refs):
        a_cur_ref, a_prev_ref = refs[0], refs[1]
        win_refs = refs[2:2 + 3 * n_win]
        out_ref = refs[2 + 3 * n_win]

        a_cur = a_cur_ref[...]                         # (R, T) current time block
        a_prev = a_prev_ref[...]                       # (R, T) previous time block
        lane = lax.broadcasted_iota(jnp.int32, (1, tile_t), 1)
        s_idx = pl.program_id(0) * tile_t + lane       # global window-end index

        loss_row = jnp.zeros((1, tile_t), jnp.float32)
        for widx, ws in enumerate(keys):
            gt_ref = win_refs[3 * widx]
            band_ref = win_refs[3 * widx + 1]
            cross_ref = win_refs[3 * widx + 2]

            dv = (jnp.dot(a_cur, band_ref[...], preferred_element_type=jnp.float32)
                  + jnp.dot(a_prev, cross_ref[...], preferred_element_type=jnp.float32))
            d0 = dv[0:b_pad, :]
            d1 = dv[b_pad:2 * b_pad, :]
            d2 = dv[2 * b_pad:3 * b_pad, :]
            # TODO(synk): epsilon convention of the external reference `vnorm` is unknown.
            inv = lax.rsqrt(jnp.maximum(d0 * d0 + d1 * d1 + d2 * d2, 1e-24))

            G = gt_ref[...]
            g0 = G[0:b_pad, :]
            g1 = G[b_pad:2 * b_pad, :]
            g2 = G[2 * b_pad:3 * b_pad, :]
            lterm = (_smooth_l1(g0 - d0 * inv)
                     + _smooth_l1(g1 - d1 * inv)
                     + _smooth_l1(g2 - d2 * inv))      # (b_pad, T)

            valid = jnp.logical_and(s_idx >= ws, s_idx < n).astype(jnp.float32)  # (1, T)
            loss_row = loss_row + coefs[widx] * valid * jnp.sum(lterm, axis=0, keepdims=True)

        out_ref[...] = loss_row
    return kernel


def accel_loss_pallas(a_hat, gt_dv_normed, *, dt, dv_normed):
    # TODO(synk): fast_acc_integration / vnorm are external helpers in the
    # reference repo; implemented here as dt-scaled windowed integration with
    # unit normalization of the windowed delta-velocity.
    keys = sorted(int(k) for k in dv_normed)
    B, N, _ = a_hat.shape
    T = _ACC_TILE_T
    for k in keys:
        assert 0 < k < N
        assert k <= T  # TODO(synk): windows longer than one time tile are not supported

    b_pad = -(-B // 8) * 8
    n_pad = -(-N // T) * T
    nb = n_pad // T
    R = 3 * b_pad

    def pack(x, start, length, width):                 # (B, length, 3) -> (R, width)
        x = jnp.transpose(jnp.asarray(x, jnp.float32), (2, 0, 1))
        x = jnp.pad(x, ((0, 0), (0, b_pad - B), (start, width - start - length)))
        return x.reshape(R, width)

    # a gets one leading zero block so that "previous block" at j=0 is zeros.
    a_ext = pack(a_hat, T, N, n_pad + T)
    # gt packed window-end aligned: column s holds gt[s - ws] for ws <= s < N.
    gts = [pack(gt_dv_normed[str(k)], k, N - k, n_pad) for k in keys]

    # banded window matrices (dt folded in): dv_ws = a_cur @ band + a_prev @ cross
    iu = np.arange(T)[:, None]
    il = np.arange(T)[None, :]
    wins = []
    for ws in keys:
        band = (((iu <= il) & (iu > il - ws)).astype(np.float32)) * float(dt)
        cross = (((il < ws) & (iu >= T - ws + il + 1)).astype(np.float32)) * float(dt)
        wins.append((jnp.asarray(band), jnp.asarray(cross)))

    in_specs = [pl.BlockSpec((R, T), lambda j: (0, j + 1)),     # current time block
                pl.BlockSpec((R, T), lambda j: (0, j))]         # previous time block
    operands = [a_ext, a_ext]
    for gt_pk, (band, cross) in zip(gts, wins):
        in_specs += [pl.BlockSpec((R, T), lambda j: (0, j)),
                     pl.BlockSpec((T, T), lambda j: (0, 0)),
                     pl.BlockSpec((T, T), lambda j: (0, 0))]
        operands += [gt_pk, band, cross]

    kernel = _make_accel_kernel(keys=keys, n=N, b_pad=b_pad, tile_t=T)
    out = pl.pallas_call(
        kernel,
        out_shape=jax.ShapeDtypeStruct((1, n_pad), jnp.float32),
        grid=(nb,),
        in_specs=in_specs,
        out_specs=pl.BlockSpec((1, T), lambda j: (0, j)),
        compiler_params=pltpu.CompilerParams(
            dimension_semantics=("parallel",),
            vmem_limit_bytes=32 * 1024 * 1024),
    )(*operands)

    # NOTE: the reference also computes a 15-tap moving-average "gap" of a_hat,
    # but discards the result — gap_loss is hard-coded to 0, so that dead branch
    # is omitted here.
    gap_loss = jnp.zeros((1,), jnp.float32)
    return jnp.sum(out), gap_loss


# --------------------------------------------------------------------------- #
# Module wrapper mirroring the torch DGALoss forward pass.  The packing ops
# are jitted together with the pallas_call so XLA fuses the transpose/pad.
# --------------------------------------------------------------------------- #
class DGALoss:
    def __init__(self, params):
        p = params["train"]["loss"]
        self.min_N = p["min_N"]
        self.max_N = p["max_N"]
        self.min_train_freq = 2 ** self.min_N
        self.max_train_freq = 2 ** self.max_N
        self.dt = p["dt"]
        self.w = p["w"]
        self.huber = p["huber"]
        # deterministic "parameter" from __init__ (unused by forward, kept for parity)
        self.weight = jnp.ones((1, 1, self.min_train_freq), jnp.float32) / self.min_train_freq
        self.N0 = 5
        self.dv = p["dv"]
        self.dv_normed = p["dv_normed"]

        self._gyro_fn = jax.jit(functools.partial(
            gyro_loss_pallas, dt=self.dt, min_N=self.min_N, max_N=self.max_N,
            w=self.w, huber=self.huber, N0=self.N0))
        self._accel_fn = jax.jit(functools.partial(
            accel_loss_pallas, dt=self.dt,
            dv_normed=tuple(int(k) for k in self.dv_normed)))

    def __call__(self, w_hat, dw_16, a_hat, gt_dv_normed):
        gloss = self._gyro_fn(w_hat, dw_16)
        acc_loss, gap_loss = self._accel_fn(a_hat, gt_dv_normed)
        return gloss, acc_loss, gap_loss


if __name__ == "__main__":
    params = {
        "train": {"loss": {
            "min_N": 2, "max_N": 3,            # min_train_freq=4, max_train_freq=8 (scaled-down)
            "dt": 0.005, "w": 1e6, "huber": 0.005,
            "dv": [16, 32], "dv_normed": [32, 16],
        }}
    }
    loss_fn = DGALoss(params)

    B, S = 2, 64
    key = jax.random.PRNGKey(0)
    k1, k2, k3, k4, k5 = jax.random.split(key, 5)
    w_hat = 0.5 * jax.random.normal(k1, (B, S, 3), jnp.float32)       # predicted gyro rates
    dw_16 = 0.01 * jax.random.normal(k2, (B, S, 3), jnp.float32)      # gt per-sample increments
    a_hat = jax.random.normal(k3, (B, S, 3), jnp.float32)             # predicted accel
    gt_dv_normed = {
        "16": jax.random.normal(k4, (B, S - 16, 3), jnp.float32),
        "32": jax.random.normal(k5, (B, S - 32, 3), jnp.float32),
    }

    gloss, acc_loss, gap_loss = loss_fn(w_hat, dw_16, a_hat, gt_dv_normed)
    jax.block_until_ready((gloss, acc_loss, gap_loss))
    assert np.isfinite(float(gloss)) and np.isfinite(float(acc_loss))
    print("KERNEL_OK")
</pallas_src>

<mosaic_0001>
module attributes {stable_mosaic.version = 11 : i64} {
  func.func @kernel(%arg0: i32, %arg1: memref<24x8x128xf32, #tpu.memory_space<vmem>>, %arg2: memref<6x8x128xf32, #tpu.memory_space<vmem>>, %arg3: memref<8x128xf32, #tpu.memory_space<vmem>>, %arg4: memref<8x128xf32, #tpu.memory_space<vmem>>) attributes {dimension_semantics = [#tpu.dimension_semantics<parallel>], iteration_bounds = array<i64: 1>, scalar_prefetch = 0 : i64, scratch_operands = 0 : i64, tpu.core_type = #tpu.core_type<tc>, window_params = [{transform_indices = @transform_0, window_bounds = array<i64: 24, 8, 128>}, {transform_indices = @transform_1, window_bounds = array<i64: 6, 8, 128>}, {transform_indices = @transform_2, window_bounds = array<i64: 8, 128>}, {transform_indices = @transform_3, window_bounds = array<i64: 8, 128>}]} {
    %cst = arith.constant 0.000000e+00 : f32
    %0 = vector.broadcast %cst : f32 to vector<8x128xf32>
    %c0_i32 = arith.constant 0 : i32
    %c128_i32 = arith.constant 128 : i32
    %1 = arith.muli %c0_i32, %c128_i32 : i32
    %2 = tpu.assume_multiple %1, 128 : i32
    %c0 = arith.constant 0 : index
    %3 = arith.index_cast %2 : i32 to index
    %4 = vector.load %arg3[%c0, %3] : memref<8x128xf32, #tpu.memory_space<vmem>>, vector<8x128xf32>
    %cst_0 = arith.constant 0.000000e+00 : f32
    %5 = vector.broadcast %cst_0 : f32 to vector<8x128xf32>
    %6 = arith.cmpf oge, %4, %5 : vector<8x128xf32>
    %cst_1 = arith.constant 2.000000e+00 : f32
    %7 = vector.broadcast %cst_1 : f32 to vector<8x128xf32>
    %8 = arith.mulf %7, %4 : vector<8x128xf32>
    %cst_2 = arith.constant 0.000000e+00 : f32
    %9 = vector.broadcast %cst_2 : f32 to vector<8x128xf32>
    %10 = arith.addf %8, %9 : vector<8x128xf32>
    %cst_3 = arith.constant 5.000000e+00 : f32
    %11 = vector.broadcast %cst_3 : f32 to vector<8x128xf32>
    %12 = arith.cmpf oge, %10, %11 : vector<8x128xf32>
    %13 = arith.andi %12, %6 : vector<8x128xi1>
    %cst_4 = arith.constant 0.378787875 : f32
    %cst_5 = arith.constant 0.000000e+00 : f32
    %14 = vector.broadcast %cst_4 : f32 to vector<8x128xf32>
    %15 = vector.broadcast %cst_5 : f32 to vector<8x128xf32>
    %16 = arith.select %13, %14, %15 : vector<8x128xi1>, vector<8x128xf32>
    %cst_6 = arith.constant 2.000000e+00 : f32
    %17 = vector.broadcast %cst_6 : f32 to vector<8x128xf32>
    %18 = arith.mulf %17, %4 : vector<8x128xf32>
    %cst_7 = arith.constant 1.000000e+00 : f32
    %19 = vector.broadcast %cst_7 : f32 to vector<8x128xf32>
    %20 = arith.addf %18, %19 : vector<8x128xf32>
    %cst_8 = arith.constant 5.000000e+00 : f32
    %21 = vector.broadcast %cst_8 : f32 to vector<8x128xf32>
    %22 = arith.cmpf oge, %20, %21 : vector<8x128xf32>
    %23 = arith.andi %22, %6 : vector<8x128xi1>
    %cst_9 = arith.constant 0.378787875 : f32
    %cst_10 = arith.constant 0.000000e+00 : f32
    %24 = vector.broadcast %cst_9 : f32 to vector<8x128xf32>
    %25 = vector.broadcast %cst_10 : f32 to vector<8x128xf32>
    %26 = arith.select %23, %24, %25 : vector<8x128xi1>, vector<8x128xf32>
    %cst_11 = arith.constant 5.000000e+00 : f32
    %27 = vector.broadcast %cst_11 : f32 to vector<8x128xf32>
    %28 = arith.cmpf oge, %4, %27 : vector<8x128xf32>
    %29 = arith.andi %28, %6 : vector<8x128xi1>
    %cst_12 = arith.constant 0.347222209 : f32
    %cst_13 = arith.constant 0.000000e+00 : f32
    %30 = vector.broadcast %cst_12 : f32 to vector<8x128xf32>
    %31 = vector.broadcast %cst_13 : f32 to vector<8x128xf32>
    %32 = arith.select %29, %30, %31 : vector<8x128xi1>, vector<8x128xf32>
    %c0_14 = arith.constant 0 : index
    %c0_15 = arith.constant 0 : index
    %33 = arith.index_cast %2 : i32 to index
    %34 = vector.load %arg1[%c0_14, %c0_15, %33] : memref<24x8x128xf32, #tpu.memory_space<vmem>>, vector<1x8x128xf32>
    %35 = vector.shape_cast %34 : vector<1x8x128xf32> to vector<8x128xf32>
    %c1 = arith.constant 1 : index
    %c0_16 = arith.constant 0 : index
    %36 = arith.index_cast %2 : i32 to index
    %37 = vector.load %arg1[%c1, %c0_16, %36] : memref<24x8x128xf32, #tpu.memory_space<vmem>>, vector<1x8x128xf32>
    %38 = vector.shape_cast %37 : vector<1x8x128xf32> to vector<8x128xf32>
    %c2 = arith.constant 2 : index
    %c0_17 = arith.constant 0 : index
    %39 = arith.index_cast %2 : i32 to index
    %40 = vector.load %arg1[%c2, %c0_17, %39] : memref<24x8x128xf32, #tpu.memory_space<vmem>>, vector<1x8x128xf32>
    %41 = vector.shape_cast %40 : vector<1x8x128xf32> to vector<8x128xf32>
    %42 = arith.mulf %35, %35 : vector<8x128xf32>
    %43 = arith.mulf %38, %38 : vector<8x128xf32>
    %44 = arith.addf %42, %43 : vector<8x128xf32>
    %45 = arith.mulf %41, %41 : vector<8x128xf32>
    %46 = arith.addf %44, %45 : vector<8x128xf32>
    %47 = math.sqrt %46 : vector<8x128xf32>
    %cst_18 = arith.constant 5.000000e-01 : f32
    %48 = vector.broadcast %cst_18 : f32 to vector<8x128xf32>
    %49 = arith.mulf %48, %47 : vector<8x128xf32>
    %50 = math.sin %49 : vector<8x128xf32>
    %51 = arith.mulf %50, %50 : vector<8x128xf32>
    %cst_19 = arith.constant 1.000000e+00 : f32
    %52 = vector.broadcast %cst_19 : f32 to vector<8x128xf32>
    %53 = arith.subf %52, %51 : vector<8x128xf32>
    %cst_20 = arith.constant 0.000000e+00 : f32
    %54 = vector.broadcast %cst_20 : f32 to vector<8x128xf32>
    %55 = arith.maximumf %53, %54 : vector<8x128xf32>
    %56 = math.sqrt %55 : vector<8x128xf32>
    %cst_21 = arith.constant 1.000000e-07 : f32
    %57 = vector.broadcast %cst_21 : f32 to vector<8x128xf32>
    %58 = arith.cmpf olt, %47, %57 : vector<8x128xf32>
    %cst_22 = arith.constant 1.000000e+00 : f32
    %59 = vector.broadcast %cst_22 : f32 to vector<8x128xf32>
    %60 = arith.select %58, %59, %47 : vector<8x128xi1>, vector<8x128xf32>
    %cst_23 = arith.constant 0.166666672 : f32
    %61 = vector.broadcast %cst_23 : f32 to vector<8x128xf32>
    %62 = arith.mulf %46, %61 : vector<8x128xf32>
    %cst_24 = arith.constant 1.000000e+00 : f32
    %63 = vector.broadcast %cst_24 : f32 to vector<8x128xf32>
    %64 = arith.subf %63, %62 : vector<8x128xf32>
    %cst_25 = arith.constant 2.000000e+00 : f32
    %65 = vector.broadcast %cst_25 : f32 to vector<8x128xf32>
    %66 = arith.mulf %65, %50 : vector<8x128xf32>
    %67 = arith.mulf %66, %56 : vector<8x128xf32>
    %68 = arith.divf %67, %60 : vector<8x128xf32>
    %69 = arith.select %58, %64, %68 : vector<8x128xi1>, vector<8x128xf32>
    %cst_26 = arith.constant 0.0416666679 : f32
    %70 = vector.broadcast %cst_26 : f32 to vector<8x128xf32>
    %71 = arith.mulf %46, %70 : vector<8x128xf32>
    %cst_27 = arith.constant 5.000000e-01 : f32
    %72 = vector.broadcast %cst_27 : f32 to vector<8x128xf32>
    %73 = arith.subf %72, %71 : vector<8x128xf32>
    %cst_28 = arith.constant 2.000000e+00 : f32
    %74 = vector.broadcast %cst_28 : f32 to vector<8x128xf32>
    %75 = arith.mulf %74, %50 : vector<8x128xf32>
    %76 = arith.mulf %75, %50 : vector<8x128xf32>
    %77 = arith.mulf %60, %60 : vector<8x128xf32>
    %78 = arith.divf %76, %77 : vector<8x128xf32>
    %79 = arith.select %58, %73, %78 : vector<8x128xi1>, vector<8x128xf32>
    %80 = arith.mulf %35, %35 : vector<8x128xf32>
    %81 = arith.mulf %38, %38 : vector<8x128xf32>
    %82 = arith.mulf %41, %41 : vector<8x128xf32>
    %83 = arith.mulf %35, %38 : vector<8x128xf32>
    %84 = arith.mulf %35, %41 : vector<8x128xf32>
    %85 = arith.mulf %38, %41 : vector<8x128xf32>
    %86 = arith.addf %81, %82 : vector<8x128xf32>
    %87 = arith.mulf %79, %86 : vector<8x128xf32>
    %cst_29 = arith.constant 1.000000e+00 : f32
    %88 = vector.broadcast %cst_29 : f32 to vector<8x128xf32>
    %89 = arith.subf %88, %87 : vector<8x128xf32>
    %cst_30 = arith.constant 0.000000e+00 : f32
    %90 = vector.broadcast %cst_30 : f32 to vector<8x128xf32>
    %91 = arith.subf %90, %69 : vector<8x128xf32>
    %92 = arith.mulf %91, %41 : vector<8x128xf32>
    %93 = arith.mulf %79, %83 : vector<8x128xf32>
    %94 = arith.addf %92, %93 : vector<8x128xf32>
    %95 = arith.mulf %69, %38 : vector<8x128xf32>
    %96 = arith.mulf %79, %84 : vector<8x128xf32>
    %97 = arith.addf %95, %96 : vector<8x128xf32>
    %98 = arith.mulf %69, %41 : vector<8x128xf32>
    %99 = arith.mulf %79, %83 : vector<8x128xf32>
    %100 = arith.addf %98, %99 : vector<8x128xf32>
    %101 = arith.addf %80, %82 : vector<8x128xf32>
    %102 = arith.mulf %79, %101 : vector<8x128xf32>
    %cst_31 = arith.constant 1.000000e+00 : f32
    %103 = vector.broadcast %cst_31 : f32 to vector<8x128xf32>
    %104 = arith.subf %103, %102 : vector<8x128xf32>
    %cst_32 = arith.constant 0.000000e+00 : f32
    %105 = vector.broadcast %cst_32 : f32 to vector<8x128xf32>
    %106 = arith.subf %105, %69 : vector<8x128xf32>
    %107 = arith.mulf %106, %35 : vector<8x128xf32>
    %108 = arith.mulf %79, %85 : vector<8x128xf32>
    %109 = arith.addf %107, %108 : vector<8x128xf32>
    %cst_33 = arith.constant 0.000000e+00 : f32
    %110 = vector.broadcast %cst_33 : f32 to vector<8x128xf32>
    %111 = arith.subf %110, %69 : vector<8x128xf32>
    %112 = arith.mulf %111, %38 : vector<8x128xf32>
    %113 = arith.mulf %79, %84 : vector<8x128xf32>
    %114 = arith.addf %112, %113 : vector<8x128xf32>
    %115 = arith.mulf %69, %35 : vector<8x128xf32>
    %116 = arith.mulf %79, %85 : vector<8x128xf32>
    %117 = arith.addf %115, %116 : vector<8x128xf32>
    %118 = arith.addf %80, %81 : vector<8x128xf32>
    %119 = arith.mulf %79, %118 : vector<8x128xf32>
    %cst_34 = arith.constant 1.000000e+00 : f32
    %120 = vector.broadcast %cst_34 : f32 to vector<8x128xf32>
    %121 = arith.subf %120, %119 : vector<8x128xf32>
    %c3 = arith.constant 3 : index
    %c0_35 = arith.constant 0 : index
    %122 = arith.index_cast %2 : i32 to index
    %123 = vector.load %arg1[%c3, %c0_35, %122] : memref<24x8x128xf32, #tpu.memory_space<vmem>>, vector<1x8x128xf32>
    %124 = vector.shape_cast %123 : vector<1x8x128xf32> to vector<8x128xf32>
    %c4 = arith.constant 4 : index
    %c0_36 = arith.constant 0 : index
    %125 = arith.index_cast %2 : i32 to index
    %126 = vector.load %arg1[%c4, %c0_36, %125] : memref<24x8x128xf32, #tpu.memory_space<vmem>>, vector<1x8x128xf32>
    %127 = vector.shape_cast %126 : vector<1x8x128xf32> to vector<8x128xf32>
    %c5 = arith.constant 5 : index
    %c0_37 = arith.constant 0 : index
    %128 = arith.index_cast %2 : i32 to index
    %129 = vector.load %arg1[%c5, %c0_37, %128] : memref<24x8x128xf32, #tpu.memory_space<vmem>>, vector<1x8x128xf32>
    %130 = vector.shape_cast %129 : vector<1x8x128xf32> to vector<8x128xf32>
    %131 = arith.mulf %124, %124 : vector<8x128xf32>
    %132 = arith.mulf %127, %127 : vector<8x128xf32>
    %133 = arith.addf %131, %132 : vector<8x128xf32>
    %134 = arith.mulf %130, %130 : vector<8x128xf32>
    %135 = arith.addf %133, %134 : vector<8x128xf32>
    %136 = math.sqrt %135 : vector<8x128xf32>
    %cst_38 = arith.constant 5.000000e-01 : f32
    %137 = vector.broadcast %cst_38 : f32 to vector<8x128xf32>
    %138 = arith.mulf %137, %136 : vector<8x128xf32>
    %139 = math.sin %138 : vector<8x128xf32>
    %140 = arith.mulf %139, %139 : vector<8x128xf32>
    %cst_39 = arith.constant 1.000000e+00 : f32
    %141 = vector.broadcast %cst_39 : f32 to vector<8x128xf32>
    %142 = arith.subf %141, %140 : vector<8x128xf32>
    %cst_40 = arith.constant 0.000000e+00 : f32
    %143 = vector.broadcast %cst_40 : f32 to vector<8x128xf32>
    %144 = arith.maximumf %142, %143 : vector<8x128xf32>
    %145 = math.sqrt %144 : vector<8x128xf32>
    %cst_41 = arith.constant 1.000000e-07 : f32
    %146 = vector.broadcast %cst_41 : f32 to vector<8x128xf32>
    %147 = arith.cmpf olt, %136, %146 : vector<8x128xf32>
    %cst_42 = arith.constant 1.000000e+00 : f32
    %148 = vector.broadcast %cst_42 : f32 to vector<8x128xf32>
    %149 = arith.select %147, %148, %136 : vector<8x128xi1>, vector<8x128xf32>
    %cst_43 = arith.constant 0.166666672 : f32
    %150 = vector.broadcast %cst_43 : f32 to vector<8x128xf32>
    %151 = arith.mulf %135, %150 : vector<8x128xf32>
    %cst_44 = arith.constant 1.000000e+00 : f32
    %152 = vector.broadcast %cst_44 : f32 to vector<8x128xf32>
    %153 = arith.subf %152, %151 : vector<8x128xf32>
    %cst_45 = arith.constant 2.000000e+00 : f32
    %154 = vector.broadcast %cst_45 : f32 to vector<8x128xf32>
    %155 = arith.mulf %154, %139 : vector<8x128xf32>
    %156 = arith.mulf %155, %145 : vector<8x128xf32>
    %157 = arith.divf %156, %149 : vector<8x128xf32>
    %158 = arith.select %147, %153, %157 : vector<8x128xi1>, vector<8x128xf32>
    %cst_46 = arith.constant 0.0416666679 : f32
    %159 = vector.broadcast %cst_46 : f32 to vector<8x128xf32>
    %160 = arith.mulf %135, %159 : vector<8x128xf32>
    %cst_47 = arith.constant 5.000000e-01 : f32
    %161 = vector.broadcast %cst_47 : f32 to vector<8x128xf32>
    %162 = arith.subf %161, %160 : vector<8x128xf32>
    %cst_48 = arith.constant 2.000000e+00 : f32
    %163 = vector.broadcast %cst_48 : f32 to vector<8x128xf32>
    %164 = arith.mulf %163, %139 : vector<8x128xf32>
    %165 = arith.mulf %164, %139 : vector<8x128xf32>
    %166 = arith.mulf %149, %149 : vector<8x128xf32>
    %167 = arith.divf %165, %166 : vector<8x128xf32>
    %168 = arith.select %147, %162, %167 : vector<8x128xi1>, vector<8x128xf32>
    %169 = arith.mulf %124, %124 : vector<8x128xf32>
    %170 = arith.mulf %127, %127 : vector<8x128xf32>
    %171 = arith.mulf %130, %130 : vector<8x128xf32>
    %172 = arith.mulf %124, %127 : vector<8x128xf32>
    %173 = arith.mulf %124, %130 : vector<8x128xf32>
    %174 = arith.mulf %127, %130 : vector<8x128xf32>
    %175 = arith.addf %170, %171 : vector<8x128xf32>
    %176 = arith.mulf %168, %175 : vector<8x128xf32>
    %cst_49 = arith.constant 1.000000e+00 : f32
    %177 = vector.broadcast %cst_49 : f32 to vector<8x128xf32>
    %178 = arith.subf %177, %176 : vector<8x128xf32>
    %cst_50 = arith.constant 0.000000e+00 : f32
    %179 = vector.broadcast %cst_50 : f32 to vector<8x128xf32>
    %180 = arith.subf %179, %158 : vector<8x128xf32>
    %181 = arith.mulf %180, %130 : vector<8x128xf32>
    %182 = arith.mulf %168, %172 : vector<8x128xf32>
    %183 = arith.addf %181, %182 : vector<8x128xf32>
    %184 = arith.mulf %158, %127 : vector<8x128xf32>
    %185 = arith.mulf %168, %173 : vector<8x128xf32>
    %186 = arith.addf %184, %185 : vector<8x128xf32>
    %187 = arith.mulf %158, %130 : vector<8x128xf32>
    %188 = arith.mulf %168, %172 : vector<8x128xf32>
    %189 = arith.addf %187, %188 : vector<8x128xf32>
    %190 = arith.addf %169, %171 : vector<8x128xf32>
    %191 = arith.mulf %168, %190 : vector<8x128xf32>
    %cst_51 = arith.constant 1.000000e+00 : f32
    %192 = vector.broadcast %cst_51 : f32 to vector<8x128xf32>
    %193 = arith.subf %192, %191 : vector<8x128xf32>
    %cst_52 = arith.constant 0.000000e+00 : f32
    %194 = vector.broadcast %cst_52 : f32 to vector<8x128xf32>
    %195 = arith.subf %194, %158 : vector<8x128xf32>
    %196 = arith.mulf %195, %124 : vector<8x128xf32>
    %197 = arith.mulf %168, %174 : vector<8x128xf32>
    %198 = arith.addf %196, %197 : vector<8x128xf32>
    %cst_53 = arith.constant 0.000000e+00 : f32
    %199 = vector.broadcast %cst_53 : f32 to vector<8x128xf32>
    %200 = arith.subf %199, %158 : vector<8x128xf32>
    %201 = arith.mulf %200, %127 : vector<8x128xf32>
    %202 = arith.mulf %168, %173 : vector<8x128xf32>
    %203 = arith.addf %201, %202 : vector<8x128xf32>
    %204 = arith.mulf %158, %124 : vector<8x128xf32>
    %205 = arith.mulf %168, %174 : vector<8x128xf32>
    %206 = arith.addf %204, %205 : vector<8x128xf32>
    %207 = arith.addf %169, %170 : vector<8x128xf32>
    %208 = arith.mulf %168, %207 : vector<8x128xf32>
    %cst_54 = arith.constant 1.000000e+00 : f32
    %209 = vector.broadcast %cst_54 : f32 to vector<8x128xf32>
    %210 = arith.subf %209, %208 : vector<8x128xf32>
    %211 = arith.mulf %89, %178 : vector<8x128xf32>
    %cst_55 = arith.constant 0.000000e+00 : f32
    %212 = vector.broadcast %cst_55 : f32 to vector<8x128xf32>
    %213 = arith.addf %212, %211 : vector<8x128xf32>
    %214 = arith.mulf %94, %189 : vector<8x128xf32>
    %215 = arith.addf %213, %214 : vector<8x128xf32>
    %216 = arith.mulf %97, %203 : vector<8x128xf32>
    %217 = arith.addf %215, %216 : vector<8x128xf32>
    %218 = arith.mulf %89, %183 : vector<8x128xf32>
    %cst_56 = arith.constant 0.000000e+00 : f32
    %219 = vector.broadcast %cst_56 : f32 to vector<8x128xf32>
    %220 = arith.addf %219, %218 : vector<8x128xf32>
    %221 = arith.mulf %94, %193 : vector<8x128xf32>
    %222 = arith.addf %220, %221 : vector<8x128xf32>
    %223 = arith.mulf %97, %206 : vector<8x128xf32>
    %224 = arith.addf %222, %223 : vector<8x128xf32>
    %225 = arith.mulf %89, %186 : vector<8x128xf32>
    %cst_57 = arith.constant 0.000000e+00 : f32
    %226 = vector.broadcast %cst_57 : f32 to vector<8x128xf32>
    %227 = arith.addf %226, %225 : vector<8x128xf32>
    %228 = arith.mulf %94, %198 : vector<8x128xf32>
    %229 = arith.addf %227, %228 : vector<8x128xf32>
    %230 = arith.mulf %97, %210 : vector<8x128xf32>
    %231 = arith.addf %229, %230 : vector<8x128xf32>
    %232 = arith.mulf %100, %178 : vector<8x128xf32>
    %cst_58 = arith.constant 0.000000e+00 : f32
    %233 = vector.broadcast %cst_58 : f32 to vector<8x128xf32>
    %234 = arith.addf %233, %232 : vector<8x128xf32>
    %235 = arith.mulf %104, %189 : vector<8x128xf32>
    %236 = arith.addf %234, %235 : vector<8x128xf32>
    %237 = arith.mulf %109, %203 : vector<8x128xf32>
    %238 = arith.addf %236, %237 : vector<8x128xf32>
    %239 = arith.mulf %100, %183 : vector<8x128xf32>
    %cst_59 = arith.constant 0.000000e+00 : f32
    %240 = vector.broadcast %cst_59 : f32 to vector<8x128xf32>
    %241 = arith.addf %240, %239 : vector<8x128xf32>
    %242 = arith.mulf %104, %193 : vector<8x128xf32>
    %243 = arith.addf %241, %242 : vector<8x128xf32>
    %244 = arith.mulf %109, %206 : vector<8x128xf32>
    %245 = arith.addf %243, %244 : vector<8x128xf32>
    %246 = arith.mulf %100, %186 : vector<8x128xf32>
    %cst_60 = arith.constant 0.000000e+00 : f32
    %247 = vector.broadcast %cst_60 : f32 to vector<8x128xf32>
    %248 = arith.addf %247, %246 : vector<8x128xf32>
    %249 = arith.mulf %104, %198 : vector<8x128xf32>
    %250 = arith.addf %248, %249 : vector<8x128xf32>
    %251 = arith.mulf %109, %210 : vector<8x128xf32>
    %252 = arith.addf %250, %251 : vector<8x128xf32>
    %253 = arith.mulf %114, %178 : vector<8x128xf32>
    %cst_61 = arith.constant 0.000000e+00 : f32
    %254 = vector.broadcast %cst_61 : f32 to vector<8x128xf32>
    %255 = arith.addf %254, %253 : vector<8x128xf32>
    %256 = arith.mulf %117, %189 : vector<8x128xf32>
    %257 = arith.addf %255, %256 : vector<8x128xf32>
    %258 = arith.mulf %121, %203 : vector<8x128xf32>
    %259 = arith.addf %257, %258 : vector<8x128xf32>
    %260 = arith.mulf %114, %183 : vector<8x128xf32>
    %cst_62 = arith.constant 0.000000e+00 : f32
    %261 = vector.broadcast %cst_62 : f32 to vector<8x128xf32>
    %262 = arith.addf %261, %260 : vector<8x128xf32>
    %263 = arith.mulf %117, %193 : vector<8x128xf32>
    %264 = arith.addf %262, %263 : vector<8x128xf32>
    %265 = arith.mulf %121, %206 : vector<8x128xf32>
    %266 = arith.addf %264, %265 : vector<8x128xf32>
    %267 = arith.mulf %114, %186 : vector<8x128xf32>
    %cst_63 = arith.constant 0.000000e+00 : f32
    %268 = vector.broadcast %cst_63 : f32 to vector<8x128xf32>
    %269 = arith.addf %268, %267 : vector<8x128xf32>
    %270 = arith.mulf %117, %198 : vector<8x128xf32>
    %271 = arith.addf %269, %270 : vector<8x128xf32>
    %272 = arith.mulf %121, %210 : vector<8x128xf32>
    %273 = arith.addf %271, %272 : vector<8x128xf32>
    %c6 = arith.constant 6 : index
    %c0_64 = arith.constant 0 : index
    %274 = arith.index_cast %2 : i32 to index
    %275 = vector.load %arg1[%c6, %c0_64, %274] : memref<24x8x128xf32, #tpu.memory_space<vmem>>, vector<1x8x128xf32>
    %276 = vector.shape_cast %275 : vector<1x8x128xf32> to vector<8x128xf32>
    %c7 = arith.constant 7 : index
    %c0_65 = arith.constant 0 : index
    %277 = arith.index_cast %2 : i32 to index
    %278 = vector.load %arg1[%c7, %c0_65, %277] : memref<24x8x128xf32, #tpu.memory_space<vmem>>, vector<1x8x128xf32>
    %279 = vector.shape_cast %278 : vector<1x8x128xf32> to vector<8x128xf32>
    %c8 = arith.constant 8 : index
    %c0_66 = arith.constant 0 : index
    %280 = arith.index_cast %2 : i32 to index
    %281 = vector.load %arg1[%c8, %c0_66, %280] : memref<24x8x128xf32, #tpu.memory_space<vmem>>, vector<1x8x128xf32>
    %282 = vector.shape_cast %281 : vector<1x8x128xf32> to vector<8x128xf32>
    %283 = arith.mulf %276, %276 : vector<8x128xf32>
    %284 = arith.mulf %279, %279 : vector<8x128xf32>
    %285 = arith.addf %283, %284 : vector<8x128xf32>
    %286 = arith.mulf %282, %282 : vector<8x128xf32>
    %287 = arith.addf %285, %286 : vector<8x128xf32>
    %288 = math.sqrt %287 : vector<8x128xf32>
    %cst_67 = arith.constant 5.000000e-01 : f32
    %289 = vector.broadcast %cst_67 : f32 to vector<8x128xf32>
    %290 = arith.mulf %289, %288 : vector<8x128xf32>
    %291 = math.sin %290 : vector<8x128xf32>
    %292 = arith.mulf %291, %291 : vector<8x128xf32>
    %cst_68 = arith.constant 1.000000e+00 : f32
    %293 = vector.broadcast %cst_68 : f32 to vector<8x128xf32>
    %294 = arith.subf %293, %292 : vector<8x128xf32>
    %cst_69 = arith.constant 0.000000e+00 : f32
    %295 = vector.broadcast %cst_69 : f32 to vector<8x128xf32>
    %296 = arith.maximumf %294, %295 : vector<8x128xf32>
    %297 = math.sqrt %296 : vector<8x128xf32>
    %cst_70 = arith.constant 1.000000e-07 : f32
    %298 = vector.broadcast %cst_70 : f32 to vector<8x128xf32>
    %299 = arith.cmpf olt, %288, %298 : vector<8x128xf32>
    %cst_71 = arith.constant 1.000000e+00 : f32
    %300 = vector.broadcast %cst_71 : f32 to vector<8x128xf32>
    %301 = arith.select %299, %300, %288 : vector<8x128xi1>, vector<8x128xf32>
    %cst_72 = arith.constant 0.166666672 : f32
    %302 = vector.broadcast %cst_72 : f32 to vector<8x128xf32>
    %303 = arith.mulf %287, %302 : vector<8x128xf32>
    %cst_73 = arith.constant 1.000000e+00 : f32
    %304 = vector.broadcast %cst_73 : f32 to vector<8x128xf32>
    %305 = arith.subf %304, %303 : vector<8x128xf32>
    %cst_74 = arith.constant 2.000000e+00 : f32
    %306 = vector.broadcast %cst_74 : f32 to vector<8x128xf32>
    %307 = arith.mulf %306, %291 : vector<8x128xf32>
    %308 = arith.mulf %307, %297 : vector<8x128xf32>
    %309 = arith.divf %308, %301 : vector<8x128xf32>
    %310 = arith.select %299, %305, %309 : vector<8x128xi1>, vector<8x128xf32>
    %cst_75 = arith.constant 0.0416666679 : f32
    %311 = vector.broadcast %cst_75 : f32 to vector<8x128xf32>
    %312 = arith.mulf %287, %311 : vector<8x128xf32>
    %cst_76 = arith.constant 5.000000e-01 : f32
    %313 = vector.broadcast %cst_76 : f32 to vector<8x128xf32>
    %314 = arith.subf %313, %312 : vector<8x128xf32>
    %cst_77 = arith.constant 2.000000e+00 : f32
    %315 = vector.broadcast %cst_77 : f32 to vector<8x128xf32>
    %316 = arith.mulf %315, %291 : vector<8x128xf32>
    %317 = arith.mulf %316, %291 : vector<8x128xf32>
    %318 = arith.mulf %301, %301 : vector<8x128xf32>
    %319 = arith.divf %317, %318 : vector<8x128xf32>
    %320 = arith.select %299, %314, %319 : vector<8x128xi1>, vector<8x128xf32>
    %321 = arith.mulf %276, %276 : vector<8x128xf32>
    %322 = arith.mulf %279, %279 : vector<8x128xf32>
    %323 = arith.mulf %282, %282 : vector<8x128xf32>
    %324 = arith.mulf %276, %279 : vector<8x128xf32>
    %325 = arith.mulf %276, %282 : vector<8x128xf32>
    %326 = arith.mulf %279, %282 : vector<8x128xf32>
    %327 = arith.addf %322, %323 : vector<8x128xf32>
    %328 = arith.mulf %320, %327 : vector<8x128xf32>
    %cst_78 = arith.constant 1.000000e+00 : f32
    %329 = vector.broadcast %cst_78 : f32 to vector<8x128xf32>
    %330 = arith.subf %329, %328 : vector<8x128xf32>
    %cst_79 = arith.constant 0.000000e+00 : f32
    %331 = vector.broadcast %cst_79 : f32 to vector<8x128xf32>
    %332 = arith.subf %331, %310 : vector<8x128xf32>
    %333 = arith.mulf %332, %282 : vector<8x128xf32>
    %334 = arith.mulf %320, %324 : vector<8x128xf32>
    %335 = arith.addf %333, %334 : vector<8x128xf32>
    %336 = arith.mulf %310, %279 : vector<8x128xf32>
    %337 = arith.mulf %320, %325 : vector<8x128xf32>
    %338 = arith.addf %336, %337 : vector<8x128xf32>
    %339 = arith.mulf %310, %282 : vector<8x128xf32>
    %340 = arith.mulf %320, %324 : vector<8x128xf32>
    %341 = arith.addf %339, %340 : vector<8x128xf32>
    %342 = arith.addf %321, %323 : vector<8x128xf32>
    %343 = arith.mulf %320, %342 : vector<8x128xf32>
    %cst_80 = arith.constant 1.000000e+00 : f32
    %344 = vector.broadcast %cst_80 : f32 to vector<8x128xf32>
    %345 = arith.subf %344, %343 : vector<8x128xf32>
    %cst_81 = arith.constant 0.000000e+00 : f32
    %346 = vector.broadcast %cst_81 : f32 to vector<8x128xf32>
    %347 = arith.subf %346, %310 : vector<8x128xf32>
    %348 = arith.mulf %347, %276 : vector<8x128xf32>
    %349 = arith.mulf %320, %326 : vector<8x128xf32>
    %350 = arith.addf %348, %349 : vector<8x128xf32>
    %cst_82 = arith.constant 0.000000e+00 : f32
    %351 = vector.broadcast %cst_82 : f32 to vector<8x128xf32>
    %352 = arith.subf %351, %310 : vector<8x128xf32>
    %353 = arith.mulf %352, %279 : vector<8x128xf32>
    %354 = arith.mulf %320, %325 : vector<8x128xf32>
    %355 = arith.addf %353, %354 : vector<8x128xf32>
    %356 = arith.mulf %310, %276 : vector<8x128xf32>
    %357 = arith.mulf %320, %326 : vector<8x128xf32>
    %358 = arith.addf %356, %357 : vector<8x128xf32>
    %359 = arith.addf %321, %322 : vector<8x128xf32>
    %360 = arith.mulf %320, %359 : vector<8x128xf32>
    %cst_83 = arith.constant 1.000000e+00 : f32
    %361 = vector.broadcast %cst_83 : f32 to vector<8x128xf32>
    %362 = arith.subf %361, %360 : vector<8x128xf32>
    %363 = arith.mulf %217, %330 : vector<8x128xf32>
    %cst_84 = arith.constant 0.000000e+00 : f32
    %364 = vector.broadcast %cst_84 : f32 to vector<8x128xf32>
    %365 = arith.addf %364, %363 : vector<8x128xf32>
    %366 = arith.mulf %224, %341 : vector<8x128xf32>
    %367 = arith.addf %365, %366 : vector<8x128xf32>
    %368 = arith.mulf %231, %355 : vector<8x128xf32>
    %369 = arith.addf %367, %368 : vector<8x128xf32>
    %370 = arith.mulf %217, %335 : vector<8x128xf32>
    %cst_85 = arith.constant 0.000000e+00 : f32
    %371 = vector.broadcast %cst_85 : f32 to vector<8x128xf32>
    %372 = arith.addf %371, %370 : vector<8x128xf32>
    %373 = arith.mulf %224, %345 : vector<8x128xf32>
    %374 = arith.addf %372, %373 : vector<8x128xf32>
    %375 = arith.mulf %231, %358 : vector<8x128xf32>
    %376 = arith.addf %374, %375 : vector<8x128xf32>
    %377 = arith.mulf %217, %338 : vector<8x128xf32>
    %cst_86 = arith.constant 0.000000e+00 : f32
    %378 = vector.broadcast %cst_86 : f32 to vector<8x128xf32>
    %379 = arith.addf %378, %377 : vector<8x128xf32>
    %380 = arith.mulf %224, %350 : vector<8x128xf32>
    %381 = arith.addf %379, %380 : vector<8x128xf32>
    %382 = arith.mulf %231, %362 : vector<8x128xf32>
    %383 = arith.addf %381, %382 : vector<8x128xf32>
    %384 = arith.mulf %238, %330 : vector<8x128xf32>
    %cst_87 = arith.constant 0.000000e+00 : f32
    %385 = vector.broadcast %cst_87 : f32 to vector<8x128xf32>
    %386 = arith.addf %385, %384 : vector<8x128xf32>
    %387 = arith.mulf %245, %341 : vector<8x128xf32>
    %388 = arith.addf %386, %387 : vector<8x128xf32>
    %389 = arith.mulf %252, %355 : vector<8x128xf32>
    %390 = arith.addf %388, %389 : vector<8x128xf32>
    %391 = arith.mulf %238, %335 : vector<8x128xf32>
    %cst_88 = arith.constant 0.000000e+00 : f32
    %392 = vector.broadcast %cst_88 : f32 to vector<8x128xf32>
    %393 = arith.addf %392, %391 : vector<8x128xf32>
    %394 = arith.mulf %245, %345 : vector<8x128xf32>
    %395 = arith.addf %393, %394 : vector<8x128xf32>
    %396 = arith.mulf %252, %358 : vector<8x128xf32>
    %397 = arith.addf %395, %396 : vector<8x128xf32>
    %398 = arith.mulf %238, %338 : vector<8x128xf32>
    %cst_89 = arith.constant 0.000000e+00 : f32
    %399 = vector.broadcast %cst_89 : f32 to vector<8x128xf32>
    %400 = arith.addf %399, %398 : vector<8x128xf32>
    %401 = arith.mulf %245, %350 : vector<8x128xf32>
    %402 = arith.addf %400, %401 : vector<8x128xf32>
    %403 = arith.mulf %252, %362 : vector<8x128xf32>
    %404 = arith.addf %402, %403 : vector<8x128xf32>
    %405 = arith.mulf %259, %330 : vector<8x128xf32>
    %cst_90 = arith.constant 0.000000e+00 : f32
    %406 = vector.broadcast %cst_90 : f32 to vector<8x128xf32>
    %407 = arith.addf %406, %405 : vector<8x128xf32>
    %408 = arith.mulf %266, %341 : vector<8x128xf32>
    %409 = arith.addf %407, %408 : vector<8x128xf32>
    %410 = arith.mulf %273, %355 : vector<8x128xf32>
    %411 = arith.addf %409, %410 : vector<8x128xf32>
    %412 = arith.mulf %259, %335 : vector<8x128xf32>
    %cst_91 = arith.constant 0.000000e+00 : f32
    %413 = vector.broadcast %cst_91 : f32 to vector<8x128xf32>
    %414 = arith.addf %413, %412 : vector<8x128xf32>
    %415 = arith.mulf %266, %345 : vector<8x128xf32>
    %416 = arith.addf %414, %415 : vector<8x128xf32>
    %417 = arith.mulf %273, %358 : vector<8x128xf32>
    %418 = arith.addf %416, %417 : vector<8x128xf32>
    %419 = arith.mulf %259, %338 : vector<8x128xf32>
    %cst_92 = arith.constant 0.000000e+00 : f32
    %420 = vector.broadcast %cst_92 : f32 to vector<8x128xf32>
    %421 = arith.addf %420, %419 : vector<8x128xf32>
    %422 = arith.mulf %266, %350 : vector<8x128xf32>
    %423 = arith.addf %421, %422 : vector<8x128xf32>
    %424 = arith.mulf %273, %362 : vector<8x128xf32>
    %425 = arith.addf %423, %424 : vector<8x128xf32>
    %c9 = arith.constant 9 : index
    %c0_93 = arith.constant 0 : index
    %426 = arith.index_cast %2 : i32 to index
    %427 = vector.load %arg1[%c9, %c0_93, %426] : memref<24x8x128xf32, #tpu.memory_space<vmem>>, vector<1x8x128xf32>
    %428 = vector.shape_cast %427 : vector<1x8x128xf32> to vector<8x128xf32>
    %c10 = arith.constant 10 : index
    %c0_94 = arith.constant 0 : index
    %429 = arith.index_cast %2 : i32 to index
    %430 = vector.load %arg1[%c10, %c0_94, %429] : memref<24x8x128xf32, #tpu.memory_space<vmem>>, vector<1x8x128xf32>
    %431 = vector.shape_cast %430 : vector<1x8x128xf32> to vector<8x128xf32>
    %c11 = arith.constant 11 : index
    %c0_95 = arith.constant 0 : index
    %432 = arith.index_cast %2 : i32 to index
    %433 = vector.load %arg1[%c11, %c0_95, %432] : memref<24x8x128xf32, #tpu.memory_space<vmem>>, vector<1x8x128xf32>
    %434 = vector.shape_cast %433 : vector<1x8x128xf32> to vector<8x128xf32>
    %435 = arith.mulf %428, %428 : vector<8x128xf32>
    %436 = arith.mulf %431, %431 : vector<8x128xf32>
    %437 = arith.addf %435, %436 : vector<8x128xf32>
    %438 = arith.mulf %434, %434 : vector<8x128xf32>
    %439 = arith.addf %437, %438 : vector<8x128xf32>
    %440 = math.sqrt %439 : vector<8x128xf32>
    %cst_96 = arith.constant 5.000000e-01 : f32
    %441 = vector.broadcast %cst_96 : f32 to vector<8x128xf32>
    %442 = arith.mulf %441, %440 : vector<8x128xf32>
    %443 = math.sin %442 : vector<8x128xf32>
    %444 = arith.mulf %443, %443 : vector<8x128xf32>
    %cst_97 = arith.constant 1.000000e+00 : f32
    %445 = vector.broadcast %cst_97 : f32 to vector<8x128xf32>
    %446 = arith.subf %445, %444 : vector<8x128xf32>
    %cst_98 = arith.constant 0.000000e+00 : f32
    %447 = vector.broadcast %cst_98 : f32 to vector<8x128xf32>
    %448 = arith.maximumf %446, %447 : vector<8x128xf32>
    %449 = math.sqrt %448 : vector<8x128xf32>
    %cst_99 = arith.constant 1.000000e-07 : f32
    %450 = vector.broadcast %cst_99 : f32 to vector<8x128xf32>
    %451 = arith.cmpf olt, %440, %450 : vector<8x128xf32>
    %cst_100 = arith.constant 1.000000e+00 : f32
    %452 = vector.broadcast %cst_100 : f32 to vector<8x128xf32>
    %453 = arith.select %451, %452, %440 : vector<8x128xi1>, vector<8x128xf32>
    %cst_101 = arith.constant 0.166666672 : f32
    %454 = vector.broadcast %cst_101 : f32 to vector<8x128xf32>
    %455 = arith.mulf %439, %454 : vector<8x128xf32>
    %cst_102 = arith.constant 1.000000e+00 : f32
    %456 = vector.broadcast %cst_102 : f32 to vector<8x128xf32>
    %457 = arith.subf %456, %455 : vector<8x128xf32>
    %cst_103 = arith.constant 2.000000e+00 : f32
    %458 = vector.broadcast %cst_103 : f32 to vector<8x128xf32>
    %459 = arith.mulf %458, %443 : vector<8x128xf32>
    %460 = arith.mulf %459, %449 : vector<8x128xf32>
    %461 = arith.divf %460, %453 : vector<8x128xf32>
    %462 = arith.select %451, %457, %461 : vector<8x128xi1>, vector<8x128xf32>
    %cst_104 = arith.constant 0.0416666679 : f32
    %463 = vector.broadcast %cst_104 : f32 to vector<8x128xf32>
    %464 = arith.mulf %439, %463 : vector<8x128xf32>
    %cst_105 = arith.constant 5.000000e-01 : f32
    %465 = vector.broadcast %cst_105 : f32 to vector<8x128xf32>
    %466 = arith.subf %465, %464 : vector<8x128xf32>
    %cst_106 = arith.constant 2.000000e+00 : f32
    %467 = vector.broadcast %cst_106 : f32 to vector<8x128xf32>
    %468 = arith.mulf %467, %443 : vector<8x128xf32>
    %469 = arith.mulf %468, %443 : vector<8x128xf32>
    %470 = arith.mulf %453, %453 : vector<8x128xf32>
    %471 = arith.divf %469, %470 : vector<8x128xf32>
    %472 = arith.select %451, %466, %471 : vector<8x128xi1>, vector<8x128xf32>
    %473 = arith.mulf %428, %428 : vector<8x128xf32>
    %474 = arith.mulf %431, %431 : vector<8x128xf32>
    %475 = arith.mulf %434, %434 : vector<8x128xf32>
    %476 = arith.mulf %428, %431 : vector<8x128xf32>
    %477 = arith.mulf %428, %434 : vector<8x128xf32>
    %478 = arith.mulf %431, %434 : vector<8x128xf32>
    %479 = arith.addf %474, %475 : vector<8x128xf32>
    %480 = arith.mulf %472, %479 : vector<8x128xf32>
    %cst_107 = arith.constant 1.000000e+00 : f32
    %481 = vector.broadcast %cst_107 : f32 to vector<8x128xf32>
    %482 = arith.subf %481, %480 : vector<8x128xf32>
    %cst_108 = arith.constant 0.000000e+00 : f32
    %483 = vector.broadcast %cst_108 : f32 to vector<8x128xf32>
    %484 = arith.subf %483, %462 : vector<8x128xf32>
    %485 = arith.mulf %484, %434 : vector<8x128xf32>
    %486 = arith.mulf %472, %476 : vector<8x128xf32>
    %487 = arith.addf %485, %486 : vector<8x128xf32>
    %488 = arith.mulf %462, %431 : vector<8x128xf32>
    %489 = arith.mulf %472, %477 : vector<8x128xf32>
    %490 = arith.addf %488, %489 : vector<8x128xf32>
    %491 = arith.mulf %462, %434 : vector<8x128xf32>
    %492 = arith.mulf %472, %476 : vector<8x128xf32>
    %493 = arith.addf %491, %492 : vector<8x128xf32>
    %494 = arith.addf %473, %475 : vector<8x128xf32>
    %495 = arith.mulf %472, %494 : vector<8x128xf32>
    %cst_109 = arith.constant 1.000000e+00 : f32
    %496 = vector.broadcast %cst_109 : f32 to vector<8x128xf32>
    %497 = arith.subf %496, %495 : vector<8x128xf32>
    %cst_110 = arith.constant 0.000000e+00 : f32
    %498 = vector.broadcast %cst_110 : f32 to vector<8x128xf32>
    %499 = arith.subf %498, %462 : vector<8x128xf32>
    %500 = arith.mulf %499, %428 : vector<8x128xf32>
    %501 = arith.mulf %472, %478 : vector<8x128xf32>
    %502 = arith.addf %500, %501 : vector<8x128xf32>
    %cst_111 = arith.constant 0.000000e+00 : f32
    %503 = vector.broadcast %cst_111 : f32 to vector<8x128xf32>
    %504 = arith.subf %503, %462 : vector<8x128xf32>
    %505 = arith.mulf %504, %431 : vector<8x128xf32>
    %506 = arith.mulf %472, %477 : vector<8x128xf32>
    %507 = arith.addf %505, %506 : vector<8x128xf32>
    %508 = arith.mulf %462, %428 : vector<8x128xf32>
    %509 = arith.mulf %472, %478 : vector<8x128xf32>
    %510 = arith.addf %508, %509 : vector<8x128xf32>
    %511 = arith.addf %473, %474 : vector<8x128xf32>
    %512 = arith.mulf %472, %511 : vector<8x128xf32>
    %cst_112 = arith.constant 1.000000e+00 : f32
    %513 = vector.broadcast %cst_112 : f32 to vector<8x128xf32>
    %514 = arith.subf %513, %512 : vector<8x128xf32>
    %515 = arith.mulf %369, %482 : vector<8x128xf32>
    %cst_113 = arith.constant 0.000000e+00 : f32
    %516 = vector.broadcast %cst_113 : f32 to vector<8x128xf32>
    %517 = arith.addf %516, %515 : vector<8x128xf32>
    %518 = arith.mulf %376, %493 : vector<8x128xf32>
    %519 = arith.addf %517, %518 : vector<8x128xf32>
    %520 = arith.mulf %383, %507 : vector<8x128xf32>
    %521 = arith.addf %519, %520 : vector<8x128xf32>
    %522 = arith.mulf %369, %487 : vector<8x128xf32>
    %cst_114 = arith.constant 0.000000e+00 : f32
    %523 = vector.broadcast %cst_114 : f32 to vector<8x128xf32>
    %524 = arith.addf %523, %522 : vector<8x128xf32>
    %525 = arith.mulf %376, %497 : vector<8x128xf32>
    %526 = arith.addf %524, %525 : vector<8x128xf32>
    %527 = arith.mulf %383, %510 : vector<8x128xf32>
    %528 = arith.addf %526, %527 : vector<8x128xf32>
    %529 = arith.mulf %369, %490 : vector<8x128xf32>
    %cst_115 = arith.constant 0.000000e+00 : f32
    %530 = vector.broadcast %cst_115 : f32 to vector<8x128xf32>
    %531 = arith.addf %530, %529 : vector<8x128xf32>
    %532 = arith.mulf %376, %502 : vector<8x128xf32>
    %533 = arith.addf %531, %532 : vector<8x128xf32>
    %534 = arith.mulf %383, %514 : vector<8x128xf32>
    %535 = arith.addf %533, %534 : vector<8x128xf32>
    %536 = arith.mulf %390, %482 : vector<8x128xf32>
    %cst_116 = arith.constant 0.000000e+00 : f32
    %537 = vector.broadcast %cst_116 : f32 to vector<8x128xf32>
    %538 = arith.addf %537, %536 : vector<8x128xf32>
    %539 = arith.mulf %397, %493 : vector<8x128xf32>
    %540 = arith.addf %538, %539 : vector<8x128xf32>
    %541 = arith.mulf %404, %507 : vector<8x128xf32>
    %542 = arith.addf %540, %541 : vector<8x128xf32>
    %543 = arith.mulf %390, %487 : vector<8x128xf32>
    %cst_117 = arith.constant 0.000000e+00 : f32
    %544 = vector.broadcast %cst_117 : f32 to vector<8x128xf32>
    %545 = arith.addf %544, %543 : vector<8x128xf32>
    %546 = arith.mulf %397, %497 : vector<8x128xf32>
    %547 = arith.addf %545, %546 : vector<8x128xf32>
    %548 = arith.mulf %404, %510 : vector<8x128xf32>
    %549 = arith.addf %547, %548 : vector<8x128xf32>
    %550 = arith.mulf %390, %490 : vector<8x128xf32>
    %cst_118 = arith.constant 0.000000e+00 : f32
    %551 = vector.broadcast %cst_118 : f32 to vector<8x128xf32>
    %552 = arith.addf %551, %550 : vector<8x128xf32>
    %553 = arith.mulf %397, %502 : vector<8x128xf32>
    %554 = arith.addf %552, %553 : vector<8x128xf32>
    %555 = arith.mulf %404, %514 : vector<8x128xf32>
    %556 = arith.addf %554, %555 : vector<8x128xf32>
    %557 = arith.mulf %411, %482 : vector<8x128xf32>
    %cst_119 = arith.constant 0.000000e+00 : f32
    %558 = vector.broadcast %cst_119 : f32 to vector<8x128xf32>
    %559 = arith.addf %558, %557 : vector<8x128xf32>
    %560 = arith.mulf %418, %493 : vector<8x128xf32>
    %561 = arith.addf %559, %560 : vector<8x128xf32>
    %562 = arith.mulf %425, %507 : vector<8x128xf32>
    %563 = arith.addf %561, %562 : vector<8x128xf32>
    %564 = arith.mulf %411, %487 : vector<8x128xf32>
    %cst_120 = arith.constant 0.000000e+00 : f32
    %565 = vector.broadcast %cst_120 : f32 to vector<8x128xf32>
    %566 = arith.addf %565, %564 : vector<8x128xf32>
    %567 = arith.mulf %418, %497 : vector<8x128xf32>
    %568 = arith.addf %566, %567 : vector<8x128xf32>
    %569 = arith.mulf %425, %510 : vector<8x128xf32>
    %570 = arith.addf %568, %569 : vector<8x128xf32>
    %571 = arith.mulf %411, %490 : vector<8x128xf32>
    %cst_121 = arith.constant 0.000000e+00 : f32
    %572 = vector.broadcast %cst_121 : f32 to vector<8x128xf32>
    %573 = arith.addf %572, %571 : vector<8x128xf32>
    %574 = arith.mulf %418, %502 : vector<8x128xf32>
    %575 = arith.addf %573, %574 : vector<8x128xf32>
    %576 = arith.mulf %425, %514 : vector<8x128xf32>
    %577 = arith.addf %575, %576 : vector<8x128xf32>
    %c12 = arith.constant 12 : index
    %c0_122 = arith.constant 0 : index
    %578 = arith.index_cast %2 : i32 to index
    %579 = vector.load %arg1[%c12, %c0_122, %578] : memref<24x8x128xf32, #tpu.memory_space<vmem>>, vector<1x8x128xf32>
    %580 = vector.shape_cast %579 : vector<1x8x128xf32> to vector<8x128xf32>
    %c13 = arith.constant 13 : index
    %c0_123 = arith.constant 0 : index
    %581 = arith.index_cast %2 : i32 to index
    %582 = vector.load %arg1[%c13, %c0_123, %581] : memref<24x8x128xf32, #tpu.memory_space<vmem>>, vector<1x8x128xf32>
    %583 = vector.shape_cast %582 : vector<1x8x128xf32> to vector<8x128xf32>
    %c14 = arith.constant 14 : index
    %c0_124 = arith.constant 0 : index
    %584 = arith.index_cast %2 : i32 to index
    %585 = vector.load %arg1[%c14, %c0_124, %584] : memref<24x8x128xf32, #tpu.memory_space<vmem>>, vector<1x8x128xf32>
    %586 = vector.shape_cast %585 : vector<1x8x128xf32> to vector<8x128xf32>
    %587 = arith.mulf %580, %580 : vector<8x128xf32>
    %588 = arith.mulf %583, %583 : vector<8x128xf32>
    %589 = arith.addf %587, %588 : vector<8x128xf32>
    %590 = arith.mulf %586, %586 : vector<8x128xf32>
    %591 = arith.addf %589, %590 : vector<8x128xf32>
    %592 = math.sqrt %591 : vector<8x128xf32>
    %cst_125 = arith.constant 5.000000e-01 : f32
    %593 = vector.broadcast %cst_125 : f32 to vector<8x128xf32>
    %594 = arith.mulf %593, %592 : vector<8x128xf32>
    %595 = math.sin %594 : vector<8x128xf32>
    %596 = arith.mulf %595, %595 : vector<8x128xf32>
    %cst_126 = arith.constant 1.000000e+00 : f32
    %597 = vector.broadcast %cst_126 : f32 to vector<8x128xf32>
    %598 = arith.subf %597, %596 : vector<8x128xf32>
    %cst_127 = arith.constant 0.000000e+00 : f32
    %599 = vector.broadcast %cst_127 : f32 to vector<8x128xf32>
    %600 = arith.maximumf %598, %599 : vector<8x128xf32>
    %601 = math.sqrt %600 : vector<8x128xf32>
    %cst_128 = arith.constant 1.000000e-07 : f32
    %602 = vector.broadcast %cst_128 : f32 to vector<8x128xf32>
    %603 = arith.cmpf olt, %592, %602 : vector<8x128xf32>
    %cst_129 = arith.constant 1.000000e+00 : f32
    %604 = vector.broadcast %cst_129 : f32 to vector<8x128xf32>
    %605 = arith.select %603, %604, %592 : vector<8x128xi1>, vector<8x128xf32>
    %cst_130 = arith.constant 0.166666672 : f32
    %606 = vector.broadcast %cst_130 : f32 to vector<8x128xf32>
    %607 = arith.mulf %591, %606 : vector<8x128xf32>
    %cst_131 = arith.constant 1.000000e+00 : f32
    %608 = vector.broadcast %cst_131 : f32 to vector<8x128xf32>
    %609 = arith.subf %608, %607 : vector<8x128xf32>
    %cst_132 = arith.constant 2.000000e+00 : f32
    %610 = vector.broadcast %cst_132 : f32 to vector<8x128xf32>
    %611 = arith.mulf %610, %595 : vector<8x128xf32>
    %612 = arith.mulf %611, %601 : vector<8x128xf32>
    %613 = arith.divf %612, %605 : vector<8x128xf32>
    %614 = arith.select %603, %609, %613 : vector<8x128xi1>, vector<8x128xf32>
    %cst_133 = arith.constant 0.0416666679 : f32
    %615 = vector.broadcast %cst_133 : f32 to vector<8x128xf32>
    %616 = arith.mulf %591, %615 : vector<8x128xf32>
    %cst_134 = arith.constant 5.000000e-01 : f32
    %617 = vector.broadcast %cst_134 : f32 to vector<8x128xf32>
    %618 = arith.subf %617, %616 : vector<8x128xf32>
    %cst_135 = arith.constant 2.000000e+00 : f32
    %619 = vector.broadcast %cst_135 : f32 to vector<8x128xf32>
    %620 = arith.mulf %619, %595 : vector<8x128xf32>
    %621 = arith.mulf %620, %595 : vector<8x128xf32>
    %622 = arith.mulf %605, %605 : vector<8x128xf32>
    %623 = arith.divf %621, %622 : vector<8x128xf32>
    %624 = arith.select %603, %618, %623 : vector<8x128xi1>, vector<8x128xf32>
    %625 = arith.mulf %580, %580 : vector<8x128xf32>
    %626 = arith.mulf %583, %583 : vector<8x128xf32>
    %627 = arith.mulf %586, %586 : vector<8x128xf32>
    %628 = arith.mulf %580, %583 : vector<8x128xf32>
    %629 = arith.mulf %580, %586 : vector<8x128xf32>
    %630 = arith.mulf %583, %586 : vector<8x128xf32>
    %631 = arith.addf %626, %627 : vector<8x128xf32>
    %632 = arith.mulf %624, %631 : vector<8x128xf32>
    %cst_136 = arith.constant 1.000000e+00 : f32
    %633 = vector.broadcast %cst_136 : f32 to vector<8x128xf32>
    %634 = arith.subf %633, %632 : vector<8x128xf32>
    %cst_137 = arith.constant 0.000000e+00 : f32
    %635 = vector.broadcast %cst_137 : f32 to vector<8x128xf32>
    %636 = arith.subf %635, %614 : vector<8x128xf32>
    %637 = arith.mulf %636, %586 : vector<8x128xf32>
    %638 = arith.mulf %624, %628 : vector<8x128xf32>
    %639 = arith.addf %637, %638 : vector<8x128xf32>
    %640 = arith.mulf %614, %583 : vector<8x128xf32>
    %641 = arith.mulf %624, %629 : vector<8x128xf32>
    %642 = arith.addf %640, %641 : vector<8x128xf32>
    %643 = arith.mulf %614, %586 : vector<8x128xf32>
    %644 = arith.mulf %624, %628 : vector<8x128xf32>
    %645 = arith.addf %643, %644 : vector<8x128xf32>
    %646 = arith.addf %625, %627 : vector<8x128xf32>
    %647 = arith.mulf %624, %646 : vector<8x128xf32>
    %cst_138 = arith.constant 1.000000e+00 : f32
    %648 = vector.broadcast %cst_138 : f32 to vector<8x128xf32>
    %649 = arith.subf %648, %647 : vector<8x128xf32>
    %cst_139 = arith.constant 0.000000e+00 : f32
    %650 = vector.broadcast %cst_139 : f32 to vector<8x128xf32>
    %651 = arith.subf %650, %614 : vector<8x128xf32>
    %652 = arith.mulf %651, %580 : vector<8x128xf32>
    %653 = arith.mulf %624, %630 : vector<8x128xf32>
    %654 = arith.addf %652, %653 : vector<8x128xf32>
    %cst_140 = arith.constant 0.000000e+00 : f32
    %655 = vector.broadcast %cst_140 : f32 to vector<8x128xf32>
    %656 = arith.subf %655, %614 : vector<8x128xf32>
    %657 = arith.mulf %656, %583 : vector<8x128xf32>
    %658 = arith.mulf %624, %629 : vector<8x128xf32>
    %659 = arith.addf %657, %658 : vector<8x128xf32>
    %660 = arith.mulf %614, %580 : vector<8x128xf32>
    %661 = arith.mulf %624, %630 : vector<8x128xf32>
    %662 = arith.addf %660, %661 : vector<8x128xf32>
    %663 = arith.addf %625, %626 : vector<8x128xf32>
    %664 = arith.mulf %624, %663 : vector<8x128xf32>
    %cst_141 = arith.constant 1.000000e+00 : f32
    %665 = vector.broadcast %cst_141 : f32 to vector<8x128xf32>
    %666 = arith.subf %665, %664 : vector<8x128xf32>
    %c15 = arith.constant 15 : index
    %c0_142 = arith.constant 0 : index
    %667 = arith.index_cast %2 : i32 to index
    %668 = vector.load %arg1[%c15, %c0_142, %667] : memref<24x8x128xf32, #tpu.memory_space<vmem>>, vector<1x8x128xf32>
    %669 = vector.shape_cast %668 : vector<1x8x128xf32> to vector<8x128xf32>
    %c16 = arith.constant 16 : index
    %c0_143 = arith.constant 0 : index
    %670 = arith.index_cast %2 : i32 to index
    %671 = vector.load %arg1[%c16, %c0_143, %670] : memref<24x8x128xf32, #tpu.memory_space<vmem>>, vector<1x8x128xf32>
    %672 = vector.shape_cast %671 : vector<1x8x128xf32> to vector<8x128xf32>
    %c17 = arith.constant 17 : index
    %c0_144 = arith.constant 0 : index
    %673 = arith.index_cast %2 : i32 to index
    %674 = vector.load %arg1[%c17, %c0_144, %673] : memref<24x8x128xf32, #tpu.memory_space<vmem>>, vector<1x8x128xf32>
    %675 = vector.shape_cast %674 : vector<1x8x128xf32> to vector<8x128xf32>
    %676 = arith.mulf %669, %669 : vector<8x128xf32>
    %677 = arith.mulf %672, %672 : vector<8x128xf32>
    %678 = arith.addf %676, %677 : vector<8x128xf32>
    %679 = arith.mulf %675, %675 : vector<8x128xf32>
    %680 = arith.addf %678, %679 : vector<8x128xf32>
    %681 = math.sqrt %680 : vector<8x128xf32>
    %cst_145 = arith.constant 5.000000e-01 : f32
    %682 = vector.broadcast %cst_145 : f32 to vector<8x128xf32>
    %683 = arith.mulf %682, %681 : vector<8x128xf32>
    %684 = math.sin %683 : vector<8x128xf32>
    %685 = arith.mulf %684, %684 : vector<8x128xf32>
    %cst_146 = arith.constant 1.000000e+00 : f32
    %686 = vector.broadcast %cst_146 : f32 to vector<8x128xf32>
    %687 = arith.subf %686, %685 : vector<8x128xf32>
    %cst_147 = arith.constant 0.000000e+00 : f32
    %688 = vector.broadcast %cst_147 : f32 to vector<8x128xf32>
    %689 = arith.maximumf %687, %688 : vector<8x128xf32>
    %690 = math.sqrt %689 : vector<8x128xf32>
    %cst_148 = arith.constant 1.000000e-07 : f32
    %691 = vector.broadcast %cst_148 : f32 to vector<8x128xf32>
    %692 = arith.cmpf olt, %681, %691 : vector<8x128xf32>
    %cst_149 = arith.constant 1.000000e+00 : f32
    %693 = vector.broadcast %cst_149 : f32 to vector<8x128xf32>
    %694 = arith.select %692, %693, %681 : vector<8x128xi1>, vector<8x128xf32>
    %cst_150 = arith.constant 0.166666672 : f32
    %695 = vector.broadcast %cst_150 : f32 to vector<8x128xf32>
    %696 = arith.mulf %680, %695 : vector<8x128xf32>
    %cst_151 = arith.constant 1.000000e+00 : f32
    %697 = vector.broadcast %cst_151 : f32 to vector<8x128xf32>
    %698 = arith.subf %697, %696 : vector<8x128xf32>
    %cst_152 = arith.constant 2.000000e+00 : f32
    %699 = vector.broadcast %cst_152 : f32 to vector<8x128xf32>
    %700 = arith.mulf %699, %684 : vector<8x128xf32>
    %701 = arith.mulf %700, %690 : vector<8x128xf32>
    %702 = arith.divf %701, %694 : vector<8x128xf32>
    %703 = arith.select %692, %698, %702 : vector<8x128xi1>, vector<8x128xf32>
    %cst_153 = arith.constant 0.0416666679 : f32
    %704 = vector.broadcast %cst_153 : f32 to vector<8x128xf32>
    %705 = arith.mulf %680, %704 : vector<8x128xf32>
    %cst_154 = arith.constant 5.000000e-01 : f32
    %706 = vector.broadcast %cst_154 : f32 to vector<8x128xf32>
    %707 = arith.subf %706, %705 : vector<8x128xf32>
    %cst_155 = arith.constant 2.000000e+00 : f32
    %708 = vector.broadcast %cst_155 : f32 to vector<8x128xf32>
    %709 = arith.mulf %708, %684 : vector<8x128xf32>
    %710 = arith.mulf %709, %684 : vector<8x128xf32>
    %711 = arith.mulf %694, %694 : vector<8x128xf32>
    %712 = arith.divf %710, %711 : vector<8x128xf32>
    %713 = arith.select %692, %707, %712 : vector<8x128xi1>, vector<8x128xf32>
    %714 = arith.mulf %669, %669 : vector<8x128xf32>
    %715 = arith.mulf %672, %672 : vector<8x128xf32>
    %716 = arith.mulf %675, %675 : vector<8x128xf32>
    %717 = arith.mulf %669, %672 : vector<8x128xf32>
    %718 = arith.mulf %669, %675 : vector<8x128xf32>
    %719 = arith.mulf %672, %675 : vector<8x128xf32>
    %720 = arith.addf %715, %716 : vector<8x128xf32>
    %721 = arith.mulf %713, %720 : vector<8x128xf32>
    %cst_156 = arith.constant 1.000000e+00 : f32
    %722 = vector.broadcast %cst_156 : f32 to vector<8x128xf32>
    %723 = arith.subf %722, %721 : vector<8x128xf32>
    %cst_157 = arith.constant 0.000000e+00 : f32
    %724 = vector.broadcast %cst_157 : f32 to vector<8x128xf32>
    %725 = arith.subf %724, %703 : vector<8x128xf32>
    %726 = arith.mulf %725, %675 : vector<8x128xf32>
    %727 = arith.mulf %713, %717 : vector<8x128xf32>
    %728 = arith.addf %726, %727 : vector<8x128xf32>
    %729 = arith.mulf %703, %672 : vector<8x128xf32>
    %730 = arith.mulf %713, %718 : vector<8x128xf32>
    %731 = arith.addf %729, %730 : vector<8x128xf32>
    %732 = arith.mulf %703, %675 : vector<8x128xf32>
    %733 = arith.mulf %713, %717 : vector<8x128xf32>
    %734 = arith.addf %732, %733 : vector<8x128xf32>
    %735 = arith.addf %714, %716 : vector<8x128xf32>
    %736 = arith.mulf %713, %735 : vector<8x128xf32>
    %cst_158 = arith.constant 1.000000e+00 : f32
    %737 = vector.broadcast %cst_158 : f32 to vector<8x128xf32>
    %738 = arith.subf %737, %736 : vector<8x128xf32>
    %cst_159 = arith.constant 0.000000e+00 : f32
    %739 = vector.broadcast %cst_159 : f32 to vector<8x128xf32>
    %740 = arith.subf %739, %703 : vector<8x128xf32>
    %741 = arith.mulf %740, %669 : vector<8x128xf32>
    %742 = arith.mulf %713, %719 : vector<8x128xf32>
    %743 = arith.addf %741, %742 : vector<8x128xf32>
    %cst_160 = arith.constant 0.000000e+00 : f32
    %744 = vector.broadcast %cst_160 : f32 to vector<8x128xf32>
    %745 = arith.subf %744, %703 : vector<8x128xf32>
    %746 = arith.mulf %745, %672 : vector<8x128xf32>
    %747 = arith.mulf %713, %718 : vector<8x128xf32>
    %748 = arith.addf %746, %747 : vector<8x128xf32>
    %749 = arith.mulf %703, %669 : vector<8x128xf32>
    %750 = arith.mulf %713, %719 : vector<8x128xf32>
    %751 = arith.addf %749, %750 : vector<8x128xf32>
    %752 = arith.addf %714, %715 : vector<8x128xf32>
    %753 = arith.mulf %713, %752 : vector<8x128xf32>
    %cst_161 = arith.constant 1.000000e+00 : f32
    %754 = vector.broadcast %cst_161 : f32 to vector<8x128xf32>
    %755 = arith.subf %754, %753 : vector<8x128xf32>
    %756 = arith.mulf %634, %723 : vector<8x128xf32>
    %cst_162 = arith.constant 0.000000e+00 : f32
    %757 = vector.broadcast %cst_162 : f32 to vector<8x128xf32>
    %758 = arith.addf %757, %756 : vector<8x128xf32>
    %759 = arith.mulf %639, %734 : vector<8x128xf32>
    %760 = arith.addf %758, %759 : vector<8x128xf32>
    %761 = arith.mulf %642, %748 : vector<8x128xf32>
    %762 = arith.addf %760, %761 : vector<8x128xf32>
    %763 = arith.mulf %634, %728 : vector<8x128xf32>
    %cst_163 = arith.constant 0.000000e+00 : f32
    %764 = vector.broadcast %cst_163 : f32 to vector<8x128xf32>
    %765 = arith.addf %764, %763 : vector<8x128xf32>
    %766 = arith.mulf %639, %738 : vector<8x128xf32>
    %767 = arith.addf %765, %766 : vector<8x128xf32>
    %768 = arith.mulf %642, %751 : vector<8x128xf32>
    %769 = arith.addf %767, %768 : vector<8x128xf32>
    %770 = arith.mulf %634, %731 : vector<8x128xf32>
    %cst_164 = arith.constant 0.000000e+00 : f32
    %771 = vector.broadcast %cst_164 : f32 to vector<8x128xf32>
    %772 = arith.addf %771, %770 : vector<8x128xf32>
    %773 = arith.mulf %639, %743 : vector<8x128xf32>
    %774 = arith.addf %772, %773 : vector<8x128xf32>
    %775 = arith.mulf %642, %755 : vector<8x128xf32>
    %776 = arith.addf %774, %775 : vector<8x128xf32>
    %777 = arith.mulf %645, %723 : vector<8x128xf32>
    %cst_165 = arith.constant 0.000000e+00 : f32
    %778 = vector.broadcast %cst_165 : f32 to vector<8x128xf32>
    %779 = arith.addf %778, %777 : vector<8x128xf32>
    %780 = arith.mulf %649, %734 : vector<8x128xf32>
    %781 = arith.addf %779, %780 : vector<8x128xf32>
    %782 = arith.mulf %654, %748 : vector<8x128xf32>
    %783 = arith.addf %781, %782 : vector<8x128xf32>
    %784 = arith.mulf %645, %728 : vector<8x128xf32>
    %cst_166 = arith.constant 0.000000e+00 : f32
    %785 = vector.broadcast %cst_166 : f32 to vector<8x128xf32>
    %786 = arith.addf %785, %784 : vector<8x128xf32>
    %787 = arith.mulf %649, %738 : vector<8x128xf32>
    %788 = arith.addf %786, %787 : vector<8x128xf32>
    %789 = arith.mulf %654, %751 : vector<8x128xf32>
    %790 = arith.addf %788, %789 : vector<8x128xf32>
    %791 = arith.mulf %645, %731 : vector<8x128xf32>
    %cst_167 = arith.constant 0.000000e+00 : f32
    %792 = vector.broadcast %cst_167 : f32 to vector<8x128xf32>
    %793 = arith.addf %792, %791 : vector<8x128xf32>
    %794 = arith.mulf %649, %743 : vector<8x128xf32>
    %795 = arith.addf %793, %794 : vector<8x128xf32>
    %796 = arith.mulf %654, %755 : vector<8x128xf32>
    %797 = arith.addf %795, %796 : vector<8x128xf32>
    %798 = arith.mulf %659, %723 : vector<8x128xf32>
    %cst_168 = arith.constant 0.000000e+00 : f32
    %799 = vector.broadcast %cst_168 : f32 to vector<8x128xf32>
    %800 = arith.addf %799, %798 : vector<8x128xf32>
    %801 = arith.mulf %662, %734 : vector<8x128xf32>
    %802 = arith.addf %800, %801 : vector<8x128xf32>
    %803 = arith.mulf %666, %748 : vector<8x128xf32>
    %804 = arith.addf %802, %803 : vector<8x128xf32>
    %805 = arith.mulf %659, %728 : vector<8x128xf32>
    %cst_169 = arith.constant 0.000000e+00 : f32
    %806 = vector.broadcast %cst_169 : f32 to vector<8x128xf32>
    %807 = arith.addf %806, %805 : vector<8x128xf32>
    %808 = arith.mulf %662, %738 : vector<8x128xf32>
    %809 = arith.addf %807, %808 : vector<8x128xf32>
    %810 = arith.mulf %666, %751 : vector<8x128xf32>
    %811 = arith.addf %809, %810 : vector<8x128xf32>
    %812 = arith.mulf %659, %731 : vector<8x128xf32>
    %cst_170 = arith.constant 0.000000e+00 : f32
    %813 = vector.broadcast %cst_170 : f32 to vector<8x128xf32>
    %814 = arith.addf %813, %812 : vector<8x128xf32>
    %815 = arith.mulf %662, %743 : vector<8x128xf32>
    %816 = arith.addf %814, %815 : vector<8x128xf32>
    %817 = arith.mulf %666, %755 : vector<8x128xf32>
    %818 = arith.addf %816, %817 : vector<8x128xf32>
    %c18 = arith.constant 18 : index
    %c0_171 = arith.constant 0 : index
    %819 = arith.index_cast %2 : i32 to index
    %820 = vector.load %arg1[%c18, %c0_171, %819] : memref<24x8x128xf32, #tpu.memory_space<vmem>>, vector<1x8x128xf32>
    %821 = vector.shape_cast %820 : vector<1x8x128xf32> to vector<8x128xf32>
    %c19 = arith.constant 19 : index
    %c0_172 = arith.constant 0 : index
    %822 = arith.index_cast %2 : i32 to index
    %823 = vector.load %arg1[%c19, %c0_172, %822] : memref<24x8x128xf32, #tpu.memory_space<vmem>>, vector<1x8x128xf32>
    %824 = vector.shape_cast %823 : vector<1x8x128xf32> to vector<8x128xf32>
    %c20 = arith.constant 20 : index
    %c0_173 = arith.constant 0 : index
    %825 = arith.index_cast %2 : i32 to index
    %826 = vector.load %arg1[%c20, %c0_173, %825] : memref<24x8x128xf32, #tpu.memory_space<vmem>>, vector<1x8x128xf32>
    %827 = vector.shape_cast %826 : vector<1x8x128xf32> to vector<8x128xf32>
    %828 = arith.mulf %821, %821 : vector<8x128xf32>
    %829 = arith.mulf %824, %824 : vector<8x128xf32>
    %830 = arith.addf %828, %829 : vector<8x128xf32>
    %831 = arith.mulf %827, %827 : vector<8x128xf32>
    %832 = arith.addf %830, %831 : vector<8x128xf32>
    %833 = math.sqrt %832 : vector<8x128xf32>
    %cst_174 = arith.constant 5.000000e-01 : f32
    %834 = vector.broadcast %cst_174 : f32 to vector<8x128xf32>
    %835 = arith.mulf %834, %833 : vector<8x128xf32>
    %836 = math.sin %835 : vector<8x128xf32>
    %837 = arith.mulf %836, %836 : vector<8x128xf32>
    %cst_175 = arith.constant 1.000000e+00 : f32
    %838 = vector.broadcast %cst_175 : f32 to vector<8x128xf32>
    %839 = arith.subf %838, %837 : vector<8x128xf32>
    %cst_176 = arith.constant 0.000000e+00 : f32
    %840 = vector.broadcast %cst_176 : f32 to vector<8x128xf32>
    %841 = arith.maximumf %839, %840 : vector<8x128xf32>
    %842 = math.sqrt %841 : vector<8x128xf32>
    %cst_177 = arith.constant 1.000000e-07 : f32
    %843 = vector.broadcast %cst_177 : f32 to vector<8x128xf32>
    %844 = arith.cmpf olt, %833, %843 : vector<8x128xf32>
    %cst_178 = arith.constant 1.000000e+00 : f32
    %845 = vector.broadcast %cst_178 : f32 to vector<8x128xf32>
    %846 = arith.select %844, %845, %833 : vector<8x128xi1>, vector<8x128xf32>
    %cst_179 = arith.constant 0.166666672 : f32
    %847 = vector.broadcast %cst_179 : f32 to vector<8x128xf32>
    %848 = arith.mulf %832, %847 : vector<8x128xf32>
    %cst_180 = arith.constant 1.000000e+00 : f32
    %849 = vector.broadcast %cst_180 : f32 to vector<8x128xf32>
    %850 = arith.subf %849, %848 : vector<8x128xf32>
    %cst_181 = arith.constant 2.000000e+00 : f32
    %851 = vector.broadcast %cst_181 : f32 to vector<8x128xf32>
    %852 = arith.mulf %851, %836 : vector<8x128xf32>
    %853 = arith.mulf %852, %842 : vector<8x128xf32>
    %854 = arith.divf %853, %846 : vector<8x128xf32>
    %855 = arith.select %844, %850, %854 : vector<8x128xi1>, vector<8x128xf32>
    %cst_182 = arith.constant 0.0416666679 : f32
    %856 = vector.broadcast %cst_182 : f32 to vector<8x128xf32>
    %857 = arith.mulf %832, %856 : vector<8x128xf32>
    %cst_183 = arith.constant 5.000000e-01 : f32
    %858 = vector.broadcast %cst_183 : f32 to vector<8x128xf32>
    %859 = arith.subf %858, %857 : vector<8x128xf32>
    %cst_184 = arith.constant 2.000000e+00 : f32
    %860 = vector.broadcast %cst_184 : f32 to vector<8x128xf32>
    %861 = arith.mulf %860, %836 : vector<8x128xf32>
    %862 = arith.mulf %861, %836 : vector<8x128xf32>
    %863 = arith.mulf %846, %846 : vector<8x128xf32>
    %864 = arith.divf %862, %863 : vector<8x128xf32>
    %865 = arith.select %844, %859, %864 : vector<8x128xi1>, vector<8x128xf32>
    %866 = arith.mulf %821, %821 : vector<8x128xf32>
    %867 = arith.mulf %824, %824 : vector<8x128xf32>
    %868 = arith.mulf %827, %827 : vector<8x128xf32>
    %869 = arith.mulf %821, %824 : vector<8x128xf32>
    %870 = arith.mulf %821, %827 : vector<8x128xf32>
    %871 = arith.mulf %824, %827 : vector<8x128xf32>
    %872 = arith.addf %867, %868 : vector<8x128xf32>
    %873 = arith.mulf %865, %872 : vector<8x128xf32>
    %cst_185 = arith.constant 1.000000e+00 : f32
    %874 = vector.broadcast %cst_185 : f32 to vector<8x128xf32>
    %875 = arith.subf %874, %873 : vector<8x128xf32>
    %cst_186 = arith.constant 0.000000e+00 : f32
    %876 = vector.broadcast %cst_186 : f32 to vector<8x128xf32>
    %877 = arith.subf %876, %855 : vector<8x128xf32>
    %878 = arith.mulf %877, %827 : vector<8x128xf32>
    %879 = arith.mulf %865, %869 : vector<8x128xf32>
    %880 = arith.addf %878, %879 : vector<8x128xf32>
    %881 = arith.mulf %855, %824 : vector<8x128xf32>
    %882 = arith.mulf %865, %870 : vector<8x128xf32>
    %883 = arith.addf %881, %882 : vector<8x128xf32>
    %884 = arith.mulf %855, %827 : vector<8x128xf32>
    %885 = arith.mulf %865, %869 : vector<8x128xf32>
    %886 = arith.addf %884, %885 : vector<8x128xf32>
    %887 = arith.addf %866, %868 : vector<8x128xf32>
    %888 = arith.mulf %865, %887 : vector<8x128xf32>
    %cst_187 = arith.constant 1.000000e+00 : f32
    %889 = vector.broadcast %cst_187 : f32 to vector<8x128xf32>
    %890 = arith.subf %889, %888 : vector<8x128xf32>
    %cst_188 = arith.constant 0.000000e+00 : f32
    %891 = vector.broadcast %cst_188 : f32 to vector<8x128xf32>
    %892 = arith.subf %891, %855 : vector<8x128xf32>
    %893 = arith.mulf %892, %821 : vector<8x128xf32>
    %894 = arith.mulf %865, %871 : vector<8x128xf32>
    %895 = arith.addf %893, %894 : vector<8x128xf32>
    %cst_189 = arith.constant 0.000000e+00 : f32
    %896 = vector.broadcast %cst_189 : f32 to vector<8x128xf32>
    %897 = arith.subf %896, %855 : vector<8x128xf32>
    %898 = arith.mulf %897, %824 : vector<8x128xf32>
    %899 = arith.mulf %865, %870 : vector<8x128xf32>
    %900 = arith.addf %898, %899 : vector<8x128xf32>
    %901 = arith.mulf %855, %821 : vector<8x128xf32>
    %902 = arith.mulf %865, %871 : vector<8x128xf32>
    %903 = arith.addf %901, %902 : vector<8x128xf32>
    %904 = arith.addf %866, %867 : vector<8x128xf32>
    %905 = arith.mulf %865, %904 : vector<8x128xf32>
    %cst_190 = arith.constant 1.000000e+00 : f32
    %906 = vector.broadcast %cst_190 : f32 to vector<8x128xf32>
    %907 = arith.subf %906, %905 : vector<8x128xf32>
    %908 = arith.mulf %762, %875 : vector<8x128xf32>
    %cst_191 = arith.constant 0.000000e+00 : f32
    %909 = vector.broadcast %cst_191 : f32 to vector<8x128xf32>
    %910 = arith.addf %909, %908 : vector<8x128xf32>
    %911 = arith.mulf %769, %886 : vector<8x128xf32>
    %912 = arith.addf %910, %911 : vector<8x128xf32>
    %913 = arith.mulf %776, %900 : vector<8x128xf32>
    %914 = arith.addf %912, %913 : vector<8x128xf32>
    %915 = arith.mulf %762, %880 : vector<8x128xf32>
    %cst_192 = arith.constant 0.000000e+00 : f32
    %916 = vector.broadcast %cst_192 : f32 to vector<8x128xf32>
    %917 = arith.addf %916, %915 : vector<8x128xf32>
    %918 = arith.mulf %769, %890 : vector<8x128xf32>
    %919 = arith.addf %917, %918 : vector<8x128xf32>
    %920 = arith.mulf %776, %903 : vector<8x128xf32>
    %921 = arith.addf %919, %920 : vector<8x128xf32>
    %922 = arith.mulf %762, %883 : vector<8x128xf32>
    %cst_193 = arith.constant 0.000000e+00 : f32
    %923 = vector.broadcast %cst_193 : f32 to vector<8x128xf32>
    %924 = arith.addf %923, %922 : vector<8x128xf32>
    %925 = arith.mulf %769, %895 : vector<8x128xf32>
    %926 = arith.addf %924, %925 : vector<8x128xf32>
    %927 = arith.mulf %776, %907 : vector<8x128xf32>
    %928 = arith.addf %926, %927 : vector<8x128xf32>
    %929 = arith.mulf %783, %875 : vector<8x128xf32>
    %cst_194 = arith.constant 0.000000e+00 : f32
    %930 = vector.broadcast %cst_194 : f32 to vector<8x128xf32>
    %931 = arith.addf %930, %929 : vector<8x128xf32>
    %932 = arith.mulf %790, %886 : vector<8x128xf32>
    %933 = arith.addf %931, %932 : vector<8x128xf32>
    %934 = arith.mulf %797, %900 : vector<8x128xf32>
    %935 = arith.addf %933, %934 : vector<8x128xf32>
    %936 = arith.mulf %783, %880 : vector<8x128xf32>
    %cst_195 = arith.constant 0.000000e+00 : f32
    %937 = vector.broadcast %cst_195 : f32 to vector<8x128xf32>
    %938 = arith.addf %937, %936 : vector<8x128xf32>
    %939 = arith.mulf %790, %890 : vector<8x128xf32>
    %940 = arith.addf %938, %939 : vector<8x128xf32>
    %941 = arith.mulf %797, %903 : vector<8x128xf32>
    %942 = arith.addf %940, %941 : vector<8x128xf32>
    %943 = arith.mulf %783, %883 : vector<8x128xf32>
    %cst_196 = arith.constant 0.000000e+00 : f32
    %944 = vector.broadcast %cst_196 : f32 to vector<8x128xf32>
    %945 = arith.addf %944, %943 : vector<8x128xf32>
    %946 = arith.mulf %790, %895 : vector<8x128xf32>
    %947 = arith.addf %945, %946 : vector<8x128xf32>
    %948 = arith.mulf %797, %907 : vector<8x128xf32>
    %949 = arith.addf %947, %948 : vector<8x128xf32>
    %950 = arith.mulf %804, %875 : vector<8x128xf32>
    %cst_197 = arith.constant 0.000000e+00 : f32
    %951 = vector.broadcast %cst_197 : f32 to vector<8x128xf32>
    %952 = arith.addf %951, %950 : vector<8x128xf32>
    %953 = arith.mulf %811, %886 : vector<8x128xf32>
    %954 = arith.addf %952, %953 : vector<8x128xf32>
    %955 = arith.mulf %818, %900 : vector<8x128xf32>
    %956 = arith.addf %954, %955 : vector<8x128xf32>
    %957 = arith.mulf %804, %880 : vector<8x128xf32>
    %cst_198 = arith.constant 0.000000e+00 : f32
    %958 = vector.broadcast %cst_198 : f32 to vector<8x128xf32>
    %959 = arith.addf %958, %957 : vector<8x128xf32>
    %960 = arith.mulf %811, %890 : vector<8x128xf32>
    %961 = arith.addf %959, %960 : vector<8x128xf32>
    %962 = arith.mulf %818, %903 : vector<8x128xf32>
    %963 = arith.addf %961, %962 : vector<8x128xf32>
    %964 = arith.mulf %804, %883 : vector<8x128xf32>
    %cst_199 = arith.constant 0.000000e+00 : f32
    %965 = vector.broadcast %cst_199 : f32 to vector<8x128xf32>
    %966 = arith.addf %965, %964 : vector<8x128xf32>
    %967 = arith.mulf %811, %895 : vector<8x128xf32>
    %968 = arith.addf %966, %967 : vector<8x128xf32>
    %969 = arith.mulf %818, %907 : vector<8x128xf32>
    %970 = arith.addf %968, %969 : vector<8x128xf32>
    %c21 = arith.constant 21 : index
    %c0_200 = arith.constant 0 : index
    %971 = arith.index_cast %2 : i32 to index
    %972 = vector.load %arg1[%c21, %c0_200, %971] : memref<24x8x128xf32, #tpu.memory_space<vmem>>, vector<1x8x128xf32>
    %973 = vector.shape_cast %972 : vector<1x8x128xf32> to vector<8x128xf32>
    %c22 = arith.constant 22 : index
    %c0_201 = arith.constant 0 : index
    %974 = arith.index_cast %2 : i32 to index
    %975 = vector.load %arg1[%c22, %c0_201, %974] : memref<24x8x128xf32, #tpu.memory_space<vmem>>, vector<1x8x128xf32>
    %976 = vector.shape_cast %975 : vector<1x8x128xf32> to vector<8x128xf32>
    %c23 = arith.constant 23 : index
    %c0_202 = arith.constant 0 : index
    %977 = arith.index_cast %2 : i32 to index
    %978 = vector.load %arg1[%c23, %c0_202, %977] : memref<24x8x128xf32, #tpu.memory_space<vmem>>, vector<1x8x128xf32>
    %979 = vector.shape_cast %978 : vector<1x8x128xf32> to vector<8x128xf32>
    %980 = arith.mulf %973, %973 : vector<8x128xf32>
    %981 = arith.mulf %976, %976 : vector<8x128xf32>
    %982 = arith.addf %980, %981 : vector<8x128xf32>
    %983 = arith.mulf %979, %979 : vector<8x128xf32>
    %984 = arith.addf %982, %983 : vector<8x128xf32>
    %985 = math.sqrt %984 : vector<8x128xf32>
    %cst_203 = arith.constant 5.000000e-01 : f32
    %986 = vector.broadcast %cst_203 : f32 to vector<8x128xf32>
    %987 = arith.mulf %986, %985 : vector<8x128xf32>
    %988 = math.sin %987 : vector<8x128xf32>
    %989 = arith.mulf %988, %988 : vector<8x128xf32>
    %cst_204 = arith.constant 1.000000e+00 : f32
    %990 = vector.broadcast %cst_204 : f32 to vector<8x128xf32>
    %991 = arith.subf %990, %989 : vector<8x128xf32>
    %cst_205 = arith.constant 0.000000e+00 : f32
    %992 = vector.broadcast %cst_205 : f32 to vector<8x128xf32>
    %993 = arith.maximumf %991, %992 : vector<8x128xf32>
    %994 = math.sqrt %993 : vector<8x128xf32>
    %cst_206 = arith.constant 1.000000e-07 : f32
    %995 = vector.broadcast %cst_206 : f32 to vector<8x128xf32>
    %996 = arith.cmpf olt, %985, %995 : vector<8x128xf32>
    %cst_207 = arith.constant 1.000000e+00 : f32
    %997 = vector.broadcast %cst_207 : f32 to vector<8x128xf32>
    %998 = arith.select %996, %997, %985 : vector<8x128xi1>, vector<8x128xf32>
    %cst_208 = arith.constant 0.166666672 : f32
    %999 = vector.broadcast %cst_208 : f32 to vector<8x128xf32>
    %1000 = arith.mulf %984, %999 : vector<8x128xf32>
    %cst_209 = arith.constant 1.000000e+00 : f32
    %1001 = vector.broadcast %cst_209 : f32 to vector<8x128xf32>
    %1002 = arith.subf %1001, %1000 : vector<8x128xf32>
    %cst_210 = arith.constant 2.000000e+00 : f32
    %1003 = vector.broadcast %cst_210 : f32 to vector<8x128xf32>
    %1004 = arith.mulf %1003, %988 : vector<8x128xf32>
    %1005 = arith.mulf %1004, %994 : vector<8x128xf32>
    %1006 = arith.divf %1005, %998 : vector<8x128xf32>
    %1007 = arith.select %996, %1002, %1006 : vector<8x128xi1>, vector<8x128xf32>
    %cst_211 = arith.constant 0.0416666679 : f32
    %1008 = vector.broadcast %cst_211 : f32 to vector<8x128xf32>
    %1009 = arith.mulf %984, %1008 : vector<8x128xf32>
    %cst_212 = arith.constant 5.000000e-01 : f32
    %1010 = vector.broadcast %cst_212 : f32 to vector<8x128xf32>
    %1011 = arith.subf %1010, %1009 : vector<8x128xf32>
    %cst_213 = arith.constant 2.000000e+00 : f32
    %1012 = vector.broadcast %cst_213 : f32 to vector<8x128xf32>
    %1013 = arith.mulf %1012, %988 : vector<8x128xf32>
    %1014 = arith.mulf %1013, %988 : vector<8x128xf32>
    %1015 = arith.mulf %998, %998 : vector<8x128xf32>
    %1016 = arith.divf %1014, %1015 : vector<8x128xf32>
    %1017 = arith.select %996, %1011, %1016 : vector<8x128xi1>, vector<8x128xf32>
    %1018 = arith.mulf %973, %973 : vector<8x128xf32>
    %1019 = arith.mulf %976, %976 : vector<8x128xf32>
    %1020 = arith.mulf %979, %979 : vector<8x128xf32>
    %1021 = arith.mulf %973, %976 : vector<8x128xf32>
    %1022 = arith.mulf %973, %979 : vector<8x128xf32>
    %1023 = arith.mulf %976, %979 : vector<8x128xf32>
    %1024 = arith.addf %1019, %1020 : vector<8x128xf32>
    %1025 = arith.mulf %1017, %1024 : vector<8x128xf32>
    %cst_214 = arith.constant 1.000000e+00 : f32
    %1026 = vector.broadcast %cst_214 : f32 to vector<8x128xf32>
    %1027 = arith.subf %1026, %1025 : vector<8x128xf32>
    %cst_215 = arith.constant 0.000000e+00 : f32
    %1028 = vector.broadcast %cst_215 : f32 to vector<8x128xf32>
    %1029 = arith.subf %1028, %1007 : vector<8x128xf32>
    %1030 = arith.mulf %1029, %979 : vector<8x128xf32>
    %1031 = arith.mulf %1017, %1021 : vector<8x128xf32>
    %1032 = arith.addf %1030, %1031 : vector<8x128xf32>
    %1033 = arith.mulf %1007, %976 : vector<8x128xf32>
    %1034 = arith.mulf %1017, %1022 : vector<8x128xf32>
    %1035 = arith.addf %1033, %1034 : vector<8x128xf32>
    %1036 = arith.mulf %1007, %979 : vector<8x128xf32>
    %1037 = arith.mulf %1017, %1021 : vector<8x128xf32>
    %1038 = arith.addf %1036, %1037 : vector<8x128xf32>
    %1039 = arith.addf %1018, %1020 : vector<8x128xf32>
    %1040 = arith.mulf %1017, %1039 : vector<8x128xf32>
    %cst_216 = arith.constant 1.000000e+00 : f32
    %1041 = vector.broadcast %cst_216 : f32 to vector<8x128xf32>
    %1042 = arith.subf %1041, %1040 : vector<8x128xf32>
    %cst_217 = arith.constant 0.000000e+00 : f32
    %1043 = vector.broadcast %cst_217 : f32 to vector<8x128xf32>
    %1044 = arith.subf %1043, %1007 : vector<8x128xf32>
    %1045 = arith.mulf %1044, %973 : vector<8x128xf32>
    %1046 = arith.mulf %1017, %1023 : vector<8x128xf32>
    %1047 = arith.addf %1045, %1046 : vector<8x128xf32>
    %cst_218 = arith.constant 0.000000e+00 : f32
    %1048 = vector.broadcast %cst_218 : f32 to vector<8x128xf32>
    %1049 = arith.subf %1048, %1007 : vector<8x128xf32>
    %1050 = arith.mulf %1049, %976 : vector<8x128xf32>
    %1051 = arith.mulf %1017, %1022 : vector<8x128xf32>
    %1052 = arith.addf %1050, %1051 : vector<8x128xf32>
    %1053 = arith.mulf %1007, %973 : vector<8x128xf32>
    %1054 = arith.mulf %1017, %1023 : vector<8x128xf32>
    %1055 = arith.addf %1053, %1054 : vector<8x128xf32>
    %1056 = arith.addf %1018, %1019 : vector<8x128xf32>
    %1057 = arith.mulf %1017, %1056 : vector<8x128xf32>
    %cst_219 = arith.constant 1.000000e+00 : f32
    %1058 = vector.broadcast %cst_219 : f32 to vector<8x128xf32>
    %1059 = arith.subf %1058, %1057 : vector<8x128xf32>
    %1060 = arith.mulf %914, %1027 : vector<8x128xf32>
    %cst_220 = arith.constant 0.000000e+00 : f32
    %1061 = vector.broadcast %cst_220 : f32 to vector<8x128xf32>
    %1062 = arith.addf %1061, %1060 : vector<8x128xf32>
    %1063 = arith.mulf %921, %1038 : vector<8x128xf32>
    %1064 = arith.addf %1062, %1063 : vector<8x128xf32>
    %1065 = arith.mulf %928, %1052 : vector<8x128xf32>
    %1066 = arith.addf %1064, %1065 : vector<8x128xf32>
    %1067 = arith.mulf %914, %1032 : vector<8x128xf32>
    %cst_221 = arith.constant 0.000000e+00 : f32
    %1068 = vector.broadcast %cst_221 : f32 to vector<8x128xf32>
    %1069 = arith.addf %1068, %1067 : vector<8x128xf32>
    %1070 = arith.mulf %921, %1042 : vector<8x128xf32>
    %1071 = arith.addf %1069, %1070 : vector<8x128xf32>
    %1072 = arith.mulf %928, %1055 : vector<8x128xf32>
    %1073 = arith.addf %1071, %1072 : vector<8x128xf32>
    %1074 = arith.mulf %914, %1035 : vector<8x128xf32>
    %cst_222 = arith.constant 0.000000e+00 : f32
    %1075 = vector.broadcast %cst_222 : f32 to vector<8x128xf32>
    %1076 = arith.addf %1075, %1074 : vector<8x128xf32>
    %1077 = arith.mulf %921, %1047 : vector<8x128xf32>
    %1078 = arith.addf %1076, %1077 : vector<8x128xf32>
    %1079 = arith.mulf %928, %1059 : vector<8x128xf32>
    %1080 = arith.addf %1078, %1079 : vector<8x128xf32>
    %1081 = arith.mulf %935, %1027 : vector<8x128xf32>
    %cst_223 = arith.constant 0.000000e+00 : f32
    %1082 = vector.broadcast %cst_223 : f32 to vector<8x128xf32>
    %1083 = arith.addf %1082, %1081 : vector<8x128xf32>
    %1084 = arith.mulf %942, %1038 : vector<8x128xf32>
    %1085 = arith.addf %1083, %1084 : vector<8x128xf32>
    %1086 = arith.mulf %949, %1052 : vector<8x128xf32>
    %1087 = arith.addf %1085, %1086 : vector<8x128xf32>
    %1088 = arith.mulf %935, %1032 : vector<8x128xf32>
    %cst_224 = arith.constant 0.000000e+00 : f32
    %1089 = vector.broadcast %cst_224 : f32 to vector<8x128xf32>
    %1090 = arith.addf %1089, %1088 : vector<8x128xf32>
    %1091 = arith.mulf %942, %1042 : vector<8x128xf32>
    %1092 = arith.addf %1090, %1091 : vector<8x128xf32>
    %1093 = arith.mulf %949, %1055 : vector<8x128xf32>
    %1094 = arith.addf %1092, %1093 : vector<8x128xf32>
    %1095 = arith.mulf %935, %1035 : vector<8x128xf32>
    %cst_225 = arith.constant 0.000000e+00 : f32
    %1096 = vector.broadcast %cst_225 : f32 to vector<8x128xf32>
    %1097 = arith.addf %1096, %1095 : vector<8x128xf32>
    %1098 = arith.mulf %942, %1047 : vector<8x128xf32>
    %1099 = arith.addf %1097, %1098 : vector<8x128xf32>
    %1100 = arith.mulf %949, %1059 : vector<8x128xf32>
    %1101 = arith.addf %1099, %1100 : vector<8x128xf32>
    %1102 = arith.mulf %956, %1027 : vector<8x128xf32>
    %cst_226 = arith.constant 0.000000e+00 : f32
    %1103 = vector.broadcast %cst_226 : f32 to vector<8x128xf32>
    %1104 = arith.addf %1103, %1102 : vector<8x128xf32>
    %1105 = arith.mulf %963, %1038 : vector<8x128xf32>
    %1106 = arith.addf %1104, %1105 : vector<8x128xf32>
    %1107 = arith.mulf %970, %1052 : vector<8x128xf32>
    %1108 = arith.addf %1106, %1107 : vector<8x128xf32>
    %1109 = arith.mulf %956, %1032 : vector<8x128xf32>
    %cst_227 = arith.constant 0.000000e+00 : f32
    %1110 = vector.broadcast %cst_227 : f32 to vector<8x128xf32>
    %1111 = arith.addf %1110, %1109 : vector<8x128xf32>
    %1112 = arith.mulf %963, %1042 : vector<8x128xf32>
    %1113 = arith.addf %1111, %1112 : vector<8x128xf32>
    %1114 = arith.mulf %970, %1055 : vector<8x128xf32>
    %1115 = arith.addf %1113, %1114 : vector<8x128xf32>
    %1116 = arith.mulf %956, %1035 : vector<8x128xf32>
    %cst_228 = arith.constant 0.000000e+00 : f32
    %1117 = vector.broadcast %cst_228 : f32 to vector<8x128xf32>
    %1118 = arith.addf %1117, %1116 : vector<8x128xf32>
    %1119 = arith.mulf %963, %1047 : vector<8x128xf32>
    %1120 = arith.addf %1118, %1119 : vector<8x128xf32>
    %1121 = arith.mulf %970, %1059 : vector<8x128xf32>
    %1122 = arith.addf %1120, %1121 : vector<8x128xf32>
    %c0_229 = arith.constant 0 : index
    %c0_230 = arith.constant 0 : index
    %1123 = arith.index_cast %2 : i32 to index
    %1124 = vector.load %arg2[%c0_229, %c0_230, %1123] : memref<6x8x128xf32, #tpu.memory_space<vmem>>, vector<1x8x128xf32>
    %1125 = vector.shape_cast %1124 : vector<1x8x128xf32> to vector<8x128xf32>
    %c1_231 = arith.constant 1 : index
    %c0_232 = arith.constant 0 : index
    %1126 = arith.index_cast %2 : i32 to index
    %1127 = vector.load %arg2[%c1_231, %c0_232, %1126] : memref<6x8x128xf32, #tpu.memory_space<vmem>>, vector<1x8x128xf32>
    %1128 = vector.shape_cast %1127 : vector<1x8x128xf32> to vector<8x128xf32>
    %c2_233 = arith.constant 2 : index
    %c0_234 = arith.constant 0 : index
    %1129 = arith.index_cast %2 : i32 to index
    %1130 = vector.load %arg2[%c2_233, %c0_234, %1129] : memref<6x8x128xf32, #tpu.memory_space<vmem>>, vector<1x8x128xf32>
    %1131 = vector.shape_cast %1130 : vector<1x8x128xf32> to vector<8x128xf32>
    %1132 = arith.mulf %1125, %1125 : vector<8x128xf32>
    %1133 = arith.mulf %1128, %1128 : vector<8x128xf32>
    %1134 = arith.addf %1132, %1133 : vector<8x128xf32>
    %1135 = arith.mulf %1131, %1131 : vector<8x128xf32>
    %1136 = arith.addf %1134, %1135 : vector<8x128xf32>
    %1137 = math.sqrt %1136 : vector<8x128xf32>
    %cst_235 = arith.constant 5.000000e-01 : f32
    %1138 = vector.broadcast %cst_235 : f32 to vector<8x128xf32>
    %1139 = arith.mulf %1138, %1137 : vector<8x128xf32>
    %1140 = math.sin %1139 : vector<8x128xf32>
    %1141 = arith.mulf %1140, %1140 : vector<8x128xf32>
    %cst_236 = arith.constant 1.000000e+00 : f32
    %1142 = vector.broadcast %cst_236 : f32 to vector<8x128xf32>
    %1143 = arith.subf %1142, %1141 : vector<8x128xf32>
    %cst_237 = arith.constant 0.000000e+00 : f32
    %1144 = vector.broadcast %cst_237 : f32 to vector<8x128xf32>
    %1145 = arith.maximumf %1143, %1144 : vector<8x128xf32>
    %1146 = math.sqrt %1145 : vector<8x128xf32>
    %cst_238 = arith.constant 1.000000e-07 : f32
    %1147 = vector.broadcast %cst_238 : f32 to vector<8x128xf32>
    %1148 = arith.cmpf olt, %1137, %1147 : vector<8x128xf32>
    %cst_239 = arith.constant 1.000000e+00 : f32
    %1149 = vector.broadcast %cst_239 : f32 to vector<8x128xf32>
    %1150 = arith.select %1148, %1149, %1137 : vector<8x128xi1>, vector<8x128xf32>
    %cst_240 = arith.constant 0.166666672 : f32
    %1151 = vector.broadcast %cst_240 : f32 to vector<8x128xf32>
    %1152 = arith.mulf %1136, %1151 : vector<8x128xf32>
    %cst_241 = arith.constant 1.000000e+00 : f32
    %1153 = vector.broadcast %cst_241 : f32 to vector<8x128xf32>
    %1154 = arith.subf %1153, %1152 : vector<8x128xf32>
    %cst_242 = arith.constant 2.000000e+00 : f32
    %1155 = vector.broadcast %cst_242 : f32 to vector<8x128xf32>
    %1156 = arith.mulf %1155, %1140 : vector<8x128xf32>
    %1157 = arith.mulf %1156, %1146 : vector<8x128xf32>
    %1158 = arith.divf %1157, %1150 : vector<8x128xf32>
    %1159 = arith.select %1148, %1154, %1158 : vector<8x128xi1>, vector<8x128xf32>
    %cst_243 = arith.constant 0.0416666679 : f32
    %1160 = vector.broadcast %cst_243 : f32 to vector<8x128xf32>
    %1161 = arith.mulf %1136, %1160 : vector<8x128xf32>
    %cst_244 = arith.constant 5.000000e-01 : f32
    %1162 = vector.broadcast %cst_244 : f32 to vector<8x128xf32>
    %1163 = arith.subf %1162, %1161 : vector<8x128xf32>
    %cst_245 = arith.constant 2.000000e+00 : f32
    %1164 = vector.broadcast %cst_245 : f32 to vector<8x128xf32>
    %1165 = arith.mulf %1164, %1140 : vector<8x128xf32>
    %1166 = arith.mulf %1165, %1140 : vector<8x128xf32>
    %1167 = arith.mulf %1150, %1150 : vector<8x128xf32>
    %1168 = arith.divf %1166, %1167 : vector<8x128xf32>
    %1169 = arith.select %1148, %1163, %1168 : vector<8x128xi1>, vector<8x128xf32>
    %1170 = arith.mulf %1125, %1125 : vector<8x128xf32>
    %1171 = arith.mulf %1128, %1128 : vector<8x128xf32>
    %1172 = arith.mulf %1131, %1131 : vector<8x128xf32>
    %1173 = arith.mulf %1125, %1128 : vector<8x128xf32>
    %1174 = arith.mulf %1125, %1131 : vector<8x128xf32>
    %1175 = arith.mulf %1128, %1131 : vector<8x128xf32>
    %1176 = arith.addf %1171, %1172 : vector<8x128xf32>
    %1177 = arith.mulf %1169, %1176 : vector<8x128xf32>
    %cst_246 = arith.constant 1.000000e+00 : f32
    %1178 = vector.broadcast %cst_246 : f32 to vector<8x128xf32>
    %1179 = arith.subf %1178, %1177 : vector<8x128xf32>
    %cst_247 = arith.constant 0.000000e+00 : f32
    %1180 = vector.broadcast %cst_247 : f32 to vector<8x128xf32>
    %1181 = arith.subf %1180, %1159 : vector<8x128xf32>
    %1182 = arith.mulf %1181, %1131 : vector<8x128xf32>
    %1183 = arith.mulf %1169, %1173 : vector<8x128xf32>
    %1184 = arith.addf %1182, %1183 : vector<8x128xf32>
    %1185 = arith.mulf %1159, %1128 : vector<8x128xf32>
    %1186 = arith.mulf %1169, %1174 : vector<8x128xf32>
    %1187 = arith.addf %1185, %1186 : vector<8x128xf32>
    %1188 = arith.mulf %1159, %1131 : vector<8x128xf32>
    %1189 = arith.mulf %1169, %1173 : vector<8x128xf32>
    %1190 = arith.addf %1188, %1189 : vector<8x128xf32>
    %1191 = arith.addf %1170, %1172 : vector<8x128xf32>
    %1192 = arith.mulf %1169, %1191 : vector<8x128xf32>
    %cst_248 = arith.constant 1.000000e+00 : f32
    %1193 = vector.broadcast %cst_248 : f32 to vector<8x128xf32>
    %1194 = arith.subf %1193, %1192 : vector<8x128xf32>
    %cst_249 = arith.constant 0.000000e+00 : f32
    %1195 = vector.broadcast %cst_249 : f32 to vector<8x128xf32>
    %1196 = arith.subf %1195, %1159 : vector<8x128xf32>
    %1197 = arith.mulf %1196, %1125 : vector<8x128xf32>
    %1198 = arith.mulf %1169, %1175 : vector<8x128xf32>
    %1199 = arith.addf %1197, %1198 : vector<8x128xf32>
    %cst_250 = arith.constant 0.000000e+00 : f32
    %1200 = vector.broadcast %cst_250 : f32 to vector<8x128xf32>
    %1201 = arith.subf %1200, %1159 : vector<8x128xf32>
    %1202 = arith.mulf %1201, %1128 : vector<8x128xf32>
    %1203 = arith.mulf %1169, %1174 : vector<8x128xf32>
    %1204 = arith.addf %1202, %1203 : vector<8x128xf32>
    %1205 = arith.mulf %1159, %1125 : vector<8x128xf32>
    %1206 = arith.mulf %1169, %1175 : vector<8x128xf32>
    %1207 = arith.addf %1205, %1206 : vector<8x128xf32>
    %1208 = arith.addf %1170, %1171 : vector<8x128xf32>
    %1209 = arith.mulf %1169, %1208 : vector<8x128xf32>
    %cst_251 = arith.constant 1.000000e+00 : f32
    %1210 = vector.broadcast %cst_251 : f32 to vector<8x128xf32>
    %1211 = arith.subf %1210, %1209 : vector<8x128xf32>
    %c3_252 = arith.constant 3 : index
    %c0_253 = arith.constant 0 : index
    %1212 = arith.index_cast %2 : i32 to index
    %1213 = vector.load %arg2[%c3_252, %c0_253, %1212] : memref<6x8x128xf32, #tpu.memory_space<vmem>>, vector<1x8x128xf32>
    %1214 = vector.shape_cast %1213 : vector<1x8x128xf32> to vector<8x128xf32>
    %c4_254 = arith.constant 4 : index
    %c0_255 = arith.constant 0 : index
    %1215 = arith.index_cast %2 : i32 to index
    %1216 = vector.load %arg2[%c4_254, %c0_255, %1215] : memref<6x8x128xf32, #tpu.memory_space<vmem>>, vector<1x8x128xf32>
    %1217 = vector.shape_cast %1216 : vector<1x8x128xf32> to vector<8x128xf32>
    %c5_256 = arith.constant 5 : index
    %c0_257 = arith.constant 0 : index
    %1218 = arith.index_cast %2 : i32 to index
    %1219 = vector.load %arg2[%c5_256, %c0_257, %1218] : memref<6x8x128xf32, #tpu.memory_space<vmem>>, vector<1x8x128xf32>
    %1220 = vector.shape_cast %1219 : vector<1x8x128xf32> to vector<8x128xf32>
    %1221 = arith.mulf %1214, %1214 : vector<8x128xf32>
    %1222 = arith.mulf %1217, %1217 : vector<8x128xf32>
    %1223 = arith.addf %1221, %1222 : vector<8x128xf32>
    %1224 = arith.mulf %1220, %1220 : vector<8x128xf32>
    %1225 = arith.addf %1223, %1224 : vector<8x128xf32>
    %1226 = math.sqrt %1225 : vector<8x128xf32>
    %cst_258 = arith.constant 5.000000e-01 : f32
    %1227 = vector.broadcast %cst_258 : f32 to vector<8x128xf32>
    %1228 = arith.mulf %1227, %1226 : vector<8x128xf32>
    %1229 = math.sin %1228 : vector<8x128xf32>
    %1230 = arith.mulf %1229, %1229 : vector<8x128xf32>
    %cst_259 = arith.constant 1.000000e+00 : f32
    %1231 = vector.broadcast %cst_259 : f32 to vector<8x128xf32>
    %1232 = arith.subf %1231, %1230 : vector<8x128xf32>
    %cst_260 = arith.constant 0.000000e+00 : f32
    %1233 = vector.broadcast %cst_260 : f32 to vector<8x128xf32>
    %1234 = arith.maximumf %1232, %1233 : vector<8x128xf32>
    %1235 = math.sqrt %1234 : vector<8x128xf32>
    %cst_261 = arith.constant 1.000000e-07 : f32
    %1236 = vector.broadcast %cst_261 : f32 to vector<8x128xf32>
    %1237 = arith.cmpf olt, %1226, %1236 : vector<8x128xf32>
    %cst_262 = arith.constant 1.000000e+00 : f32
    %1238 = vector.broadcast %cst_262 : f32 to vector<8x128xf32>
    %1239 = arith.select %1237, %1238, %1226 : vector<8x128xi1>, vector<8x128xf32>
    %cst_263 = arith.constant 0.166666672 : f32
    %1240 = vector.broadcast %cst_263 : f32 to vector<8x128xf32>
    %1241 = arith.mulf %1225, %1240 : vector<8x128xf32>
    %cst_264 = arith.constant 1.000000e+00 : f32
    %1242 = vector.broadcast %cst_264 : f32 to vector<8x128xf32>
    %1243 = arith.subf %1242, %1241 : vector<8x128xf32>
    %cst_265 = arith.constant 2.000000e+00 : f32
    %1244 = vector.broadcast %cst_265 : f32 to vector<8x128xf32>
    %1245 = arith.mulf %1244, %1229 : vector<8x128xf32>
    %1246 = arith.mulf %1245, %1235 : vector<8x128xf32>
    %1247 = arith.divf %1246, %1239 : vector<8x128xf32>
    %1248 = arith.select %1237, %1243, %1247 : vector<8x128xi1>, vector<8x128xf32>
    %cst_266 = arith.constant 0.0416666679 : f32
    %1249 = vector.broadcast %cst_266 : f32 to vector<8x128xf32>
    %1250 = arith.mulf %1225, %1249 : vector<8x128xf32>
    %cst_267 = arith.constant 5.000000e-01 : f32
    %1251 = vector.broadcast %cst_267 : f32 to vector<8x128xf32>
    %1252 = arith.subf %1251, %1250 : vector<8x128xf32>
    %cst_268 = arith.constant 2.000000e+00 : f32
    %1253 = vector.broadcast %cst_268 : f32 to vector<8x128xf32>
    %1254 = arith.mulf %1253, %1229 : vector<8x128xf32>
    %1255 = arith.mulf %1254, %1229 : vector<8x128xf32>
    %1256 = arith.mulf %1239, %1239 : vector<8x128xf32>
    %1257 = arith.divf %1255, %1256 : vector<8x128xf32>
    %1258 = arith.select %1237, %1252, %1257 : vector<8x128xi1>, vector<8x128xf32>
    %1259 = arith.mulf %1214, %1214 : vector<8x128xf32>
    %1260 = arith.mulf %1217, %1217 : vector<8x128xf32>
    %1261 = arith.mulf %1220, %1220 : vector<8x128xf32>
    %1262 = arith.mulf %1214, %1217 : vector<8x128xf32>
    %1263 = arith.mulf %1214, %1220 : vector<8x128xf32>
    %1264 = arith.mulf %1217, %1220 : vector<8x128xf32>
    %1265 = arith.addf %1260, %1261 : vector<8x128xf32>
    %1266 = arith.mulf %1258, %1265 : vector<8x128xf32>
    %cst_269 = arith.constant 1.000000e+00 : f32
    %1267 = vector.broadcast %cst_269 : f32 to vector<8x128xf32>
    %1268 = arith.subf %1267, %1266 : vector<8x128xf32>
    %cst_270 = arith.constant 0.000000e+00 : f32
    %1269 = vector.broadcast %cst_270 : f32 to vector<8x128xf32>
    %1270 = arith.subf %1269, %1248 : vector<8x128xf32>
    %1271 = arith.mulf %1270, %1220 : vector<8x128xf32>
    %1272 = arith.mulf %1258, %1262 : vector<8x128xf32>
    %1273 = arith.addf %1271, %1272 : vector<8x128xf32>
    %1274 = arith.mulf %1248, %1217 : vector<8x128xf32>
    %1275 = arith.mulf %1258, %1263 : vector<8x128xf32>
    %1276 = arith.addf %1274, %1275 : vector<8x128xf32>
    %1277 = arith.mulf %1248, %1220 : vector<8x128xf32>
    %1278 = arith.mulf %1258, %1262 : vector<8x128xf32>
    %1279 = arith.addf %1277, %1278 : vector<8x128xf32>
    %1280 = arith.addf %1259, %1261 : vector<8x128xf32>
    %1281 = arith.mulf %1258, %1280 : vector<8x128xf32>
    %cst_271 = arith.constant 1.000000e+00 : f32
    %1282 = vector.broadcast %cst_271 : f32 to vector<8x128xf32>
    %1283 = arith.subf %1282, %1281 : vector<8x128xf32>
    %cst_272 = arith.constant 0.000000e+00 : f32
    %1284 = vector.broadcast %cst_272 : f32 to vector<8x128xf32>
    %1285 = arith.subf %1284, %1248 : vector<8x128xf32>
    %1286 = arith.mulf %1285, %1214 : vector<8x128xf32>
    %1287 = arith.mulf %1258, %1264 : vector<8x128xf32>
    %1288 = arith.addf %1286, %1287 : vector<8x128xf32>
    %cst_273 = arith.constant 0.000000e+00 : f32
    %1289 = vector.broadcast %cst_273 : f32 to vector<8x128xf32>
    %1290 = arith.subf %1289, %1248 : vector<8x128xf32>
    %1291 = arith.mulf %1290, %1217 : vector<8x128xf32>
    %1292 = arith.mulf %1258, %1263 : vector<8x128xf32>
    %1293 = arith.addf %1291, %1292 : vector<8x128xf32>
    %1294 = arith.mulf %1248, %1214 : vector<8x128xf32>
    %1295 = arith.mulf %1258, %1264 : vector<8x128xf32>
    %1296 = arith.addf %1294, %1295 : vector<8x128xf32>
    %1297 = arith.addf %1259, %1260 : vector<8x128xf32>
    %1298 = arith.mulf %1258, %1297 : vector<8x128xf32>
    %cst_274 = arith.constant 1.000000e+00 : f32
    %1299 = vector.broadcast %cst_274 : f32 to vector<8x128xf32>
    %1300 = arith.subf %1299, %1298 : vector<8x128xf32>
    %1301 = arith.mulf %521, %1179 : vector<8x128xf32>
    %cst_275 = arith.constant 0.000000e+00 : f32
    %1302 = vector.broadcast %cst_275 : f32 to vector<8x128xf32>
    %1303 = arith.addf %1302, %1301 : vector<8x128xf32>
    %1304 = arith.mulf %542, %1190 : vector<8x128xf32>
    %1305 = arith.addf %1303, %1304 : vector<8x128xf32>
    %1306 = arith.mulf %563, %1204 : vector<8x128xf32>
    %1307 = arith.addf %1305, %1306 : vector<8x128xf32>
    %1308 = arith.mulf %521, %1184 : vector<8x128xf32>
    %cst_276 = arith.constant 0.000000e+00 : f32
    %1309 = vector.broadcast %cst_276 : f32 to vector<8x128xf32>
    %1310 = arith.addf %1309, %1308 : vector<8x128xf32>
    %1311 = arith.mulf %542, %1194 : vector<8x128xf32>
    %1312 = arith.addf %1310, %1311 : vector<8x128xf32>
    %1313 = arith.mulf %563, %1207 : vector<8x128xf32>
    %1314 = arith.addf %1312, %1313 : vector<8x128xf32>
    %1315 = arith.mulf %521, %1187 : vector<8x128xf32>
    %cst_277 = arith.constant 0.000000e+00 : f32
    %1316 = vector.broadcast %cst_277 : f32 to vector<8x128xf32>
    %1317 = arith.addf %1316, %1315 : vector<8x128xf32>
    %1318 = arith.mulf %542, %1199 : vector<8x128xf32>
    %1319 = arith.addf %1317, %1318 : vector<8x128xf32>
    %1320 = arith.mulf %563, %1211 : vector<8x128xf32>
    %1321 = arith.addf %1319, %1320 : vector<8x128xf32>
    %1322 = arith.mulf %528, %1179 : vector<8x128xf32>
    %cst_278 = arith.constant 0.000000e+00 : f32
    %1323 = vector.broadcast %cst_278 : f32 to vector<8x128xf32>
    %1324 = arith.addf %1323, %1322 : vector<8x128xf32>
    %1325 = arith.mulf %549, %1190 : vector<8x128xf32>
    %1326 = arith.addf %1324, %1325 : vector<8x128xf32>
    %1327 = arith.mulf %570, %1204 : vector<8x128xf32>
    %1328 = arith.addf %1326, %1327 : vector<8x128xf32>
    %1329 = arith.mulf %528, %1184 : vector<8x128xf32>
    %cst_279 = arith.constant 0.000000e+00 : f32
    %1330 = vector.broadcast %cst_279 : f32 to vector<8x128xf32>
    %1331 = arith.addf %1330, %1329 : vector<8x128xf32>
    %1332 = arith.mulf %549, %1194 : vector<8x128xf32>
    %1333 = arith.addf %1331, %1332 : vector<8x128xf32>
    %1334 = arith.mulf %570, %1207 : vector<8x128xf32>
    %1335 = arith.addf %1333, %1334 : vector<8x128xf32>
    %1336 = arith.mulf %528, %1187 : vector<8x128xf32>
    %cst_280 = arith.constant 0.000000e+00 : f32
    %1337 = vector.broadcast %cst_280 : f32 to vector<8x128xf32>
    %1338 = arith.addf %1337, %1336 : vector<8x128xf32>
    %1339 = arith.mulf %549, %1199 : vector<8x128xf32>
    %1340 = arith.addf %1338, %1339 : vector<8x128xf32>
    %1341 = arith.mulf %570, %1211 : vector<8x128xf32>
    %1342 = arith.addf %1340, %1341 : vector<8x128xf32>
    %1343 = arith.mulf %535, %1179 : vector<8x128xf32>
    %cst_281 = arith.constant 0.000000e+00 : f32
    %1344 = vector.broadcast %cst_281 : f32 to vector<8x128xf32>
    %1345 = arith.addf %1344, %1343 : vector<8x128xf32>
    %1346 = arith.mulf %556, %1190 : vector<8x128xf32>
    %1347 = arith.addf %1345, %1346 : vector<8x128xf32>
    %1348 = arith.mulf %577, %1204 : vector<8x128xf32>
    %1349 = arith.addf %1347, %1348 : vector<8x128xf32>
    %1350 = arith.mulf %535, %1184 : vector<8x128xf32>
    %cst_282 = arith.constant 0.000000e+00 : f32
    %1351 = vector.broadcast %cst_282 : f32 to vector<8x128xf32>
    %1352 = arith.addf %1351, %1350 : vector<8x128xf32>
    %1353 = arith.mulf %556, %1194 : vector<8x128xf32>
    %1354 = arith.addf %1352, %1353 : vector<8x128xf32>
    %1355 = arith.mulf %577, %1207 : vector<8x128xf32>
    %1356 = arith.addf %1354, %1355 : vector<8x128xf32>
    %1357 = arith.mulf %535, %1187 : vector<8x128xf32>
    %cst_283 = arith.constant 0.000000e+00 : f32
    %1358 = vector.broadcast %cst_283 : f32 to vector<8x128xf32>
    %1359 = arith.addf %1358, %1357 : vector<8x128xf32>
    %1360 = arith.mulf %556, %1199 : vector<8x128xf32>
    %1361 = arith.addf %1359, %1360 : vector<8x128xf32>
    %1362 = arith.mulf %577, %1211 : vector<8x128xf32>
    %1363 = arith.addf %1361, %1362 : vector<8x128xf32>
    %1364 = arith.addf %1307, %1335 : vector<8x128xf32>
    %1365 = arith.addf %1364, %1363 : vector<8x128xf32>
    %cst_284 = arith.constant 1.000000e+00 : f32
    %1366 = vector.broadcast %cst_284 : f32 to vector<8x128xf32>
    %1367 = arith.subf %1365, %1366 : vector<8x128xf32>
    %cst_285 = arith.constant 5.000000e-01 : f32
    %1368 = vector.broadcast %cst_285 : f32 to vector<8x128xf32>
    %1369 = arith.mulf %1368, %1367 : vector<8x128xf32>
    %cst_286 = arith.constant -1.000000e+00 : f32
    %cst_287 = arith.constant 1.000000e+00 : f32
    %1370 = vector.broadcast %cst_286 : f32 to vector<8x128xf32>
    %1371 = arith.maximumf %1370, %1369 : vector<8x128xf32>
    %1372 = vector.broadcast %cst_287 : f32 to vector<8x128xf32>
    %1373 = arith.minimumf %1372, %1371 : vector<8x128xf32>
    %cst_288 = arith.constant -1.000000e+00 : f32
    %cst_289 = arith.constant 1.000000e+00 : f32
    %1374 = vector.broadcast %cst_288 : f32 to vector<8x128xf32>
    %1375 = arith.maximumf %1374, %1373 : vector<8x128xf32>
    %1376 = vector.broadcast %cst_289 : f32 to vector<8x128xf32>
    %1377 = arith.minimumf %1376, %1375 : vector<8x128xf32>
    %1378 = math.absf %1377 : vector<8x128xf32>
    %cst_290 = arith.constant -0.0012624911 : f32
    %1379 = vector.broadcast %cst_290 : f32 to vector<8x128xf32>
    %1380 = arith.mulf %1379, %1378 : vector<8x128xf32>
    %cst_291 = arith.constant 6.670090e-03 : f32
    %1381 = vector.broadcast %cst_291 : f32 to vector<8x128xf32>
    %1382 = arith.addf %1380, %1381 : vector<8x128xf32>
    %1383 = arith.mulf %1382, %1378 : vector<8x128xf32>
    %cst_292 = arith.constant 0.0170881264 : f32
    %1384 = vector.broadcast %cst_292 : f32 to vector<8x128xf32>
    %1385 = arith.subf %1383, %1384 : vector<8x128xf32>
    %1386 = arith.mulf %1385, %1378 : vector<8x128xf32>
    %cst_293 = arith.constant 0.0308918804 : f32
    %1387 = vector.broadcast %cst_293 : f32 to vector<8x128xf32>
    %1388 = arith.addf %1386, %1387 : vector<8x128xf32>
    %1389 = arith.mulf %1388, %1378 : vector<8x128xf32>
    %cst_294 = arith.constant 0.0501743034 : f32
    %1390 = vector.broadcast %cst_294 : f32 to vector<8x128xf32>
    %1391 = arith.subf %1389, %1390 : vector<8x128xf32>
    %1392 = arith.mulf %1391, %1378 : vector<8x128xf32>
    %cst_295 = arith.constant 0.0889789909 : f32
    %1393 = vector.broadcast %cst_295 : f32 to vector<8x128xf32>
    %1394 = arith.addf %1392, %1393 : vector<8x128xf32>
    %1395 = arith.mulf %1394, %1378 : vector<8x128xf32>
    %cst_296 = arith.constant 0.214598805 : f32
    %1396 = vector.broadcast %cst_296 : f32 to vector<8x128xf32>
    %1397 = arith.subf %1395, %1396 : vector<8x128xf32>
    %1398 = arith.mulf %1397, %1378 : vector<8x128xf32>
    %cst_297 = arith.constant 1.57079625 : f32
    %1399 = vector.broadcast %cst_297 : f32 to vector<8x128xf32>
    %1400 = arith.addf %1398, %1399 : vector<8x128xf32>
    %cst_298 = arith.constant 1.000000e+00 : f32
    %1401 = vector.broadcast %cst_298 : f32 to vector<8x128xf32>
    %1402 = arith.subf %1401, %1378 : vector<8x128xf32>
    %cst_299 = arith.constant 0.000000e+00 : f32
    %1403 = vector.broadcast %cst_299 : f32 to vector<8x128xf32>
    %1404 = arith.maximumf %1402, %1403 : vector<8x128xf32>
    %1405 = math.sqrt %1404 : vector<8x128xf32>
    %1406 = arith.mulf %1405, %1400 : vector<8x128xf32>
    %cst_300 = arith.constant 0.000000e+00 : f32
    %1407 = vector.broadcast %cst_300 : f32 to vector<8x128xf32>
    %1408 = arith.cmpf olt, %1377, %1407 : vector<8x128xf32>
    %cst_301 = arith.constant 3.14159274 : f32
    %1409 = vector.broadcast %cst_301 : f32 to vector<8x128xf32>
    %1410 = arith.subf %1409, %1406 : vector<8x128xf32>
    %1411 = arith.select %1408, %1410, %1406 : vector<8x128xi1>, vector<8x128xf32>
    %1412 = arith.mulf %1373, %1373 : vector<8x128xf32>
    %cst_302 = arith.constant 1.000000e+00 : f32
    %1413 = vector.broadcast %cst_302 : f32 to vector<8x128xf32>
    %1414 = arith.subf %1413, %1412 : vector<8x128xf32>
    %cst_303 = arith.constant 1.000000e-30 : f32
    %1415 = vector.broadcast %cst_303 : f32 to vector<8x128xf32>
    %1416 = arith.maximumf %1414, %1415 : vector<8x128xf32>
    %1417 = math.rsqrt %1416 : vector<8x128xf32>
    %cst_304 = arith.constant 0.00999999977 : f32
    %1418 = vector.broadcast %cst_304 : f32 to vector<8x128xf32>
    %1419 = arith.cmpf olt, %1411, %1418 : vector<8x128xf32>
    %1420 = arith.mulf %1411, %1411 : vector<8x128xf32>
    %cst_305 = arith.constant 0.166666672 : f32
    %1421 = vector.broadcast %cst_305 : f32 to vector<8x128xf32>
    %1422 = arith.mulf %1420, %1421 : vector<8x128xf32>
    %cst_306 = arith.constant 1.000000e+00 : f32
    %1423 = vector.broadcast %cst_306 : f32 to vector<8x128xf32>
    %1424 = arith.addf %1423, %1422 : vector<8x128xf32>
    %1425 = arith.mulf %1411, %1417 : vector<8x128xf32>
    %1426 = arith.select %1419, %1424, %1425 : vector<8x128xi1>, vector<8x128xf32>
    %cst_307 = arith.constant 5.000000e-01 : f32
    %1427 = vector.broadcast %cst_307 : f32 to vector<8x128xf32>
    %1428 = arith.mulf %1427, %1426 : vector<8x128xf32>
    %1429 = arith.subf %1356, %1342 : vector<8x128xf32>
    %1430 = arith.mulf %1428, %1429 : vector<8x128xf32>
    %cst_308 = arith.constant 5.000000e-01 : f32
    %1431 = vector.broadcast %cst_308 : f32 to vector<8x128xf32>
    %1432 = arith.mulf %1431, %1426 : vector<8x128xf32>
    %1433 = arith.subf %1321, %1349 : vector<8x128xf32>
    %1434 = arith.mulf %1432, %1433 : vector<8x128xf32>
    %cst_309 = arith.constant 5.000000e-01 : f32
    %1435 = vector.broadcast %cst_309 : f32 to vector<8x128xf32>
    %1436 = arith.mulf %1435, %1426 : vector<8x128xf32>
    %1437 = arith.subf %1328, %1314 : vector<8x128xf32>
    %1438 = arith.mulf %1436, %1437 : vector<8x128xf32>
    %cst_310 = arith.constant 2.000000e+02 : f32
    %1439 = vector.broadcast %cst_310 : f32 to vector<8x128xf32>
    %1440 = arith.mulf %1430, %1439 : vector<8x128xf32>
    %1441 = math.absf %1440 : vector<8x128xf32>
    %cst_311 = arith.constant 1.000000e+00 : f32
    %1442 = vector.broadcast %cst_311 : f32 to vector<8x128xf32>
    %1443 = arith.cmpf olt, %1441, %1442 : vector<8x128xf32>
    %cst_312 = arith.constant 5.000000e-01 : f32
    %1444 = vector.broadcast %cst_312 : f32 to vector<8x128xf32>
    %1445 = arith.mulf %1444, %1440 : vector<8x128xf32>
    %1446 = arith.mulf %1445, %1440 : vector<8x128xf32>
    %cst_313 = arith.constant 5.000000e-01 : f32
    %1447 = vector.broadcast %cst_313 : f32 to vector<8x128xf32>
    %1448 = arith.subf %1441, %1447 : vector<8x128xf32>
    %1449 = arith.select %1443, %1446, %1448 : vector<8x128xi1>, vector<8x128xf32>
    %1450 = arith.mulf %1449, %16 : vector<8x128xf32>
    %1451 = arith.addf %0, %1450 : vector<8x128xf32>
    %cst_314 = arith.constant 2.000000e+02 : f32
    %1452 = vector.broadcast %cst_314 : f32 to vector<8x128xf32>
    %1453 = arith.mulf %1434, %1452 : vector<8x128xf32>
    %1454 = math.absf %1453 : vector<8x128xf32>
    %cst_315 = arith.constant 1.000000e+00 : f32
    %1455 = vector.broadcast %cst_315 : f32 to vector<8x128xf32>
    %1456 = arith.cmpf olt, %1454, %1455 : vector<8x128xf32>
    %cst_316 = arith.constant 5.000000e-01 : f32
    %1457 = vector.broadcast %cst_316 : f32 to vector<8x128xf32>
    %1458 = arith.mulf %1457, %1453 : vector<8x128xf32>
    %1459 = arith.mulf %1458, %1453 : vector<8x128xf32>
    %cst_317 = arith.constant 5.000000e-01 : f32
    %1460 = vector.broadcast %cst_317 : f32 to vector<8x128xf32>
    %1461 = arith.subf %1454, %1460 : vector<8x128xf32>
    %1462 = arith.select %1456, %1459, %1461 : vector<8x128xi1>, vector<8x128xf32>
    %1463 = arith.mulf %1462, %16 : vector<8x128xf32>
    %1464 = arith.addf %1451, %1463 : vector<8x128xf32>
    %cst_318 = arith.constant 2.000000e+02 : f32
    %1465 = vector.broadcast %cst_318 : f32 to vector<8x128xf32>
    %1466 = arith.mulf %1438, %1465 : vector<8x128xf32>
    %1467 = math.absf %1466 : vector<8x128xf32>
    %cst_319 = arith.constant 1.000000e+00 : f32
    %1468 = vector.broadcast %cst_319 : f32 to vector<8x128xf32>
    %1469 = arith.cmpf olt, %1467, %1468 : vector<8x128xf32>
    %cst_320 = arith.constant 5.000000e-01 : f32
    %1470 = vector.broadcast %cst_320 : f32 to vector<8x128xf32>
    %1471 = arith.mulf %1470, %1466 : vector<8x128xf32>
    %1472 = arith.mulf %1471, %1466 : vector<8x128xf32>
    %cst_321 = arith.constant 5.000000e-01 : f32
    %1473 = vector.broadcast %cst_321 : f32 to vector<8x128xf32>
    %1474 = arith.subf %1467, %1473 : vector<8x128xf32>
    %1475 = arith.select %1469, %1472, %1474 : vector<8x128xi1>, vector<8x128xf32>
    %1476 = arith.mulf %1475, %16 : vector<8x128xf32>
    %1477 = arith.addf %1464, %1476 : vector<8x128xf32>
    %1478 = arith.mulf %1066, %1268 : vector<8x128xf32>
    %cst_322 = arith.constant 0.000000e+00 : f32
    %1479 = vector.broadcast %cst_322 : f32 to vector<8x128xf32>
    %1480 = arith.addf %1479, %1478 : vector<8x128xf32>
    %1481 = arith.mulf %1087, %1279 : vector<8x128xf32>
    %1482 = arith.addf %1480, %1481 : vector<8x128xf32>
    %1483 = arith.mulf %1108, %1293 : vector<8x128xf32>
    %1484 = arith.addf %1482, %1483 : vector<8x128xf32>
    %1485 = arith.mulf %1066, %1273 : vector<8x128xf32>
    %cst_323 = arith.constant 0.000000e+00 : f32
    %1486 = vector.broadcast %cst_323 : f32 to vector<8x128xf32>
    %1487 = arith.addf %1486, %1485 : vector<8x128xf32>
    %1488 = arith.mulf %1087, %1283 : vector<8x128xf32>
    %1489 = arith.addf %1487, %1488 : vector<8x128xf32>
    %1490 = arith.mulf %1108, %1296 : vector<8x128xf32>
    %1491 = arith.addf %1489, %1490 : vector<8x128xf32>
    %1492 = arith.mulf %1066, %1276 : vector<8x128xf32>
    %cst_324 = arith.constant 0.000000e+00 : f32
    %1493 = vector.broadcast %cst_324 : f32 to vector<8x128xf32>
    %1494 = arith.addf %1493, %1492 : vector<8x128xf32>
    %1495 = arith.mulf %1087, %1288 : vector<8x128xf32>
    %1496 = arith.addf %1494, %1495 : vector<8x128xf32>
    %1497 = arith.mulf %1108, %1300 : vector<8x128xf32>
    %1498 = arith.addf %1496, %1497 : vector<8x128xf32>
    %1499 = arith.mulf %1073, %1268 : vector<8x128xf32>
    %cst_325 = arith.constant 0.000000e+00 : f32
    %1500 = vector.broadcast %cst_325 : f32 to vector<8x128xf32>
    %1501 = arith.addf %1500, %1499 : vector<8x128xf32>
    %1502 = arith.mulf %1094, %1279 : vector<8x128xf32>
    %1503 = arith.addf %1501, %1502 : vector<8x128xf32>
    %1504 = arith.mulf %1115, %1293 : vector<8x128xf32>
    %1505 = arith.addf %1503, %1504 : vector<8x128xf32>
    %1506 = arith.mulf %1073, %1273 : vector<8x128xf32>
    %cst_326 = arith.constant 0.000000e+00 : f32
    %1507 = vector.broadcast %cst_326 : f32 to vector<8x128xf32>
    %1508 = arith.addf %1507, %1506 : vector<8x128xf32>
    %1509 = arith.mulf %1094, %1283 : vector<8x128xf32>
    %1510 = arith.addf %1508, %1509 : vector<8x128xf32>
    %1511 = arith.mulf %1115, %1296 : vector<8x128xf32>
    %1512 = arith.addf %1510, %1511 : vector<8x128xf32>
    %1513 = arith.mulf %1073, %1276 : vector<8x128xf32>
    %cst_327 = arith.constant 0.000000e+00 : f32
    %1514 = vector.broadcast %cst_327 : f32 to vector<8x128xf32>
    %1515 = arith.addf %1514, %1513 : vector<8x128xf32>
    %1516 = arith.mulf %1094, %1288 : vector<8x128xf32>
    %1517 = arith.addf %1515, %1516 : vector<8x128xf32>
    %1518 = arith.mulf %1115, %1300 : vector<8x128xf32>
    %1519 = arith.addf %1517, %1518 : vector<8x128xf32>
    %1520 = arith.mulf %1080, %1268 : vector<8x128xf32>
    %cst_328 = arith.constant 0.000000e+00 : f32
    %1521 = vector.broadcast %cst_328 : f32 to vector<8x128xf32>
    %1522 = arith.addf %1521, %1520 : vector<8x128xf32>
    %1523 = arith.mulf %1101, %1279 : vector<8x128xf32>
    %1524 = arith.addf %1522, %1523 : vector<8x128xf32>
    %1525 = arith.mulf %1122, %1293 : vector<8x128xf32>
    %1526 = arith.addf %1524, %1525 : vector<8x128xf32>
    %1527 = arith.mulf %1080, %1273 : vector<8x128xf32>
    %cst_329 = arith.constant 0.000000e+00 : f32
    %1528 = vector.broadcast %cst_329 : f32 to vector<8x128xf32>
    %1529 = arith.addf %1528, %1527 : vector<8x128xf32>
    %1530 = arith.mulf %1101, %1283 : vector<8x128xf32>
    %1531 = arith.addf %1529, %1530 : vector<8x128xf32>
    %1532 = arith.mulf %1122, %1296 : vector<8x128xf32>
    %1533 = arith.addf %1531, %1532 : vector<8x128xf32>
    %1534 = arith.mulf %1080, %1276 : vector<8x128xf32>
    %cst_330 = arith.constant 0.000000e+00 : f32
    %1535 = vector.broadcast %cst_330 : f32 to vector<8x128xf32>
    %1536 = arith.addf %1535, %1534 : vector<8x128xf32>
    %1537 = arith.mulf %1101, %1288 : vector<8x128xf32>
    %1538 = arith.addf %1536, %1537 : vector<8x128xf32>
    %1539 = arith.mulf %1122, %1300 : vector<8x128xf32>
    %1540 = arith.addf %1538, %1539 : vector<8x128xf32>
    %1541 = arith.addf %1484, %1512 : vector<8x128xf32>
    %1542 = arith.addf %1541, %1540 : vector<8x128xf32>
    %cst_331 = arith.constant 1.000000e+00 : f32
    %1543 = vector.broadcast %cst_331 : f32 to vector<8x128xf32>
    %1544 = arith.subf %1542, %1543 : vector<8x128xf32>
    %cst_332 = arith.constant 5.000000e-01 : f32
    %1545 = vector.broadcast %cst_332 : f32 to vector<8x128xf32>
    %1546 = arith.mulf %1545, %1544 : vector<8x128xf32>
    %cst_333 = arith.constant -1.000000e+00 : f32
    %cst_334 = arith.constant 1.000000e+00 : f32
    %1547 = vector.broadcast %cst_333 : f32 to vector<8x128xf32>
    %1548 = arith.maximumf %1547, %1546 : vector<8x128xf32>
    %1549 = vector.broadcast %cst_334 : f32 to vector<8x128xf32>
    %1550 = arith.minimumf %1549, %1548 : vector<8x128xf32>
    %cst_335 = arith.constant -1.000000e+00 : f32
    %cst_336 = arith.constant 1.000000e+00 : f32
    %1551 = vector.broadcast %cst_335 : f32 to vector<8x128xf32>
    %1552 = arith.maximumf %1551, %1550 : vector<8x128xf32>
    %1553 = vector.broadcast %cst_336 : f32 to vector<8x128xf32>
    %1554 = arith.minimumf %1553, %1552 : vector<8x128xf32>
    %1555 = math.absf %1554 : vector<8x128xf32>
    %cst_337 = arith.constant -0.0012624911 : f32
    %1556 = vector.broadcast %cst_337 : f32 to vector<8x128xf32>
    %1557 = arith.mulf %1556, %1555 : vector<8x128xf32>
    %cst_338 = arith.constant 6.670090e-03 : f32
    %1558 = vector.broadcast %cst_338 : f32 to vector<8x128xf32>
    %1559 = arith.addf %1557, %1558 : vector<8x128xf32>
    %1560 = arith.mulf %1559, %1555 : vector<8x128xf32>
    %cst_339 = arith.constant 0.0170881264 : f32
    %1561 = vector.broadcast %cst_339 : f32 to vector<8x128xf32>
    %1562 = arith.subf %1560, %1561 : vector<8x128xf32>
    %1563 = arith.mulf %1562, %1555 : vector<8x128xf32>
    %cst_340 = arith.constant 0.0308918804 : f32
    %1564 = vector.broadcast %cst_340 : f32 to vector<8x128xf32>
    %1565 = arith.addf %1563, %1564 : vector<8x128xf32>
    %1566 = arith.mulf %1565, %1555 : vector<8x128xf32>
    %cst_341 = arith.constant 0.0501743034 : f32
    %1567 = vector.broadcast %cst_341 : f32 to vector<8x128xf32>
    %1568 = arith.subf %1566, %1567 : vector<8x128xf32>
    %1569 = arith.mulf %1568, %1555 : vector<8x128xf32>
    %cst_342 = arith.constant 0.0889789909 : f32
    %1570 = vector.broadcast %cst_342 : f32 to vector<8x128xf32>
    %1571 = arith.addf %1569, %1570 : vector<8x128xf32>
    %1572 = arith.mulf %1571, %1555 : vector<8x128xf32>
    %cst_343 = arith.constant 0.214598805 : f32
    %1573 = vector.broadcast %cst_343 : f32 to vector<8x128xf32>
    %1574 = arith.subf %1572, %1573 : vector<8x128xf32>
    %1575 = arith.mulf %1574, %1555 : vector<8x128xf32>
    %cst_344 = arith.constant 1.57079625 : f32
    %1576 = vector.broadcast %cst_344 : f32 to vector<8x128xf32>
    %1577 = arith.addf %1575, %1576 : vector<8x128xf32>
    %cst_345 = arith.constant 1.000000e+00 : f32
    %1578 = vector.broadcast %cst_345 : f32 to vector<8x128xf32>
    %1579 = arith.subf %1578, %1555 : vector<8x128xf32>
    %cst_346 = arith.constant 0.000000e+00 : f32
    %1580 = vector.broadcast %cst_346 : f32 to vector<8x128xf32>
    %1581 = arith.maximumf %1579, %1580 : vector<8x128xf32>
    %1582 = math.sqrt %1581 : vector<8x128xf32>
    %1583 = arith.mulf %1582, %1577 : vector<8x128xf32>
    %cst_347 = arith.constant 0.000000e+00 : f32
    %1584 = vector.broadcast %cst_347 : f32 to vector<8x128xf32>
    %1585 = arith.cmpf olt, %1554, %1584 : vector<8x128xf32>
    %cst_348 = arith.constant 3.14159274 : f32
    %1586 = vector.broadcast %cst_348 : f32 to vector<8x128xf32>
    %1587 = arith.subf %1586, %1583 : vector<8x128xf32>
    %1588 = arith.select %1585, %1587, %1583 : vector<8x128xi1>, vector<8x128xf32>
    %1589 = arith.mulf %1550, %1550 : vector<8x128xf32>
    %cst_349 = arith.constant 1.000000e+00 : f32
    %1590 = vector.broadcast %cst_349 : f32 to vector<8x128xf32>
    %1591 = arith.subf %1590, %1589 : vector<8x128xf32>
    %cst_350 = arith.constant 1.000000e-30 : f32
    %1592 = vector.broadcast %cst_350 : f32 to vector<8x128xf32>
    %1593 = arith.maximumf %1591, %1592 : vector<8x128xf32>
    %1594 = math.rsqrt %1593 : vector<8x128xf32>
    %cst_351 = arith.constant 0.00999999977 : f32
    %1595 = vector.broadcast %cst_351 : f32 to vector<8x128xf32>
    %1596 = arith.cmpf olt, %1588, %1595 : vector<8x128xf32>
    %1597 = arith.mulf %1588, %1588 : vector<8x128xf32>
    %cst_352 = arith.constant 0.166666672 : f32
    %1598 = vector.broadcast %cst_352 : f32 to vector<8x128xf32>
    %1599 = arith.mulf %1597, %1598 : vector<8x128xf32>
    %cst_353 = arith.constant 1.000000e+00 : f32
    %1600 = vector.broadcast %cst_353 : f32 to vector<8x128xf32>
    %1601 = arith.addf %1600, %1599 : vector<8x128xf32>
    %1602 = arith.mulf %1588, %1594 : vector<8x128xf32>
    %1603 = arith.select %1596, %1601, %1602 : vector<8x128xi1>, vector<8x128xf32>
    %cst_354 = arith.constant 5.000000e-01 : f32
    %1604 = vector.broadcast %cst_354 : f32 to vector<8x128xf32>
    %1605 = arith.mulf %1604, %1603 : vector<8x128xf32>
    %1606 = arith.subf %1533, %1519 : vector<8x128xf32>
    %1607 = arith.mulf %1605, %1606 : vector<8x128xf32>
    %cst_355 = arith.constant 5.000000e-01 : f32
    %1608 = vector.broadcast %cst_355 : f32 to vector<8x128xf32>
    %1609 = arith.mulf %1608, %1603 : vector<8x128xf32>
    %1610 = arith.subf %1498, %1526 : vector<8x128xf32>
    %1611 = arith.mulf %1609, %1610 : vector<8x128xf32>
    %cst_356 = arith.constant 5.000000e-01 : f32
    %1612 = vector.broadcast %cst_356 : f32 to vector<8x128xf32>
    %1613 = arith.mulf %1612, %1603 : vector<8x128xf32>
    %1614 = arith.subf %1505, %1491 : vector<8x128xf32>
    %1615 = arith.mulf %1613, %1614 : vector<8x128xf32>
    %cst_357 = arith.constant 2.000000e+02 : f32
    %1616 = vector.broadcast %cst_357 : f32 to vector<8x128xf32>
    %1617 = arith.mulf %1607, %1616 : vector<8x128xf32>
    %1618 = math.absf %1617 : vector<8x128xf32>
    %cst_358 = arith.constant 1.000000e+00 : f32
    %1619 = vector.broadcast %cst_358 : f32 to vector<8x128xf32>
    %1620 = arith.cmpf olt, %1618, %1619 : vector<8x128xf32>
    %cst_359 = arith.constant 5.000000e-01 : f32
    %1621 = vector.broadcast %cst_359 : f32 to vector<8x128xf32>
    %1622 = arith.mulf %1621, %1617 : vector<8x128xf32>
    %1623 = arith.mulf %1622, %1617 : vector<8x128xf32>
    %cst_360 = arith.constant 5.000000e-01 : f32
    %1624 = vector.broadcast %cst_360 : f32 to vector<8x128xf32>
    %1625 = arith.subf %1618, %1624 : vector<8x128xf32>
    %1626 = arith.select %1620, %1623, %1625 : vector<8x128xi1>, vector<8x128xf32>
    %1627 = arith.mulf %1626, %26 : vector<8x128xf32>
    %1628 = arith.addf %1477, %1627 : vector<8x128xf32>
    %cst_361 = arith.constant 2.000000e+02 : f32
    %1629 = vector.broadcast %cst_361 : f32 to vector<8x128xf32>
    %1630 = arith.mulf %1611, %1629 : vector<8x128xf32>
    %1631 = math.absf %1630 : vector<8x128xf32>
    %cst_362 = arith.constant 1.000000e+00 : f32
    %1632 = vector.broadcast %cst_362 : f32 to vector<8x128xf32>
    %1633 = arith.cmpf olt, %1631, %1632 : vector<8x128xf32>
    %cst_363 = arith.constant 5.000000e-01 : f32
    %1634 = vector.broadcast %cst_363 : f32 to vector<8x128xf32>
    %1635 = arith.mulf %1634, %1630 : vector<8x128xf32>
    %1636 = arith.mulf %1635, %1630 : vector<8x128xf32>
    %cst_364 = arith.constant 5.000000e-01 : f32
    %1637 = vector.broadcast %cst_364 : f32 to vector<8x128xf32>
    %1638 = arith.subf %1631, %1637 : vector<8x128xf32>
    %1639 = arith.select %1633, %1636, %1638 : vector<8x128xi1>, vector<8x128xf32>
    %1640 = arith.mulf %1639, %26 : vector<8x128xf32>
    %1641 = arith.addf %1628, %1640 : vector<8x128xf32>
    %cst_365 = arith.constant 2.000000e+02 : f32
    %1642 = vector.broadcast %cst_365 : f32 to vector<8x128xf32>
    %1643 = arith.mulf %1615, %1642 : vector<8x128xf32>
    %1644 = math.absf %1643 : vector<8x128xf32>
    %cst_366 = arith.constant 1.000000e+00 : f32
    %1645 = vector.broadcast %cst_366 : f32 to vector<8x128xf32>
    %1646 = arith.cmpf olt, %1644, %1645 : vector<8x128xf32>
    %cst_367 = arith.constant 5.000000e-01 : f32
    %1647 = vector.broadcast %cst_367 : f32 to vector<8x128xf32>
    %1648 = arith.mulf %1647, %1643 : vector<8x128xf32>
    %1649 = arith.mulf %1648, %1643 : vector<8x128xf32>
    %cst_368 = arith.constant 5.000000e-01 : f32
    %1650 = vector.broadcast %cst_368 : f32 to vector<8x128xf32>
    %1651 = arith.subf %1644, %1650 : vector<8x128xf32>
    %1652 = arith.select %1646, %1649, %1651 : vector<8x128xi1>, vector<8x128xf32>
    %1653 = arith.mulf %1652, %26 : vector<8x128xf32>
    %1654 = arith.addf %1641, %1653 : vector<8x128xf32>
    %1655 = arith.mulf %521, %1066 : vector<8x128xf32>
    %cst_369 = arith.constant 0.000000e+00 : f32
    %1656 = vector.broadcast %cst_369 : f32 to vector<8x128xf32>
    %1657 = arith.addf %1656, %1655 : vector<8x128xf32>
    %1658 = arith.mulf %528, %1087 : vector<8x128xf32>
    %1659 = arith.addf %1657, %1658 : vector<8x128xf32>
    %1660 = arith.mulf %535, %1108 : vector<8x128xf32>
    %1661 = arith.addf %1659, %1660 : vector<8x128xf32>
    %1662 = arith.mulf %521, %1073 : vector<8x128xf32>
    %cst_370 = arith.constant 0.000000e+00 : f32
    %1663 = vector.broadcast %cst_370 : f32 to vector<8x128xf32>
    %1664 = arith.addf %1663, %1662 : vector<8x128xf32>
    %1665 = arith.mulf %528, %1094 : vector<8x128xf32>
    %1666 = arith.addf %1664, %1665 : vector<8x128xf32>
    %1667 = arith.mulf %535, %1115 : vector<8x128xf32>
    %1668 = arith.addf %1666, %1667 : vector<8x128xf32>
    %1669 = arith.mulf %521, %1080 : vector<8x128xf32>
    %cst_371 = arith.constant 0.000000e+00 : f32
    %1670 = vector.broadcast %cst_371 : f32 to vector<8x128xf32>
    %1671 = arith.addf %1670, %1669 : vector<8x128xf32>
    %1672 = arith.mulf %528, %1101 : vector<8x128xf32>
    %1673 = arith.addf %1671, %1672 : vector<8x128xf32>
    %1674 = arith.mulf %535, %1122 : vector<8x128xf32>
    %1675 = arith.addf %1673, %1674 : vector<8x128xf32>
    %1676 = arith.mulf %542, %1066 : vector<8x128xf32>
    %cst_372 = arith.constant 0.000000e+00 : f32
    %1677 = vector.broadcast %cst_372 : f32 to vector<8x128xf32>
    %1678 = arith.addf %1677, %1676 : vector<8x128xf32>
    %1679 = arith.mulf %549, %1087 : vector<8x128xf32>
    %1680 = arith.addf %1678, %1679 : vector<8x128xf32>
    %1681 = arith.mulf %556, %1108 : vector<8x128xf32>
    %1682 = arith.addf %1680, %1681 : vector<8x128xf32>
    %1683 = arith.mulf %542, %1073 : vector<8x128xf32>
    %cst_373 = arith.constant 0.000000e+00 : f32
    %1684 = vector.broadcast %cst_373 : f32 to vector<8x128xf32>
    %1685 = arith.addf %1684, %1683 : vector<8x128xf32>
    %1686 = arith.mulf %549, %1094 : vector<8x128xf32>
    %1687 = arith.addf %1685, %1686 : vector<8x128xf32>
    %1688 = arith.mulf %556, %1115 : vector<8x128xf32>
    %1689 = arith.addf %1687, %1688 : vector<8x128xf32>
    %1690 = arith.mulf %542, %1080 : vector<8x128xf32>
    %cst_374 = arith.constant 0.000000e+00 : f32
    %1691 = vector.broadcast %cst_374 : f32 to vector<8x128xf32>
    %1692 = arith.addf %1691, %1690 : vector<8x128xf32>
    %1693 = arith.mulf %549, %1101 : vector<8x128xf32>
    %1694 = arith.addf %1692, %1693 : vector<8x128xf32>
    %1695 = arith.mulf %556, %1122 : vector<8x128xf32>
    %1696 = arith.addf %1694, %1695 : vector<8x128xf32>
    %1697 = arith.mulf %563, %1066 : vector<8x128xf32>
    %cst_375 = arith.constant 0.000000e+00 : f32
    %1698 = vector.broadcast %cst_375 : f32 to vector<8x128xf32>
    %1699 = arith.addf %1698, %1697 : vector<8x128xf32>
    %1700 = arith.mulf %570, %1087 : vector<8x128xf32>
    %1701 = arith.addf %1699, %1700 : vector<8x128xf32>
    %1702 = arith.mulf %577, %1108 : vector<8x128xf32>
    %1703 = arith.addf %1701, %1702 : vector<8x128xf32>
    %1704 = arith.mulf %563, %1073 : vector<8x128xf32>
    %cst_376 = arith.constant 0.000000e+00 : f32
    %1705 = vector.broadcast %cst_376 : f32 to vector<8x128xf32>
    %1706 = arith.addf %1705, %1704 : vector<8x128xf32>
    %1707 = arith.mulf %570, %1094 : vector<8x128xf32>
    %1708 = arith.addf %1706, %1707 : vector<8x128xf32>
    %1709 = arith.mulf %577, %1115 : vector<8x128xf32>
    %1710 = arith.addf %1708, %1709 : vector<8x128xf32>
    %1711 = arith.mulf %563, %1080 : vector<8x128xf32>
    %cst_377 = arith.constant 0.000000e+00 : f32
    %1712 = vector.broadcast %cst_377 : f32 to vector<8x128xf32>
    %1713 = arith.addf %1712, %1711 : vector<8x128xf32>
    %1714 = arith.mulf %570, %1101 : vector<8x128xf32>
    %1715 = arith.addf %1713, %1714 : vector<8x128xf32>
    %1716 = arith.mulf %577, %1122 : vector<8x128xf32>
    %1717 = arith.addf %1715, %1716 : vector<8x128xf32>
    %1718 = arith.mulf %1179, %1268 : vector<8x128xf32>
    %cst_378 = arith.constant 0.000000e+00 : f32
    %1719 = vector.broadcast %cst_378 : f32 to vector<8x128xf32>
    %1720 = arith.addf %1719, %1718 : vector<8x128xf32>
    %1721 = arith.mulf %1184, %1279 : vector<8x128xf32>
    %1722 = arith.addf %1720, %1721 : vector<8x128xf32>
    %1723 = arith.mulf %1187, %1293 : vector<8x128xf32>
    %1724 = arith.addf %1722, %1723 : vector<8x128xf32>
    %1725 = arith.mulf %1179, %1273 : vector<8x128xf32>
    %cst_379 = arith.constant 0.000000e+00 : f32
    %1726 = vector.broadcast %cst_379 : f32 to vector<8x128xf32>
    %1727 = arith.addf %1726, %1725 : vector<8x128xf32>
    %1728 = arith.mulf %1184, %1283 : vector<8x128xf32>
    %1729 = arith.addf %1727, %1728 : vector<8x128xf32>
    %1730 = arith.mulf %1187, %1296 : vector<8x128xf32>
    %1731 = arith.addf %1729, %1730 : vector<8x128xf32>
    %1732 = arith.mulf %1179, %1276 : vector<8x128xf32>
    %cst_380 = arith.constant 0.000000e+00 : f32
    %1733 = vector.broadcast %cst_380 : f32 to vector<8x128xf32>
    %1734 = arith.addf %1733, %1732 : vector<8x128xf32>
    %1735 = arith.mulf %1184, %1288 : vector<8x128xf32>
    %1736 = arith.addf %1734, %1735 : vector<8x128xf32>
    %1737 = arith.mulf %1187, %1300 : vector<8x128xf32>
    %1738 = arith.addf %1736, %1737 : vector<8x128xf32>
    %1739 = arith.mulf %1190, %1268 : vector<8x128xf32>
    %cst_381 = arith.constant 0.000000e+00 : f32
    %1740 = vector.broadcast %cst_381 : f32 to vector<8x128xf32>
    %1741 = arith.addf %1740, %1739 : vector<8x128xf32>
    %1742 = arith.mulf %1194, %1279 : vector<8x128xf32>
    %1743 = arith.addf %1741, %1742 : vector<8x128xf32>
    %1744 = arith.mulf %1199, %1293 : vector<8x128xf32>
    %1745 = arith.addf %1743, %1744 : vector<8x128xf32>
    %1746 = arith.mulf %1190, %1273 : vector<8x128xf32>
    %cst_382 = arith.constant 0.000000e+00 : f32
    %1747 = vector.broadcast %cst_382 : f32 to vector<8x128xf32>
    %1748 = arith.addf %1747, %1746 : vector<8x128xf32>
    %1749 = arith.mulf %1194, %1283 : vector<8x128xf32>
    %1750 = arith.addf %1748, %1749 : vector<8x128xf32>
    %1751 = arith.mulf %1199, %1296 : vector<8x128xf32>
    %1752 = arith.addf %1750, %1751 : vector<8x128xf32>
    %1753 = arith.mulf %1190, %1276 : vector<8x128xf32>
    %cst_383 = arith.constant 0.000000e+00 : f32
    %1754 = vector.broadcast %cst_383 : f32 to vector<8x128xf32>
    %1755 = arith.addf %1754, %1753 : vector<8x128xf32>
    %1756 = arith.mulf %1194, %1288 : vector<8x128xf32>
    %1757 = arith.addf %1755, %1756 : vector<8x128xf32>
    %1758 = arith.mulf %1199, %1300 : vector<8x128xf32>
    %1759 = arith.addf %1757, %1758 : vector<8x128xf32>
    %1760 = arith.mulf %1204, %1268 : vector<8x128xf32>
    %cst_384 = arith.constant 0.000000e+00 : f32
    %1761 = vector.broadcast %cst_384 : f32 to vector<8x128xf32>
    %1762 = arith.addf %1761, %1760 : vector<8x128xf32>
    %1763 = arith.mulf %1207, %1279 : vector<8x128xf32>
    %1764 = arith.addf %1762, %1763 : vector<8x128xf32>
    %1765 = arith.mulf %1211, %1293 : vector<8x128xf32>
    %1766 = arith.addf %1764, %1765 : vector<8x128xf32>
    %1767 = arith.mulf %1204, %1273 : vector<8x128xf32>
    %cst_385 = arith.constant 0.000000e+00 : f32
    %1768 = vector.broadcast %cst_385 : f32 to vector<8x128xf32>
    %1769 = arith.addf %1768, %1767 : vector<8x128xf32>
    %1770 = arith.mulf %1207, %1283 : vector<8x128xf32>
    %1771 = arith.addf %1769, %1770 : vector<8x128xf32>
    %1772 = arith.mulf %1211, %1296 : vector<8x128xf32>
    %1773 = arith.addf %1771, %1772 : vector<8x128xf32>
    %1774 = arith.mulf %1204, %1276 : vector<8x128xf32>
    %cst_386 = arith.constant 0.000000e+00 : f32
    %1775 = vector.broadcast %cst_386 : f32 to vector<8x128xf32>
    %1776 = arith.addf %1775, %1774 : vector<8x128xf32>
    %1777 = arith.mulf %1207, %1288 : vector<8x128xf32>
    %1778 = arith.addf %1776, %1777 : vector<8x128xf32>
    %1779 = arith.mulf %1211, %1300 : vector<8x128xf32>
    %1780 = arith.addf %1778, %1779 : vector<8x128xf32>
    %1781 = arith.mulf %1661, %1724 : vector<8x128xf32>
    %cst_387 = arith.constant 0.000000e+00 : f32
    %1782 = vector.broadcast %cst_387 : f32 to vector<8x128xf32>
    %1783 = arith.addf %1782, %1781 : vector<8x128xf32>
    %1784 = arith.mulf %1682, %1745 : vector<8x128xf32>
    %1785 = arith.addf %1783, %1784 : vector<8x128xf32>
    %1786 = arith.mulf %1703, %1766 : vector<8x128xf32>
    %1787 = arith.addf %1785, %1786 : vector<8x128xf32>
    %1788 = arith.mulf %1661, %1731 : vector<8x128xf32>
    %cst_388 = arith.constant 0.000000e+00 : f32
    %1789 = vector.broadcast %cst_388 : f32 to vector<8x128xf32>
    %1790 = arith.addf %1789, %1788 : vector<8x128xf32>
    %1791 = arith.mulf %1682, %1752 : vector<8x128xf32>
    %1792 = arith.addf %1790, %1791 : vector<8x128xf32>
    %1793 = arith.mulf %1703, %1773 : vector<8x128xf32>
    %1794 = arith.addf %1792, %1793 : vector<8x128xf32>
    %1795 = arith.mulf %1661, %1738 : vector<8x128xf32>
    %cst_389 = arith.constant 0.000000e+00 : f32
    %1796 = vector.broadcast %cst_389 : f32 to vector<8x128xf32>
    %1797 = arith.addf %1796, %1795 : vector<8x128xf32>
    %1798 = arith.mulf %1682, %1759 : vector<8x128xf32>
    %1799 = arith.addf %1797, %1798 : vector<8x128xf32>
    %1800 = arith.mulf %1703, %1780 : vector<8x128xf32>
    %1801 = arith.addf %1799, %1800 : vector<8x128xf32>
    %1802 = arith.mulf %1668, %1724 : vector<8x128xf32>
    %cst_390 = arith.constant 0.000000e+00 : f32
    %1803 = vector.broadcast %cst_390 : f32 to vector<8x128xf32>
    %1804 = arith.addf %1803, %1802 : vector<8x128xf32>
    %1805 = arith.mulf %1689, %1745 : vector<8x128xf32>
    %1806 = arith.addf %1804, %1805 : vector<8x128xf32>
    %1807 = arith.mulf %1710, %1766 : vector<8x128xf32>
    %1808 = arith.addf %1806, %1807 : vector<8x128xf32>
    %1809 = arith.mulf %1668, %1731 : vector<8x128xf32>
    %cst_391 = arith.constant 0.000000e+00 : f32
    %1810 = vector.broadcast %cst_391 : f32 to vector<8x128xf32>
    %1811 = arith.addf %1810, %1809 : vector<8x128xf32>
    %1812 = arith.mulf %1689, %1752 : vector<8x128xf32>
    %1813 = arith.addf %1811, %1812 : vector<8x128xf32>
    %1814 = arith.mulf %1710, %1773 : vector<8x128xf32>
    %1815 = arith.addf %1813, %1814 : vector<8x128xf32>
    %1816 = arith.mulf %1668, %1738 : vector<8x128xf32>
    %cst_392 = arith.constant 0.000000e+00 : f32
    %1817 = vector.broadcast %cst_392 : f32 to vector<8x128xf32>
    %1818 = arith.addf %1817, %1816 : vector<8x128xf32>
    %1819 = arith.mulf %1689, %1759 : vector<8x128xf32>
    %1820 = arith.addf %1818, %1819 : vector<8x128xf32>
    %1821 = arith.mulf %1710, %1780 : vector<8x128xf32>
    %1822 = arith.addf %1820, %1821 : vector<8x128xf32>
    %1823 = arith.mulf %1675, %1724 : vector<8x128xf32>
    %cst_393 = arith.constant 0.000000e+00 : f32
    %1824 = vector.broadcast %cst_393 : f32 to vector<8x128xf32>
    %1825 = arith.addf %1824, %1823 : vector<8x128xf32>
    %1826 = arith.mulf %1696, %1745 : vector<8x128xf32>
    %1827 = arith.addf %1825, %1826 : vector<8x128xf32>
    %1828 = arith.mulf %1717, %1766 : vector<8x128xf32>
    %1829 = arith.addf %1827, %1828 : vector<8x128xf32>
    %1830 = arith.mulf %1675, %1731 : vector<8x128xf32>
    %cst_394 = arith.constant 0.000000e+00 : f32
    %1831 = vector.broadcast %cst_394 : f32 to vector<8x128xf32>
    %1832 = arith.addf %1831, %1830 : vector<8x128xf32>
    %1833 = arith.mulf %1696, %1752 : vector<8x128xf32>
    %1834 = arith.addf %1832, %1833 : vector<8x128xf32>
    %1835 = arith.mulf %1717, %1773 : vector<8x128xf32>
    %1836 = arith.addf %1834, %1835 : vector<8x128xf32>
    %1837 = arith.mulf %1675, %1738 : vector<8x128xf32>
    %cst_395 = arith.constant 0.000000e+00 : f32
    %1838 = vector.broadcast %cst_395 : f32 to vector<8x128xf32>
    %1839 = arith.addf %1838, %1837 : vector<8x128xf32>
    %1840 = arith.mulf %1696, %1759 : vector<8x128xf32>
    %1841 = arith.addf %1839, %1840 : vector<8x128xf32>
    %1842 = arith.mulf %1717, %1780 : vector<8x128xf32>
    %1843 = arith.addf %1841, %1842 : vector<8x128xf32>
    %1844 = arith.addf %1787, %1815 : vector<8x128xf32>
    %1845 = arith.addf %1844, %1843 : vector<8x128xf32>
    %cst_396 = arith.constant 1.000000e+00 : f32
    %1846 = vector.broadcast %cst_396 : f32 to vector<8x128xf32>
    %1847 = arith.subf %1845, %1846 : vector<8x128xf32>
    %cst_397 = arith.constant 5.000000e-01 : f32
    %1848 = vector.broadcast %cst_397 : f32 to vector<8x128xf32>
    %1849 = arith.mulf %1848, %1847 : vector<8x128xf32>
    %cst_398 = arith.constant -1.000000e+00 : f32
    %cst_399 = arith.constant 1.000000e+00 : f32
    %1850 = vector.broadcast %cst_398 : f32 to vector<8x128xf32>
    %1851 = arith.maximumf %1850, %1849 : vector<8x128xf32>
    %1852 = vector.broadcast %cst_399 : f32 to vector<8x128xf32>
    %1853 = arith.minimumf %1852, %1851 : vector<8x128xf32>
    %cst_400 = arith.constant -1.000000e+00 : f32
    %cst_401 = arith.constant 1.000000e+00 : f32
    %1854 = vector.broadcast %cst_400 : f32 to vector<8x128xf32>
    %1855 = arith.maximumf %1854, %1853 : vector<8x128xf32>
    %1856 = vector.broadcast %cst_401 : f32 to vector<8x128xf32>
    %1857 = arith.minimumf %1856, %1855 : vector<8x128xf32>
    %1858 = math.absf %1857 : vector<8x128xf32>
    %cst_402 = arith.constant -0.0012624911 : f32
    %1859 = vector.broadcast %cst_402 : f32 to vector<8x128xf32>
    %1860 = arith.mulf %1859, %1858 : vector<8x128xf32>
    %cst_403 = arith.constant 6.670090e-03 : f32
    %1861 = vector.broadcast %cst_403 : f32 to vector<8x128xf32>
    %1862 = arith.addf %1860, %1861 : vector<8x128xf32>
    %1863 = arith.mulf %1862, %1858 : vector<8x128xf32>
    %cst_404 = arith.constant 0.0170881264 : f32
    %1864 = vector.broadcast %cst_404 : f32 to vector<8x128xf32>
    %1865 = arith.subf %1863, %1864 : vector<8x128xf32>
    %1866 = arith.mulf %1865, %1858 : vector<8x128xf32>
    %cst_405 = arith.constant 0.0308918804 : f32
    %1867 = vector.broadcast %cst_405 : f32 to vector<8x128xf32>
    %1868 = arith.addf %1866, %1867 : vector<8x128xf32>
    %1869 = arith.mulf %1868, %1858 : vector<8x128xf32>
    %cst_406 = arith.constant 0.0501743034 : f32
    %1870 = vector.broadcast %cst_406 : f32 to vector<8x128xf32>
    %1871 = arith.subf %1869, %1870 : vector<8x128xf32>
    %1872 = arith.mulf %1871, %1858 : vector<8x128xf32>
    %cst_407 = arith.constant 0.0889789909 : f32
    %1873 = vector.broadcast %cst_407 : f32 to vector<8x128xf32>
    %1874 = arith.addf %1872, %1873 : vector<8x128xf32>
    %1875 = arith.mulf %1874, %1858 : vector<8x128xf32>
    %cst_408 = arith.constant 0.214598805 : f32
    %1876 = vector.broadcast %cst_408 : f32 to vector<8x128xf32>
    %1877 = arith.subf %1875, %1876 : vector<8x128xf32>
    %1878 = arith.mulf %1877, %1858 : vector<8x128xf32>
    %cst_409 = arith.constant 1.57079625 : f32
    %1879 = vector.broadcast %cst_409 : f32 to vector<8x128xf32>
    %1880 = arith.addf %1878, %1879 : vector<8x128xf32>
    %cst_410 = arith.constant 1.000000e+00 : f32
    %1881 = vector.broadcast %cst_410 : f32 to vector<8x128xf32>
    %1882 = arith.subf %1881, %1858 : vector<8x128xf32>
    %cst_411 = arith.constant 0.000000e+00 : f32
    %1883 = vector.broadcast %cst_411 : f32 to vector<8x128xf32>
    %1884 = arith.maximumf %1882, %1883 : vector<8x128xf32>
    %1885 = math.sqrt %1884 : vector<8x128xf32>
    %1886 = arith.mulf %1885, %1880 : vector<8x128xf32>
    %cst_412 = arith.constant 0.000000e+00 : f32
    %1887 = vector.broadcast %cst_412 : f32 to vector<8x128xf32>
    %1888 = arith.cmpf olt, %1857, %1887 : vector<8x128xf32>
    %cst_413 = arith.constant 3.14159274 : f32
    %1889 = vector.broadcast %cst_413 : f32 to vector<8x128xf32>
    %1890 = arith.subf %1889, %1886 : vector<8x128xf32>
    %1891 = arith.select %1888, %1890, %1886 : vector<8x128xi1>, vector<8x128xf32>
    %1892 = arith.mulf %1853, %1853 : vector<8x128xf32>
    %cst_414 = arith.constant 1.000000e+00 : f32
    %1893 = vector.broadcast %cst_414 : f32 to vector<8x128xf32>
    %1894 = arith.subf %1893, %1892 : vector<8x128xf32>
    %cst_415 = arith.constant 1.000000e-30 : f32
    %1895 = vector.broadcast %cst_415 : f32 to vector<8x128xf32>
    %1896 = arith.maximumf %1894, %1895 : vector<8x128xf32>
    %1897 = math.rsqrt %1896 : vector<8x128xf32>
    %cst_416 = arith.constant 0.00999999977 : f32
    %1898 = vector.broadcast %cst_416 : f32 to vector<8x128xf32>
    %1899 = arith.cmpf olt, %1891, %1898 : vector<8x128xf32>
    %1900 = arith.mulf %1891, %1891 : vector<8x128xf32>
    %cst_417 = arith.constant 0.166666672 : f32
    %1901 = vector.broadcast %cst_417 : f32 to vector<8x128xf32>
    %1902 = arith.mulf %1900, %1901 : vector<8x128xf32>
    %cst_418 = arith.constant 1.000000e+00 : f32
    %1903 = vector.broadcast %cst_418 : f32 to vector<8x128xf32>
    %1904 = arith.addf %1903, %1902 : vector<8x128xf32>
    %1905 = arith.mulf %1891, %1897 : vector<8x128xf32>
    %1906 = arith.select %1899, %1904, %1905 : vector<8x128xi1>, vector<8x128xf32>
    %cst_419 = arith.constant 5.000000e-01 : f32
    %1907 = vector.broadcast %cst_419 : f32 to vector<8x128xf32>
    %1908 = arith.mulf %1907, %1906 : vector<8x128xf32>
    %1909 = arith.subf %1836, %1822 : vector<8x128xf32>
    %1910 = arith.mulf %1908, %1909 : vector<8x128xf32>
    %cst_420 = arith.constant 5.000000e-01 : f32
    %1911 = vector.broadcast %cst_420 : f32 to vector<8x128xf32>
    %1912 = arith.mulf %1911, %1906 : vector<8x128xf32>
    %1913 = arith.subf %1801, %1829 : vector<8x128xf32>
    %1914 = arith.mulf %1912, %1913 : vector<8x128xf32>
    %cst_421 = arith.constant 5.000000e-01 : f32
    %1915 = vector.broadcast %cst_421 : f32 to vector<8x128xf32>
    %1916 = arith.mulf %1915, %1906 : vector<8x128xf32>
    %1917 = arith.subf %1808, %1794 : vector<8x128xf32>
    %1918 = arith.mulf %1916, %1917 : vector<8x128xf32>
    %cst_422 = arith.constant 2.000000e+02 : f32
    %1919 = vector.broadcast %cst_422 : f32 to vector<8x128xf32>
    %1920 = arith.mulf %1910, %1919 : vector<8x128xf32>
    %1921 = math.absf %1920 : vector<8x128xf32>
    %cst_423 = arith.constant 1.000000e+00 : f32
    %1922 = vector.broadcast %cst_423 : f32 to vector<8x128xf32>
    %1923 = arith.cmpf olt, %1921, %1922 : vector<8x128xf32>
    %cst_424 = arith.constant 5.000000e-01 : f32
    %1924 = vector.broadcast %cst_424 : f32 to vector<8x128xf32>
    %1925 = arith.mulf %1924, %1920 : vector<8x128xf32>
    %1926 = arith.mulf %1925, %1920 : vector<8x128xf32>
    %cst_425 = arith.constant 5.000000e-01 : f32
    %1927 = vector.broadcast %cst_425 : f32 to vector<8x128xf32>
    %1928 = arith.subf %1921, %1927 : vector<8x128xf32>
    %1929 = arith.select %1923, %1926, %1928 : vector<8x128xi1>, vector<8x128xf32>
    %1930 = arith.mulf %1929, %32 : vector<8x128xf32>
    %1931 = arith.addf %1654, %1930 : vector<8x128xf32>
    %cst_426 = arith.constant 2.000000e+02 : f32
    %1932 = vector.broadcast %cst_426 : f32 to vector<8x128xf32>
    %1933 = arith.mulf %1914, %1932 : vector<8x128xf32>
    %1934 = math.absf %1933 : vector<8x128xf32>
    %cst_427 = arith.constant 1.000000e+00 : f32
    %1935 = vector.broadcast %cst_427 : f32 to vector<8x128xf32>
    %1936 = arith.cmpf olt, %1934, %1935 : vector<8x128xf32>
    %cst_428 = arith.constant 5.000000e-01 : f32
    %1937 = vector.broadcast %cst_428 : f32 to vector<8x128xf32>
    %1938 = arith.mulf %1937, %1933 : vector<8x128xf32>
    %1939 = arith.mulf %1938, %1933 : vector<8x128xf32>
    %cst_429 = arith.constant 5.000000e-01 : f32
    %1940 = vector.broadcast %cst_429 : f32 to vector<8x128xf32>
    %1941 = arith.subf %1934, %1940 : vector<8x128xf32>
    %1942 = arith.select %1936, %1939, %1941 : vector<8x128xi1>, vector<8x128xf32>
    %1943 = arith.mulf %1942, %32 : vector<8x128xf32>
    %1944 = arith.addf %1931, %1943 : vector<8x128xf32>
    %cst_430 = arith.constant 2.000000e+02 : f32
    %1945 = vector.broadcast %cst_430 : f32 to vector<8x128xf32>
    %1946 = arith.mulf %1918, %1945 : vector<8x128xf32>
    %1947 = math.absf %1946 : vector<8x128xf32>
    %cst_431 = arith.constant 1.000000e+00 : f32
    %1948 = vector.broadcast %cst_431 : f32 to vector<8x128xf32>
    %1949 = arith.cmpf olt, %1947, %1948 : vector<8x128xf32>
    %cst_432 = arith.constant 5.000000e-01 : f32
    %1950 = vector.broadcast %cst_432 : f32 to vector<8x128xf32>
    %1951 = arith.mulf %1950, %1946 : vector<8x128xf32>
    %1952 = arith.mulf %1951, %1946 : vector<8x128xf32>
    %cst_433 = arith.constant 5.000000e-01 : f32
    %1953 = vector.broadcast %cst_433 : f32 to vector<8x128xf32>
    %1954 = arith.subf %1947, %1953 : vector<8x128xf32>
    %1955 = arith.select %1949, %1952, %1954 : vector<8x128xi1>, vector<8x128xf32>
    %1956 = arith.mulf %1955, %32 : vector<8x128xf32>
    %1957 = arith.addf %1944, %1956 : vector<8x128xf32>
    %c1_i32 = arith.constant 1 : i32
    %c0_434 = arith.constant 0 : index
    %c0_435 = arith.constant 0 : index
    %1958 = vector.load %arg4[%c0_434, %c0_435] : memref<8x128xf32, #tpu.memory_space<vmem>>, vector<8x128xf32>
    tpu.vector_store %arg4[%c0_434, %c0_435], %1957 {strides = array<i32>} : memref<8x128xf32, #tpu.memory_space<vmem>>, vector<8x128xf32>,
    return
  }
  func.func @transform_0(%arg0: i32) -> (i32, i32, i32) {
    %c0_i32 = arith.constant 0 : i32
    %c0_i32_0 = arith.constant 0 : i32
    %c0_i32_1 = arith.constant 0 : i32
    return %c0_i32, %c0_i32_0, %arg0 : i32, i32, i32
  }
  func.func @transform_1(%arg0: i32) -> (i32, i32, i32) {
    %c0_i32 = arith.constant 0 : i32
    %c0_i32_0 = arith.constant 0 : i32
    %c0_i32_1 = arith.constant 0 : i32
    return %c0_i32, %c0_i32_0, %arg0 : i32, i32, i32
  }
  func.func @transform_2(%arg0: i32) -> (i32, i32) {
    %c0_i32 = arith.constant 0 : i32
    %c0_i32_0 = arith.constant 0 : i32
    return %c0_i32, %arg0 : i32, i32
  }
  func.func @transform_3(%arg0: i32) -> (i32, i32) {
    %c0_i32 = arith.constant 0 : i32
    %c0_i32_0 = arith.constant 0 : i32
    return %c0_i32, %arg0 : i32, i32
  }
}

</mosaic_0001>

<bundles_post_ra>
// kernel: gyro_loss_pallas.1
= control target key start
LH: loop header
LB: loop body
LE: loop exit
PB: predicated region body
PF: predicated region fallthrough
CT: control target
= control target key end

     0   :  { %s6199_s0 = inlined_call_operand.vmem [shape: f32[24,8,128], index: 0, kind: input, shape index: {}]   ;;  %s6200_s1 = inlined_call_operand.vmem [shape: f32[6,8,128], index: 1, kind: input, shape index: {}]   ;;  %s6201_s2 = inlined_call_operand.vmem [shape: f32[8,128], index: 2, kind: input, shape index: {}]   ;;  %s6202_s3 = inlined_call_operand.vmem [shape: f32[8,128], index: 3, kind: output, shape index: {}]  }
   0x1   :  { %v3007_v0 = vld [vmem:[%s6199_s0] sm:$0xff]  ;;  %v3012_v1 = vld [vmem:[%s6199_s0 + $0x8] sm:$0xff]  ;;  %v3017_v2 = vld [vmem:[%s6199_s0 + $0x10] sm:$0xff] }
   0x2   :  { %6347 = vst [vmem:[#allocation2_spill] sm:$0xff] %v3007_v0  ;;  %6348 = vst [vmem:[#allocation3_spill] sm:$0xff] %v3012_v1  ;;  %v35_v3 = vmul.f32 %v3007_v0, %v3007_v0  ;;  %v36_v4 = vmul.f32 %v3012_v1, %v3012_v1  ;;  %v38_v5 = vmul.f32 %v3017_v2, %v3017_v2  ;;  %v3028_v6 = vld [vmem:[%s6199_s0 + $0x18] sm:$0xff]  ;;  %v3033_v7 = vld [vmem:[%s6199_s0 + $0x20] sm:$0xff] }
   0x3   :  { %6349 = vst [vmem:[#allocation4_spill] sm:$0xff] %v3017_v2  ;;  %v3038_v8 = vld [vmem:[%s6199_s0 + $0x28] sm:$0xff]  ;;  %v2689_v10 = vld [vmem:[%s6199_s0 + $0x30] sm:$0xff]  ;;  %v2690_v11 = vld [vmem:[%s6199_s0 + $0x38] sm:$0xff]  ;;  %v214_v16 = vmul.f32 %v3028_v6, %v3028_v6  ;;  %v215_v17 = vmul.f32 %v3033_v7, %v3033_v7  ;;  %v3127_v51 = vmul.f32 %v3012_v1, %v3007_v0  ;;  %v3148_v61 = vmul.f32 %v3017_v2, %v3007_v0 }
   0x4   :  { %v3040_v9 = vadd.f32 %v36_v4, %v35_v3  ;;  %v2691_v12 = vld [vmem:[%s6199_s0 + $0x40] sm:$0xff]  ;;  %v3051_v13 = vadd.f32 %v38_v5, %v36_v4  ;;  %v3053_v14 = vadd.f32 %v38_v5, %v35_v3  ;;  %v217_v18 = vmul.f32 %v3038_v8, %v3038_v8  ;;  %v2696_v45 = vld [vmem:[%s6199_s0 + $0x48] sm:$0xff]  ;;  %v2697_v46 = vld [vmem:[%s6199_s0 + $0x50] sm:$0xff] }
   0x5   :  { %v3064_v19 = vmul.f32 %v2689_v10, %v2689_v10  ;;  %v3066_v20 = vmul.f32 %v2690_v11, %v2690_v11  ;;  %v3068_v21 = vmul.f32 %v2691_v12, %v2691_v12  ;;  %v3071_v22 = vadd.f32 %v215_v17, %v214_v16  ;;  %v2698_v55 = vld [vmem:[%s6199_s0 + $0x58] sm:$0xff]  ;;  %v2703_v58 = vld [vmem:[%s6199_s0 + $0x60] sm:$0xff]  ;;  %v2704_v63 = vld [vmem:[%s6199_s0 + $0x68] sm:$0xff] }
   0x6   :  { %v3056_v15 = vadd.f32 %v38_v5, %v3040_v9  ;;  %v3086_v26 = vadd.f32 %v217_v18, %v215_v17  ;;  %v3088_v27 = vadd.f32 %v217_v18, %v214_v16  ;;  %v3136_v56 = vmul.f32 %v2696_v45, %v2696_v45  ;;  %v2705_v11 = vld [vmem:[%s6199_s0 + $0x70] sm:$0xff] }
   0x7   :  { %6350 = vst [vmem:[#allocation5_spill] sm:$0xff] %v3064_v19  ;;  %6351 = vst [vmem:[#allocation6_spill] sm:$0xff] %v3066_v20  ;;  %v3075_v23 = vadd.f32 %v3066_v20, %v3064_v19  ;;  %v3078_v24 = vadd.f32 %v217_v18, %v3071_v22  ;;  %v3138_v57 = vmul.f32 %v2697_v46, %v2697_v46  ;;  %v6208_v45 = vmov 2475754826  }
   0x8   :  { %6352 = vst [vmem:[#allocation7_spill] sm:$0xff] %v3068_v21  ;;  %2815 = vrsqrt.f32 %v3056_v15  ;;  %6353 = vst [vmem:[#allocation8_spill] sm:$0xff] %v3071_v22  ;;  %vm42_vm0 = vcmp.eq.f32.partialorder %v3056_v15, inf  ;;  %v45_v29 = vand.u32 2147483648, %v3056_v15  ;;  %vm44_vm1 = vcmp.eq.f32.partialorder %v3056_v15, 0.0 }
   0x9   :  { %6354 = vst [vmem:[#allocation9_spill] sm:$0xff] %v3075_v23  ;;  %v3082_v25 = vadd.f32 %v3068_v21, %v3075_v23  ;;  %2817 = vrsqrt.f32 %v3078_v24  ;;  %6355 = vst [vmem:[#allocation10_spill] sm:$0xff] %v3086_v26  ;;  %vm221_vm2 = vcmp.eq.f32.partialorder %v3078_v24, inf  ;;  %v224_v35 = vand.u32 2147483648, %v3078_v24 }
   0xa   :  { %6356 = vst [vmem:[#allocation11_spill] sm:$0xff] %v3088_v27  ;;  %vm223_vm3 = vcmp.eq.f32.partialorder %v3078_v24, 0.0  ;;  %6357 = vst [vmem:[#allocation12_spill] sm:$0xff] %v3136_v56  ;;  %v3144_v60 = vmul.f32 0.16666667, %v3056_v15  ;;  %v3152_v62 = vmul.f32 %v3017_v2, %v3012_v1  ;;  %v3168_v16 = vmul.f32 %v2698_v55, %v2698_v55 }
   0xb   :  { %2819 = vrsqrt.f32 %v3082_v25  ;;  %vm454_vm4 = vcmp.eq.f32.partialorder %v3082_v25, inf  ;;  %v457_v40 = vand.u32 2147483648, %v3082_v25  ;;  %vm456_vm5 = vcmp.eq.f32.partialorder %v3082_v25, 0.0  ;;  %6358 = vst [vmem:[#allocation13_spill] sm:$0xff] %v3138_v57 }
   0xc   :  { %v3166_v12 = vmul.f32 0.041666668, %v3056_v15  ;;  %6359 = vst [vmem:[#allocation14_spill] sm:$0xff] %v3168_v16  ;;  %v3170_v17 = vmul.f32 %v2703_v58, %v2703_v58  ;;  %v6214_v55 = vmov 920167782  }
   0xe   :  { %6360 = vst [vmem:[#allocation15_spill] sm:$0xff] %v3170_v17 }
  0x12   :  { %v2816_v28 = vpop.eup %2815 }
  0x13   :  { %v41_v30 = vmul.f32 %v2816_v28, %v3056_v15  ;;  %v2818_v33 = vpop.eup %2817 }
  0x14   :  { %v220_v37 = vmul.f32 %v2818_v33, %v3078_v24 }
  0x15   :  { %v43_v31 = vsel %vm42_vm0, %v3056_v15, %v41_v30  ;;  %v2820_v36 = vpop.eup %2819  ;;  %v3174_v30 = vadd.f32 %v3138_v57, %v3136_v56 }
  0x16   :  { %v3095_v32 = vsel %vm44_vm1, %v45_v29, %v43_v31  ;;  %v222_v41 = vsel %vm221_vm2, %v3078_v24, %v220_v37  ;;  %v453_v42 = vmul.f32 %v2820_v36, %v3082_v25  ;;  %v3178_v36 = vmul.f32 %v2705_v11, %v2705_v11 }
  0x17   :  { %v3098_v34 = vmul.f32 0.5, %v3095_v32  ;;  %v3111_v44 = vsel %vm223_vm3, %v224_v35, %v222_v41  ;;  %6361 = vst [vmem:[#allocation16_spill] sm:$0xff] %v3174_v30  ;;  %v3176_v35 = vmul.f32 %v2704_v63, %v2704_v63  ;;  %vm162_vm1 = vcmp.lt.f32.partialorder %v3095_v32, 1e-07 }
  0x18   :  { %v3122_v48 = vmul.f32 0.5, %v3111_v44  ;;  %v455_v49 = vsel %vm454_vm4, %v3082_v25, %v453_v42  ;;  %6363 = vst [vmem:[#allocation18_spill] sm:$0xff] %v3178_v36  ;;  %v6206_v42 = vmov 683565275  }
  0x19   :  { %v6204_v38 = vand.u32 2147483647, %v3098_v34  ;;  %v51_v39 = vand.u32 2139095040, %v3098_v34  ;;  %v3129_v52 = vsel %vm456_vm5, %v457_v40, %v455_v49  ;;  %6362 = vst [vmem:[#allocation17_spill] sm:$0xff] %v3176_v35  ;;  %vm50_vm4 = vcmp.lt.s32.totalorder %v3098_v34, 0 }
  0x1a   :  { %v6203_v53 = vand.u32 2147483647, %v3122_v48  ;;  %v230_v54 = vand.u32 2139095040, %v3122_v48  ;;  %v3160_v10 = vmul.f32 0.5, %v3129_v52 }
  0x1b   :  { %v52_v43 = vshrl.u32 %v51_v39, 23  ;;  %v55_v47 = vand.u32 8388607, %v6204_v38  ;;  %v3183_v39 = vmul.f32 0.16666667, %v3078_v24 }
  0x1c   :  { %v231_v4 = vshrl.u32 %v230_v54, 23  ;;  %v234_v5 = vand.u32 8388607, %v6203_v53  ;;  %v463_v40 = vand.u32 2139095040, %v3160_v10 }
  0x1d   :  { %v2678_v50 = vadd.s32 4294967169, %v52_v43  ;;  %v56_v3 = vor.u32 8388608, %v55_v47  ;;  %v6210_v47 = vmov 2131351028  }
  0x1e   :  { %v2685_v28 = vadd.s32 4294967169, %v231_v4  ;;  %v235_v29 = vor.u32 8388608, %v234_v5 }
  0x1f   :  { %v58_v59 = vadd.s32 1, %v2678_v50  ;;  %v3180_v37 = vshll.u32 %v56_v3, 8  ;;  %v6212_v50 = vmov 2102212464  }
  0x20   :  { %v237_v15 = vadd.s32 1, %v2685_v28 }
  0x21   :  { %vm59_vm6 = vcmp.gt.s32.totalorder %v58_v59, 0 }
  0x22   :  { %v60_v18 = vsel %vm59_vm6, %v58_v59, 0  ;;  %v3191_v59 = vshll.u32 %v235_v29, 8  ;;  %vm238_vm10 = vcmp.gt.s32.totalorder %v237_v15, 0 }
  0x23   :  { %v61_v31 = vshrl.u32 %v60_v18, 5  ;;  %v62_v33 = vand.u32 31, %v60_v18  ;;  %v6218_v18 = vmov 1326507024  }
  0x25   :  { %v63_v41 = vsub.s32 32, %v62_v33  ;;  %v65_v43 = vshll.u32 %v6206_v42, %v62_v33  ;;  %v68_v46 = vshll.u32 %v6208_v45, %v62_v33  ;;  %v71_v49 = vshll.u32 %v6210_v47, %v62_v33 }
  0x26   :  { %v74_v54 = vshll.u32 %v6212_v50, %v62_v33  ;;  %v77_v58 = vshll.u32 %v6214_v55, %v62_v33  ;;  %vm80_vm7 = vcmp.lt.s32.totalorder %v61_v31, 1  ;;  %vm81_vm8 = vcmp.lt.s32.totalorder %v61_v31, 2 }
  0x27   :  { %v64_v63 = vshrl.u32 %v6206_v42, %v63_v41  ;;  %v66_v3 = vshrl.u32 %v6208_v45, %v63_v41  ;;  %v69_v4 = vshrl.u32 %v6210_v47, %v63_v41  ;;  %v72_v5 = vshrl.u32 %v6212_v50, %v63_v41 }
  0x28   :  { %v75_v11 = vshrl.u32 %v6214_v55, %v63_v41  ;;  %v78_v28 = vshrl.u32 %v6218_v18, %v63_v41  ;;  %vm83_vm9 = vcmp.lt.s32.totalorder %v61_v31, 4  ;;  %vm82_vm11 = vcmp.lt.s32.totalorder %v61_v31, 3 }
  0x29   :  { %v67_v53 = vor.u32 %v66_v3, %v65_v43  ;;  %v70_v33 = vor.u32 %v69_v4, %v68_v46  ;;  %v73_v38 = vor.u32 %v72_v5, %v71_v49  ;;  %v239_v42 = vsel %vm238_vm10, %v237_v15, 0 }
  0x2a   :  { %v76_v29 = vor.u32 %v75_v11, %v74_v54  ;;  %v79_v56 = vor.u32 %v78_v28, %v77_v58  ;;  %v240_v18 = vshrl.u32 %v239_v42, 5  ;;  %v241_v3 = vand.u32 31, %v239_v42 }
  0x2b   :  { %v84_v45 = vsel %vm80_vm7, %v64_v63, %v67_v53  ;;  %v85_v47 = vsel %vm83_vm9, %v73_v38, 2102212464  ;;  %v88_v50 = vsel %vm80_vm7, %v67_v53, %v70_v33  ;;  %v92_v55 = vsel %vm80_vm7, %v70_v33, %v73_v38 }
  0x2c   :  { %v86_v57 = vsel %vm82_vm11, %v70_v33, %v85_v47  ;;  %v89_v23 = vsel %vm83_vm9, %v76_v29, 920167782  ;;  %v93_v41 = vsel %vm83_vm9, %v79_v56, 1326507024  ;;  %v464_v63 = vshrl.u32 %v463_v40, 23 }
  0x2d   :  { %v87_v43 = vsel %vm81_vm8, %v84_v45, %v86_v57  ;;  %v90_v46 = vsel %vm82_vm11, %v73_v38, %v89_v23  ;;  %v94_v49 = vsel %vm82_vm11, %v76_v29, %v93_v41  ;;  %v242_v57 = vsub.s32 32, %v241_v3 }
  0x2e   :  { %v91_v54 = vsel %vm81_vm8, %v88_v50, %v90_v46  ;;  %v95_v15 = vsel %vm81_vm8, %v92_v55, %v94_v49  ;;  %v103_v58 = vmul.u32 %v3180_v37, %v87_v43  ;;  %v6364_v23 = vmov 683565275  }
  0x2f   :  { %v3207_v53 = vmul.u32.u64.low %v3180_v37, %v95_v15  ;;  %v3208_v4 = vmul.u32.u64.high %v3180_v37, %v95_v15, %v3207_v53  ;;  %v3211_v47 = vmul.u32.u64.low %v3180_v37, %v91_v54  ;;  %v3212_v56 = vmul.u32.u64.high %v3180_v37, %v91_v54, %v3211_v47 }
  0x30   :  { %v244_v38 = vshll.u32 %v6364_v23, %v241_v3  ;;  %v6365_v42 = vmov 2475754826   ;;  %v6366_v50 = vmov 2131351028   ;;  %v6367_v55 = vmov 2102212464  }
  0x31   :  { %v247_v45 = vshll.u32 %v6365_v42, %v241_v3  ;;  %v250_v31 = vshll.u32 %v6366_v50, %v241_v3  ;;  %v253_v5 = vshll.u32 %v6367_v55, %v241_v3  ;;  %v6368_v11 = vmov 920167782  }
  0x32   :  { %v256_v40 = vshll.u32 %v6368_v11, %v241_v3  ;;  %vm259_vm12 = vcmp.lt.s32.totalorder %v240_v18, 1  ;;  %vm260_vm13 = vcmp.lt.s32.totalorder %v240_v18, 2  ;;  %v243_v28 = vshrl.u32 %v6364_v23, %v242_v57 }
  0x33   :  { %v245_v33 = vshrl.u32 %v6365_v42, %v242_v57  ;;  %v248_v37 = vshrl.u32 %v6366_v50, %v242_v57  ;;  %v251_v29 = vshrl.u32 %v6367_v55, %v242_v57  ;;  %vm105_vm14 = vc.u32 %v3208_v4, %v3211_v47 }
  0x34   :  { %v106_v41 = vadd.s32 1, %v3212_v56  ;;  %v254_v43 = vshrl.u32 %v6368_v11, %v242_v57  ;;  %vm261_vm15 = vcmp.lt.s32.totalorder %v240_v18, 3  ;;  %v6369_v54 = vmov 1326507024  }
  0x35   :  { %v246_v46 = vor.u32 %v245_v33, %v244_v38  ;;  %v249_v49 = vor.u32 %v248_v37, %v247_v45  ;;  %v252_v3 = vor.u32 %v251_v29, %v250_v31  ;;  %v257_v15 = vshrl.u32 %v6369_v54, %v242_v57 }
  0x36   :  { %v107_v53 = vsel %vm105_vm14, %v106_v41, %v3212_v56  ;;  %v255_v19 = vor.u32 %v254_v43, %v253_v5  ;;  %vm262_vm0 = vcmp.lt.s32.totalorder %v240_v18, 4  ;;  %v2692_v21 = vadd.s32 4294967169, %v464_v63 }
  0x37   :  { %v108_v20 = vadd.s32 %v107_v53, %v103_v58  ;;  %v258_v0 = vor.u32 %v257_v15, %v256_v40  ;;  %v263_v2 = vsel %vm259_vm12, %v243_v28, %v246_v46  ;;  %v264_v1 = vsel %vm262_vm0, %v252_v3, 2102212464 }
  0x38   :  { %v265_v22 = vsel %vm261_vm15, %v249_v49, %v264_v1  ;;  %v267_v27 = vsel %vm259_vm12, %v246_v46, %v249_v49  ;;  %v268_v26 = vsel %vm262_vm0, %v255_v19, 920167782  ;;  %v271_v38 = vsel %vm259_vm12, %v249_v49, %v252_v3 }
  0x39   :  { %v109_v45 = vadd.s32 536870912, %v108_v20  ;;  %v269_v57 = vsel %vm261_vm15, %v252_v3, %v268_v26  ;;  %v272_v31 = vsel %vm262_vm0, %v258_v0, 1326507024  ;;  %v3236_v56 = vmul.f32 0.041666668, %v3078_v24 }
  0x3a   :  { %v266_v58 = vsel %vm260_vm13, %v263_v2, %v265_v22  ;;  %v270_v63 = vsel %vm260_vm13, %v267_v27, %v269_v57  ;;  %v273_v5 = vsel %vm261_vm15, %v255_v19, %v272_v31  ;;  %v3243_v1 = vadd.f32 %v3176_v35, %v3170_v17 }
  0x3b   :  { %v3245_v40 = vshrl.u32 %v109_v45, 30  ;;  %v274_v28 = vsel %vm260_vm13, %v271_v38, %v273_v5  ;;  %v3249_v26 = vmul.u32.u64.low %v3191_v59, %v270_v63  ;;  %v3250_v0 = vmul.u32.u64.high %v3191_v59, %v270_v63, %v3249_v26 }
  0x3c   :  { %6370 = vst [vmem:[#allocation19_spill] sm:$0xff] %v3243_v1  ;;  %v3254_v24 = vmul.u32.u64.low %v3191_v59, %v274_v28  ;;  %v3255_v2 = vmul.u32.u64.high %v3191_v59, %v274_v28, %v3254_v24  ;;  %v6228_v22 = vand.u32 2147483647, %v3160_v10  ;;  %v470_v19 = vadd.s32 1, %v2692_v21 }
  0x3d   :  { %v111_v27 = vshll.u32 %v3245_v40, 30  ;;  %v3263_v18 = vadd.f32 %v3168_v16, %v3174_v30  ;;  %v282_v29 = vmul.u32 %v3191_v59, %v266_v58  ;;  %v285_v21 = vadd.s32 1, %v3250_v0 }
  0x3e   :  { %vm471_vm2 = vcmp.gt.s32.totalorder %v470_v19, 0  ;;  %v3273_v49 = vadd.f32 %v3178_v36, %v3243_v1  ;;  %vm284_vm3 = vc.u32 %v3255_v2, %v3249_v26  ;;  %v3280_v59 = vmul.f32 %v3033_v7, %v3028_v6 }
  0x3f   :  { %6371 = vst [vmem:[#allocation20_spill] sm:$0xff] %v3263_v18  ;;  %v3268_v43 = vsub.s32 %v108_v20, %v111_v27  ;;  %v472_v46 = vsel %vm471_vm2, %v470_v19, 0  ;;  %v467_v20 = vand.u32 8388607, %v6228_v22  ;;  %v3288_v53 = vsel %vm162_vm1, 1.0, %v3095_v32 }
  0x40   :  { %6372 = vst [vmem:[#allocation21_spill] sm:$0xff] %v3273_v49  ;;  %v286_v38 = vsel %vm284_vm3, %v285_v21, %v3250_v0  ;;  %v474_v45 = vand.u32 31, %v472_v46  ;;  %v3293_v31 = vmul.f32 %v3038_v8, %v3028_v6  ;;  %v3297_v58 = vmul.f32 %v3038_v8, %v3033_v7 }
  0x41   :  { %v114_v15 = vsub.s32 0, %v3268_v43  ;;  %v287_v57 = vadd.s32 %v286_v38, %v282_v29  ;;  %2821 = vrsqrt.f32 %v3263_v18  ;;  %v468_v24 = vor.u32 8388608, %v467_v20 }
  0x42   :  { %v475_v5 = vsub.s32 32, %v474_v45  ;;  %2823 = vrsqrt.f32 %v3273_v49  ;;  %v3304_v19 = vshrl.u32 %v472_v46, 5  ;;  %v477_v27 = vshll.u32 %v6364_v23, %v474_v45 }
  0x43   :  { %v2679_v63 = vmin.u32 %v114_v15, %v3268_v43  ;;  %2825 = vrcp.f32 %v3288_v53  ;;  %v288_v0 = vadd.s32 536870912, %v287_v57  ;;  %v480_v7 = vshll.u32 %v6365_v42, %v474_v45 }
  0x44   :  { %v483_v8 = vshll.u32 %v6366_v50, %v474_v45  ;;  %v478_v21 = vshrl.u32 %v6365_v42, %v475_v5  ;;  %v481_v15 = vshrl.u32 %v6366_v50, %v475_v5  ;;  %v486_v38 = vshll.u32 %v6367_v55, %v474_v45 }
  0x45   :  { %v116_v6 = vclz %v2679_v63  ;;  %v3309_v29 = vshrl.u32 %v288_v0, 30  ;;  %v104_v46 = vadd.s32 %v3211_v47, %v3208_v4  ;;  %v484_v63 = vshrl.u32 %v6367_v55, %v475_v5 }
  0x46   :  { %v487_v41 = vshrl.u32 %v6368_v11, %v475_v5  ;;  %v489_v0 = vshll.u32 %v6368_v11, %v474_v45  ;;  %vm492_vm5 = vcmp.lt.s32.totalorder %v3304_v19, 1  ;;  %v3322_v3 = vshll.u32 %v468_v24, 8 }
  0x47   :  { %v2680_v20 = vadd.s32 4294967294, %v116_v6  ;;  %v290_v33 = vshll.u32 %v3309_v29, 30  ;;  %v479_v37 = vor.u32 %v478_v21, %v477_v27  ;;  %v482_v22 = vor.u32 %v481_v15, %v480_v7 }
  0x48   :  { %v485_v28 = vor.u32 %v484_v63, %v483_v8  ;;  %v6373_v1 = vand.u32 2147483647, %v3098_v34  ;;  %v488_v17 = vor.u32 %v487_v41, %v486_v38  ;;  %v490_v45 = vshrl.u32 %v6369_v54, %v475_v5 }
  0x49   :  { %vm2681_vm6 = vcmp.lt.s32.totalorder %v2680_v20, 0  ;;  %v3330_v6 = vsub.s32 %v287_v57, %v290_v33  ;;  %vm495_vm8 = vcmp.lt.s32.totalorder %v3304_v19, 4  ;;  %v134_v7 = vsub.s32 4, %v3245_v40 }
  0x4a   :  { %vm3326_vm7 = vcmp.le.f32.partialorder %v6373_v1, 0.7853982  ;;  %v119_v47 = vsel %vm2681_vm6, 0, %v2680_v20  ;;  %v476_v8 = vshrl.u32 %v6364_v23, %v475_v5  ;;  %vm494_vm9 = vcmp.lt.s32.totalorder %v3304_v19, 3 }
  0x4b   :  { %v120_v36 = vsub.s32 32, %v119_v47  ;;  %v121_v24 = vshll.u32 %v3268_v43, %v119_v47  ;;  %v124_v35 = vsub.s32 4294967266, %v119_v47  ;;  %v2822_v27 = vpop.eup %2821  ;;  %v293_v1 = vsub.s32 0, %v3330_v6 }
  0x4c   :  { %v3339_v33 = vpop.eup %2823  ;;  %vm493_vm10 = vcmp.lt.s32.totalorder %v3304_v19, 2  ;;  %v497_v43 = vsel %vm495_vm8, %v485_v28, 2102212464  ;;  %v491_v38 = vor.u32 %v490_v45, %v489_v0  ;;  %v500_v20 = vsel %vm492_vm5, %v479_v37, %v482_v22 }
  0x4d   :  { %v122_v41 = vshrl.u32 %v104_v46, %v120_v36  ;;  %v125_v57 = vadd.s32 127, %v124_v35  ;;  %v3344_v21 = vpop.eup %2825  ;;  %v2686_v15 = vmin.u32 %v293_v1, %v3330_v6  ;;  %v501_v5 = vsel %vm495_vm8, %v488_v17, 920167782 }
  0x4e   :  { %vm341_vm11 = vcmp.lt.f32.partialorder %v3111_v44, 1e-07  ;;  %v502_v35 = vsel %vm494_vm9, %v485_v28, %v501_v5  ;;  %v135_v36 = vsel %vm50_vm4, %v134_v7, %v3245_v40  ;;  %v496_v0 = vsel %vm492_vm5, %v476_v8, %v479_v37 }
  0x4f   :  { %v123_v63 = vor.u32 %v122_v41, %v121_v24  ;;  %v126_v47 = vshll.u32 %v125_v57, 23  ;;  %v295_v46 = vclz %v2686_v15  ;;  %v498_v45 = vsel %vm494_vm9, %v482_v22, %v497_v43 }
  0x50   :  { %vm687_vm12 = vcmp.eq.f32.partialorder %v3263_v18, inf  ;;  %v503_v41 = vsel %vm493_vm10, %v500_v20, %v502_v35  ;;  %v504_v57 = vsel %vm492_vm5, %v482_v22, %v485_v28  ;;  %vm689_vm13 = vcmp.eq.f32.partialorder %v3263_v18, 0.0 }
  0x51   :  { %v127_v24 = vor.u32 4788187, %v126_v47  ;;  %v130_v1 = vcvt.s32.f32 %v123_v63  ;;  %v2687_v40 = vadd.s32 4294967294, %v295_v46  ;;  %v505_v7 = vsel %vm495_vm8, %v491_v38, 1326507024 }
  0x52   :  { %v3370_v37 = vmul.u32.u64.low %v3322_v3, %v503_v41  ;;  %v3371_v8 = vmul.u32.u64.high %v3322_v3, %v503_v41, %v3370_v37  ;;  %v137_v15 = vsel %vm3326_vm7, 0, %v135_v36  ;;  %v342_v20 = vsel %vm341_vm11, 1.0, %v3111_v44  ;;  %v2952_v44 = vld [vmem:[%s6199_s0 + $0x18] sm:$0xff] }
  0x53   :  { %v128_v43 = vand.u32 2147483647, %v127_v24  ;;  %v506_v22 = vsel %vm494_vm9, %v488_v17, %v505_v7  ;;  %v283_v28 = vadd.s32 %v3249_v26, %v3255_v2  ;;  %vm2688_vm14 = vcmp.lt.s32.totalorder %v2687_v40, 0 }
  0x54   :  { %v499_v38 = vsel %vm493_vm10, %v496_v0, %v498_v45  ;;  %v507_v5 = vsel %vm493_vm10, %v504_v57, %v506_v22  ;;  %v298_v47 = vsel %vm2688_vm14, 0, %v2687_v40  ;;  %v518_v41 = vadd.s32 1, %v3371_v8 }
  0x55   :  { %v131_v63 = vmul.f32 %v130_v1, %v128_v43  ;;  %v3388_v35 = vmul.u32.u64.low %v3322_v3, %v507_v5  ;;  %v3389_v36 = vmul.u32.u64.high %v3322_v3, %v507_v5, %v3388_v35  ;;  %v299_v46 = vsub.s32 32, %v298_v47 }
  0x56   :  { %v300_v24 = vshll.u32 %v3330_v6, %v298_v47  ;;  %v303_v17 = vsub.s32 4294967266, %v298_v47  ;;  %v313_v2 = vsub.s32 4, %v3309_v29  ;;  %v515_v0 = vmul.u32 %v3322_v3, %v499_v38 }
  0x57   :  { %v132_v26 = vxor.u32 2147483648, %v131_v63  ;;  %v686_v19 = vmul.f32 %v2822_v27, %v3263_v18  ;;  %v174_v45 = vmul.f32 %v3288_v53, %v3288_v53  ;;  %vm229_vm15 = vcmp.lt.s32.totalorder %v3122_v48, 0 }
  0x58   :  { %v301_v1 = vshrl.u32 %v283_v28, %v299_v46  ;;  %v304_v57 = vadd.s32 127, %v303_v17  ;;  %vm920_vm0 = vcmp.eq.f32.partialorder %v3273_v49, inf  ;;  %v141_v40 = vadd.s32 3, %v137_v15 }
  0x59   :  { %v133_v6 = vsel %vm50_vm4, %v132_v26, %v131_v63  ;;  %v353_v7 = vmul.f32 %v342_v20, %v342_v20  ;;  %vm517_vm2 = vc.u32 %v3389_v36, %v3370_v37  ;;  %v314_v22 = vsel %vm229_vm15, %v313_v2, %v3309_v29 }
  0x5a   :  { %v136_v3 = vsel %vm3326_vm7, %v3098_v34, %v133_v6  ;;  %v302_v27 = vor.u32 %v301_v1, %v300_v24  ;;  %v305_v53 = vshll.u32 %v304_v57, 23  ;;  %v519_v43 = vsel %vm517_vm2, %v518_v41, %v3371_v8 }
  0x5b   :  { %2827 = vcosq.f32 %v136_v3  ;;  %v520_v28 = vadd.s32 %v519_v43, %v515_v0  ;;  %v688_v15 = vsel %vm687_vm12, %v3263_v18, %v686_v19  ;;  %vm922_vm3 = vcmp.eq.f32.partialorder %v3273_v49, 0.0 }
  0x5c   :  { %2829 = vsinq.f32 %v136_v3  ;;  %v306_v38 = vor.u32 4788187, %v305_v53  ;;  %v309_v4 = vcvt.s32.f32 %v302_v27  ;;  %v6376_v5 = vand.u32 2147483648, %v3263_v18 }
  0x5d   :  { %2831 = vrcp.f32 %v174_v45  ;;  %v6378_v63 = vand.u32 2147483647, %v3122_v48  ;;  %v521_v47 = vadd.s32 536870912, %v520_v28  ;;  %v923_v17 = vand.u32 2147483648, %v3273_v49 }
  0x5e   :  { %v3419_v8 = vsel %vm689_vm13, %v6376_v5, %v688_v15  ;;  %v307_v46 = vand.u32 2147483647, %v306_v38  ;;  %2833 = vrcp.f32 %v342_v20  ;;  %vm574_vm5 = vcmp.lt.f32.partialorder %v3129_v52, 1e-07 }
  0x5f   :  { %6377 = vst [vmem:[#allocation22_spill] sm:$0xff] %v3419_v8  ;;  %vm3423_vm4 = vcmp.le.f32.partialorder %v6378_v63, 0.7853982  ;;  %v3428_v35 = vmul.f32 0.5, %v3419_v8  ;;  %v522_v41 = vshrl.u32 %v521_v47, 30  ;;  %v919_v2 = vmul.f32 %v3339_v33, %v3273_v49 }
  0x60   :  { %v316_v24 = vsel %vm3423_vm4, 0, %v314_v22  ;;  %vm140_vm6 = vweird.f32 %v3098_v34  ;;  %v142_v0 = vand.u32 3, %v141_v40  ;;  %v310_v19 = vmul.f32 %v309_v4, %v307_v46 }
  0x61   :  { %6381 = vst [vmem:[#allocation23_spill] sm:$0xff] %v3428_v35  ;;  %v696_v26 = vand.u32 2139095040, %v3428_v35  ;;  %2835 = vrcp.f32 %v353_v7  ;;  %v320_v45 = vadd.s32 3, %v316_v24  ;;  %vm462_vm7 = vcmp.lt.s32.totalorder %v3160_v10, 0 }
  0x62   :  { %v523_v1 = vshll.u32 %v522_v41, 30  ;;  %v311_v57 = vxor.u32 2147483648, %v310_v19  ;;  %v546_v6 = vsub.s32 4, %v522_v41  ;;  %v3442_v3 = vsel %vm574_vm5, 1.0, %v3129_v52 }
  0x63   :  { %v697_v20 = vshrl.u32 %v696_v26, 23  ;;  %v3445_v27 = vmul.f32 0.041666668, %v3082_v25  ;;  %v6234_v40 = vand.u32 2147483647, %v3428_v35  ;;  %v921_v53 = vsel %vm920_vm0, %v3273_v49, %v919_v2 }
  0x64   :  { %v3447_v33 = vsub.s32 %v520_v28, %v523_v1  ;;  %vm143_vm8 = vcmp.lt.s32.totalorder %v142_v0, 2  ;;  %vm144_vm9 = vcmp.eq.s32.totalorder %v142_v0, 0  ;;  %vm147_vm10 = vcmp.eq.s32.totalorder %v142_v0, 2 }
  0x65   :  { %v2699_v7 = vadd.s32 4294967169, %v697_v20  ;;  %v312_v43 = vsel %vm229_vm15, %v311_v57, %v310_v19  ;;  %v2828_v22 = vpop.eup %2827  ;;  %v3458_v28 = vand.u32 3, %v320_v45  ;;  %v547_v47 = vsel %vm462_vm7, %v546_v6, %v522_v41 }
  0x66   :  { %v315_v15 = vsel %vm3423_vm4, %v3122_v48, %v312_v43  ;;  %v526_v38 = vsub.s32 0, %v3447_v33  ;;  %v2830_v5 = vpop.eup %2829  ;;  %v148_v63 = vxor.u32 2147483648, %v2828_v22  ;;  %v3465_v46 = vsel %vm922_vm3, %v923_v17, %v921_v53 }
  0x67   :  { %v703_v4 = vadd.s32 1, %v2699_v7  ;;  %2837 = vcosq.f32 %v315_v15  ;;  %6382 = vst [vmem:[#allocation24_spill] sm:$0xff] %v3465_v46  ;;  %v2832_v24 = vpop.eup %2831  ;;  %v145_v26 = vxor.u32 2147483648, %v2830_v5  ;;  %v700_v2 = vand.u32 8388607, %v6234_v40 }
  0x68   :  { %2839 = vsinq.f32 %v315_v15  ;;  %v2693_v29 = vmin.u32 %v526_v38, %v3447_v33  ;;  %v3470_v19 = vpop.eup %2833  ;;  %v149_v45 = vsel %vm147_vm10, %v148_v63, %v2830_v5  ;;  %v6383_v1 = vand.u32 2147483647, %v3160_v10 }
  0x69   :  { %v3480_v17 = vmul.f32 0.16666667, %v3082_v25  ;;  %vm704_vm13 = vcmp.gt.s32.totalorder %v703_v4, 0  ;;  %v146_v20 = vsel %vm144_vm9, %v2828_v22, %v145_v26  ;;  %v586_v7 = vmul.f32 %v3442_v3, %v3442_v3 }
  0x6a   :  { %vm3475_vm12 = vcmp.le.f32.partialorder %v6383_v1, 0.7853982  ;;  %v528_v57 = vclz %v2693_v29  ;;  %v150_v43 = vsel %vm143_vm8, %v146_v20, %v149_v45  ;;  %vm323_vm14 = vcmp.eq.s32.totalorder %v3458_v28, 0 }
  0x6b   :  { %v549_v6 = vsel %vm3475_vm12, 0, %v547_v47  ;;  %v3487_v53 = vpop.eup %2835  ;;  %vm326_vm15 = vcmp.eq.s32.totalorder %v3458_v28, 2  ;;  %v705_v25 = vsel %vm704_vm13, %v703_v4, 0  ;;  %v3493_v15 = vmul.f32 0.5, %v3465_v46 }
  0x6c   :  { %v151_v22 = vsel %vm140_vm6, nan, %v150_v43  ;;  %vm322_vm0 = vcmp.lt.s32.totalorder %v3458_v28, 2  ;;  %v2694_v38 = vadd.s32 4294967294, %v528_v57  ;;  %v701_v63 = vor.u32 8388608, %v700_v2 }
  0x6d   :  { %v152_v47 = vmul.f32 %v151_v22, %v151_v22  ;;  %v3499_v0 = vmul.f32 2.0, %v151_v22  ;;  %vm319_vm2 = vweird.f32 %v3122_v48  ;;  %v553_v26 = vadd.s32 3, %v549_v6 }
  0x6e   :  { %v707_v29 = vand.u32 31, %v705_v25  ;;  %v516_v4 = vadd.s32 %v3370_v37, %v3389_v36  ;;  %vm2695_vm3 = vcmp.lt.s32.totalorder %v2694_v38, 0  ;;  %2841 = vrcp.f32 %v586_v7 }
  0x6f   :  { %v153_v45 = vsub.f32 1.0, %v152_v47  ;;  %v173_v1 = vmul.f32 %v3499_v0, %v151_v22  ;;  %v531_v20 = vsel %vm2695_vm3, 0, %v2694_v38  ;;  %v3508_v5 = vshll.u32 %v701_v63, 8 }
  0x70   :  { %v532_v57 = vsub.s32 32, %v531_v20  ;;  %v533_v43 = vshll.u32 %v3447_v33, %v531_v20  ;;  %v536_v40 = vsub.s32 4294967266, %v531_v20  ;;  %v3512_v36 = vand.u32 3, %v553_v26 }
  0x71   :  { %v2838_v6 = vpop.eup %2837  ;;  %v3510_v49 = vmax.f32 %v153_v45, 0.0  ;;  %v176_v37 = vmul.f32 %v2832_v24, %v173_v1  ;;  %v708_v7 = vsub.s32 32, %v707_v29  ;;  %v3514_v38 = vshrl.u32 %v705_v25, 5 }
  0x72   :  { %v2840_v34 = vpop.eup %2839  ;;  %v327_v47 = vxor.u32 2147483648, %v2838_v6  ;;  %v534_v30 = vshrl.u32 %v516_v4, %v532_v57  ;;  %v537_v22 = vadd.s32 127, %v536_v40  ;;  %v710_v33 = vshll.u32 %v6364_v23, %v707_v29 }
  0x73   :  { %2843 = vrsqrt.f32 %v3510_v49  ;;  %v713_v63 = vshll.u32 %v6365_v42, %v707_v29  ;;  %v716_v20 = vshll.u32 %v6366_v50, %v707_v29  ;;  %v6386_v45 = vsub.f32 0.5, %v3166_v12 }
  0x74   :  { %v324_v26 = vxor.u32 2147483648, %v2840_v34  ;;  %v328_v4 = vsel %vm326_vm15, %v327_v47, %v2840_v34  ;;  %v535_v40 = vor.u32 %v534_v30, %v533_v43  ;;  %v709_v57 = vshrl.u32 %v6364_v23, %v708_v7 }
  0x75   :  { %v177_v24 = vsel %vm162_vm1, %v6386_v45, %v176_v37  ;;  %v711_v2 = vshrl.u32 %v6365_v42, %v708_v7  ;;  %v538_v12 = vshll.u32 %v537_v22, 23  ;;  %v714_v46 = vshrl.u32 %v6366_v50, %v708_v7 }
  0x76   :  { %v182_v25 = vmul.f32 %v3051_v13, %v177_v24  ;;  %v194_v1 = vmul.f32 %v3053_v14, %v177_v24  ;;  %v325_v16 = vsel %vm323_vm14, %v2838_v6, %v324_v26  ;;  %v717_v37 = vshrl.u32 %v6367_v55, %v708_v7 }
  0x77   :  { %vm157_vm4 = vcmp.eq.f32.partialorder %v3510_v49, inf  ;;  %vm159_vm6 = vcmp.eq.f32.partialorder %v3510_v49, 0.0  ;;  %v160_v13 = vand.u32 2147483648, %v3510_v49  ;;  %v329_v14 = vsel %vm322_vm0, %v325_v16, %v328_v4 }
  0x78   :  { %v3539_v30 = vpop.eup %2841  ;;  %v203_v34 = vmul.f32 %v177_v24, %v3040_v9  ;;  %v330_v43 = vsel %vm319_vm2, nan, %v329_v14  ;;  %v539_v6 = vor.u32 4788187, %v538_v12  ;;  %v542_v47 = vcvt.s32.f32 %v535_v40 }
  0x79   :  { %v3545_v22 = vmul.f32 %v3127_v51, %v177_v24  ;;  %v3548_v45 = vmul.f32 %v3148_v61, %v177_v24  ;;  %v331_v26 = vmul.f32 %v330_v43, %v330_v43  ;;  %v3550_v18 = vmul.f32 2.0, %v330_v43 }
  0x7a   :  { %v3552_v28 = vsub.f32 1.0, %v182_v25  ;;  %v3554_v16 = vsub.f32 1.0, %v194_v1  ;;  %v3557_v9 = vmul.f32 %v3152_v62, %v177_v24  ;;  %v540_v48 = vand.u32 2147483647, %v539_v6 }
  0x7b   :  { %v332_v4 = vsub.f32 1.0, %v331_v26  ;;  %v352_v40 = vmul.f32 %v3550_v18, %v330_v43  ;;  %v719_v51 = vshll.u32 %v6367_v55, %v707_v29  ;;  %v720_v12 = vshrl.u32 %v6368_v11, %v708_v7 }
  0x7c   :  { %v3562_v61 = vsub.f32 1.0, %v203_v34  ;;  %v543_v14 = vmul.f32 %v542_v47, %v540_v48  ;;  %v722_v8 = vshll.u32 %v6368_v11, %v707_v29  ;;  %v723_v25 = vshrl.u32 %v6369_v54, %v708_v7  ;;  %v6389_v47 = vld [vmem:[#allocation11_spill] sm:$0xff] }
  0x7d   :  { %v2844_v1 = vpop.eup %2843  ;;  %v3566_v35 = vmax.f32 %v332_v4, 0.0  ;;  %v355_v62 = vmul.f32 %v3487_v53, %v352_v40  ;;  %v712_v24 = vor.u32 %v711_v2, %v710_v33  ;;  %v3569_v6 = vor.u32 %v714_v46, %v713_v63  ;;  %v6388_v63 = vld [vmem:[#allocation10_spill] sm:$0xff]  ;;  %v6390_v4 = vld [vmem:[#allocation8_spill] sm:$0xff] }
  0x7e   :  { %v156_v43 = vmul.f32 %v2844_v1, %v3510_v49  ;;  %v544_v26 = vxor.u32 2147483648, %v543_v14  ;;  %v718_v50 = vor.u32 %v717_v37, %v716_v20  ;;  %vm725_vm8 = vcmp.lt.s32.totalorder %v3514_v38, 1 }
  0x7f   :  { %2845 = vrsqrt.f32 %v3566_v35  ;;  %v721_v34 = vor.u32 %v720_v12, %v719_v51  ;;  %vm726_vm9 = vcmp.lt.s32.totalorder %v3514_v38, 2  ;;  %vm727_vm10 = vcmp.lt.s32.totalorder %v3514_v38, 3 }
  0x80   :  { %v158_v53 = vsel %vm157_vm4, %v3510_v49, %v156_v43  ;;  %v6387_v46 = vsub.f32 0.5, %v3236_v56  ;;  %v545_v2 = vsel %vm462_vm7, %v544_v26, %v543_v14  ;;  %v724_v7 = vor.u32 %v723_v25, %v722_v8  ;;  %v6392_v26 = vld [vmem:[#allocation3_spill] sm:$0xff] }
  0x81   :  { %v161_v33 = vsel %vm159_vm6, %v160_v13, %v158_v53  ;;  %vm728_vm13 = vcmp.lt.s32.totalorder %v3514_v38, 4  ;;  %v3594_v37 = vsel %vm725_vm8, %v709_v57, %v712_v24  ;;  %vm336_vm7 = vcmp.eq.f32.partialorder %v3566_v35, inf }
  0x82   :  { %v3583_v29 = vsel %vm341_vm11, %v6387_v46, %v355_v62  ;;  %v167_v56 = vmul.f32 %v3499_v0, %v161_v33  ;;  %v730_v49 = vsel %vm728_vm13, %v718_v50, 2102212464  ;;  %vm338_vm14 = vcmp.eq.f32.partialorder %v3566_v35, 0.0  ;;  %v6393_v46 = vld [vmem:[#allocation4_spill] sm:$0xff] }
  0x83   :  { %v361_v20 = vmul.f32 %v6388_v63, %v3583_v29  ;;  %v373_v48 = vmul.f32 %v6389_v47, %v3583_v29  ;;  %v382_v8 = vmul.f32 %v3583_v29, %v6390_v4  ;;  %v548_v57 = vsel %vm3475_vm12, %v3160_v10, %v545_v2 }
  0x84   :  { %v169_v0 = vmul.f32 %v3344_v21, %v167_v56  ;;  %2847 = vcosq.f32 %v548_v57  ;;  %v733_v14 = vsel %vm725_vm8, %v712_v24, %v3569_v6  ;;  %v734_v25 = vsel %vm728_vm13, %v721_v34, 920167782 }
  0x85   :  { %v362_v13 = vsub.f32 1.0, %v361_v20  ;;  %v374_v40 = vsub.f32 1.0, %v373_v48  ;;  %v383_v51 = vsub.f32 1.0, %v382_v8  ;;  %2849 = vsinq.f32 %v548_v57  ;;  %v2947_v48 = vld [vmem:[%s6199_s0 + $0x10] sm:$0xff] }
  0x86   :  { %v6391_v1 = vsub.f32 1.0, %v3144_v60  ;;  %vm559_vm12 = vcmp.eq.s32.totalorder %v3512_v36, 2  ;;  %v735_v43 = vsel %vm727_vm10, %v718_v50, %v734_v25  ;;  %v6394_v60 = vld [vmem:[#allocation2_spill] sm:$0xff]  ;;  %v339_v32 = vand.u32 2147483648, %v3566_v35 }
  0x87   :  { %v3610_v12 = vmul.f32 %v362_v13, %v3552_v28  ;;  %v3622_v21 = vmul.f32 %v374_v40, %v3554_v16  ;;  %v3625_v62 = vmul.f32 %v383_v51, %v3562_v61  ;;  %v736_v63 = vsel %vm726_vm9, %v733_v14, %v735_v43 }
  0x88   :  { %v170_v41 = vsel %vm162_vm1, %v6391_v1, %v169_v0  ;;  %v737_v20 = vsel %vm725_vm8, %v3569_v6, %v718_v50  ;;  %v738_v56 = vsel %vm728_vm13, %v724_v7, 1326507024  ;;  %v2948_v0 = vld [vmem:[%s6199_s0] sm:$0xff]  ;;  %v2949_v7 = vld [vmem:[%s6199_s0 + $0x8] sm:$0xff]  ;;  %vm552_vm1 = vweird.f32 %v3160_v10 }
  0x89   :  { %v184_v24 = vsub.f32 0.0, %v170_v41  ;;  %v188_v53 = vmul.f32 %v6392_v26, %v170_v41  ;;  %v191_v2 = vmul.f32 %v6393_v46, %v170_v41  ;;  %v201_v33 = vmul.f32 %v170_v41, %v6394_v60  ;;  %v2846_v47 = vpop.eup %2845 }
  0x8a   :  { %v335_v1 = vmul.f32 %v2846_v47, %v3566_v35  ;;  %v739_v41 = vsel %vm727_vm10, %v721_v34, %v738_v56  ;;  %vm556_vm15 = vcmp.eq.s32.totalorder %v3512_v36, 0  ;;  %vm555_vm0 = vcmp.lt.s32.totalorder %v3512_v36, 2 }
  0x8b   :  { %v185_v4 = vmul.f32 %v2947_v48, %v184_v24  ;;  %v3645_v8 = vadd.f32 %v3548_v45, %v188_v53  ;;  %v3648_v57 = vadd.f32 %v191_v2, %v3545_v22  ;;  %v196_v50 = vmul.f32 %v2948_v0, %v184_v24 }
  0x8c   :  { %v199_v14 = vmul.f32 %v2949_v7, %v184_v24  ;;  %v3657_v25 = vadd.f32 %v201_v33, %v3557_v9  ;;  %v337_v34 = vsel %vm336_vm7, %v3566_v35, %v335_v1  ;;  %v365_v0 = vmul.f32 %v3280_v59, %v3583_v29 }
  0x8d   :  { %v3663_v43 = vadd.f32 %v3545_v22, %v185_v4  ;;  %v3666_v26 = vadd.f32 %v3557_v9, %v196_v50  ;;  %v3669_v53 = vmul.f32 %v383_v51, %v3645_v8  ;;  %v3672_v46 = vmul.f32 %v362_v13, %v3648_v57 }
  0x8e   :  { %v3676_v24 = vadd.f32 %v199_v14, %v3548_v45  ;;  %v3682_v22 = vmul.f32 %v374_v40, %v3657_v25  ;;  %v740_v9 = vsel %vm726_vm9, %v737_v20, %v739_v41  ;;  %v340_v2 = vsel %vm338_vm14, %v339_v32, %v337_v34  ;;  %v2848_v56 = vpop.eup %2847  ;;  %v2950_v41 = vld [vmem:[%s6199_s0 + $0x20] sm:$0xff] }
  0x8f   :  { %v392_v60 = vmul.f32 %v374_v40, %v3663_v43  ;;  %v3690_v33 = vmul.f32 %v383_v51, %v3666_v26  ;;  %v731_v45 = vsel %vm727_vm10, %v3569_v6, %v730_v49  ;;  %v346_v47 = vmul.f32 %v3550_v18, %v340_v2  ;;  %v2850_v35 = vpop.eup %2849 }
  0x90   :  { %v3697_v48 = vmul.f32 %v362_v13, %v3676_v24  ;;  %v3700_v20 = vmul.u32.u64.low %v3508_v5, %v740_v9  ;;  %v3701_v4 = vmul.u32.u64.high %v3508_v5, %v740_v9, %v3700_v20  ;;  %v560_v40 = vxor.u32 2147483648, %v2848_v56 }
  0x91   :  { %v3705_v51 = vmul.u32.u64.low %v3508_v5, %v736_v63  ;;  %v3706_v32 = vmul.u32.u64.high %v3508_v5, %v736_v63, %v3705_v51  ;;  %v348_v6 = vmul.f32 %v3470_v19, %v346_v47  ;;  %v557_v18 = vxor.u32 2147483648, %v2850_v35 }
  0x92   :  { %v6395_v49 = vand.u32 2139095040, %v3493_v15  ;;  %v368_v50 = vmul.f32 %v3293_v31, %v3583_v29  ;;  %v561_v7 = vsel %vm559_vm12, %v560_v40, %v2850_v35  ;;  %v3722_v63 = vsel %vm726_vm9, %v3594_v37, %v731_v45 }
  0x93   :  { %v6396_v19 = vsub.f32 1.0, %v3183_v39  ;;  %v376_v1 = vmul.f32 %v3297_v58, %v3583_v29  ;;  %v558_v59 = vsel %vm556_vm15, %v2848_v56, %v557_v18  ;;  %vm750_vm2 = vc.u32 %v3701_v4, %v3705_v51  ;;  %v2951_v39 = vld [vmem:[%s6199_s0 + $0x28] sm:$0xff] }
  0x94   :  { %v930_v13 = vshrl.u32 %v6395_v49, 23  ;;  %v562_v29 = vsel %vm555_vm0, %v558_v59, %v561_v7  ;;  %v748_v34 = vmul.u32 %v3508_v5, %v3722_v63  ;;  %v751_v9 = vadd.s32 1, %v3706_v32 }
  0x95   :  { %v349_v14 = vsel %vm341_vm11, %v6396_v19, %v348_v6  ;;  %v563_v6 = vsel %vm552_vm1, nan, %v562_v29  ;;  %2851 = vrcp.f32 %v3442_v3  ;;  %v3826_v3 = vld [vmem:[%s6199_s0 + $0x38] sm:$0xff] }
  0x96   :  { %v363_v31 = vsub.f32 0.0, %v349_v14  ;;  %v367_v38 = vmul.f32 %v2950_v41, %v349_v14  ;;  %v370_v37 = vmul.f32 %v2951_v39, %v349_v14  ;;  %v380_v58 = vmul.f32 %v2952_v44, %v349_v14 }
  0x97   :  { %v2706_v2 = vadd.s32 4294967169, %v930_v13  ;;  %v752_v36 = vsel %vm750_vm2, %v751_v9, %v3706_v32 }
  0x98   :  { %v364_v45 = vmul.f32 %v2951_v39, %v363_v31  ;;  %v369_v56 = vadd.f32 %v368_v50, %v367_v38  ;;  %v371_v47 = vadd.f32 %v370_v37, %v365_v0  ;;  %v375_v20 = vmul.f32 %v2952_v44, %v363_v31 }
  0x99   :  { %v378_v35 = vmul.f32 %v2950_v41, %v363_v31  ;;  %v381_v40 = vadd.f32 %v380_v58, %v376_v1 }
  0x9a   :  { %v366_v18 = vadd.f32 %v365_v0, %v364_v45  ;;  %v377_v49 = vadd.f32 %v376_v1, %v375_v20  ;;  %v386_v5 = vmul.f32 %v371_v47, %v3663_v43  ;;  %v396_v13 = vmul.f32 %v369_v56, %v3552_v28 }
  0x9b   :  { %v379_v7 = vadd.f32 %v378_v35, %v368_v50  ;;  %v394_v63 = vmul.f32 %v381_v40, %v3645_v8  ;;  %v404_v19 = vmul.f32 %v371_v47, %v3554_v16  ;;  %v412_v14 = vmul.f32 %v381_v40, %v3666_v26 }
  0x9c   :  { %v387_v10 = vadd.f32 %v386_v5, %v3610_v12  ;;  %v390_v59 = vmul.f32 %v366_v18, %v3552_v28  ;;  %v398_v31 = vmul.f32 %v377_v49, %v3663_v43  ;;  %v408_v32 = vmul.f32 %v366_v18, %v3648_v57 }
  0x9d   :  { %v388_v0 = vmul.f32 %v379_v7, %v3645_v8  ;;  %v405_v1 = vadd.f32 %v404_v19, %v3672_v46  ;;  %v406_v50 = vmul.f32 %v379_v7, %v3666_v26  ;;  %v414_v41 = vmul.f32 %v369_v56, %v3648_v57 }
  0x9e   :  { %v393_v38 = vadd.f32 %v392_v60, %v390_v59  ;;  %v399_v39 = vadd.f32 %v398_v31, %v396_v13  ;;  %v411_v37 = vadd.f32 %v3622_v21, %v408_v32  ;;  %v416_v12 = vmul.f32 %v377_v49, %v3554_v16  ;;  %v3833_v59 = vld [vmem:[%s6199_s0 + $0x80] sm:$0xff] }
  0x9f   :  { %v3767_v44 = vadd.f32 %v388_v0, %v387_v10  ;;  %v3769_v28 = vadd.f32 %v406_v50, %v405_v1  ;;  %v422_v43 = vmul.f32 %v371_v47, %v3657_v25  ;;  %v424_v8 = vmul.f32 %v379_v7, %v3562_v61  ;;  %v6400_v7 = vld [vmem:[#allocation5_spill] sm:$0xff]  ;;  %6402 = vst [vmem:[#allocation11_spill] sm:$0xff] %v3833_v59  ;;  %v3842_v0 = vld [vmem:[%s6199_s0 + $0x40] sm:$0xff] }
  0xa0   :  { %v3773_v58 = vadd.f32 %v394_v63, %v393_v38  ;;  %v3776_v26 = vadd.f32 %v3669_v53, %v399_v39  ;;  %v3778_v57 = vadd.f32 %v412_v14, %v411_v37  ;;  %v417_v46 = vadd.f32 %v416_v12, %v414_v41  ;;  %v6405_v12 = vld [vmem:[#allocation9_spill] sm:$0xff] }
  0xa1   :  { %v423_v21 = vadd.f32 %v422_v43, %v3697_v48  ;;  %v426_v16 = vmul.f32 %v366_v18, %v3676_v24  ;;  %v430_v60 = vmul.f32 %v381_v40, %v3562_v61  ;;  %v432_v29 = vmul.f32 %v369_v56, %v3676_v24  ;;  %v6398_v40 = vld [vmem:[#allocation6_spill] sm:$0xff] }
  0xa2   :  { %v3785_v9 = vadd.f32 %v3690_v33, %v417_v46  ;;  %v434_v45 = vmul.f32 %v377_v49, %v3657_v25  ;;  %v564_v47 = vmul.f32 %v563_v6, %v563_v6  ;;  %v3788_v20 = vmul.f32 2.0, %v563_v6  ;;  %v6399_v25 = vld [vmem:[#allocation7_spill] sm:$0xff] }
  0xa3   :  { %v3790_v53 = vadd.f32 %v424_v8, %v423_v21  ;;  %v429_v35 = vadd.f32 %v3682_v22, %v426_v16  ;;  %v753_v5 = vadd.s32 %v752_v36, %v748_v34  ;;  %v6397_v48 = vand.u32 2147483647, %v3493_v15 }
  0xa4   :  { %v435_v13 = vadd.f32 %v434_v45, %v432_v29  ;;  %v565_v61 = vsub.f32 1.0, %v564_v47  ;;  %v585_v24 = vmul.f32 %v3788_v20, %v563_v6  ;;  %v936_v56 = vadd.s32 1, %v2706_v2  ;;  %v3814_v6 = vld [vmem:[%s6199_s0 + $0x78] sm:$0xff] }
  0xa5   :  { %v933_v18 = vand.u32 8388607, %v6397_v48  ;;  %v3796_v33 = vadd.f32 %v430_v60, %v429_v35  ;;  %v593_v49 = vadd.f32 %v6399_v25, %v6398_v40  ;;  %v605_v63 = vadd.f32 %v6399_v25, %v6400_v7  ;;  %6401 = vst [vmem:[#allocation10_spill] sm:$0xff] %v3814_v6  ;;  %v2852_v7 = vpop.eup %2851 }
  0xa6   :  { %v754_v19 = vadd.s32 536870912, %v753_v5  ;;  %v3803_v22 = vadd.f32 %v3625_v62, %v435_v13  ;;  %v3805_v34 = vmax.f32 %v565_v61, 0.0  ;;  %v588_v36 = vmul.f32 %v3539_v30, %v585_v24  ;;  %v3821_v62 = vld [vmem:[%s6199_s0 + $0x30] sm:$0xff] }
  0xa7   :  { %vm937_vm11 = vcmp.gt.s32.totalorder %v936_v56, 0  ;;  %v590_v30 = vmul.f32 %v3826_v3, %v3821_v62  ;;  %v934_v10 = vor.u32 8388608, %v933_v18  ;;  %v6403_v31 = vsub.f32 0.5, %v3445_v27 }
  0xa8   :  { %v3809_v2 = vshrl.u32 %v754_v19, 30  ;;  %2853 = vrsqrt.f32 %v3805_v34  ;;  %v591_v1 = vmul.f32 %v3842_v0, %v3821_v62  ;;  %v938_v41 = vsel %vm937_vm11, %v936_v56, 0 }
  0xa9   :  { %v589_v32 = vsel %vm574_vm5, %v6403_v31, %v588_v36  ;;  %v592_v38 = vmul.f32 %v3842_v0, %v3826_v3  ;;  %v3851_v27 = vmul.f32 %v3814_v6, %v3814_v6  ;;  %v749_v8 = vadd.s32 %v3705_v51, %v3701_v4 }
  0xaa   :  { %v756_v50 = vshll.u32 %v3809_v2, 30  ;;  %v594_v39 = vmul.f32 %v593_v49, %v589_v32  ;;  %v606_v37 = vmul.f32 %v605_v63, %v589_v32  ;;  %v615_v43 = vmul.f32 %v589_v32, %v6405_v12 }
  0xab   :  { %6404 = vst [vmem:[#allocation8_spill] sm:$0xff] %v3851_v27  ;;  %v3860_v21 = vmul.f32 %v3833_v59, %v3833_v59  ;;  %v940_v29 = vand.u32 31, %v938_v41  ;;  %v3862_v45 = vshll.u32 %v934_v10, 8  ;;  %vm569_vm3 = vcmp.eq.f32.partialorder %v3805_v34, inf }
  0xac   :  { %v3856_v46 = vsub.s32 %v753_v5, %v756_v50  ;;  %v595_v16 = vsub.f32 1.0, %v594_v39  ;;  %v607_v60 = vsub.f32 1.0, %v606_v37  ;;  %vm571_vm4 = vcmp.eq.f32.partialorder %v3805_v34, 0.0 }
  0xad   :  { %6406 = vst [vmem:[#allocation3_spill] sm:$0xff] %v3860_v21  ;;  %v616_v47 = vsub.f32 1.0, %v615_v43  ;;  %v572_v56 = vand.u32 2147483648, %v3805_v34  ;;  %v941_v49 = vsub.s32 32, %v940_v29  ;;  %v598_v63 = vmul.f32 %v590_v30, %v589_v32 }
  0xae   :  { %v759_v35 = vsub.s32 0, %v3856_v46  ;;  %v3868_v4 = vmul.f32 %v595_v16, %v3767_v44  ;;  %v3871_v51 = vmul.f32 %v607_v60, %v3773_v58  ;;  %v3874_v5 = vmul.f32 %v595_v16, %v3769_v28 }
  0xaf   :  { %v3877_v48 = vmul.f32 %v607_v60, %v3778_v57  ;;  %v3880_v18 = vmul.f32 %v616_v47, %v3776_v26  ;;  %v3883_v13 = vmul.f32 %v616_v47, %v3785_v9  ;;  %v3886_v61 = vmul.f32 %v595_v16, %v3790_v53 }
  0xb0   :  { %v3889_v24 = vmul.f32 %v607_v60, %v3796_v33  ;;  %v3893_v40 = vmul.f32 %v616_v47, %v3803_v22  ;;  %v2700_v25 = vmin.u32 %v759_v35, %v3856_v46  ;;  %v3896_v19 = vmul.f32 %v591_v1, %v589_v32 }
  0xb1   :  { %v3899_v10 = vshrl.u32 %v938_v41, 5  ;;  %v943_v39 = vshll.u32 %v6364_v23, %v940_v29  ;;  %v946_v37 = vshll.u32 %v6365_v42, %v940_v29  ;;  %v952_v12 = vshll.u32 %v6367_v55, %v940_v29 }
  0xb2   :  { %v2854_v31 = vpop.eup %2853  ;;  %v761_v50 = vclz %v2700_v25  ;;  %v944_v16 = vshrl.u32 %v6365_v42, %v941_v49  ;;  %v6407_v60 = vmov 2131351028   ;;  %v950_v41 = vshrl.u32 %v6367_v55, %v941_v49 }
  0xb3   :  { %v568_v43 = vmul.f32 %v2854_v31, %v3805_v34  ;;  %v947_v30 = vshrl.u32 %v6407_v60, %v941_v49  ;;  %v949_v1 = vshll.u32 %v6407_v60, %v940_v29  ;;  %v953_v35 = vshrl.u32 %v6368_v11, %v941_v49 }
  0xb4   :  { %v2701_v47 = vadd.s32 4294967294, %v761_v50  ;;  %v3911_v25 = vshll.u32 %v6368_v11, %v940_v29  ;;  %v609_v14 = vmul.f32 %v592_v38, %v589_v32  ;;  %v3917_v31 = vshrl.u32 %v6369_v54, %v941_v49 }
  0xb5   :  { %v570_v36 = vsel %vm569_vm3, %v3805_v34, %v568_v43  ;;  %vm958_vm6 = vcmp.lt.s32.totalorder %v3899_v10, 1  ;;  %v942_v59 = vshrl.u32 %v6364_v23, %v941_v49  ;;  %v3923_v6 = vor.u32 %v953_v35, %v952_v12 }
  0xb6   :  { %v573_v50 = vsel %vm571_vm4, %v572_v56, %v570_v36  ;;  %vm2702_vm8 = vcmp.lt.s32.totalorder %v2701_v47, 0  ;;  %v945_v55 = vor.u32 %v944_v16, %v943_v39  ;;  %v948_v60 = vor.u32 %v947_v30, %v946_v37 }
  0xb7   :  { %v579_v29 = vmul.f32 %v3788_v20, %v573_v50  ;;  %v764_v11 = vsel %vm2702_vm8, 0, %v2701_v47  ;;  %v951_v38 = vor.u32 %v950_v41, %v949_v1  ;;  %v957_v54 = vor.u32 %v3917_v31, %v3911_v25 }
  0xb8   :  { %v765_v43 = vsub.s32 32, %v764_v11  ;;  %v769_v32 = vsub.s32 4294967266, %v764_v11  ;;  %v766_v34 = vshll.u32 %v3856_v46, %v764_v11  ;;  %vm960_vm9 = vcmp.lt.s32.totalorder %v3899_v10, 3 }
  0xb9   :  { %v581_v42 = vmul.f32 %v2852_v7, %v579_v29  ;;  %vm961_vm10 = vcmp.lt.s32.totalorder %v3899_v10, 4  ;;  %v6408_v39 = vsub.f32 1.0, %v3480_v17  ;;  %v3942_v11 = vsel %vm958_vm6, %v942_v59, %v945_v55 }
  0xba   :  { %v767_v56 = vshrl.u32 %v749_v8, %v765_v43  ;;  %v770_v49 = vadd.s32 127, %v769_v32  ;;  %v963_v20 = vsel %vm961_vm10, %v951_v38, 2102212464  ;;  %v967_v36 = vsel %vm961_vm10, %v3923_v6, 920167782 }
  0xbb   :  { %v582_v7 = vsel %vm574_vm5, %v6408_v39, %v581_v42  ;;  %v3946_v8 = vsel %vm960_vm9, %v948_v60, %v963_v20  ;;  %v966_v46 = vsel %vm958_vm6, %v945_v55, %v948_v60  ;;  %v968_v59 = vsel %vm960_vm9, %v951_v38, %v967_v36  ;;  %v6409_v20 = vld [vmem:[#allocation23_spill] sm:$0xff] }
  0xbc   :  { %v596_v37 = vsub.f32 0.0, %v582_v7  ;;  %v600_v12 = vmul.f32 %v3826_v3, %v582_v7  ;;  %v603_v16 = vmul.f32 %v3842_v0, %v582_v7  ;;  %v613_v17 = vmul.f32 %v3821_v62, %v582_v7 }
  0xbd   :  { %v768_v52 = vor.u32 %v767_v56, %v766_v34  ;;  %v771_v42 = vshll.u32 %v770_v49, 23  ;;  %v970_v30 = vsel %vm958_vm6, %v948_v60, %v951_v38  ;;  %vm959_vm5 = vcmp.lt.s32.totalorder %v3899_v10, 2 }
  0xbe   :  { %v597_v1 = vmul.f32 %v3842_v0, %v596_v37  ;;  %v602_v47 = vadd.f32 %v3896_v19, %v600_v12  ;;  %v604_v55 = vadd.f32 %v603_v16, %v598_v63  ;;  %v608_v41 = vmul.f32 %v3821_v62, %v596_v37 }
  0xbf   :  { %v611_v35 = vmul.f32 %v3826_v3, %v596_v37  ;;  %v614_v50 = vadd.f32 %v613_v17, %v609_v14  ;;  %v772_v29 = vor.u32 4788187, %v771_v42  ;;  %v775_v43 = vcvt.s32.f32 %v768_v52 }
  0xc0   :  { %v599_v32 = vadd.f32 %v598_v63, %v597_v1  ;;  %v610_v34 = vadd.f32 %v609_v14, %v608_v41  ;;  %v619_v56 = vmul.f32 %v604_v55, %v3773_v58  ;;  %v629_v60 = vmul.f32 %v602_v47, %v3767_v44 }
  0xc1   :  { %v612_v0 = vadd.f32 %v611_v35, %v3896_v19  ;;  %v627_v38 = vmul.f32 %v614_v50, %v3776_v26  ;;  %v637_v49 = vmul.f32 %v604_v55, %v3778_v57  ;;  %v645_v62 = vmul.f32 %v614_v50, %v3785_v9 }
  0xc2   :  { %vm695_vm13 = vcmp.lt.s32.totalorder %v6409_v20, 0  ;;  %v620_v3 = vadd.f32 %v619_v56, %v3868_v4  ;;  %v623_v36 = vmul.f32 %v599_v32, %v3767_v44  ;;  %v631_v14 = vmul.f32 %v610_v34, %v3773_v58 }
  0xc3   :  { %v641_v63 = vmul.f32 %v599_v32, %v3769_v28  ;;  %v621_v39 = vmul.f32 %v612_v0, %v3776_v26  ;;  %v638_v19 = vadd.f32 %v637_v49, %v3874_v5  ;;  %v639_v7 = vmul.f32 %v612_v0, %v3785_v9 }
  0xc4   :  { %v647_v37 = vmul.f32 %v602_v47, %v3769_v28  ;;  %v626_v12 = vadd.f32 %v3871_v51, %v623_v36  ;;  %v632_v16 = vadd.f32 %v631_v14, %v629_v60  ;;  %v649_v4 = vmul.f32 %v610_v34, %v3778_v57 }
  0xc5   :  { %v644_v17 = vadd.f32 %v3877_v48, %v641_v63  ;;  %v6410_v44 = vand.u32 2147483647, %v6409_v20  ;;  %v3986_v26 = vadd.f32 %v621_v39, %v620_v3  ;;  %v3988_v5 = vadd.f32 %v639_v7, %v638_v19  ;;  %v2717_v7 = vld [vmem:[%s6199_s0 + $0x90] sm:$0xff] }
  0xc6   :  { %v655_v9 = vmul.f32 %v604_v55, %v3796_v33  ;;  %v657_v28 = vmul.f32 %v612_v0, %v3803_v22  ;;  %v3992_v51 = vadd.f32 %v627_v38, %v626_v12  ;;  %v3995_v48 = vadd.f32 %v3880_v18, %v632_v16 }
  0xc7   :  { %vm3982_vm7 = vcmp.le.f32.partialorder %v6410_v44, 0.7853982  ;;  %v3997_v57 = vadd.f32 %v645_v62, %v644_v17  ;;  %v650_v52 = vadd.f32 %v649_v4, %v647_v37  ;;  %v659_v1 = vmul.f32 %v599_v32, %v3790_v53  ;;  %v2718_v37 = vld [vmem:[%s6199_s0 + $0x98] sm:$0xff]  ;;  %v2719_v17 = vld [vmem:[%s6199_s0 + $0xa0] sm:$0xff] }
  0xc8   :  { %v656_v42 = vadd.f32 %v655_v9, %v3886_v61  ;;  %v663_v41 = vmul.f32 %v614_v50, %v3803_v22  ;;  %v665_v35 = vmul.f32 %v602_v47, %v3790_v53  ;;  %v667_v56 = vmul.f32 %v610_v34, %v3796_v33 }
  0xc9   :  { %v4004_v55 = vadd.f32 %v3883_v13, %v650_v52  ;;  %v773_v60 = vand.u32 2147483647, %v772_v29  ;;  %v971_v18 = vsel %vm961_vm10, %v957_v54, 1326507024  ;;  %v662_v61 = vadd.f32 %v3889_v24, %v659_v1  ;;  %v4030_v24 = vld [vmem:[%s6199_s0 + $0x88] sm:$0xff] }
  0xca   :  { %v4012_v0 = vadd.f32 %v657_v28, %v656_v42  ;;  %v969_v22 = vsel %vm959_vm5, %v966_v46, %v968_v59  ;;  %v972_v53 = vsel %vm960_vm9, %v3923_v6, %v971_v18  ;;  %v668_v13 = vadd.f32 %v667_v56, %v665_v35  ;;  %6414 = vst [vmem:[#allocation4_spill] sm:$0xff] %v4030_v24  ;;  %v6420_v42 = vld [vmem:[#allocation20_spill] sm:$0xff] }
  0xcb   :  { %v776_v33 = vmul.f32 %v775_v43, %v773_v60  ;;  %v6413_v47 = vsub.s32 4, %v3809_v2  ;;  %v973_v54 = vsel %vm959_vm5, %v970_v30, %v972_v53  ;;  %v4032_v31 = vadd.f32 %v663_v41, %v662_v61 }
  0xcc   :  { %v965_v6 = vsel %vm959_vm5, %v3942_v11, %v3946_v8  ;;  %v4039_v46 = vmul.u32.u64.low %v3862_v45, %v973_v54  ;;  %v4040_v59 = vmul.u32.u64.high %v3862_v45, %v973_v54, %v4039_v46  ;;  %v4052_v43 = vadd.f32 %v3860_v21, %v3851_v27  ;;  %v6417_v8 = vld [vmem:[#allocation22_spill] sm:$0xff] }
  0xcd   :  { %v780_v25 = vsel %vm695_vm13, %v6413_v47, %v3809_v2  ;;  %v4043_v2 = vadd.f32 %v3893_v40, %v668_v13  ;;  %v777_v30 = vxor.u32 2147483648, %v776_v33  ;;  %v4056_v10 = vmul.f32 %v4030_v24, %v4030_v24 }
  0xce   :  { %v4046_v50 = vmul.u32.u64.low %v3862_v45, %v969_v22  ;;  %v4047_v29 = vmul.u32.u64.high %v3862_v45, %v969_v22, %v4046_v50  ;;  %6415 = vst [vmem:[#allocation2_spill] sm:$0xff] %v4052_v43  ;;  %vm807_vm14 = vcmp.lt.f32.partialorder %v6417_v8, 1e-07  ;;  %v782_v32 = vsel %vm3982_vm7, 0, %v780_v25 }
  0xcf   :  { %6416 = vst [vmem:[#allocation6_spill] sm:$0xff] %v4056_v10  ;;  %v778_v11 = vsel %vm695_vm13, %v777_v30, %v776_v33  ;;  %v981_v34 = vmul.u32 %v3862_v45, %v965_v6  ;;  %v808_v49 = vsel %vm807_vm14, 1.0, %v6417_v8  ;;  %v4075_v62 = vadd.f32 %v4056_v10, %v4052_v43 }
  0xd0   :  { %v781_v40 = vsel %vm3982_vm7, %v6409_v20, %v778_v11  ;;  %vm983_vm12 = vc.u32 %v4040_v59, %v4046_v50  ;;  %v984_v38 = vadd.s32 1, %v4047_v29  ;;  %v786_v3 = vadd.s32 3, %v782_v32  ;;  %v4129_v11 = vld [vmem:[%s6199_s0 + $0x50] sm:$0xff] }
  0xd1   :  { %2855 = vcosq.f32 %v781_v40  ;;  %v819_v45 = vmul.f32 %v808_v49, %v808_v49  ;;  %v4091_v4 = vmul.f32 %v2717_v7, %v2717_v7  ;;  %v4093_v44 = vmul.f32 %v2718_v37, %v2718_v37  ;;  %v2724_v37 = vld [vmem:[%s6199_s0 + $0xa8] sm:$0xff] }
  0xd2   :  { %2857 = vsinq.f32 %v781_v40  ;;  %v985_v36 = vsel %vm983_vm12, %v984_v38, %v4047_v29  ;;  %v787_v39 = vand.u32 3, %v786_v3  ;;  %vm785_vm0 = vweird.f32 %v6409_v20  ;;  %v4124_v29 = vld [vmem:[%s6199_s0 + $0x48] sm:$0xff]  ;;  %v6426_v3 = vld [vmem:[#allocation24_spill] sm:$0xff] }
  0xd3   :  { %v986_v14 = vadd.s32 %v985_v36, %v981_v34  ;;  %2859 = vrsqrt.f32 %v4075_v62  ;;  %6418 = vst [vmem:[#allocation7_spill] sm:$0xff] %v4091_v4  ;;  %6419 = vst [vmem:[#allocation5_spill] sm:$0xff] %v4093_v44  ;;  %v4099_v1 = vmul.f32 0.16666667, %v6420_v42  ;;  %vm1099_vm11 = vcmp.eq.f32.partialorder %v4075_v62, inf }
  0xd4   :  { %2861 = vrcp.f32 %v819_v45  ;;  %vm792_vm1 = vcmp.eq.s32.totalorder %v787_v39, 2  ;;  %vm789_vm15 = vcmp.eq.s32.totalorder %v787_v39, 0  ;;  %vm788_vm2 = vcmp.lt.s32.totalorder %v787_v39, 2 }
  0xd5   :  { %v987_v63 = vadd.s32 536870912, %v986_v14  ;;  %v4103_v60 = vmul.f32 %v2719_v17, %v2719_v17  ;;  %vm928_vm3 = vcmp.lt.s32.totalorder %v3493_v15, 0  ;;  %v1102_v22 = vand.u32 2147483648, %v4075_v62 }
  0xd6   :  { %v4110_v53 = vadd.f32 %v4093_v44, %v4091_v4  ;;  %2863 = vrcp.f32 %v808_v49  ;;  %vm1101_vm4 = vcmp.eq.f32.partialorder %v4075_v62, 0.0  ;;  %v816_v54 = vmul.f32 0.041666668, %v6420_v42  ;;  %v6430_v42 = vld [vmem:[#allocation12_spill] sm:$0xff] }
  0xd7   :  { %v4079_v19 = vshrl.u32 %v987_v63, 30  ;;  %6421 = vst [vmem:[#allocation9_spill] sm:$0xff] %v4103_v60  ;;  %v4133_v20 = vmul.f32 %v4129_v11, %v4124_v29  ;;  %v6423_v34 = vand.u32 2147483647, %v3493_v15  ;;  %vm1040_vm8 = vcmp.lt.f32.partialorder %v6426_v3, 1e-07 }
  0xd8   :  { %6422 = vst [vmem:[#allocation23_spill] sm:$0xff] %v4110_v53  ;;  %v6444_v38 = vmov 2102212464  }
  0xd9   :  { %v989_v12 = vshll.u32 %v4079_v19, 30  ;;  %vm4137_vm6 = vcmp.le.f32.partialorder %v6423_v34, 0.7853982  ;;  %v1012_v49 = vsub.s32 4, %v4079_v19 }
  0xdb   :  { %v2856_v16 = vpop.eup %2855  ;;  %v4095_v28 = vsub.s32 %v986_v14, %v989_v12  ;;  %v4147_v14 = vadd.f32 %v4103_v60, %v4110_v53  ;;  %v817_v12 = vsub.f32 0.5, %v816_v54  ;;  %v1013_v54 = vsel %vm928_vm3, %v1012_v49, %v4079_v19 }
  0xdc   :  { %v2858_v58 = vpop.eup %2857  ;;  %v793_v9 = vxor.u32 2147483648, %v2856_v16 }
  0xdd   :  { %v790_v52 = vxor.u32 2147483648, %v2858_v58  ;;  %v2860_v41 = vpop.eup %2859  ;;  %v992_v56 = vsub.s32 0, %v4095_v28  ;;  %2865 = vrsqrt.f32 %v4147_v14 }
  0xde   :  { %v794_v35 = vsel %vm792_vm1, %v793_v9, %v2858_v58  ;;  %v1098_v61 = vmul.f32 %v2860_v41, %v4075_v62  ;;  %v2862_v32 = vpop.eup %2861  ;;  %v6428_v58 = vld [vmem:[#allocation13_spill] sm:$0xff]  ;;  %v6429_v9 = vld [vmem:[#allocation14_spill] sm:$0xff]  ;;  %vm1018_vm1 = vweird.f32 %v3493_v15 }
  0xdf   :  { %v791_v18 = vsel %vm789_vm15, %v2856_v16, %v790_v52  ;;  %v2707_v33 = vmin.u32 %v992_v56, %v4095_v28  ;;  %v4159_v16 = vld [vmem:[%s6199_s0 + $0x58] sm:$0xff]  ;;  %v826_v52 = vadd.f32 %v6429_v9, %v6428_v58  ;;  %v838_v41 = vadd.f32 %v6429_v9, %v6430_v42 }
  0xe0   :  { %v795_v13 = vsel %vm788_vm2, %v791_v18, %v794_v35  ;;  %v1100_v6 = vsel %vm1099_vm11, %v4075_v62, %v1098_v61  ;;  %v4163_v17 = vmul.f32 %v4159_v16, %v4124_v29  ;;  %v4174_v18 = vsel %vm1040_vm8, 1.0, %v6426_v3 }
  0xe1   :  { %v796_v47 = vsel %vm785_vm0, nan, %v795_v13  ;;  %v994_v40 = vclz %v2707_v33  ;;  %v4143_v36 = vsel %vm1101_vm4, %v1102_v22, %v1100_v6  ;;  %v982_v61 = vadd.s32 %v4046_v50, %v4040_v59  ;;  %v2725_v13 = vld [vmem:[%s6199_s0 + $0xb0] sm:$0xff]  ;;  %v2731_v6 = vld [vmem:[%s6200_s1 + $0x8] sm:$0xff] }
  0xe2   :  { %v797_v46 = vmul.f32 %v796_v47, %v796_v47  ;;  %v4119_v30 = vmul.f32 2.0, %v796_v47  ;;  %v4151_v7 = vmul.f32 0.5, %v4143_v36  ;;  %v4182_v33 = vmul.f32 %v2724_v37, %v2724_v37  ;;  %v6434_v37 = vld [vmem:[#allocation16_spill] sm:$0xff] }
  0xe3   :  { %v2708_v39 = vadd.s32 4294967294, %v994_v40  ;;  %v4211_v42 = vmul.f32 %v2731_v6, %v2731_v6  ;;  %v825_v43 = vmul.f32 %v4159_v16, %v4129_v11  ;;  %vm1332_vm15 = vcmp.eq.f32.partialorder %v4147_v14, inf }
  0xe4   :  { %v798_v45 = vsub.f32 1.0, %v797_v46  ;;  %v818_v63 = vmul.f32 %v4119_v30, %v796_v47  ;;  %6427 = vst [vmem:[#allocation22_spill] sm:$0xff] %v4151_v7  ;;  %6431 = vst [vmem:[#allocation20_spill] sm:$0xff] %v4182_v33  ;;  %v1782_v47 = vld [vmem:[%s6200_s1] sm:$0xff]  ;;  %v1108_v50 = vand.u32 2139095040, %v4151_v7  ;;  %vm1334_vm0 = vcmp.eq.f32.partialorder %v4147_v14, 0.0 }
  0xe5   :  { %vm2709_vm9 = vcmp.lt.s32.totalorder %v2708_v39, 0  ;;  %6435 = vst [vmem:[#allocation12_spill] sm:$0xff] %v4211_v42 }
  0xe6   :  { %v4169_v35 = vmax.f32 %v798_v45, 0.0  ;;  %v821_v56 = vmul.f32 %v2862_v32, %v818_v63  ;;  %v997_v22 = vsel %vm2709_vm9, 0, %v2708_v39  ;;  %v4201_v45 = vpop.eup %2863  ;;  %v4205_v63 = vmul.f32 %v2725_v13, %v2725_v13 }
  0xe7   :  { %v998_v40 = vsub.s32 32, %v997_v22  ;;  %v999_v32 = vshll.u32 %v4095_v28, %v997_v22  ;;  %v1002_v34 = vsub.s32 4294967266, %v997_v22  ;;  %v4207_v39 = vmul.f32 %v1782_v47, %v1782_v47 }
  0xe8   :  { %2867 = vrsqrt.f32 %v4169_v35  ;;  %v4198_v46 = vsel %vm807_vm14, %v817_v12, %v821_v56  ;;  %6432 = vst [vmem:[#allocation13_spill] sm:$0xff] %v4205_v63  ;;  %v1015_v22 = vsel %vm4137_vm6, 0, %v1013_v54  ;;  %v1109_v25 = vshrl.u32 %v1108_v50, 23  ;;  %v2726_v54 = vld [vmem:[%s6199_s0 + $0xb8] sm:$0xff] }
  0xe9   :  { %v827_v19 = vmul.f32 %v826_v52, %v4198_v46  ;;  %v839_v49 = vmul.f32 %v838_v41, %v4198_v46  ;;  %6433 = vst [vmem:[#allocation14_spill] sm:$0xff] %v4207_v39  ;;  %v848_v58 = vmul.f32 %v4198_v46, %v6434_v37  ;;  %v1000_v9 = vshrl.u32 %v982_v61, %v998_v40 }
  0xea   :  { %v1003_v12 = vadd.s32 127, %v1002_v34  ;;  %v6436_v13 = vand.u32 2147483647, %v4151_v7  ;;  %v1019_v4 = vadd.s32 3, %v1015_v22  ;;  %vm802_vm10 = vcmp.eq.f32.partialorder %v4169_v35, inf }
  0xeb   :  { %v828_v56 = vsub.f32 1.0, %v827_v19  ;;  %v840_v28 = vsub.f32 1.0, %v839_v49  ;;  %v849_v52 = vsub.f32 1.0, %v848_v58  ;;  %v1001_v59 = vor.u32 %v1000_v9, %v999_v32 }
  0xec   :  { %v1004_v41 = vshll.u32 %v1003_v12, 23  ;;  %v1112_v47 = vand.u32 8388607, %v6436_v13  ;;  %v2713_v9 = vadd.s32 4294967169, %v1109_v25  ;;  %v2732_v12 = vld [vmem:[%s6200_s1 + $0x10] sm:$0xff]  ;;  %v2866_v13 = vpop.eup %2865  ;;  %v805_v25 = vand.u32 2147483648, %v4169_v35 }
  0xed   :  { %v4218_v53 = vmul.f32 %v828_v56, %v3986_v26  ;;  %v4221_v61 = vmul.f32 %v840_v28, %v3992_v51  ;;  %v4224_v6 = vmul.f32 %v828_v56, %v3988_v5  ;;  %v4227_v40 = vmul.f32 %v840_v28, %v3997_v57 }
  0xee   :  { %v4233_v50 = vmul.f32 %v849_v52, %v3995_v48  ;;  %v4236_v32 = vmul.f32 %v849_v52, %v4004_v55  ;;  %v4239_v34 = vmul.f32 %v828_v56, %v4012_v0  ;;  %v4242_v19 = vmul.f32 %v840_v28, %v4032_v31 }
  0xef   :  { %v4245_v49 = vmul.f32 %v849_v52, %v4043_v2  ;;  %v1005_v37 = vor.u32 4788187, %v1004_v41  ;;  %v1008_v58 = vcvt.s32.f32 %v1001_v59  ;;  %v4254_v56 = vmul.f32 %v4174_v18, %v4174_v18 }
  0xf0   :  { %v4256_v28 = vmul.f32 %v2726_v54, %v2726_v54  ;;  %v1115_v41 = vadd.s32 1, %v2713_v9  ;;  %vm804_vm5 = vcmp.eq.f32.partialorder %v4169_v35, 0.0  ;;  %v4264_v22 = vadd.f32 %v4205_v63, %v4182_v33 }
  0xf1   :  { %v1006_v59 = vand.u32 2147483647, %v1005_v37  ;;  %v4266_v44 = vmul.f32 %v2732_v12, %v2732_v12  ;;  %v1113_v54 = vor.u32 8388608, %v1112_v47  ;;  %v4270_v27 = vadd.f32 %v4211_v42, %v4207_v39 }
  0xf2   :  { %6437 = vst [vmem:[#allocation16_spill] sm:$0xff] %v4256_v28  ;;  %v2868_v52 = vpop.eup %2867  ;;  %6438 = vst [vmem:[#allocation25_spill] sm:$0xff] %v4264_v22  ;;  %vm1116_vm13 = vcmp.gt.s32.totalorder %v1115_v41, 0  ;;  %v4273_v9 = vand.u32 3, %v1019_v4  ;;  %v4277_v12 = vmul.f32 %v2866_v13, %v4147_v14  ;;  %v842_v4 = vmul.f32 %v825_v43, %v4198_v46 }
  0xf3   :  { %v801_v60 = vmul.f32 %v2868_v52, %v4169_v35  ;;  %6439 = vst [vmem:[#allocation26_spill] sm:$0xff] %v4266_v44  ;;  %v1009_v7 = vmul.f32 %v1008_v58, %v1006_v59  ;;  %6440 = vst [vmem:[#allocation27_spill] sm:$0xff] %v4270_v27  ;;  %v1117_v52 = vsel %vm1116_vm13, %v1115_v41, 0  ;;  %v831_v58 = vmul.f32 %v4133_v20, %v4198_v46 }
  0xf4   :  { %v1119_v33 = vand.u32 31, %v1117_v52  ;;  %v834_v59 = vmul.f32 %v4163_v17, %v4198_v46  ;;  %v4290_v41 = vshll.u32 %v1113_v54, 8  ;;  %v6442_v17 = vmov 2131351028  }
  0xf5   :  { %v803_v37 = vsel %vm802_vm10, %v4169_v35, %v801_v60  ;;  %v1010_v3 = vxor.u32 2147483648, %v1009_v7  ;;  %v4298_v43 = vshrl.u32 %v1117_v52, 5  ;;  %v6443_v46 = vsub.f32 1.0, %v4099_v1 }
  0xf6   :  { %v806_v21 = vsel %vm804_vm5, %v805_v25, %v803_v37  ;;  %v4287_v35 = vsub.s32 32, %v1119_v33  ;;  %v1122_v25 = vshll.u32 %v6364_v23, %v1119_v33  ;;  %v1128_v37 = vshll.u32 %v6442_v17, %v1119_v33 }
  0xf7   :  { %v812_v47 = vmul.f32 %v4119_v30, %v806_v21  ;;  %v1011_v60 = vsel %vm928_vm3, %v1010_v3, %v1009_v7  ;;  %v6441_v30 = vmov 2475754826   ;;  %vm1022_vm7 = vcmp.eq.s32.totalorder %v4273_v9, 0 }
  0xf8   :  { %v1014_v21 = vsel %vm4137_vm6, %v3493_v15, %v1011_v60  ;;  %v1125_v20 = vshll.u32 %v6441_v30, %v1119_v33  ;;  %v1123_v3 = vshrl.u32 %v6441_v30, %v4287_v35  ;;  %v1126_v7 = vshrl.u32 %v6442_v17, %v4287_v35 }
  0xf9   :  { %v814_v13 = vmul.f32 %v4201_v45, %v812_v47  ;;  %2869 = vcosq.f32 %v1014_v21  ;;  %v1129_v54 = vshrl.u32 %v6444_v38, %v4287_v35  ;;  %v4311_v47 = vshll.u32 %v6444_v38, %v1119_v33 }
  0xfa   :  { %2871 = vsinq.f32 %v1014_v21  ;;  %v4316_v42 = vor.u32 %v1123_v3, %v1122_v25  ;;  %v4318_v1 = vor.u32 %v1126_v7, %v1125_v20  ;;  %v6446_v20 = vmov 1326507024  }
  0xfb   :  { %v815_v45 = vsel %vm807_vm14, %v6443_v46, %v814_v13  ;;  %v4320_v8 = vor.u32 %v1129_v54, %v1128_v37  ;;  %v6445_v13 = vmov 920167782   ;;  %vm1025_vm14 = vcmp.eq.s32.totalorder %v4273_v9, 2 }
  0xfc   :  { %v829_v52 = vsub.f32 0.0, %v815_v45  ;;  %v833_v60 = vmul.f32 %v4129_v11, %v815_v45  ;;  %v836_v10 = vmul.f32 %v4159_v16, %v815_v45  ;;  %v846_v39 = vmul.f32 %v4124_v29, %v815_v45 }
  0xfd   :  { %v1132_v21 = vshrl.u32 %v6445_v13, %v4287_v35  ;;  %v4330_v25 = vshll.u32 %v6445_v13, %v1119_v33  ;;  %v4334_v37 = vshrl.u32 %v6446_v20, %v4287_v35  ;;  %vm1021_vm12 = vcmp.lt.s32.totalorder %v4273_v9, 2 }
  0xfe   :  { %v830_v46 = vmul.f32 %v4159_v16, %v829_v52  ;;  %v835_v63 = vadd.f32 %v834_v59, %v833_v60  ;;  %v837_v38 = vadd.f32 %v836_v10, %v831_v58  ;;  %v841_v17 = vmul.f32 %v4124_v29, %v829_v52 }
  0xff   :  { %v844_v30 = vmul.f32 %v4129_v11, %v829_v52  ;;  %v847_v24 = vadd.f32 %v846_v39, %v842_v4  ;;  %vm1137_vm2 = vcmp.lt.s32.totalorder %v4298_v43, 1  ;;  %vm1140_vm11 = vcmp.lt.s32.totalorder %v4298_v43, 4 }
 0x100   :  { %v832_v3 = vadd.f32 %v831_v58, %v830_v46  ;;  %v843_v16 = vadd.f32 %v842_v4, %v841_v17  ;;  %v852_v10 = vmul.f32 %v837_v38, %v3992_v51  ;;  %v862_v29 = vmul.f32 %v835_v63, %v3986_v26 }
 0x101   :  { %v845_v11 = vadd.f32 %v844_v30, %v834_v59  ;;  %v860_v39 = vmul.f32 %v847_v24, %v3995_v48  ;;  %v870_v7 = vmul.f32 %v837_v38, %v3997_v57  ;;  %v878_v33 = vmul.f32 %v847_v24, %v4004_v55 }
 0x102   :  { %v853_v58 = vadd.f32 %v852_v10, %v4218_v53  ;;  %v856_v4 = vmul.f32 %v832_v3, %v3986_v26  ;;  %v864_v17 = vmul.f32 %v843_v16, %v3992_v51  ;;  %v874_v45 = vmul.f32 %v832_v3, %v3988_v5 }
 0x103   :  { %v854_v59 = vmul.f32 %v845_v11, %v3995_v48  ;;  %v871_v30 = vadd.f32 %v870_v7, %v4224_v6  ;;  %v872_v54 = vmul.f32 %v845_v11, %v4004_v55  ;;  %v880_v52 = vmul.f32 %v835_v63, %v3988_v5  ;;  %v2870_v60 = vpop.eup %2869 }
 0x104   :  { %v859_v46 = vadd.f32 %v4221_v61, %v856_v4  ;;  %v865_v20 = vadd.f32 %v864_v17, %v862_v29  ;;  %v877_v53 = vadd.f32 %v4227_v40, %v874_v45  ;;  %v882_v26 = vmul.f32 %v843_v16, %v3997_v57  ;;  %v2872_v10 = vpop.eup %2871 }
 0x105   :  { %v4355_v51 = vadd.f32 %v854_v59, %v853_v58  ;;  %v4357_v13 = vadd.f32 %v872_v54, %v871_v30  ;;  %v888_v48 = vmul.f32 %v837_v38, %v4032_v31  ;;  %v890_v6 = vmul.f32 %v845_v11, %v4043_v2 }
 0x106   :  { %v4362_v5 = vadd.f32 %v860_v39, %v859_v46  ;;  %v4365_v55 = vadd.f32 %v4233_v50, %v865_v20  ;;  %v4367_v61 = vadd.f32 %v878_v33, %v877_v53  ;;  %v883_v40 = vadd.f32 %v882_v26, %v880_v52 }
 0x107   :  { %6447 = vst [vmem:[#allocation28_spill] sm:$0xff] %v4355_v51  ;;  %6448 = vst [vmem:[#allocation29_spill] sm:$0xff] %v4357_v13  ;;  %v889_v57 = vadd.f32 %v888_v48, %v4239_v34  ;;  %v892_v29 = vmul.f32 %v832_v3, %v4012_v0  ;;  %v896_v7 = vmul.f32 %v847_v24, %v4043_v2  ;;  %v1023_v58 = vxor.u32 2147483648, %v2872_v10  ;;  %v6460_v48 = vld [vmem:[#allocation21_spill] sm:$0xff] }
 0x108   :  { %6449 = vst [vmem:[#allocation30_spill] sm:$0xff] %v4362_v5  ;;  %6450 = vst [vmem:[#allocation31_spill] sm:$0xff] %v4365_v55  ;;  %v898_v38 = vmul.f32 %v835_v63, %v4012_v0  ;;  %v4374_v11 = vadd.f32 %v4236_v32, %v883_v40  ;;  %v900_v39 = vmul.f32 %v843_v16, %v4032_v31  ;;  %v1026_v4 = vxor.u32 2147483648, %v2870_v60 }
 0x109   :  { %6451 = vst [vmem:[#allocation32_spill] sm:$0xff] %v4367_v61  ;;  %v4377_v50 = vadd.f32 %v890_v6, %v889_v57  ;;  %v895_v20 = vadd.f32 %v4242_v19, %v892_v29  ;;  %v1133_v33 = vor.u32 %v1132_v21, %v4311_v47  ;;  %v1136_v34 = vor.u32 %v4334_v37, %v4330_v25 }
 0x10a   :  { %6452 = vst [vmem:[#allocation33_spill] sm:$0xff] %v4374_v11  ;;  %v901_v3 = vadd.f32 %v900_v39, %v898_v38  ;;  %v1024_v0 = vsel %vm1022_vm7, %v2870_v60, %v1023_v58  ;;  %v1027_v24 = vsel %vm1025_vm14, %v1026_v4, %v2872_v10  ;;  %v1121_v63 = vshrl.u32 %v6364_v23, %v4287_v35  ;;  %v4480_v58 = vld [vmem:[%s6199_s0 + $0x68] sm:$0xff] }
 0x10b   :  { %6453 = vst [vmem:[#allocation34_spill] sm:$0xff] %v4377_v50  ;;  %v4388_v31 = vadd.f32 %v896_v7, %v895_v20  ;;  %v1028_v2 = vsel %vm1021_vm12, %v1024_v0, %v1027_v24  ;;  %vm1139_vm3 = vcmp.lt.s32.totalorder %v4298_v43, 3  ;;  %v1333_v47 = vsel %vm1332_vm15, %v4147_v14, %v4277_v12  ;;  %v4487_v20 = vld [vmem:[%s6199_s0 + $0x70] sm:$0xff] }
 0x10c   :  { %v4396_v32 = vadd.f32 %v4245_v49, %v901_v3  ;;  %v1029_v19 = vsel %vm1018_vm1, nan, %v1028_v2  ;;  %vm1138_vm4 = vcmp.lt.s32.totalorder %v4298_v43, 2  ;;  %v1142_v35 = vsel %vm1140_vm11, %v4320_v8, 2102212464 }
 0x10d   :  { %6454 = vst [vmem:[#allocation35_spill] sm:$0xff] %v4388_v31  ;;  %v1030_v9 = vmul.f32 %v1029_v19, %v1029_v19  ;;  %v1145_v49 = vsel %vm1137_vm2, %v4316_v42, %v4318_v1  ;;  %v1146_v21 = vsel %vm1140_vm11, %v1133_v33, 920167782  ;;  %v1149_v15 = vsel %vm1137_vm2, %v4318_v1, %v4320_v8  ;;  %v6476_v31 = vld [vmem:[#allocation19_spill] sm:$0xff] }
 0x10e   :  { %6455 = vst [vmem:[#allocation36_spill] sm:$0xff] %v4396_v32  ;;  %v1150_v25 = vsel %vm1140_vm11, %v1136_v34, 1326507024  ;;  %v4417_v12 = vadd.f32 %v4256_v28, %v4264_v22  ;;  %v1141_v16 = vsel %vm1137_vm2, %v1121_v63, %v4316_v42  ;;  %v1147_v17 = vsel %vm1139_vm3, %v4320_v8, %v1146_v21 }
 0x10f   :  { %v1031_v37 = vsub.f32 1.0, %v1030_v9  ;;  %v1151_v45 = vsel %vm1139_vm3, %v1133_v33, %v1150_v25  ;;  %v1143_v59 = vsel %vm1139_vm3, %v4318_v1, %v1142_v35  ;;  %v1148_v30 = vsel %vm1138_vm4, %v1145_v49, %v1147_v17  ;;  %v6461_v9 = vld [vmem:[#allocation17_spill] sm:$0xff]  ;;  %v6462_v35 = vld [vmem:[#allocation18_spill] sm:$0xff] }
 0x110   :  { %6456 = vst [vmem:[#allocation37_spill] sm:$0xff] %v4417_v12  ;;  %v1152_v54 = vsel %vm1138_vm4, %v1149_v15, %v1151_v45  ;;  %v6457_v52 = vand.u32 2147483648, %v4147_v14  ;;  %2873 = vrcp.f32 %v4254_v56  ;;  %v1144_v10 = vsel %vm1138_vm4, %v1141_v16, %v1143_v59 }
 0x111   :  { %v4434_v46 = vmax.f32 %v1031_v37, 0.0  ;;  %v4438_v42 = vmul.u32.u64.low %v4290_v41, %v1152_v54  ;;  %v4439_v8 = vmul.u32.u64.high %v4290_v41, %v1152_v54, %v4438_v42  ;;  %2875 = vrsqrt.f32 %v4417_v12 }
 0x112   :  { %v4432_v60 = vsel %vm1334_vm0, %v6457_v52, %v1333_v47  ;;  %v4442_v1 = vmul.u32.u64.low %v4290_v41, %v1148_v30  ;;  %v4443_v53 = vmul.u32.u64.high %v4290_v41, %v1148_v30, %v4442_v1  ;;  %v4454_v56 = vadd.f32 %v4266_v44, %v4270_v27 }
 0x113   :  { %6458 = vst [vmem:[#allocation38_spill] sm:$0xff] %v4432_v60  ;;  %v4447_v26 = vmul.f32 0.5, %v4432_v60  ;;  %v4457_v6 = vmul.f32 0.16666667, %v6460_v48  ;;  %2877 = vrsqrt.f32 %v4434_v46  ;;  %v1160_v57 = vmul.u32 %v4290_v41, %v1144_v10  ;;  %v4475_v41 = vld [vmem:[%s6199_s0 + $0x60] sm:$0xff] }
 0x114   :  { %6459 = vst [vmem:[#allocation39_spill] sm:$0xff] %v4454_v56  ;;  %vm1162_vm6 = vc.u32 %v4439_v8, %v4442_v1  ;;  %v1049_v29 = vmul.f32 0.041666668, %v6460_v48  ;;  %v1163_v43 = vadd.s32 1, %v4443_v53  ;;  %vm1219_vm9 = vcmp.lt.f32.partialorder %v4143_v36, 1e-07 }
 0x115   :  { %v1341_v40 = vand.u32 2139095040, %v4447_v26  ;;  %2879 = vrsqrt.f32 %v4454_v56  ;;  %v4469_v38 = vmul.f32 2.0, %v1029_v19  ;;  %v1056_v4 = vmul.f32 %v4480_v58, %v4475_v41 }
 0x116   :  { %2881 = vrcp.f32 %v4174_v18  ;;  %v4491_v18 = vmul.f32 %v4487_v20, %v4475_v41  ;;  %v1164_v33 = vsel %vm1162_vm6, %v1163_v43, %v4443_v53  ;;  %v1220_v0 = vsel %vm1219_vm9, 1.0, %v4143_v36  ;;  %v6466_v43 = vld [vmem:[#allocation11_spill] sm:$0xff] }
 0x117   :  { %v1342_v39 = vshrl.u32 %v1341_v40, 23  ;;  %v1051_v34 = vmul.f32 %v4469_v38, %v1029_v19  ;;  %v1165_v3 = vadd.s32 %v1164_v33, %v1160_v57  ;;  %v1050_v63 = vsub.f32 0.5, %v1049_v29  ;;  %v6464_v19 = vld [vmem:[#allocation15_spill] sm:$0xff]  ;;  %v6465_v29 = vld [vmem:[#allocation10_spill] sm:$0xff] }
 0x118   :  { %v4500_v47 = vmul.f32 %v4487_v20, %v4480_v58  ;;  %v1059_v49 = vadd.f32 %v6462_v35, %v6461_v9  ;;  %v4505_v21 = vmul.f32 0.16666667, %v4075_v62  ;;  %v1071_v25 = vadd.f32 %v6462_v35, %v6464_v19  ;;  %v2963_v36 = vld [vmem:[%s6199_s0 + $0x88] sm:$0xff] }
 0x119   :  { %v2720_v24 = vadd.s32 4294967169, %v1342_v39  ;;  %v1166_v37 = vadd.s32 536870912, %v1165_v3  ;;  %v4510_v16 = vmul.f32 0.041666668, %v4075_v62  ;;  %v1231_v45 = vmul.f32 %v1220_v0, %v1220_v0 }
 0x11a   :  { %v2874_v2 = vpop.eup %2873  ;;  %6463 = vst [vmem:[#allocation21_spill] sm:$0xff] %v4505_v21  ;;  %v6281_v59 = vand.u32 2147483647, %v4447_v26  ;;  %vm1565_vm10 = vcmp.eq.f32.partialorder %v4417_v12, inf  ;;  %vm1567_vm5 = vcmp.eq.f32.partialorder %v4417_v12, 0.0  ;;  %v1568_v52 = vand.u32 2147483648, %v4417_v12 }
 0x11b   :  { %v2876_v15 = vpop.eup %2875  ;;  %v1348_v17 = vadd.s32 1, %v2720_v24  ;;  %v1054_v30 = vmul.f32 %v2874_v2, %v1051_v34  ;;  %v4515_v54 = vshrl.u32 %v1166_v37, 30  ;;  %2883 = vrcp.f32 %v1220_v0  ;;  %v6467_v34 = vld [vmem:[#allocation4_spill] sm:$0xff] }
 0x11c   :  { %v1564_v62 = vmul.f32 %v2876_v15, %v4417_v12  ;;  %v4525_v39 = vmul.f32 %v6466_v43, %v6465_v29  ;;  %2885 = vrcp.f32 %v1231_v45  ;;  %v4529_v24 = vmul.f32 %v6467_v34, %v6465_v29  ;;  %v6469_v45 = vld [vmem:[#allocation3_spill] sm:$0xff]  ;;  %v6470_v29 = vld [vmem:[#allocation6_spill] sm:$0xff] }
 0x11d   :  { %vm1349_vm13 = vcmp.gt.s32.totalorder %v1348_v17, 0  ;;  %v2878_v42 = vpop.eup %2877  ;;  %v1168_v40 = vshll.u32 %v4515_v54, 30  ;;  %v1345_v2 = vand.u32 8388607, %v6281_v59  ;;  %v4536_v0 = vsel %vm1040_vm8, %v1050_v63, %v1054_v30  ;;  %v6471_v30 = vld [vmem:[#allocation8_spill] sm:$0xff] }
 0x11e   :  { %v1350_v10 = vsel %vm1349_vm13, %v1348_v17, 0  ;;  %v1034_v35 = vmul.f32 %v2878_v42, %v4434_v46  ;;  %v4542_v37 = vmul.f32 %v6467_v34, %v6466_v43  ;;  %vm1035_vm7 = vcmp.eq.f32.partialorder %v4434_v46, inf }
 0x11f   :  { %v2880_v33 = vpop.eup %2879  ;;  %v1352_v9 = vand.u32 31, %v1350_v10  ;;  %v4538_v19 = vsub.s32 %v1165_v3, %v1168_v40  ;;  %v4549_v53 = vadd.f32 %v6470_v29, %v6469_v45  ;;  %v1566_v63 = vsel %vm1565_vm10, %v4417_v12, %v1564_v62 }
 0x120   :  { %v4544_v17 = vpop.eup %2881  ;;  %vm1037_vm14 = vcmp.eq.f32.partialorder %v4434_v46, 0.0  ;;  %v4558_v42 = vadd.f32 %v6470_v29, %v6471_v30  ;;  %v4561_v40 = vmul.f32 %v2880_v33, %v4454_v56  ;;  %v1038_v43 = vand.u32 2147483648, %v4434_v46 }
 0x121   :  { %v1353_v57 = vsub.s32 32, %v1352_v9  ;;  %v1171_v3 = vsub.s32 0, %v4538_v19  ;;  %v4565_v34 = vmul.f32 %v1059_v49, %v4536_v0  ;;  %v4568_v45 = vmul.f32 %v1056_v4, %v4536_v0 }
 0x122   :  { %v1346_v62 = vor.u32 8388608, %v1345_v2  ;;  %v1036_v59 = vsel %vm1035_vm7, %v4434_v46, %v1034_v35  ;;  %v4572_v7 = vshrl.u32 %v1350_v10, 5  ;;  %v4576_v29 = vsel %vm1567_vm5, %v1568_v52, %v1566_v63 }
 0x123   :  { %v2714_v48 = vmin.u32 %v1171_v3, %v4538_v19  ;;  %6472 = vst [vmem:[#allocation17_spill] sm:$0xff] %v4576_v29  ;;  %v1355_v33 = vshll.u32 %v6364_v23, %v1352_v9  ;;  %v6473_v30 = vmov 2475754826   ;;  %v6474_v44 = vmov 2131351028  }
 0x124   :  { %v1356_v27 = vshrl.u32 %v6473_v30, %v1353_v57  ;;  %v1358_v49 = vshll.u32 %v6473_v30, %v1352_v9  ;;  %v1359_v4 = vshrl.u32 %v6474_v44, %v1353_v57  ;;  %v4583_v2 = vmul.f32 %v1071_v25, %v4536_v0 }
 0x125   :  { %v1173_v35 = vclz %v2714_v48  ;;  %v1361_v3 = vshll.u32 %v6474_v44, %v1352_v9  ;;  %v6475_v10 = vmov 2102212464   ;;  %v4589_v52 = vmul.f32 %v4536_v0, %v6476_v31  ;;  %v4596_v61 = vpop.eup %2883  ;;  %v6478_v48 = vld [vmem:[#allocation22_spill] sm:$0xff] }
 0x126   :  { %v1362_v32 = vshrl.u32 %v6475_v10, %v1353_v57  ;;  %v1161_v63 = vadd.s32 %v4442_v1, %v4439_v8  ;;  %v1191_v50 = vsub.s32 4, %v4515_v54  ;;  %v4594_v11 = vshll.u32 %v1346_v62, 8  ;;  %6477 = vst [vmem:[#allocation18_spill] sm:$0xff] %v4596_v61  ;;  %v4606_v8 = vpop.eup %2885 }
 0x127   :  { %v1039_v25 = vsel %vm1037_vm14, %v1038_v43, %v1036_v59  ;;  %vm1107_vm12 = vcmp.lt.s32.totalorder %v6478_v48, 0  ;;  %v2715_v13 = vadd.s32 4294967294, %v1173_v35  ;;  %v1364_v55 = vshll.u32 %v6475_v10, %v1352_v9 }
 0x128   :  { %vm1452_vm1 = vcmp.lt.f32.partialorder %v4432_v60, 1e-07  ;;  %v4604_v31 = vmul.f32 0.5, %v4576_v29  ;;  %v1354_v1 = vshrl.u32 %v6364_v23, %v1353_v57  ;;  %v1357_v62 = vor.u32 %v1356_v27, %v1355_v33 }
 0x129   :  { %v1360_v5 = vor.u32 %v1359_v4, %v1358_v49  ;;  %vm1370_vm15 = vcmp.lt.s32.totalorder %v4572_v7, 1  ;;  %vm2716_vm0 = vcmp.lt.s32.totalorder %v2715_v13, 0  ;;  %v1363_v46 = vor.u32 %v1362_v32, %v1361_v3 }
 0x12a   :  { %v6479_v59 = vmov 920167782   ;;  %v1176_v51 = vsel %vm2716_vm0, 0, %v2715_v13  ;;  %v6480_v22 = vmov 1326507024   ;;  %vm1371_vm2 = vcmp.lt.s32.totalorder %v4572_v7, 2 }
 0x12b   :  { %v1365_v43 = vshrl.u32 %v6479_v59, %v1353_v57  ;;  %v1367_v35 = vshll.u32 %v6479_v59, %v1352_v9  ;;  %v1368_v28 = vshrl.u32 %v6480_v22, %v1353_v57  ;;  %vm1372_vm11 = vcmp.lt.s32.totalorder %v4572_v7, 3 }
 0x12c   :  { %v6481_v12 = vand.u32 2147483647, %v6478_v48  ;;  %v1177_v33 = vsub.s32 32, %v1176_v51  ;;  %v1178_v32 = vshll.u32 %v4538_v19, %v1176_v51  ;;  %v1181_v49 = vsub.s32 4294967266, %v1176_v51 }
 0x12d   :  { %v1366_v4 = vor.u32 %v1365_v43, %v1364_v55  ;;  %v1369_v3 = vor.u32 %v1368_v28, %v1367_v35  ;;  %vm1373_vm4 = vcmp.lt.s32.totalorder %v4572_v7, 4  ;;  %v1374_v13 = vsel %vm1370_vm15, %v1354_v1, %v1357_v62 }
 0x12e   :  { %vm4617_vm3 = vcmp.le.f32.partialorder %v6481_v12, 0.7853982  ;;  %v1378_v57 = vsel %vm1370_vm15, %v1357_v62, %v1360_v5  ;;  %v1179_v9 = vshrl.u32 %v1161_v63, %v1177_v33  ;;  %v1182_v29 = vadd.s32 127, %v1181_v49 }
 0x12f   :  { %v1375_v12 = vsel %vm1373_vm4, %v1363_v46, 2102212464  ;;  %v1379_v21 = vsel %vm1373_vm4, %v1366_v4, 920167782  ;;  %v1382_v28 = vsel %vm1370_vm15, %v1360_v5, %v1363_v46  ;;  %v1383_v55 = vsel %vm1373_vm4, %v1369_v3, 1326507024 }
 0x130   :  { %v1376_v61 = vsel %vm1372_vm11, %v1360_v5, %v1375_v12  ;;  %v1380_v51 = vsel %vm1372_vm11, %v1363_v46, %v1379_v21  ;;  %vm1794_vm6 = vcmp.eq.f32.partialorder %v4454_v56, inf  ;;  %v1045_v19 = vmul.f32 %v4469_v38, %v1039_v25 }
 0x131   :  { %v1180_v1 = vor.u32 %v1179_v9, %v1178_v32  ;;  %v1183_v62 = vshll.u32 %v1182_v29, 23  ;;  %v1381_v63 = vsel %vm1371_vm2, %v1378_v57, %v1380_v51  ;;  %v1192_v43 = vsel %vm1107_vm12, %v1191_v50, %v4515_v54 }
 0x132   :  { %v1384_v21 = vsel %vm1372_vm11, %v1366_v4, %v1383_v55  ;;  %v4643_v35 = vmul.u32.u64.low %v4594_v11, %v1381_v63  ;;  %v4644_v5 = vmul.u32.u64.high %v4594_v11, %v1381_v63, %v4643_v35  ;;  %v1377_v38 = vsel %vm1371_vm2, %v1374_v13, %v1376_v61 }
 0x133   :  { %v1184_v46 = vor.u32 4788187, %v1183_v62  ;;  %v1187_v33 = vcvt.s32.f32 %v1180_v1  ;;  %v1385_v29 = vsel %vm1371_vm2, %v1382_v28, %v1384_v21  ;;  %v1453_v50 = vsel %vm1452_vm1, 1.0, %v4432_v60 }
 0x134   :  { %v4652_v25 = vmul.u32.u64.low %v4594_v11, %v1385_v29  ;;  %v4653_v32 = vmul.u32.u64.high %v4594_v11, %v1385_v29, %v4652_v25  ;;  %v1574_v54 = vand.u32 2139095040, %v4604_v31  ;;  %vm1796_vm10 = vcmp.eq.f32.partialorder %v4454_v56, 0.0 }
 0x135   :  { %v4662_v49 = vmul.f32 %v4491_v18, %v4536_v0  ;;  %v4666_v61 = vmul.f32 %v4500_v47, %v4536_v0  ;;  %v1185_v7 = vand.u32 2147483647, %v1184_v46  ;;  %v4669_v4 = vmul.f32 0.041666668, %v4147_v14  ;;  %v6486_v46 = vld [vmem:[#allocation5_spill] sm:$0xff] }
 0x136   :  { %v1194_v3 = vsel %vm4617_vm3, 0, %v1192_v43  ;;  %v1393_v13 = vmul.u32 %v4594_v11, %v1377_v38  ;;  %v1396_v57 = vadd.s32 1, %v4644_v5  ;;  %v1575_v9 = vshrl.u32 %v1574_v54, 23 }
 0x137   :  { %v1047_v12 = vmul.f32 %v4544_v17, %v1045_v19  ;;  %v4677_v18 = vsub.f32 1.0, %v4565_v34  ;;  %v1188_v51 = vmul.f32 %v1187_v33, %v1185_v7  ;;  %v1464_v47 = vmul.f32 %v1453_v50, %v1453_v50  ;;  %v6487_v33 = vld [vmem:[#allocation9_spill] sm:$0xff] }
 0x138   :  { %v4680_v0 = vsub.f32 1.0, %v4583_v2  ;;  %v4683_v28 = vsub.f32 1.0, %v4589_v52  ;;  %vm1395_vm5 = vc.u32 %v4653_v32, %v4643_v35  ;;  %v2727_v11 = vadd.s32 4294967169, %v1575_v9 }
 0x139   :  { %v1189_v55 = vxor.u32 2147483648, %v1188_v51  ;;  %v1198_v1 = vadd.s32 3, %v1194_v3  ;;  %v1397_v62 = vsel %vm1395_vm5, %v1396_v57, %v4644_v5  ;;  %v4689_v17 = vmul.f32 0.16666667, %v4147_v14 }
 0x13a   :  { %v1398_v34 = vadd.s32 %v1397_v62, %v1393_v13  ;;  %2887 = vrcp.f32 %v1453_v50  ;;  %v1581_v2 = vadd.s32 1, %v2727_v11  ;;  %v6485_v63 = vsub.f32 1.0, %v4457_v6  ;;  %v6489_v50 = vld [vmem:[#allocation7_spill] sm:$0xff] }
 0x13b   :  { %6484 = vst [vmem:[#allocation15_spill] sm:$0xff] %v4689_v17  ;;  %v1190_v43 = vsel %vm1107_vm12, %v1189_v55, %v1188_v51  ;;  %2889 = vrcp.f32 %v1464_v47  ;;  %v1795_v14 = vsel %vm1794_vm6, %v4454_v56, %v4561_v40  ;;  %v6302_v6 = vand.u32 2147483647, %v4604_v31 }
 0x13c   :  { %v4696_v52 = vsel %vm1040_vm8, %v6485_v63, %v1047_v12  ;;  %v1193_v21 = vsel %vm4617_vm3, %v6478_v48, %v1190_v43  ;;  %v1399_v5 = vadd.s32 536870912, %v1398_v34  ;;  %vm1582_vm13 = vcmp.gt.s32.totalorder %v1581_v2, 0 }
 0x13d   :  { %2891 = vcosq.f32 %v1193_v21  ;;  %v4708_v15 = vand.u32 3, %v1198_v1  ;;  %v4712_v38 = vadd.f32 %v6487_v33, %v6486_v46  ;;  %v1583_v29 = vsel %vm1582_vm13, %v1581_v2, 0 }
 0x13e   :  { %2893 = vsinq.f32 %v1193_v21  ;;  %v1400_v25 = vshrl.u32 %v1399_v5, 30  ;;  %v4716_v40 = vadd.f32 %v6487_v33, %v6489_v50  ;;  %v1585_v27 = vand.u32 31, %v1583_v29 }
 0x13f   :  { %6488 = vst [vmem:[#allocation10_spill] sm:$0xff] %v4712_v38  ;;  %v4719_v54 = vsub.f32 0.0, %v4696_v52  ;;  %v4723_v7 = vmul.f32 %v4480_v58, %v4696_v52  ;;  %v4727_v3 = vmul.f32 %v4487_v20, %v4696_v52  ;;  %v6491_v13 = vand.u32 2147483648, %v4454_v56 }
 0x140   :  { %6490 = vst [vmem:[#allocation11_spill] sm:$0xff] %v4716_v40  ;;  %v1401_v9 = vshll.u32 %v1400_v25, 30  ;;  %v1578_v12 = vand.u32 8388607, %v6302_v6  ;;  %v1586_v51 = vsub.s32 32, %v1585_v27  ;;  %v1588_v47 = vshll.u32 %v6364_v23, %v1585_v27 }
 0x141   :  { %v4733_v57 = vsel %vm1796_vm10, %v6491_v13, %v1795_v14  ;;  %vm1200_vm8 = vcmp.lt.s32.totalorder %v4708_v15, 2  ;;  %vm1201_vm7 = vcmp.eq.s32.totalorder %v4708_v15, 0  ;;  %v4740_v11 = vshrl.u32 %v1583_v29, 5 }
 0x142   :  { %6492 = vst [vmem:[#allocation4_spill] sm:$0xff] %v4733_v57  ;;  %v1591_v55 = vshll.u32 %v6473_v30, %v1585_v27  ;;  %v1597_v1 = vshll.u32 %v6475_v10, %v1585_v27  ;;  %vm1197_vm14 = vweird.f32 %v6478_v48  ;;  %vm1204_vm12 = vcmp.eq.s32.totalorder %v4708_v15, 2 }
 0x143   :  { %vm1340_vm15 = vcmp.lt.s32.totalorder %v4447_v26, 0  ;;  %v4747_v62 = vsub.s32 %v1398_v34, %v1401_v9  ;;  %v1589_v2 = vshrl.u32 %v6473_v30, %v1586_v51  ;;  %v1594_v63 = vshll.u32 %v6474_v44, %v1585_v27 }
 0x144   :  { %v1592_v43 = vshrl.u32 %v6474_v44, %v1586_v51  ;;  %v1595_v14 = vshrl.u32 %v6475_v10, %v1586_v51  ;;  %v1598_v21 = vshrl.u32 %v6479_v59, %v1586_v51  ;;  %v1600_v5 = vshll.u32 %v6479_v59, %v1585_v27  ;;  %v4755_v46 = vpop.eup %2887 }
 0x145   :  { %6493 = vst [vmem:[#allocation24_spill] sm:$0xff] %v4755_v46  ;;  %v1404_v33 = vsub.s32 0, %v4747_v62  ;;  %v1579_v29 = vor.u32 8388608, %v1578_v12  ;;  %v1590_v50 = vor.u32 %v1589_v2, %v1588_v47  ;;  %v1601_v34 = vshrl.u32 %v6480_v22, %v1586_v51  ;;  %v4759_v13 = vpop.eup %2889 }
 0x146   :  { %v1593_v9 = vor.u32 %v1592_v43, %v1591_v55  ;;  %v1599_v6 = vor.u32 %v1598_v21, %v1597_v1  ;;  %vm1603_vm0 = vcmp.lt.s32.totalorder %v4740_v11, 1  ;;  %v4763_v19 = vmul.f32 0.5, %v4733_v57 }
 0x147   :  { %v1394_v27 = vadd.s32 %v4643_v35, %v4653_v32  ;;  %v2721_v56 = vmin.u32 %v1404_v33, %v4747_v62  ;;  %v1424_v46 = vsub.s32 4, %v1400_v25  ;;  %v1596_v17 = vor.u32 %v1595_v14, %v1594_v63  ;;  %v2892_v12 = vpop.eup %2891 }
 0x148   :  { %6494 = vst [vmem:[#allocation3_spill] sm:$0xff] %v4763_v19  ;;  %v1587_v47 = vshrl.u32 %v6364_v23, %v1586_v51  ;;  %v1602_v2 = vor.u32 %v1601_v34, %v1600_v5  ;;  %vm1605_vm2 = vcmp.lt.s32.totalorder %v4740_v11, 3  ;;  %vm1606_vm11 = vcmp.lt.s32.totalorder %v4740_v11, 4  ;;  %v2894_v55 = vpop.eup %2893 }
 0x149   :  { %v1205_v1 = vxor.u32 2147483648, %v2892_v12  ;;  %v1406_v43 = vclz %v2721_v56  ;;  %vm1604_vm3 = vcmp.lt.s32.totalorder %v4740_v11, 2  ;;  %v1611_v35 = vsel %vm1603_vm0, %v1590_v50, %v1593_v9  ;;  %v2737_v11 = vld [vmem:[%s6200_s1 + $0x18] sm:$0xff] }
 0x14a   :  { %v1202_v32 = vxor.u32 2147483648, %v2894_v55  ;;  %v1612_v63 = vsel %vm1606_vm11, %v1599_v6, 920167782  ;;  %v4776_v14 = vshll.u32 %v1579_v29, 8  ;;  %v1803_v51 = vand.u32 2139095040, %v4763_v19 }
 0x14b   :  { %v1206_v21 = vsel %vm1204_vm12, %v1205_v1, %v2894_v55  ;;  %v6495_v5 = vand.u32 2147483647, %v4447_v26  ;;  %v2722_v33 = vadd.s32 4294967294, %v1406_v43  ;;  %v1608_v34 = vsel %vm1606_vm11, %v1596_v17, 2102212464 }
 0x14c   :  { %v1613_v57 = vsel %vm1605_vm2, %v1596_v17, %v1612_v63  ;;  %v1203_v29 = vsel %vm1201_vm7, %v2892_v12, %v1202_v32  ;;  %v1425_v40 = vsel %vm1340_vm15, %v1424_v46, %v1400_v25  ;;  %v1607_v55 = vsel %vm1603_vm0, %v1587_v47, %v1590_v50 }
 0x14d   :  { %vm4783_vm4 = vcmp.le.f32.partialorder %v6495_v5, 0.7853982  ;;  %v1614_v1 = vsel %vm1604_vm3, %v1611_v35, %v1613_v57  ;;  %v1207_v43 = vsel %vm1200_vm8, %v1203_v29, %v1206_v21  ;;  %vm2723_vm6 = vcmp.lt.s32.totalorder %v2722_v33, 0 }
 0x14e   :  { %v1615_v5 = vsel %vm1603_vm0, %v1593_v9, %v1596_v17  ;;  %v1616_v63 = vsel %vm1606_vm11, %v1602_v2, 1326507024  ;;  %v1208_v12 = vsel %vm1197_vm14, nan, %v1207_v43  ;;  %v1409_v25 = vsel %vm2723_vm6, 0, %v2722_v33 }
 0x14f   :  { %v1609_v46 = vsel %vm1605_vm2, %v1593_v9, %v1608_v34  ;;  %v1617_v57 = vsel %vm1605_vm2, %v1599_v6, %v1616_v63  ;;  %v1209_v50 = vmul.f32 %v1208_v12, %v1208_v12  ;;  %v4811_v15 = vmul.f32 2.0, %v1208_v12 }
 0x150   :  { %v1410_v47 = vsub.s32 32, %v1409_v25  ;;  %v1411_v35 = vshll.u32 %v4747_v62, %v1409_v25  ;;  %v1414_v17 = vsub.s32 4294967266, %v1409_v25  ;;  %v1618_v2 = vsel %vm1604_vm3, %v1615_v5, %v1617_v57 }
 0x151   :  { %v4817_v48 = vmul.u32.u64.low %v4776_v14, %v1614_v1  ;;  %v4818_v32 = vmul.u32.u64.high %v4776_v14, %v1614_v1, %v4817_v48  ;;  %v1210_v21 = vsub.f32 1.0, %v1209_v50  ;;  %v1230_v9 = vmul.f32 %v4811_v15, %v1208_v12 }
 0x152   :  { %v1412_v33 = vshrl.u32 %v1394_v27, %v1410_v47  ;;  %v1804_v34 = vshrl.u32 %v1803_v51, 23  ;;  %v1079_v6 = vmul.f32 %v4475_v41, %v4696_v52  ;;  %v1415_v29 = vadd.s32 127, %v1414_v17 }
 0x153   :  { %v4824_v43 = vmul.u32.u64.low %v4776_v14, %v1618_v2  ;;  %v4825_v62 = vmul.u32.u64.high %v4776_v14, %v1618_v2, %v4824_v43  ;;  %v4827_v63 = vmax.f32 %v1210_v21, 0.0  ;;  %v1233_v5 = vmul.f32 %v4606_v8, %v1230_v9 }
 0x154   :  { %v1413_v25 = vor.u32 %v1412_v33, %v1411_v35  ;;  %v1610_v1 = vsel %vm1604_vm3, %v1607_v55, %v1609_v46  ;;  %v1063_v27 = vmul.f32 %v4487_v20, %v4719_v54  ;;  %v1416_v51 = vshll.u32 %v1415_v29, 23 }
 0x155   :  { %v1427_v52 = vsel %vm4783_vm4, 0, %v1425_v40  ;;  %v6307_v12 = vand.u32 2147483647, %v4763_v19  ;;  %v1074_v57 = vmul.f32 %v4475_v41, %v4719_v54  ;;  %2895 = vrsqrt.f32 %v4827_v63 }
 0x156   :  { %v1629_v8 = vadd.s32 1, %v4818_v32  ;;  %v2733_v50 = vadd.s32 4294967169, %v1804_v34  ;;  %v6498_v20 = vsub.f32 0.5, %v4510_v16  ;;  %v1417_v40 = vor.u32 4788187, %v1416_v51 }
 0x157   :  { %v1420_v46 = vcvt.s32.f32 %v1413_v25  ;;  %v1626_v47 = vmul.u32 %v4776_v14, %v1610_v1  ;;  %v1077_v41 = vmul.f32 %v4480_v58, %v4719_v54  ;;  %v1431_v2 = vadd.s32 3, %v1427_v52 }
 0x158   :  { %v1234_v55 = vsel %vm1219_vm9, %v6498_v20, %v1233_v5  ;;  %v1418_v21 = vand.u32 2147483647, %v1417_v40  ;;  %vm1628_vm10 = vc.u32 %v4825_v62, %v4817_v48  ;;  %v1807_v16 = vand.u32 8388607, %v6307_v12  ;;  %v6500_v5 = vld [vmem:[#allocation2_spill] sm:$0xff] }
 0x159   :  { %v1239_v35 = vmul.f32 %v4549_v53, %v1234_v55  ;;  %v1251_v17 = vmul.f32 %v4558_v42, %v1234_v55  ;;  %v4856_v9 = vmul.f32 %v2737_v11, %v2737_v11  ;;  %v4860_v33 = vadd.f32 %v4662_v49, %v4723_v7 }
 0x15a   :  { %v4864_v58 = vadd.f32 %v4727_v3, %v4568_v45  ;;  %v1630_v53 = vsel %vm1628_vm10, %v1629_v8, %v4818_v32  ;;  %v1810_v42 = vadd.s32 1, %v2733_v50  ;;  %v4868_v54 = vadd.f32 %v4568_v45, %v1063_v27 }
 0x15b   :  { %6499 = vst [vmem:[#allocation6_spill] sm:$0xff] %v4856_v9  ;;  %v4871_v14 = vadd.f32 %v1079_v6, %v4666_v61  ;;  %v1421_v34 = vmul.f32 %v1420_v46, %v1418_v21  ;;  %v1631_v29 = vadd.s32 %v1630_v53, %v1626_v47  ;;  %v4874_v43 = vadd.f32 %v4666_v61, %v1074_v57 }
 0x15c   :  { %v4877_v7 = vadd.f32 %v1077_v41, %v4662_v49  ;;  %v1260_v3 = vmul.f32 %v1234_v55, %v6500_v5  ;;  %v4880_v25 = vand.u32 3, %v1431_v2  ;;  %vm1214_vm5 = vcmp.eq.f32.partialorder %v4827_v63, inf }
 0x15d   :  { %vm1216_vm13 = vcmp.eq.f32.partialorder %v4827_v63, 0.0  ;;  %v1217_v45 = vand.u32 2147483648, %v4827_v63  ;;  %v1808_v32 = vor.u32 8388608, %v1807_v16  ;;  %v1422_v6 = vxor.u32 2147483648, %v1421_v34 }
 0x15e   :  { %v4886_v1 = vadd.s32 %v4817_v48, %v4825_v62  ;;  %v1632_v61 = vadd.s32 536870912, %v1631_v29  ;;  %vm1811_vm8 = vcmp.gt.s32.totalorder %v1810_v42, 0  ;;  %v1240_v27 = vsub.f32 1.0, %v1239_v35 }
 0x15f   :  { %v4889_v49 = vmul.f32 %v4525_v39, %v1234_v55  ;;  %v1252_v51 = vsub.f32 1.0, %v1251_v17  ;;  %v1812_v52 = vsel %vm1811_vm8, %v1810_v42, 0  ;;  %v2896_v57 = vpop.eup %2895  ;;  %v1261_v8 = vsub.f32 1.0, %v1260_v3  ;;  %v6502_v3 = vld [vmem:[#allocation18_spill] sm:$0xff] }
 0x160   :  { %v1423_v50 = vsel %vm1340_vm15, %v1422_v6, %v1421_v34  ;;  %v4893_v11 = vshrl.u32 %v1632_v61, 30  ;;  %v4895_v20 = vand.u32 31, %v1812_v52  ;;  %v1213_v48 = vmul.f32 %v2896_v57, %v4827_v63 }
 0x161   :  { %v1246_v62 = vmul.f32 %v4529_v24, %v1234_v55  ;;  %v1254_v40 = vmul.f32 %v4542_v37, %v1234_v55  ;;  %v1426_v39 = vsel %vm4783_vm4, %v4447_v26, %v1423_v50  ;;  %v4907_v41 = vshll.u32 %v1808_v32, 8 }
 0x162   :  { %2897 = vcosq.f32 %v1426_v39  ;;  %v1634_v46 = vshll.u32 %v4893_v11, 30  ;;  %v4905_v47 = vsub.s32 32, %v4895_v20  ;;  %v1215_v35 = vsel %vm1214_vm5, %v4827_v63, %v1213_v48 }
 0x163   :  { %6501 = vst [vmem:[#allocation8_spill] sm:$0xff] %v4907_v41  ;;  %v1262_v24 = vmul.f32 %v1240_v27, %v4677_v18  ;;  %v4914_v37 = vmul.f32 %v1252_v51, %v4868_v54  ;;  %v1280_v56 = vmul.f32 %v1240_v27, %v4864_v58  ;;  %v1218_v55 = vsel %vm1216_vm13, %v1217_v45, %v1215_v35 }
 0x164   :  { %v4920_v17 = vmul.f32 %v1261_v8, %v4860_v33  ;;  %v4923_v2 = vmul.f32 %v1252_v51, %v4680_v0  ;;  %v4925_v21 = vsub.s32 %v1631_v29, %v1634_v46  ;;  %v1224_v16 = vmul.f32 %v4811_v15, %v1218_v55  ;;  %v2962_v55 = vld [vmem:[%s6199_s0 + $0x80] sm:$0xff] }
 0x165   :  { %v4929_v53 = vmul.f32 %v1261_v8, %v4874_v43  ;;  %v1817_v42 = vshll.u32 %v6364_v23, %v4895_v20  ;;  %v1818_v63 = vshrl.u32 %v6473_v30, %v4905_v47  ;;  %v4936_v34 = vmul.f32 %v1240_v27, %v4877_v7 }
 0x166   :  { %v4939_v5 = vmul.f32 %v1252_v51, %v4871_v14  ;;  %v4942_v29 = vmul.f32 %v1261_v8, %v4683_v28  ;;  %v1637_v15 = vsub.s32 0, %v4925_v21  ;;  %v1226_v45 = vmul.f32 %v6502_v3, %v1224_v16  ;;  %v6503_v8 = vld [vmem:[#allocation21_spill] sm:$0xff] }
 0x167   :  { %v4946_v32 = vshrl.u32 %v1812_v52, 5  ;;  %v1820_v6 = vshll.u32 %v6473_v30, %v4895_v20  ;;  %v1821_v61 = vshrl.u32 %v6474_v44, %v4905_v47  ;;  %2899 = vsinq.f32 %v1426_v39 }
 0x168   :  { %v2728_v27 = vmin.u32 %v1637_v15, %v4925_v21  ;;  %v4956_v57 = vshrl.u32 %v6364_v23, %v4905_v47  ;;  %v6504_v50 = vsub.f32 1.0, %v6503_v8  ;;  %v4962_v48 = vor.u32 %v1818_v63, %v1817_v42  ;;  %v2964_v63 = vld [vmem:[%s6199_s0 + $0x78] sm:$0xff] }
 0x169   :  { %v4966_v46 = vshll.u32 %v6474_v44, %v4895_v20  ;;  %v4970_v39 = vshrl.u32 %v6475_v10, %v4905_v47  ;;  %v4986_v8 = vshll.u32 %v6475_v10, %v4895_v20  ;;  %vm1434_vm7 = vcmp.eq.s32.totalorder %v4880_v25, 0 }
 0x16a   :  { %v1227_v52 = vsel %vm1219_vm9, %v6504_v50, %v1226_v45  ;;  %vm1437_vm9 = vcmp.eq.s32.totalorder %v4880_v25, 2  ;;  %v1639_v3 = vclz %v2728_v27  ;;  %v4982_v45 = vor.u32 %v1821_v61, %v1820_v6 }
 0x16b   :  { %v1241_v35 = vsub.f32 0.0, %v1227_v52  ;;  %v1245_v16 = vmul.f32 %v2962_v55, %v1227_v52  ;;  %v1248_v42 = vmul.f32 %v2963_v36, %v1227_v52  ;;  %v1258_v15 = vmul.f32 %v2964_v63, %v1227_v52 }
 0x16c   :  { %v4990_v50 = vshrl.u32 %v6479_v59, %v4905_v47  ;;  %v2898_v12 = vpop.eup %2897  ;;  %v2729_v61 = vadd.s32 4294967294, %v1639_v3  ;;  %vm1433_vm14 = vcmp.lt.s32.totalorder %v4880_v25, 2  ;;  %vm1430_vm12 = vweird.f32 %v4447_v26 }
 0x16d   :  { %v1242_v51 = vmul.f32 %v2963_v36, %v1241_v35  ;;  %v1247_v44 = vadd.f32 %v1246_v62, %v1245_v16  ;;  %v1249_v30 = vadd.f32 %v1248_v42, %v4889_v49  ;;  %v1253_v23 = vmul.f32 %v2964_v63, %v1241_v35 }
 0x16e   :  { %v1256_v52 = vmul.f32 %v2962_v55, %v1241_v35  ;;  %v1259_v19 = vadd.f32 %v1258_v15, %v1254_v40  ;;  %v1438_v6 = vxor.u32 2147483648, %v2898_v12  ;;  %vm1573_vm15 = vcmp.lt.s32.totalorder %v4604_v31, 0 }
 0x16f   :  { %v1244_v27 = vadd.f32 %v4889_v49, %v1242_v51  ;;  %v1255_v10 = vadd.f32 %v1254_v40, %v1253_v23  ;;  %v1264_v9 = vmul.f32 %v1249_v30, %v4868_v54  ;;  %v1274_v41 = vmul.f32 %v1247_v44, %v4677_v18 }
 0x170   :  { %v1257_v36 = vadd.f32 %v1256_v52, %v1246_v62  ;;  %v1272_v16 = vmul.f32 %v1259_v19, %v4860_v33  ;;  %v1282_v42 = vmul.f32 %v1249_v30, %v4680_v0  ;;  %v1290_v35 = vmul.f32 %v1259_v19, %v4874_v43 }
 0x171   :  { %v1265_v55 = vadd.f32 %v1264_v9, %v1262_v24  ;;  %v1268_v63 = vmul.f32 %v1244_v27, %v4677_v18  ;;  %v1276_v23 = vmul.f32 %v1255_v10, %v4868_v54  ;;  %v1286_v49 = vmul.f32 %v1244_v27, %v4864_v58  ;;  %v2900_v3 = vpop.eup %2899 }
 0x172   :  { %v1266_v40 = vmul.f32 %v1257_v36, %v4860_v33  ;;  %v1283_v51 = vadd.f32 %v1282_v42, %v1280_v56  ;;  %v1284_v62 = vmul.f32 %v1257_v36, %v4874_v43  ;;  %v1292_v15 = vmul.f32 %v1247_v44, %v4864_v58 }
 0x173   :  { %v1271_v52 = vadd.f32 %v4914_v37, %v1268_v63  ;;  %v1277_v38 = vadd.f32 %v1276_v23, %v1274_v41  ;;  %v1289_v60 = vadd.f32 %v4923_v2, %v1286_v49  ;;  %v1294_v9 = vmul.f32 %v1255_v10, %v4680_v0 }
 0x174   :  { %v5011_v18 = vadd.f32 %v1266_v40, %v1265_v55  ;;  %v5013_v54 = vadd.f32 %v1284_v62, %v1283_v51  ;;  %v1300_v24 = vmul.f32 %v1249_v30, %v4871_v14  ;;  %v1302_v33 = vmul.f32 %v1257_v36, %v4683_v28 }
 0x175   :  { %v5017_v56 = vadd.f32 %v1272_v16, %v1271_v52  ;;  %v5020_v58 = vadd.f32 %v4920_v17, %v1277_v38  ;;  %v5022_v43 = vadd.f32 %v1290_v35, %v1289_v60  ;;  %v1295_v41 = vadd.f32 %v1294_v9, %v1292_v15 }
 0x176   :  { %v1301_v37 = vadd.f32 %v1300_v24, %v4936_v34  ;;  %v1304_v0 = vmul.f32 %v1244_v27, %v4877_v7  ;;  %v1308_v2 = vmul.f32 %v1259_v19, %v4683_v28  ;;  %v1310_v42 = vmul.f32 %v1247_v44, %v4877_v7 }
 0x177   :  { %v5030_v30 = vadd.f32 %v4929_v53, %v1295_v41  ;;  %v1312_v36 = vmul.f32 %v1255_v10, %v4871_v14  ;;  %v1435_v38 = vxor.u32 2147483648, %v2900_v3  ;;  %v1439_v60 = vsel %vm1437_vm9, %v1438_v6, %v2900_v3 }
 0x178   :  { %v5035_v17 = vadd.f32 %v1302_v33, %v1301_v37  ;;  %v1307_v34 = vadd.f32 %v4939_v5, %v1304_v0  ;;  %vm2730_vm0 = vcmp.lt.s32.totalorder %v2729_v61, 0  ;;  %v1829_v28 = vshll.u32 %v6479_v59, %v4895_v20  ;;  %v6511_v0 = vld [vmem:[#allocation10_spill] sm:$0xff]  ;;  %v6517_v37 = vld [vmem:[#allocation15_spill] sm:$0xff] }
 0x179   :  { %v1313_v44 = vadd.f32 %v1312_v36, %v1310_v42  ;;  %v1436_v19 = vsel %vm1434_vm7, %v2898_v12, %v1435_v38  ;;  %v1642_v7 = vsel %vm2730_vm0, 0, %v2729_v61  ;;  %v1830_v10 = vshrl.u32 %v6480_v22, %v4905_v47  ;;  %v6513_v38 = vld [vmem:[#allocation23_spill] sm:$0xff] }
 0x17a   :  { %v5044_v14 = vadd.f32 %v1308_v2, %v1307_v34  ;;  %v1440_v53 = vsel %vm1433_vm14, %v1436_v19, %v1439_v60  ;;  %v1643_v6 = vsub.s32 32, %v1642_v7  ;;  %v1644_v5 = vshll.u32 %v4925_v21, %v1642_v7 }
 0x17b   :  { %v5050_v27 = vadd.f32 %v4942_v29, %v1313_v44  ;;  %v1441_v20 = vsel %vm1430_vm12, nan, %v1440_v53  ;;  %v1647_v16 = vsub.s32 4294967266, %v1642_v7  ;;  %v1828_v12 = vor.u32 %v4990_v50, %v4986_v8 }
 0x17c   :  { %v1442_v61 = vmul.f32 %v1441_v20, %v1441_v20  ;;  %v5056_v47 = vmul.f32 2.0, %v1441_v20  ;;  %v1645_v35 = vshrl.u32 %v4886_v1, %v1643_v6  ;;  %v1825_v25 = vor.u32 %v4970_v39, %v4966_v46 }
 0x17d   :  { %v1648_v55 = vadd.s32 127, %v1647_v16  ;;  %v1831_v21 = vor.u32 %v1830_v10, %v1829_v28  ;;  %vm1832_vm2 = vcmp.lt.s32.totalorder %v4946_v32, 1  ;;  %vm1835_vm11 = vcmp.lt.s32.totalorder %v4946_v32, 4  ;;  %v6514_v10 = vld [vmem:[#allocation8_spill] sm:$0xff] }
 0x17e   :  { %v1443_v26 = vsub.f32 1.0, %v1442_v61  ;;  %v1463_v29 = vmul.f32 %v5056_v47, %v1441_v20  ;;  %v1646_v63 = vor.u32 %v1645_v35, %v1644_v5  ;;  %vm1834_vm3 = vcmp.lt.s32.totalorder %v4946_v32, 3 }
 0x17f   :  { %v1649_v8 = vshll.u32 %v1648_v55, 23  ;;  %v6505_v50 = vsub.s32 4, %v4893_v11  ;;  %v1837_v46 = vsel %vm1835_vm11, %v1825_v25, 2102212464  ;;  %v1841_v39 = vsel %vm1835_vm11, %v1828_v12, 920167782 }
 0x180   :  { %v5074_v23 = vmax.f32 %v1443_v26, 0.0  ;;  %v1466_v49 = vmul.f32 %v4759_v13, %v1463_v29  ;;  %vm1833_vm4 = vcmp.lt.s32.totalorder %v4946_v32, 2  ;;  %v1840_v40 = vsel %vm1832_vm2, %v4962_v48, %v4982_v45  ;;  %v2738_v55 = vld [vmem:[%s6200_s1 + $0x20] sm:$0xff] }
 0x181   :  { %v1658_v1 = vsel %vm1573_vm15, %v6505_v50, %v4893_v11  ;;  %v1650_v51 = vor.u32 4788187, %v1649_v8  ;;  %v1653_v62 = vcvt.s32.f32 %v1646_v63  ;;  %v1842_v11 = vsel %vm1834_vm3, %v1825_v25, %v1841_v39  ;;  %v6515_v39 = vld [vmem:[#allocation17_spill] sm:$0xff] }
 0x182   :  { %v1845_v15 = vsel %vm1835_vm11, %v1831_v21, 1326507024  ;;  %2901 = vrsqrt.f32 %v5074_v23  ;;  %v1836_v13 = vsel %vm1832_vm2, %v4956_v57, %v4962_v48  ;;  %v1838_v3 = vsel %vm1834_vm3, %v4982_v45, %v1837_v46 }
 0x183   :  { %v1844_v52 = vsel %vm1832_vm2, %v4982_v45, %v1825_v25  ;;  %v6506_v9 = vsub.f32 0.5, %v4669_v4  ;;  %v6508_v41 = vand.u32 2147483647, %v4604_v31  ;;  %v1651_v57 = vand.u32 2147483647, %v1650_v51  ;;  %v6512_v45 = vld [vmem:[#allocation11_spill] sm:$0xff] }
 0x184   :  { %v1846_v48 = vsel %vm1834_vm3, %v1828_v12, %v1845_v15  ;;  %v1843_v36 = vsel %vm1833_vm4, %v1840_v40, %v1842_v11  ;;  %v1839_v28 = vsel %vm1833_vm4, %v1836_v13, %v1838_v3  ;;  %vm1685_vm5 = vcmp.lt.f32.partialorder %v6515_v39, 1e-07  ;;  %v2739_v15 = vld [vmem:[%s6200_s1 + $0x28] sm:$0xff] }
 0x185   :  { %v5101_v33 = vsel %vm1452_vm1, %v6506_v9, %v1466_v49  ;;  %vm5105_vm6 = vcmp.le.f32.partialorder %v6508_v41, 0.7853982  ;;  %v1654_v34 = vmul.f32 %v1653_v62, %v1651_v57  ;;  %v1847_v44 = vsel %vm1833_vm4, %v1844_v52, %v1846_v48  ;;  %v6518_v48 = vld [vmem:[#allocation6_spill] sm:$0xff] }
 0x186   :  { %v1472_v2 = vmul.f32 %v6511_v0, %v5101_v33  ;;  %v1484_v4 = vmul.f32 %v6512_v45, %v5101_v33  ;;  %v1660_v42 = vsel %vm5105_vm6, 0, %v1658_v1  ;;  %v1493_v60 = vmul.f32 %v5101_v33, %v6513_v38 }
 0x187   :  { %v5126_v53 = vmul.u32.u64.low %v6514_v10, %v1847_v44  ;;  %v5127_v6 = vmul.u32.u64.high %v6514_v10, %v1847_v44, %v5126_v53  ;;  %v1655_v20 = vxor.u32 2147483648, %v1654_v34  ;;  %v1855_v1 = vmul.u32 %v6514_v10, %v1839_v28 }
 0x188   :  { %v1473_v19 = vsub.f32 1.0, %v1472_v2  ;;  %v1485_v7 = vsub.f32 1.0, %v1484_v4  ;;  %v1494_v5 = vsub.f32 1.0, %v1493_v60  ;;  %v5174_v40 = vmul.f32 %v2738_v55, %v2738_v55  ;;  %v2965_v4 = vld [vmem:[%s6199_s0 + $0x90] sm:$0xff]  ;;  %v6523_v55 = vld [vmem:[#allocation37_spill] sm:$0xff] }
 0x189   :  { %v5130_v16 = vmul.u32.u64.low %v6514_v10, %v1843_v36  ;;  %v5131_v12 = vmul.u32.u64.high %v6514_v10, %v1843_v36, %v5130_v16  ;;  %v1656_v50 = vsel %vm1573_vm15, %v1655_v20, %v1654_v34  ;;  %vm1447_vm13 = vcmp.eq.f32.partialorder %v5074_v23, inf  ;;  %v6521_v10 = vld [vmem:[#allocation24_spill] sm:$0xff] }
 0x18a   :  { %v5135_v61 = vmul.f32 %v1473_v19, %v5011_v18  ;;  %v5138_v35 = vmul.f32 %v1485_v7, %v5017_v56  ;;  %v5141_v32 = vmul.f32 %v1473_v19, %v5013_v54  ;;  %v5144_v25 = vmul.f32 %v1485_v7, %v5022_v43  ;;  %6516 = vst [vmem:[#allocation19_spill] sm:$0xff] %v5174_v40 }
 0x18b   :  { %v5150_v21 = vmul.f32 %v1494_v5, %v5020_v58  ;;  %v5153_v26 = vmul.f32 %v1494_v5, %v5030_v30  ;;  %v5156_v29 = vmul.f32 %v1473_v19, %v5035_v17  ;;  %v5159_v63 = vmul.f32 %v1485_v7, %v5044_v14 }
 0x18c   :  { %v5162_v8 = vmul.f32 %v1494_v5, %v5050_v27  ;;  %vm1857_vm10 = vc.u32 %v5127_v6, %v5130_v16  ;;  %v1659_v46 = vsel %vm5105_vm6, %v4604_v31, %v1656_v50  ;;  %v1858_v49 = vadd.s32 1, %v5131_v12  ;;  %v2902_v51 = vpop.eup %2901 }
 0x18d   :  { %v1450_v62 = vand.u32 2147483648, %v5074_v23  ;;  %2903 = vcosq.f32 %v1659_v46  ;;  %v1664_v11 = vadd.s32 3, %v1660_v42  ;;  %v1446_v13 = vmul.f32 %v2902_v51, %v5074_v23  ;;  %v2966_v42 = vld [vmem:[%s6199_s0 + $0x98] sm:$0xff] }
 0x18e   :  { %vm1449_vm8 = vcmp.eq.f32.partialorder %v5074_v23, 0.0  ;;  %2905 = vsinq.f32 %v1659_v46  ;;  %v1859_v3 = vsel %vm1857_vm10, %v1858_v49, %v5131_v12  ;;  %v5187_v52 = vsel %vm1685_vm5, 1.0, %v6515_v39 }
 0x18f   :  { %v1860_v9 = vadd.s32 %v1859_v3, %v1855_v1  ;;  %v1448_v41 = vsel %vm1447_vm13, %v5074_v23, %v1446_v13  ;;  %v1455_v57 = vsub.f32 1.0, %v6517_v37  ;;  %v5193_v0 = vadd.f32 %v5174_v40, %v6518_v48  ;;  %v2967_v23 = vld [vmem:[%s6199_s0 + $0xa0] sm:$0xff] }
 0x190   :  { %v5195_v2 = vmul.f32 %v2739_v15, %v2739_v15  ;;  %v1451_v45 = vsel %vm1449_vm8, %v1450_v62, %v1448_v41  ;;  %v1468_v36 = vmul.f32 %v2966_v42, %v2965_v4  ;;  %v1469_v38 = vmul.f32 %v2967_v23, %v2965_v4 }
 0x191   :  { %6519 = vst [vmem:[#allocation22_spill] sm:$0xff] %v5193_v0  ;;  %v1861_v60 = vadd.s32 536870912, %v1860_v9  ;;  %v1457_v34 = vmul.f32 %v5056_v47, %v1451_v45  ;;  %v1470_v28 = vmul.f32 %v2967_v23, %v2966_v42  ;;  %v5207_v44 = vand.u32 3, %v1664_v11 }
 0x192   :  { %6520 = vst [vmem:[#allocation5_spill] sm:$0xff] %v5195_v2  ;;  %v1697_v19 = vmul.f32 %v5187_v52, %v5187_v52  ;;  %v5216_v5 = vadd.f32 %v5195_v2, %v5193_v0  ;;  %v1476_v20 = vmul.f32 %v1468_v36, %v5101_v33  ;;  %v1479_v12 = vmul.f32 %v1469_v38, %v5101_v33 }
 0x193   :  { %v5211_v7 = vshrl.u32 %v1861_v60, 30  ;;  %v1459_v53 = vmul.f32 %v6521_v10, %v1457_v34  ;;  %v5221_v47 = vmul.f32 0.041666668, %v6523_v55  ;;  %v1487_v46 = vmul.f32 %v1470_v28, %v5101_v33 }
 0x194   :  { %6522 = vst [vmem:[#allocation9_spill] sm:$0xff] %v5216_v5  ;;  %vm1670_vm9 = vcmp.eq.s32.totalorder %v5207_v44, 2  ;;  %2907 = vrcp.f32 %v1697_v19  ;;  %vm1667_vm7 = vcmp.eq.s32.totalorder %v5207_v44, 0  ;;  %vm1663_vm14 = vweird.f32 %v4604_v31 }
 0x195   :  { %v1863_v50 = vshll.u32 %v5211_v7, 30  ;;  %v1460_v1 = vsel %vm1452_vm1, %v1455_v57, %v1459_v53  ;;  %2909 = vrsqrt.f32 %v5216_v5  ;;  %vm1666_vm1 = vcmp.lt.s32.totalorder %v5207_v44, 2 }
 0x196   :  { %v1474_v51 = vsub.f32 0.0, %v1460_v1  ;;  %v1478_v62 = vmul.f32 %v2966_v42, %v1460_v1  ;;  %v1481_v11 = vmul.f32 %v2967_v23, %v1460_v1  ;;  %v1491_v15 = vmul.f32 %v2965_v4, %v1460_v1 }
 0x197   :  { %v2904_v49 = vpop.eup %2903  ;;  %v5229_v41 = vsub.s32 %v1860_v9, %v1863_v50  ;;  %vm1970_vm12 = vcmp.eq.f32.partialorder %v5216_v5, inf  ;;  %vm1972_vm15 = vcmp.eq.f32.partialorder %v5216_v5, 0.0 }
 0x198   :  { %v2906_v13 = vpop.eup %2905  ;;  %v1671_v3 = vxor.u32 2147483648, %v2904_v49  ;;  %v1475_v24 = vmul.f32 %v2967_v23, %v1474_v51  ;;  %v1480_v37 = vadd.f32 %v1479_v12, %v1478_v62  ;;  %v1482_v57 = vadd.f32 %v1481_v11, %v1476_v20 }
 0x199   :  { %v1486_v33 = vmul.f32 %v2965_v4, %v1474_v51  ;;  %v1489_v45 = vmul.f32 %v2966_v42, %v1474_v51  ;;  %v1492_v36 = vadd.f32 %v1491_v15, %v1487_v46  ;;  %v1668_v38 = vxor.u32 2147483648, %v2906_v13 }
 0x19a   :  { %v1672_v60 = vsel %vm1670_vm9, %v1671_v3, %v2906_v13  ;;  %v1477_v34 = vadd.f32 %v1476_v20, %v1475_v24  ;;  %v1497_v9 = vmul.f32 %v1482_v57, %v5017_v56  ;;  %v1507_v19 = vmul.f32 %v1480_v37, %v5011_v18 }
 0x19b   :  { %v1488_v28 = vadd.f32 %v1487_v46, %v1486_v33  ;;  %v1490_v23 = vadd.f32 %v1489_v45, %v1479_v12  ;;  %v1505_v10 = vmul.f32 %v1492_v36, %v5020_v58  ;;  %v1515_v4 = vmul.f32 %v1482_v57, %v5022_v43 }
 0x19c   :  { %v1523_v42 = vmul.f32 %v1492_v36, %v5030_v30  ;;  %v1498_v53 = vadd.f32 %v1497_v9, %v5135_v61  ;;  %v1501_v50 = vmul.f32 %v1477_v34, %v5011_v18  ;;  %v1519_v20 = vmul.f32 %v1477_v34, %v5013_v54 }
 0x19d   :  { %v1509_v1 = vmul.f32 %v1488_v28, %v5017_v56  ;;  %v1499_v46 = vmul.f32 %v1490_v23, %v5020_v58  ;;  %v1516_v51 = vadd.f32 %v1515_v4, %v5141_v32  ;;  %v1517_v12 = vmul.f32 %v1490_v23, %v5030_v30 }
 0x19e   :  { %v1525_v62 = vmul.f32 %v1480_v37, %v5013_v54  ;;  %v1504_v11 = vadd.f32 %v5138_v35, %v1501_v50  ;;  %v1522_v13 = vadd.f32 %v5144_v25, %v1519_v20  ;;  %v1527_v61 = vmul.f32 %v1488_v28, %v5022_v43  ;;  %v2908_v18 = vpop.eup %2907  ;;  %v6525_v50 = vld [vmem:[#allocation16_spill] sm:$0xff] }
 0x19f   :  { %v1510_v15 = vadd.f32 %v1509_v1, %v1507_v19  ;;  %v5252_v3 = vadd.f32 %v1499_v46, %v1498_v53  ;;  %v5254_v56 = vadd.f32 %v1517_v12, %v1516_v51  ;;  %v1533_v58 = vmul.f32 %v1482_v57, %v5044_v14  ;;  %v2910_v25 = vpop.eup %2909  ;;  %v6524_v53 = vld [vmem:[#allocation13_spill] sm:$0xff]  ;;  %v6526_v51 = vld [vmem:[#allocation20_spill] sm:$0xff] }
 0x1a0   :  { %v1535_v32 = vmul.f32 %v1490_v23, %v5050_v27  ;;  %v5258_v24 = vadd.f32 %v1505_v10, %v1504_v11  ;;  %v5263_v30 = vadd.f32 %v1523_v42, %v1522_v13  ;;  %v1528_v35 = vadd.f32 %v1527_v61, %v1525_v62  ;;  %v6527_v11 = vld [vmem:[#allocation3_spill] sm:$0xff] }
 0x1a1   :  { %v5261_v54 = vadd.f32 %v5150_v21, %v1510_v15  ;;  %v1534_v43 = vadd.f32 %v1533_v58, %v5156_v29  ;;  %v1537_v33 = vmul.f32 %v1477_v34, %v5035_v17  ;;  %v1541_v45 = vmul.f32 %v1492_v36, %v5050_v27 }
 0x1a2   :  { %v1543_v9 = vmul.f32 %v1480_v37, %v5035_v17  ;;  %v5270_v57 = vadd.f32 %v5153_v26, %v1528_v35  ;;  %v1545_v19 = vmul.f32 %v1488_v28, %v5044_v14  ;;  %v1669_v21 = vsel %vm1667_vm7, %v2904_v49, %v1668_v38 }
 0x1a3   :  { %v1866_v23 = vsub.s32 0, %v5229_v41  ;;  %v5276_v10 = vadd.f32 %v1535_v32, %v1534_v43  ;;  %v1540_v29 = vadd.f32 %v5159_v63, %v1537_v33  ;;  %v1673_v34 = vsel %vm1666_vm1, %v1669_v21, %v1672_v60 }
 0x1a4   :  { %v1546_v17 = vadd.f32 %v1545_v19, %v1543_v9  ;;  %v1674_v27 = vsel %vm1663_vm14, nan, %v1673_v34  ;;  %v1973_v26 = vand.u32 2147483648, %v5216_v5  ;;  %v1969_v63 = vmul.f32 %v2910_v25, %v5216_v5 }
 0x1a5   :  { %v2734_v14 = vmin.u32 %v1866_v23, %v5229_v41  ;;  %v5286_v49 = vadd.f32 %v1541_v45, %v1540_v29  ;;  %v1675_v37 = vmul.f32 %v1674_v27, %v1674_v27  ;;  %v5288_v36 = vmul.f32 2.0, %v1674_v27 }
 0x1a6   :  { %v5292_v44 = vadd.f32 %v5162_v8, %v1546_v17  ;;  %v1886_v28 = vsub.s32 4, %v5211_v7  ;;  %v1971_v4 = vsel %vm1970_vm12, %v5216_v5, %v1969_v63  ;;  %v1695_v42 = vsub.f32 0.5, %v5221_v47 }
 0x1a7   :  { %v1868_v38 = vclz %v2734_v14  ;;  %v1676_v60 = vsub.f32 1.0, %v1675_v37  ;;  %v1696_v31 = vmul.f32 %v5288_v36, %v1674_v27  ;;  %v1704_v1 = vadd.f32 %v6525_v50, %v6524_v53  ;;  %v2969_v53 = vld [vmem:[%s6199_s0 + $0xb0] sm:$0xff] }
 0x1a8   :  { %v1716_v12 = vadd.f32 %v6525_v50, %v6526_v51  ;;  %v5305_v62 = vsel %vm1972_vm15, %v1973_v26, %v1971_v4  ;;  %vm1802_vm0 = vcmp.lt.s32.totalorder %v6527_v11, 0  ;;  %v1856_v13 = vadd.s32 %v5130_v16, %v5127_v6 }
 0x1a9   :  { %v2735_v20 = vadd.s32 4294967294, %v1868_v38  ;;  %v5301_v46 = vmax.f32 %v1676_v60, 0.0  ;;  %v1699_v8 = vmul.f32 %v2908_v18, %v1696_v31  ;;  %v1887_v47 = vsel %vm1802_vm0, %v1886_v28, %v5211_v7  ;;  %v6532_v7 = vld [vmem:[#allocation25_spill] sm:$0xff] }
 0x1aa   :  { %v5319_v18 = vmul.f32 0.5, %v5305_v62  ;;  %v6529_v35 = vand.u32 2147483647, %v6527_v11  ;;  %v1687_v4 = vmul.f32 0.16666667, %v6523_v55  ;;  %vm1892_vm12 = vweird.f32 %v6527_v11 }
 0x1ab   :  { %vm2736_vm2 = vcmp.lt.s32.totalorder %v2735_v20, 0  ;;  %2911 = vrsqrt.f32 %v5301_v46  ;;  %v5314_v15 = vsel %vm1685_vm5, %v1695_v42, %v1699_v8  ;;  %v2968_v42 = vld [vmem:[%s6199_s0 + $0xa8] sm:$0xff]  ;;  %vm1680_vm4 = vcmp.eq.f32.partialorder %v5301_v46, inf }
 0x1ac   :  { %v1871_v61 = vsel %vm2736_vm2, 0, %v2735_v20  ;;  %6528 = vst [vmem:[#allocation7_spill] sm:$0xff] %v5319_v18  ;;  %v1705_v58 = vmul.f32 %v1704_v1, %v5314_v15  ;;  %v1717_v32 = vmul.f32 %v1716_v12, %v5314_v15  ;;  %vm5325_vm11 = vcmp.le.f32.partialorder %v6529_v35, 0.7853982  ;;  %v6533_v1 = vld [vmem:[#allocation4_spill] sm:$0xff] }
 0x1ad   :  { %2913 = vrcp.f32 %v5187_v52  ;;  %v1726_v43 = vmul.f32 %v5314_v15, %v6532_v7  ;;  %v1872_v6 = vsub.s32 32, %v1871_v61  ;;  %v1889_v16 = vsel %vm5325_vm11, 0, %v1887_v47 }
 0x1ae   :  { %v1706_v33 = vsub.f32 1.0, %v1705_v58  ;;  %v1718_v45 = vsub.f32 1.0, %v1717_v32  ;;  %v1873_v9 = vshll.u32 %v5229_v41, %v1871_v61  ;;  %v1876_v19 = vsub.s32 4294967266, %v1871_v61 }
 0x1af   :  { %v1727_v21 = vsub.f32 1.0, %v1726_v43  ;;  %v1874_v23 = vshrl.u32 %v1856_v13, %v1872_v6  ;;  %v6318_v29 = vand.u32 2147483647, %v5319_v18  ;;  %v1979_v34 = vand.u32 2139095040, %v5319_v18  ;;  %v2970_v13 = vld [vmem:[%s6199_s0 + $0xb8] sm:$0xff] }
 0x1b0   :  { %v5338_v52 = vmul.f32 %v1706_v33, %v5252_v3  ;;  %v5341_v17 = vmul.f32 %v1718_v45, %v5258_v24  ;;  %v5344_v27 = vmul.f32 %v1706_v33, %v5254_v56  ;;  %v5347_v14 = vmul.f32 %v1718_v45, %v5263_v30 }
 0x1b1   :  { %v5350_v41 = vmul.f32 %v1727_v21, %v5261_v54  ;;  %v5353_v26 = vmul.f32 %v1727_v21, %v5270_v57  ;;  %v5356_v37 = vmul.f32 %v1706_v33, %v5276_v10  ;;  %v5359_v63 = vmul.f32 %v1718_v45, %v5286_v49 }
 0x1b2   :  { %v5362_v38 = vmul.f32 %v1727_v21, %v5292_v44  ;;  %v1875_v60 = vor.u32 %v1874_v23, %v1873_v9  ;;  %v1877_v31 = vadd.s32 127, %v1876_v19  ;;  %v1980_v28 = vshrl.u32 %v1979_v34, 23 }
 0x1b3   :  { %v1701_v50 = vmul.f32 %v2969_v53, %v2968_v42  ;;  %vm1914_vm3 = vcmp.lt.f32.partialorder %v6533_v1, 1e-07  ;;  %v1983_v20 = vand.u32 8388607, %v6318_v29  ;;  %v1683_v51 = vand.u32 2147483648, %v5301_v46 }
 0x1b4   :  { %v1878_v55 = vshll.u32 %v1877_v31, 23  ;;  %v2740_v12 = vadd.s32 4294967169, %v1980_v28  ;;  %vm1682_vm6 = vcmp.eq.f32.partialorder %v5301_v46, 0.0  ;;  %v1702_v61 = vmul.f32 %v2970_v13, %v2968_v42 }
 0x1b5   :  { %v2912_v8 = vpop.eup %2911  ;;  %v1893_v58 = vadd.s32 3, %v1889_v16  ;;  %v1882_v35 = vcvt.s32.f32 %v1875_v60  ;;  %v5384_v7 = vsel %vm1914_vm3, 1.0, %v6533_v1  ;;  %v1703_v45 = vmul.f32 %v2970_v13, %v2969_v53 }
 0x1b6   :  { %v1679_v47 = vmul.f32 %v2912_v8, %v5301_v46  ;;  %v1879_v32 = vor.u32 4788187, %v1878_v55  ;;  %v1986_v43 = vadd.s32 1, %v2740_v12  ;;  %v1984_v9 = vor.u32 8388608, %v1983_v20 }
 0x1b7   :  { %v2914_v6 = vpop.eup %2913  ;;  %v1688_v21 = vsub.f32 1.0, %v1687_v4  ;;  %v5388_v16 = vand.u32 3, %v1893_v58  ;;  %v5392_v60 = vmul.f32 %v5384_v7, %v5384_v7  ;;  %v1709_v28 = vmul.f32 %v1701_v50, %v5314_v15 }
 0x1b8   :  { %v1681_v33 = vsel %vm1680_vm4, %v5301_v46, %v1679_v47  ;;  %v1880_v23 = vand.u32 2147483647, %v1879_v32  ;;  %vm1987_vm10 = vcmp.gt.s32.totalorder %v1986_v43, 0  ;;  %v1712_v8 = vmul.f32 %v1702_v61, %v5314_v15 }
 0x1b9   :  { %v1684_v19 = vsel %vm1682_vm6, %v1683_v51, %v1681_v33  ;;  %v1988_v31 = vsel %vm1987_vm10, %v1986_v43, 0  ;;  %v1720_v4 = vmul.f32 %v1703_v45, %v5314_v15  ;;  %v5399_v12 = vshll.u32 %v1984_v9, 8 }
 0x1ba   :  { %v1690_v34 = vmul.f32 %v5288_v36, %v1684_v19  ;;  %v1883_v46 = vmul.f32 %v1882_v35, %v1880_v23  ;;  %v1990_v55 = vand.u32 31, %v1988_v31  ;;  %v5397_v51 = vshrl.u32 %v1988_v31, 5 }
 0x1bb   :  { %v6534_v58 = vmov 683565275   ;;  %v6535_v33 = vmov 2475754826   ;;  %v6536_v61 = vmov 2131351028  }
 0x1bc   :  { %v1692_v20 = vmul.f32 %v2914_v6, %v1690_v34  ;;  %v1884_v36 = vxor.u32 2147483648, %v1883_v46  ;;  %v5401_v47 = vsub.s32 32, %v1990_v55  ;;  %v1993_v32 = vshll.u32 %v6534_v58, %v1990_v55 }
 0x1bd   :  { %v1996_v43 = vshll.u32 %v6535_v33, %v1990_v55  ;;  %v5408_v35 = vshll.u32 %v6536_v61, %v1990_v55  ;;  %v6537_v6 = vmov 2102212464   ;;  %v5414_v15 = vshll.u32 %v6479_v59, %v1990_v55 }
 0x1be   :  { %v1693_v50 = vsel %vm1685_vm5, %v1688_v21, %v1692_v20  ;;  %v5411_v19 = vshll.u32 %v6537_v6, %v1990_v55  ;;  %v1885_v31 = vsel %vm1802_vm0, %v1884_v36, %v1883_v46  ;;  %v5420_v39 = vshrl.u32 %v6534_v58, %v5401_v47 }
 0x1bf   :  { %v1707_v45 = vsub.f32 0.0, %v1693_v50  ;;  %v1711_v9 = vmul.f32 %v2969_v53, %v1693_v50  ;;  %v1714_v23 = vmul.f32 %v2970_v13, %v1693_v50  ;;  %v1724_v34 = vmul.f32 %v2968_v42, %v1693_v50 }
 0x1c0   :  { %v1994_v21 = vshrl.u32 %v6535_v33, %v5401_v47  ;;  %v1997_v20 = vshrl.u32 %v6536_v61, %v5401_v47  ;;  %v1888_v46 = vsel %vm5325_vm11, %v6527_v11, %v1885_v31  ;;  %vm1899_vm5 = vcmp.eq.s32.totalorder %v5388_v16, 2 }
 0x1c1   :  { %v1708_v29 = vmul.f32 %v2970_v13, %v1707_v45  ;;  %v1713_v55 = vadd.f32 %v1712_v8, %v1711_v9  ;;  %v1715_v0 = vadd.f32 %v1714_v23, %v1709_v28  ;;  %v1719_v48 = vmul.f32 %v2968_v42, %v1707_v45 }
 0x1c2   :  { %v1722_v2 = vmul.f32 %v2969_v53, %v1707_v45  ;;  %v1725_v40 = vadd.f32 %v1724_v34, %v1720_v4  ;;  %v1995_v36 = vor.u32 %v1994_v21, %v1993_v32  ;;  %2915 = vcosq.f32 %v1888_v46 }
 0x1c3   :  { %v1710_v50 = vadd.f32 %v1709_v28, %v1708_v29  ;;  %v1721_v58 = vadd.f32 %v1720_v4, %v1719_v48  ;;  %v1730_v5 = vmul.f32 %v1715_v0, %v5258_v24  ;;  %v1740_v33 = vmul.f32 %v1713_v55, %v5252_v3 }
 0x1c4   :  { %v1723_v18 = vadd.f32 %v1722_v2, %v1712_v8  ;;  %v1738_v61 = vmul.f32 %v1725_v40, %v5261_v54  ;;  %v1748_v13 = vmul.f32 %v1715_v0, %v5263_v30  ;;  %v1756_v42 = vmul.f32 %v1725_v40, %v5270_v57 }
 0x1c5   :  { %v1731_v53 = vadd.f32 %v1730_v5, %v5338_v52  ;;  %v1734_v45 = vmul.f32 %v1710_v50, %v5252_v3  ;;  %v1742_v25 = vmul.f32 %v1721_v58, %v5258_v24  ;;  %v1752_v29 = vmul.f32 %v1710_v50, %v5254_v56 }
 0x1c6   :  { %v1732_v48 = vmul.f32 %v1723_v18, %v5261_v54  ;;  %v1749_v28 = vadd.f32 %v1748_v13, %v5344_v27  ;;  %v1750_v2 = vmul.f32 %v1723_v18, %v5270_v57  ;;  %v1758_v8 = vmul.f32 %v1713_v55, %v5254_v56 }
 0x1c7   :  { %v1737_v4 = vadd.f32 %v5341_v17, %v1734_v45  ;;  %v1743_v32 = vadd.f32 %v1742_v25, %v1740_v33  ;;  %v1755_v9 = vadd.f32 %v5347_v14, %v1752_v29  ;;  %v1760_v5 = vmul.f32 %v1721_v58, %v5263_v30 }
 0x1c8   :  { %v5445_v3 = vadd.f32 %v1732_v48, %v1731_v53  ;;  %v5447_v24 = vadd.f32 %v1750_v2, %v1749_v28  ;;  %v1766_v52 = vmul.f32 %v1715_v0, %v5286_v49  ;;  %v1768_v54 = vmul.f32 %v1723_v18, %v5292_v44 }
 0x1c9   :  { %v5451_v27 = vadd.f32 %v1738_v61, %v1737_v4  ;;  %v5454_v57 = vadd.f32 %v5350_v41, %v1743_v32  ;;  %v5456_v56 = vadd.f32 %v1756_v42, %v1755_v9  ;;  %v1761_v17 = vadd.f32 %v1760_v5, %v1758_v8  ;;  %v6540_v42 = vld [vmem:[#allocation31_spill] sm:$0xff] }
 0x1ca   :  { %v1767_v14 = vadd.f32 %v1766_v52, %v5356_v37  ;;  %v1770_v30 = vmul.f32 %v1710_v50, %v5276_v10  ;;  %v1774_v23 = vmul.f32 %v1725_v40, %v5292_v44  ;;  %v1776_v34 = vmul.f32 %v1713_v55, %v5276_v10  ;;  %v6538_v55 = vld [vmem:[#allocation28_spill] sm:$0xff] }
 0x1cb   :  { %v5463_v0 = vadd.f32 %v5353_v26, %v1761_v17  ;;  %v1778_v18 = vmul.f32 %v1721_v58, %v5286_v49  ;;  %v1998_v31 = vor.u32 %v1997_v20, %v1996_v43  ;;  %2917 = vsinq.f32 %v1888_v46  ;;  %v6539_v58 = vld [vmem:[#allocation30_spill] sm:$0xff] }
 0x1cc   :  { %v5466_v41 = vadd.f32 %v1768_v54, %v1767_v14  ;;  %v1773_v21 = vadd.f32 %v5359_v63, %v1770_v30  ;;  %v2000_v37 = vshrl.u32 %v6537_v6, %v5401_v47  ;;  %v2003_v40 = vshrl.u32 %v6479_v59, %v5401_v47  ;;  %v2916_v28 = vpop.eup %2915  ;;  %v6542_v30 = vld [vmem:[#allocation29_spill] sm:$0xff] }
 0x1cd   :  { %v1779_v50 = vadd.f32 %v1778_v18, %v1776_v34  ;;  %v2006_v10 = vshrl.u32 %v6480_v22, %v5401_v47  ;;  %vm2008_vm13 = vcmp.lt.s32.totalorder %v5397_v51, 1  ;;  %vm1896_vm8 = vcmp.eq.s32.totalorder %v5388_v16, 0 }
 0x1ce   :  { %v5477_v49 = vadd.f32 %v1774_v23, %v1773_v21  ;;  %v2001_v44 = vor.u32 %v2000_v37, %v5408_v35  ;;  %vm2009_vm9 = vcmp.lt.s32.totalorder %v5397_v51, 2  ;;  %vm2010_vm7 = vcmp.lt.s32.totalorder %v5397_v51, 3 }
 0x1cf   :  { %v5484_v26 = vadd.f32 %v5362_v38, %v1779_v50  ;;  %vm1895_vm1 = vcmp.lt.s32.totalorder %v5388_v16, 2  ;;  %v2004_v59 = vor.u32 %v2003_v40, %v5411_v19  ;;  %v2007_v22 = vor.u32 %v2006_v10, %v5414_v15  ;;  %v6544_v50 = vld [vmem:[#allocation32_spill] sm:$0xff] }
 0x1d0   :  { %vm2011_vm14 = vcmp.lt.s32.totalorder %v5397_v51, 4  ;;  %v2012_v63 = vsel %vm2008_vm13, %v5420_v39, %v1995_v36  ;;  %v2016_v43 = vsel %vm2008_vm13, %v1995_v36, %v1998_v31  ;;  %v2020_v35 = vsel %vm2008_vm13, %v1998_v31, %v2001_v44 }
 0x1d1   :  { %v2013_v47 = vsel %vm2011_vm14, %v2001_v44, 2102212464  ;;  %v2017_v38 = vsel %vm2011_vm14, %v2004_v59, 920167782  ;;  %v2021_v20 = vsel %vm2011_vm14, %v2007_v22, 1326507024  ;;  %v2401_v46 = vmul.f32 %v5445_v3, %v6538_v55 }
 0x1d2   :  { %v2014_v6 = vsel %vm2010_vm7, %v1998_v31, %v2013_v47  ;;  %v2018_v15 = vsel %vm2010_vm7, %v2001_v44, %v2017_v38  ;;  %v2022_v39 = vsel %vm2010_vm7, %v2004_v59, %v2021_v20  ;;  %v2403_v36 = vmul.f32 %v5447_v24, %v6539_v58 }
 0x1d3   :  { %v2015_v19 = vsel %vm2009_vm9, %v2012_v63, %v2014_v6  ;;  %v2019_v33 = vsel %vm2009_vm9, %v2016_v43, %v2018_v15  ;;  %v2023_v61 = vsel %vm2009_vm9, %v2020_v35, %v2022_v39  ;;  %v2405_v53 = vmul.f32 %v5466_v41, %v6540_v42 }
 0x1d4   :  { %v2031_v13 = vmul.u32 %v5399_v12, %v2015_v19  ;;  %v5512_v45 = vmul.u32.u64.low %v5399_v12, %v2023_v61  ;;  %v5513_v25 = vmul.u32.u64.high %v5399_v12, %v2023_v61, %v5512_v45  ;;  %v2404_v2 = vadd.f32 %v2403_v36, %v2401_v46 }
 0x1d5   :  { %v5516_v29 = vmul.u32.u64.low %v5399_v12, %v2019_v33  ;;  %v5517_v48 = vmul.u32.u64.high %v5399_v12, %v2019_v33, %v5516_v29  ;;  %v2407_v51 = vmul.f32 %v5451_v27, %v6538_v55  ;;  %v2409_v8 = vmul.f32 %v5456_v56, %v6539_v58  ;;  %v2918_v32 = vpop.eup %2917 }
 0x1d6   :  { %v2411_v4 = vmul.f32 %v5477_v49, %v6540_v42  ;;  %v1900_v9 = vxor.u32 2147483648, %v2916_v28  ;;  %v2413_v5 = vmul.f32 %v5454_v57, %v6538_v55  ;;  %v2415_v12 = vmul.f32 %v5463_v0, %v6539_v58 }
 0x1d7   :  { %v2417_v52 = vmul.f32 %v5484_v26, %v6540_v42  ;;  %v1897_v54 = vxor.u32 2147483648, %v2918_v32  ;;  %v5532_v17 = vadd.f32 %v2405_v53, %v2404_v2  ;;  %v2410_v14 = vadd.f32 %v2409_v8, %v2407_v51  ;;  %v6548_v53 = vld [vmem:[#allocation34_spill] sm:$0xff]  ;;  %v6550_v51 = vld [vmem:[#allocation39_spill] sm:$0xff] }
 0x1d8   :  { %v2419_v23 = vmul.f32 %v5445_v3, %v6542_v30  ;;  %v1901_v34 = vsel %vm1899_vm5, %v1900_v9, %v2918_v32  ;;  %2919 = vrcp.f32 %v5392_v60  ;;  %vm2033_vm15 = vc.u32 %v5513_v25, %v5516_v29  ;;  %v6545_v60 = vld [vmem:[#allocation33_spill] sm:$0xff]  ;;  %v6552_v32 = vld [vmem:[#allocation36_spill] sm:$0xff] }
 0x1d9   :  { %6541 = vst [vmem:[#allocation2_spill] sm:$0xff] %v5532_v17  ;;  %v2034_v18 = vadd.s32 1, %v5517_v48  ;;  %v1898_v31 = vsel %vm1896_vm8, %v2916_v28, %v1897_v54  ;;  %v5544_v21 = vadd.f32 %v2411_v4, %v2410_v14  ;;  %v2416_v37 = vadd.f32 %v2415_v12, %v2413_v5 }
 0x1da   :  { %v2421_v40 = vmul.f32 %v5447_v24, %v6544_v50  ;;  %v1902_v10 = vsel %vm1895_vm1, %v1898_v31, %v1901_v34  ;;  %v2423_v59 = vmul.f32 %v5466_v41, %v6545_v60  ;;  %v2425_v22 = vmul.f32 %v5451_v27, %v6542_v30 }
 0x1db   :  { %6543 = vst [vmem:[#allocation18_spill] sm:$0xff] %v5544_v21  ;;  %v2035_v44 = vsel %vm2033_vm15, %v2034_v18, %v5517_v48  ;;  %v1903_v63 = vsel %vm1892_vm12, nan, %v1902_v10  ;;  %v5557_v43 = vadd.f32 %v2417_v52, %v2416_v37  ;;  %v2427_v16 = vmul.f32 %v5456_v56, %v6544_v50  ;;  %v6549_v48 = vld [vmem:[#allocation35_spill] sm:$0xff] }
 0x1dc   :  { %v2036_v47 = vadd.s32 %v2035_v44, %v2031_v13  ;;  %v2422_v35 = vadd.f32 %v2421_v40, %v2419_v23  ;;  %v1904_v6 = vmul.f32 %v1903_v63, %v1903_v63  ;;  %v2429_v38 = vmul.f32 %v5477_v49, %v6545_v60  ;;  %v5598_v40 = vld [vmem:[%s6200_s1] sm:$0xff]  ;;  %v5603_v10 = vld [vmem:[%s6200_s1 + $0x8] sm:$0xff] }
 0x1dd   :  { %6546 = vst [vmem:[#allocation21_spill] sm:$0xff] %v5557_v43  ;;  %v2431_v19 = vmul.f32 %v5454_v57, %v6542_v30  ;;  %v2433_v11 = vmul.f32 %v5463_v0, %v6544_v50  ;;  %v5569_v39 = vmul.f32 2.0, %v1903_v63  ;;  %v2428_v36 = vadd.f32 %v2427_v16, %v2425_v22 }
 0x1de   :  { %v2037_v20 = vadd.s32 536870912, %v2036_v47  ;;  %v5563_v46 = vadd.f32 %v2423_v59, %v2422_v35  ;;  %v1905_v15 = vsub.f32 1.0, %v1904_v6  ;;  %v2435_v33 = vmul.f32 %v5484_v26, %v6545_v60 }
 0x1df   :  { %v2434_v13 = vadd.f32 %v2433_v11, %v2431_v19  ;;  %v2437_v45 = vmul.f32 %v5445_v3, %v6548_v53  ;;  %v2439_v28 = vmul.f32 %v5447_v24, %v6549_v48  ;;  %v1923_v8 = vmul.f32 0.041666668, %v6550_v51  ;;  %v6555_v19 = vld [vmem:[#allocation12_spill] sm:$0xff]  ;;  %v6556_v11 = vld [vmem:[#allocation26_spill] sm:$0xff] }
 0x1e0   :  { %6547 = vst [vmem:[#allocation38_spill] sm:$0xff] %v5563_v46  ;;  %v2038_v61 = vshrl.u32 %v2037_v20, 30  ;;  %v5577_v2 = vmax.f32 %v1905_v15, 0.0  ;;  %v5580_v4 = vadd.f32 %v2429_v38, %v2428_v36  ;;  %v2441_v9 = vmul.f32 %v5466_v41, %v6552_v32  ;;  %v5621_v38 = vld [vmem:[%s6200_s1 + $0x10] sm:$0xff]  ;;  %v6557_v36 = vld [vmem:[#allocation14_spill] sm:$0xff] }
 0x1e1   :  { %v1925_v5 = vmul.f32 %v5569_v39, %v1903_v63  ;;  %v5585_v52 = vadd.f32 %v2435_v33, %v2434_v13  ;;  %v2440_v54 = vadd.f32 %v2439_v28, %v2437_v45  ;;  %v5589_v23 = vmul.f32 0.16666667, %v6550_v51  ;;  %v6558_v45 = vld [vmem:[#allocation7_spill] sm:$0xff] }
 0x1e2   :  { %6551 = vst [vmem:[#allocation10_spill] sm:$0xff] %v5580_v4  ;;  %v2039_v12 = vshll.u32 %v2038_v61, 30  ;;  %v2920_v14 = vpop.eup %2919  ;;  %2921 = vrsqrt.f32 %v5577_v2  ;;  %v1924_v31 = vsub.f32 0.5, %v1923_v8  ;;  %v1930_v44 = vmul.f32 %v5603_v10, %v5598_v40 }
 0x1e3   :  { %6553 = vst [vmem:[#allocation11_spill] sm:$0xff] %v5585_v52  ;;  %v5593_v18 = vadd.f32 %v2441_v9, %v2440_v54  ;;  %v1928_v37 = vmul.f32 %v2920_v14, %v1925_v5  ;;  %2923 = vrcp.f32 %v5384_v7  ;;  %vm2090_vm0 = vcmp.lt.f32.partialorder %v5305_v62, 1e-07 }
 0x1e4   :  { %v5591_v34 = vsub.s32 %v2036_v47, %v2039_v12  ;;  %v2443_v63 = vmul.f32 %v5451_v27, %v6548_v53  ;;  %v2062_v35 = vsub.s32 4, %v2038_v61  ;;  %v2445_v6 = vmul.f32 %v5456_v56, %v6549_v48 }
 0x1e5   :  { %6554 = vst [vmem:[#allocation23_spill] sm:$0xff] %v5593_v18  ;;  %v2447_v16 = vmul.f32 %v5477_v49, %v6552_v32  ;;  %v1931_v7 = vmul.f32 %v5621_v38, %v5598_v40  ;;  %v1932_v20 = vmul.f32 %v5621_v38, %v5603_v10  ;;  %v1933_v15 = vadd.f32 %v6556_v11, %v6555_v19 }
 0x1e6   :  { %v2042_v59 = vsub.s32 0, %v5591_v34  ;;  %v1945_v33 = vadd.f32 %v6556_v11, %v6557_v36  ;;  %v1929_v13 = vsel %vm1914_vm3, %v1924_v31, %v1928_v37  ;;  %v6559_v28 = vand.u32 2147483647, %v6558_v45 }
 0x1e7   :  { %vm1978_vm11 = vcmp.lt.s32.totalorder %v6558_v45, 0  ;;  %vm1909_vm4 = vcmp.eq.f32.partialorder %v5577_v2, inf  ;;  %vm1911_vm6 = vcmp.eq.f32.partialorder %v5577_v2, 0.0  ;;  %v2032_v9 = vadd.s32 %v5516_v29, %v5513_v25 }
 0x1e8   :  { %v2741_v47 = vmin.u32 %v2042_v59, %v5591_v34  ;;  %vm5635_vm2 = vcmp.le.f32.partialorder %v6559_v28, 0.7853982  ;;  %v5647_v5 = vsel %vm2090_vm0, 1.0, %v5305_v62  ;;  %v1912_v12 = vand.u32 2147483648, %v5577_v2  ;;  %v6563_v28 = vld [vmem:[#allocation27_spill] sm:$0xff] }
 0x1e9   :  { %v2063_v14 = vsel %vm1978_vm11, %v2062_v35, %v2038_v61  ;;  %v2446_v31 = vadd.f32 %v2445_v6, %v2443_v63  ;;  %v1934_v59 = vmul.f32 %v1933_v15, %v1929_v13  ;;  %v2451_v25 = vmul.f32 %v5463_v0, %v6549_v48 }
 0x1ea   :  { %v2044_v8 = vclz %v2741_v47  ;;  %v2449_v47 = vmul.f32 %v5454_v57, %v6548_v53  ;;  %v2453_v29 = vmul.f32 %v5484_v26, %v6552_v32  ;;  %v1946_v11 = vmul.f32 %v1945_v33, %v1929_v13 }
 0x1eb   :  { %v5659_v36 = vadd.f32 %v2447_v16, %v2446_v31  ;;  %v1955_v61 = vmul.f32 %v1929_v13, %v6563_v28  ;;  %v5664_v35 = vmul.f32 %v5647_v5, %v5647_v5  ;;  %v5672_v31 = vsub.f32 1.0, %v1934_v59 }
 0x1ec   :  { %v2742_v54 = vadd.s32 4294967294, %v2044_v8  ;;  %v2922_v37 = vpop.eup %2921  ;;  %v2452_v6 = vadd.f32 %v2451_v25, %v2449_v47  ;;  %v5679_v25 = vsub.f32 1.0, %v1946_v11  ;;  %v1938_v43 = vmul.f32 %v1930_v44, %v1929_v13 }
 0x1ed   :  { %v1908_v19 = vmul.f32 %v2922_v37, %v5577_v2  ;;  %6562 = vst [vmem:[#allocation8_spill] sm:$0xff] %v5659_v36  ;;  %v2924_v33 = vpop.eup %2923  ;;  %v5681_v36 = vsub.f32 1.0, %v1955_v61  ;;  %v2151_v44 = vmul.f32 %v5672_v31, %v6539_v58  ;;  %v2169_v1 = vmul.f32 %v5672_v31, %v6540_v42 }
 0x1ee   :  { %vm2743_vm10 = vcmp.lt.s32.totalorder %v2742_v54, 0  ;;  %v5676_v28 = vadd.f32 %v2453_v29, %v2452_v6  ;;  %vm2068_vm8 = vweird.f32 %v6558_v45 }
 0x1ef   :  { %v2047_v63 = vsel %vm2743_vm10, 0, %v2742_v54  ;;  %v1910_v15 = vsel %vm1909_vm4, %v5577_v2, %v1908_v19  ;;  %v2065_v54 = vsel %vm5635_vm2, 0, %v2063_v14  ;;  %6565 = vst [vmem:[#allocation15_spill] sm:$0xff] %v5681_v36  ;;  %v2133_v14 = vmul.f32 %v5672_v31, %v6538_v55 }
 0x1f0   :  { %v2048_v8 = vsub.s32 32, %v2047_v63  ;;  %v2049_v22 = vshll.u32 %v5591_v34, %v2047_v63  ;;  %v2052_v37 = vsub.s32 4294967266, %v2047_v63  ;;  %v1913_v16 = vsel %vm1911_vm6, %v1912_v12, %v1910_v15  ;;  %6564 = vst [vmem:[#allocation17_spill] sm:$0xff] %v5676_v28 }
 0x1f1   :  { %v1919_v47 = vmul.f32 %v5569_v39, %v1913_v16  ;;  %v1941_v34 = vmul.f32 %v1931_v7, %v1929_v13  ;;  %v1949_v63 = vmul.f32 %v1932_v20, %v1929_v13  ;;  %v5683_v15 = vadd.s32 3, %v2065_v54 }
 0x1f2   :  { %v2050_v19 = vshrl.u32 %v2032_v9, %v2048_v8  ;;  %v2053_v52 = vadd.s32 127, %v2052_v37  ;;  %v2141_v39 = vmul.f32 %v5679_v25, %v6542_v30  ;;  %v2149_v9 = vmul.f32 %v5681_v36, %v6548_v53 }
 0x1f3   :  { %v1921_v2 = vmul.f32 %v2924_v33, %v1919_v47  ;;  %v6566_v7 = vsub.f32 1.0, %v5589_v23  ;;  %v2159_v13 = vmul.f32 %v5679_v25, %v6544_v50  ;;  %v2167_v37 = vmul.f32 %v5681_v36, %v6549_v48 }
 0x1f4   :  { %v2051_v12 = vor.u32 %v2050_v19, %v2049_v22  ;;  %v2054_v59 = vshll.u32 %v2053_v52, 23  ;;  %v2177_v23 = vmul.f32 %v5679_v25, %v6545_v60 }
 0x1f5   :  { %v1922_v22 = vsel %vm1914_vm3, %v6566_v7, %v1921_v2 }
 0x1f6   :  { %v2055_v52 = vor.u32 4788187, %v2054_v59  ;;  %v2058_v20 = vcvt.s32.f32 %v2051_v12  ;;  %v1936_v29 = vsub.f32 0.0, %v1922_v22  ;;  %v1940_v11 = vmul.f32 %v5603_v10, %v1922_v22 }
 0x1f7   :  { %v1943_v61 = vmul.f32 %v5621_v38, %v1922_v22  ;;  %v1953_v6 = vmul.f32 %v5598_v40, %v1922_v22  ;;  %v2185_v59 = vmul.f32 %v5681_v36, %v6552_v32 }
 0x1f8   :  { %v2056_v8 = vand.u32 2147483647, %v2055_v52  ;;  %v1937_v33 = vmul.f32 %v5621_v38, %v1936_v29  ;;  %v5709_v16 = vadd.f32 %v1941_v34, %v1940_v11  ;;  %v1948_v47 = vmul.f32 %v5598_v40, %v1936_v29 }
 0x1f9   :  { %v5711_v54 = vadd.f32 %v1943_v61, %v1938_v43  ;;  %v1951_v19 = vmul.f32 %v5603_v10, %v1936_v29  ;;  %v5715_v2 = vadd.f32 %v1953_v6, %v1949_v63 }
 0x1fa   :  { %v2059_v12 = vmul.f32 %v2058_v20, %v2056_v8  ;;  %v5719_v7 = vadd.f32 %v1938_v43, %v1937_v33  ;;  %v5721_v22 = vadd.f32 %v1949_v63, %v1948_v47  ;;  %v2145_v52 = vmul.f32 %v5709_v16, %v6538_v55 }
 0x1fb   :  { %6567 = vst [vmem:[#allocation24_spill] sm:$0xff] %v5715_v2  ;;  %v2135_v38 = vmul.f32 %v5711_v54, %v6542_v30  ;;  %v5727_v11 = vadd.f32 %v1951_v19, %v1941_v34  ;;  %v2143_v10 = vmul.f32 %v5715_v2, %v6548_v53  ;;  %v2153_v20 = vmul.f32 %v5711_v54, %v6544_v50 }
 0x1fc   :  { %v2060_v40 = vxor.u32 2147483648, %v2059_v12  ;;  %v2139_v43 = vmul.f32 %v5719_v7, %v6538_v55  ;;  %v2147_v63 = vmul.f32 %v5721_v22, %v6542_v30  ;;  %v2157_v61 = vmul.f32 %v5719_v7, %v6539_v58 }
 0x1fd   :  { %6568 = vst [vmem:[#allocation37_spill] sm:$0xff] %v5727_v11  ;;  %v2136_v29 = vadd.f32 %v2135_v38, %v2133_v14  ;;  %v2137_v6 = vmul.f32 %v5727_v11, %v6548_v53  ;;  %v2154_v8 = vadd.f32 %v2153_v20, %v2151_v44  ;;  %v2155_v33 = vmul.f32 %v5727_v11, %v6549_v48 }
 0x1fe   :  { %v2061_v34 = vsel %vm1978_vm11, %v2060_v40, %v2059_v12  ;;  %v2142_v14 = vadd.f32 %v2141_v39, %v2139_v43  ;;  %v2148_v47 = vadd.f32 %v2147_v63, %v2145_v52  ;;  %v2160_v30 = vadd.f32 %v2159_v13, %v2157_v61 }
 0x1ff   :  { %v2064_v55 = vsel %vm5635_vm2, %v6558_v45, %v2061_v34  ;;  %v2138_v19 = vadd.f32 %v2137_v6, %v2136_v29  ;;  %v5748_v38 = vadd.f32 %v2155_v33, %v2154_v8  ;;  %v2161_v12 = vmul.f32 %v5715_v2, %v6549_v48  ;;  %v2976_v33 = vld [vmem:[%s6200_s1 + $0x28] sm:$0xff] }
 0x200   :  { %2925 = vcosq.f32 %v2064_v55  ;;  %v5752_v53 = vadd.f32 %v2143_v10, %v2142_v14  ;;  %v5754_v44 = vadd.f32 %v2149_v9, %v2148_v47  ;;  %v2163_v40 = vmul.f32 %v5709_v16, %v6539_v58 }
 0x201   :  { %2927 = vsinq.f32 %v2064_v55  ;;  %v2162_v51 = vadd.f32 %v2161_v12, %v2160_v30  ;;  %v2165_v39 = vmul.f32 %v5721_v22, %v6544_v50  ;;  %v2171_v13 = vmul.f32 %v5711_v54, %v6545_v60 }
 0x202   :  { %v2173_v52 = vmul.f32 %v5727_v11, %v6552_v32  ;;  %v2175_v48 = vmul.f32 %v5719_v7, %v6540_v42  ;;  %v2179_v9 = vmul.f32 %v5715_v2, %v6552_v32  ;;  %v2181_v10 = vmul.f32 %v5709_v16, %v6540_v42 }
 0x203   :  { %v2183_v58 = vmul.f32 %v5721_v22, %v6545_v60  ;;  %v2166_v20 = vadd.f32 %v2165_v39, %v2163_v40  ;;  %v2172_v50 = vadd.f32 %v2171_v13, %v2169_v1  ;;  %v2187_v29 = vadd.f32 %v2162_v51, %v2138_v19  ;;  %v6569_v40 = vld [vmem:[#allocation9_spill] sm:$0xff] }
 0x204   :  { %v2178_v63 = vadd.f32 %v2177_v23, %v2175_v48  ;;  %v2070_v34 = vand.u32 3, %v5683_v15  ;;  %2929 = vrcp.f32 %v5664_v35  ;;  %v2099_v51 = vmul.f32 0.041666668, %v6569_v40  ;;  %v2974_v60 = vld [vmem:[%s6200_s1 + $0x18] sm:$0xff] }
 0x205   :  { %v2184_v61 = vadd.f32 %v2183_v58, %v2181_v10  ;;  %v5775_v6 = vadd.f32 %v2167_v37, %v2166_v20  ;;  %v5777_v8 = vadd.f32 %v2173_v52, %v2172_v50  ;;  %v6570_v50 = vld [vmem:[#allocation19_spill] sm:$0xff]  ;;  %v6345_v2 = vmov 0.0  }
 0x206   :  { %v5779_v32 = vadd.f32 %v2179_v9, %v2178_v63  ;;  %vm2075_vm3 = vcmp.eq.s32.totalorder %v2070_v34, 2  ;;  %vm2072_vm5 = vcmp.eq.s32.totalorder %v2070_v34, 0  ;;  %vm2071_vm13 = vcmp.lt.s32.totalorder %v2070_v34, 2 }
 0x207   :  { %v2186_v42 = vadd.f32 %v2185_v59, %v2184_v61  ;;  %v2100_v20 = vsub.f32 0.5, %v2099_v51  ;;  %v6572_v61 = vld [vmem:[#allocation6_spill] sm:$0xff] }
 0x209   :  { %v2188_v1 = vadd.f32 %v2187_v29, %v2186_v42  ;;  %v6571_v29 = vld [vmem:[#allocation5_spill] sm:$0xff] }
 0x20a   :  { %v2926_v23 = vpop.eup %2925  ;;  %v2109_v63 = vadd.f32 %v6571_v29, %v6570_v50  ;;  %v2121_v34 = vadd.f32 %v6571_v29, %v6572_v61 }
 0x20b   :  { %v2928_v55 = vpop.eup %2927  ;;  %v2076_v15 = vxor.u32 2147483648, %v2926_v23  ;;  %v2744_v37 = vadd.f32 -1.0, %v2188_v1 }
 0x20c   :  { %v2073_v14 = vxor.u32 2147483648, %v2928_v55 }
 0x20d   :  { %v2077_v59 = vsel %vm2075_vm3, %v2076_v15, %v2928_v55  ;;  %v2190_v47 = vmul.f32 0.5, %v2744_v37 }
 0x20e   :  { %v2074_v35 = vsel %vm2072_vm5, %v2926_v23, %v2073_v14  ;;  %v2930_v48 = vpop.eup %2929  ;;  %v5811_v14 = vld [vmem:[%s6201_s2] sm:$0xff] }
 0x20f   :  { %v2078_v30 = vsel %vm2071_vm13, %v2074_v35, %v2077_v59  ;;  %v5787_v19 = vclamps-f32 %v2190_v47, 1.0  ;;  %6573 = vst [vmem:[#allocation13_spill] sm:$0xff] %v5811_v14  ;;  %v6574_v35 = vld [vmem:[#allocation22_spill] sm:$0xff]  ;;  %vm15_vm9 = vcmp.ge.f32.partialorder %v5811_v14, 0.0 }
 0x210   :  { %v2079_v12 = vsel %vm2068_vm8, nan, %v2078_v30 }
 0x211   :  { %v2080_v39 = vmul.f32 %v2079_v12, %v2079_v12  ;;  %v5790_v13 = vmul.f32 2.0, %v2079_v12  ;;  %v5793_v52 = vand.u32 2147483647, %v5787_v19  ;;  %vm2220_vm11 = vcmp.lt.f32.partialorder %v5787_v19, 0.0 }
 0x213   :  { %v2081_v9 = vsub.f32 1.0, %v2080_v39  ;;  %v2101_v10 = vmul.f32 %v5790_v13, %v2079_v12  ;;  %v2196_v45 = vmul.f32 -0.0012624911, %v5793_v52  ;;  %v2210_v58 = vsub.f32 1.0, %v5793_v52 }
 0x215   :  { %v2082_v42 = vmax.f32 %v2081_v9, 0.0  ;;  %v2104_v1 = vmul.f32 %v2930_v48, %v2101_v10  ;;  %v2197_v23 = vadd.f32 0.00667009, %v2196_v45  ;;  %v5802_v55 = vmax.f32 %v2210_v58, 0.0 }
 0x216   :  { %v5820_v48 = vmul.f32 2.0, %v5811_v14  ;;  %v2223_v45 = vmul.f32 %v5787_v19, %v5787_v19 }
 0x217   :  { %2931 = vrsqrt.f32 %v2082_v42  ;;  %v2105_v15 = vsel %vm2090_vm0, %v2100_v20, %v2104_v1  ;;  %v2198_v37 = vmul.f32 %v2197_v23, %v5793_v52  ;;  %vm2085_vm1 = vcmp.eq.f32.partialorder %v2082_v42, inf }
 0x218   :  { %2933 = vrsqrt.f32 %v5802_v55  ;;  %v2110_v59 = vmul.f32 %v2109_v63, %v2105_v15  ;;  %v2122_v47 = vmul.f32 %v2121_v34, %v2105_v15  ;;  %v2131_v30 = vmul.f32 %v2105_v15, %v6574_v35  ;;  %6575 = vst [vmem:[#allocation16_spill] sm:$0xff] %v5820_v48 }
 0x219   :  { %v2746_v12 = vadd.f32 -0.017088126, %v2198_v37  ;;  %2935 = vrcp.f32 %v5647_v5  ;;  %vm18_vm7 = vcmp.ge.f32.partialorder %v5820_v48, 5.0  ;;  %v2088_v35 = vand.u32 2147483648, %v2082_v42 }
 0x21a   :  { %v5815_v51 = vsub.f32 1.0, %v2110_v59  ;;  %v5817_v39 = vsub.f32 1.0, %v2122_v47  ;;  %v5822_v9 = vsub.f32 1.0, %v2131_v30  ;;  %v2224_v59 = vsub.f32 1.0, %v2223_v45  ;;  %v2975_v45 = vld [vmem:[%s6200_s1 + $0x20] sm:$0xff]  ;;  %vm19_vm12 = vmand %vm18_vm7, %vm15_vm9 }
 0x21b   :  { %v2200_v10 = vmul.f32 %v2746_v12, %v5793_v52  ;;  %vm2087_vm14 = vcmp.eq.f32.partialorder %v2082_v42, 0.0  ;;  %v2107_v48 = vmul.f32 %v2976_v33, %v2974_v60  ;;  %v2108_v21 = vmul.f32 %v2976_v33, %v2975_v45 }
 0x21c   :  { %v5829_v58 = vmul.f32 %v5815_v51, %v5445_v3  ;;  %v5833_v5 = vmul.f32 %v5817_v39, %v5447_v24  ;;  %v5837_v20 = vmul.f32 %v5815_v51, %v5451_v27  ;;  %v5841_v50 = vmul.f32 %v5817_v39, %v5456_v56 }
 0x21d   :  { %v2201_v29 = vadd.f32 0.03089188, %v2200_v10  ;;  %v5845_v63 = vmul.f32 %v5822_v9, %v5466_v41  ;;  %v5849_v61 = vmul.f32 %v5822_v9, %v5477_v49  ;;  %v5853_v34 = vmul.f32 %v5815_v51, %v5454_v57 }
 0x21e   :  { %v5857_v1 = vmul.f32 %v5817_v39, %v5463_v0  ;;  %v5861_v23 = vmul.f32 %v5822_v9, %v5484_v26  ;;  %v2092_v10 = vmul.f32 0.16666667, %v6569_v40  ;;  %vm2214_vm15 = vcmp.eq.f32.partialorder %v5802_v55, inf }
 0x21f   :  { %v2202_v37 = vmul.f32 %v2201_v29, %v5793_v52  ;;  %v2106_v29 = vmul.f32 %v2975_v45, %v2974_v60  ;;  %v5883_v11 = vsel %vm19_vm12, 0.37878788, %v6345_v2  ;;  %vm2216_vm2 = vcmp.eq.f32.partialorder %v5802_v55, 0.0 }
 0x220   :  { %v2093_v46 = vsub.f32 1.0, %v2092_v10  ;;  %v5907_v62 = vmul.f32 %v5815_v51, %v5711_v54 }
 0x221   :  { %v2932_v47 = vpop.eup %2931  ;;  %v2747_v43 = vadd.f32 -0.050174303, %v2202_v37  ;;  %v2225_v37 = vmax.f32 %v2224_v59, 1e-30  ;;  %v2114_v14 = vmul.f32 %v2106_v29, %v2105_v15  ;;  %v2217_v59 = vand.u32 2147483648, %v5802_v55 }
 0x222   :  { %v2934_v30 = vpop.eup %2933  ;;  %v2084_v12 = vmul.f32 %v2932_v47, %v2082_v42 }
 0x223   :  { %v2204_v40 = vmul.f32 %v2747_v43, %v5793_v52  ;;  %v2936_v28 = vpop.eup %2935  ;;  %v2213_v18 = vmul.f32 %v2934_v30, %v5802_v55  ;;  %2937 = vrsqrt.f32 %v2225_v37 }
 0x224   :  { %v2086_v47 = vsel %vm2085_vm1, %v2082_v42, %v2084_v12  ;;  %v2117_v42 = vmul.f32 %v2107_v48, %v2105_v15 }
 0x225   :  { %v2089_v4 = vsel %vm2087_vm14, %v2088_v35, %v2086_v47  ;;  %v2205_v36 = vadd.f32 0.08897899, %v2204_v40  ;;  %v2125_v35 = vmul.f32 %v2108_v21, %v2105_v15  ;;  %v2215_v30 = vsel %vm2214_vm15, %v5802_v55, %v2213_v18 }
 0x226   :  { %v2095_v17 = vmul.f32 %v5790_v13, %v2089_v4  ;;  %v5892_v4 = vmul.f32 %v5815_v51, %v5672_v31  ;;  %v5902_v21 = vmul.f32 %v5822_v9, %v5709_v16  ;;  %v2218_v10 = vsel %vm2216_vm2, %v2217_v59, %v2215_v30 }
 0x227   :  { %v2206_v43 = vmul.f32 %v2205_v36, %v5793_v52  ;;  %v5898_v36 = vmul.f32 %v5817_v39, %v5719_v7 }
 0x228   :  { %v2097_v12 = vmul.f32 %v2936_v28, %v2095_v17 }
 0x229   :  { %v2748_v17 = vadd.f32 -0.2145988, %v2206_v43 }
 0x22a   :  { %v2098_v13 = vsel %vm2090_vm0, %v2093_v46, %v2097_v12  ;;  %v5911_v46 = vmul.f32 %v5817_v39, %v5679_v25 }
 0x22b   :  { %v2112_v18 = vsub.f32 0.0, %v2098_v13  ;;  %v2116_v28 = vmul.f32 %v2975_v45, %v2098_v13  ;;  %v2119_v55 = vmul.f32 %v2976_v33, %v2098_v13  ;;  %v2129_v15 = vmul.f32 %v2974_v60, %v2098_v13 }
 0x22c   :  { %v2208_v48 = vmul.f32 %v2748_v17, %v5793_v52  ;;  %v5921_v52 = vmul.f32 %v5822_v9, %v5721_v22 }
 0x22d   :  { %v2113_v29 = vmul.f32 %v2976_v33, %v2112_v18  ;;  %v5913_v47 = vadd.f32 %v2117_v42, %v2116_v28  ;;  %v5915_v40 = vadd.f32 %v2119_v55, %v2114_v14  ;;  %v2124_v37 = vmul.f32 %v2974_v60, %v2112_v18 }
 0x22e   :  { %v2127_v12 = vmul.f32 %v2975_v45, %v2112_v18  ;;  %v5917_v43 = vadd.f32 %v2129_v15, %v2125_v35  ;;  %v2209_v13 = vadd.f32 1.5707963, %v2208_v48  ;;  %6576 = vst [vmem:[#allocation20_spill] sm:$0xff] %v5921_v52 }
 0x22f   :  { %v5923_v59 = vadd.f32 %v2114_v14, %v2113_v29  ;;  %v5925_v30 = vadd.f32 %v2125_v35, %v2124_v37  ;;  %v2269_v33 = vmul.f32 %v5915_v40, %v5447_v24  ;;  %v2279_v17 = vmul.f32 %v5913_v47, %v5445_v3 }
 0x230   :  { %v5931_v28 = vadd.f32 %v2127_v12, %v2117_v42  ;;  %v2219_v60 = vmul.f32 %v2218_v10, %v2209_v13  ;;  %v2277_v45 = vmul.f32 %v5917_v43, %v5466_v41  ;;  %v2287_v18 = vmul.f32 %v5915_v40, %v5456_v56  ;;  %v2938_v42 = vpop.eup %2937 }
 0x231   :  { %v2270_v14 = vadd.f32 %v2269_v33, %v5829_v58  ;;  %v2273_v35 = vmul.f32 %v5923_v59, %v5445_v3  ;;  %v2281_v55 = vmul.f32 %v5925_v30, %v5447_v24  ;;  %v2291_v15 = vmul.f32 %v5923_v59, %v5451_v27 }
 0x232   :  { %v2221_v48 = vsub.f32 3.1415927, %v2219_v60  ;;  %v2271_v10 = vmul.f32 %v5931_v28, %v5466_v41  ;;  %v2288_v29 = vadd.f32 %v2287_v18, %v5837_v20  ;;  %v2289_v37 = vmul.f32 %v5931_v28, %v5477_v49 }
 0x233   :  { %v2276_v58 = vadd.f32 %v5833_v5, %v2273_v35  ;;  %v2282_v12 = vadd.f32 %v2281_v55, %v2279_v17  ;;  %v2294_v3 = vadd.f32 %v5841_v50, %v2291_v15  ;;  %v2295_v24 = vmul.f32 %v5917_v43, %v5477_v49 }
 0x234   :  { %v2222_v13 = vsel %vm2220_vm11, %v2221_v48, %v2219_v60  ;;  %v2272_v33 = vadd.f32 %v2271_v10, %v2270_v14  ;;  %v5955_v2 = vadd.f32 %v2289_v37, %v2288_v29  ;;  %v2297_v41 = vmul.f32 %v5913_v47, %v5451_v27 }
 0x235   :  { %vm2227_vm0 = vcmp.lt.f32.partialorder %v2222_v13, 0.01  ;;  %v2228_v20 = vmul.f32 %v2222_v13, %v2222_v13  ;;  %v2231_v18 = vmul.f32 %v2938_v42, %v2222_v13  ;;  %v5959_v52 = vadd.f32 %v2277_v45, %v2276_v58 }
 0x236   :  { %v5962_v5 = vadd.f32 %v5845_v63, %v2282_v12  ;;  %v2296_v50 = vadd.f32 %v2295_v24, %v2294_v3  ;;  %v2299_v49 = vmul.f32 %v5925_v30, %v5456_v56  ;;  %v2305_v19 = vmul.f32 %v5915_v40, %v5463_v0 }
 0x237   :  { %v2229_v17 = vmul.f32 0.16666667, %v2228_v20  ;;  %v2307_v60 = vmul.f32 %v5931_v28, %v5484_v26  ;;  %v2309_v27 = vmul.f32 %v5923_v59, %v5454_v57  ;;  %v2313_v45 = vmul.f32 %v5917_v43, %v5484_v26 }
 0x238   :  { %v2300_v14 = vadd.f32 %v2299_v49, %v2297_v41  ;;  %v2306_v63 = vadd.f32 %v2305_v19, %v5853_v34  ;;  %v2315_v35 = vmul.f32 %v5913_v47, %v5454_v57  ;;  %v2317_v56 = vmul.f32 %v5925_v30, %v5463_v0 }
 0x239   :  { %v2230_v55 = vadd.f32 1.0, %v2229_v17  ;;  %v2312_v15 = vadd.f32 %v5857_v1, %v2309_v27  ;;  %v2321_v42 = vadd.f32 %v2296_v50, %v2272_v33  ;;  %v2372_v48 = vsub.f32 %v5955_v2, %v5959_v52 }
 0x23a   :  { %v5983_v10 = vadd.f32 %v5849_v61, %v2300_v14  ;;  %v5985_v26 = vadd.f32 %v2307_v60, %v2306_v63  ;;  %v2318_v29 = vadd.f32 %v2317_v56, %v2315_v35  ;;  %v2457_v34 = vmul.f32 %v5915_v40, %v5719_v7 }
 0x23b   :  { %v2232_v57 = vsel %vm2227_vm0, %v2230_v55, %v2231_v18  ;;  %v5990_v37 = vadd.f32 %v2313_v45, %v2312_v15  ;;  %v2459_v0 = vmul.f32 %v5931_v28, %v5709_v16  ;;  %v2461_v1 = vmul.f32 %v5923_v59, %v5672_v31 }
 0x23c   :  { %v2233_v58 = vmul.f32 0.5, %v2232_v57  ;;  %v2320_v61 = vadd.f32 %v5861_v23, %v2318_v29  ;;  %v2370_v12 = vsub.f32 %v5962_v5, %v5985_v26  ;;  %v2458_v3 = vadd.f32 %v2457_v34, %v5892_v4 }
 0x23d   :  { %v2368_v24 = vsub.f32 %v5990_v37, %v5983_v10  ;;  %v2464_v13 = vadd.f32 %v5898_v36, %v2461_v1  ;;  %v2465_v33 = vmul.f32 %v5917_v43, %v5709_v16  ;;  %v2467_v41 = vmul.f32 %v5913_v47, %v5672_v31 }
 0x23e   :  { %v6577_v20 = vsub.f32 %v5779_v32, %v5775_v6  ;;  %v6578_v18 = vsub.f32 %v5754_v44, %v5777_v8  ;;  %v6579_v4 = vsub.f32 %v5748_v38, %v5752_v53  ;;  %v2322_v19 = vadd.f32 %v2321_v42, %v2320_v61 }
 0x23f   :  { %v6016_v36 = vadd.f32 %v2459_v0, %v2458_v3  ;;  %v6018_v17 = vadd.f32 %v2465_v33, %v2464_v13  ;;  %v2469_v31 = vmul.f32 %v5925_v30, %v5719_v7  ;;  %v2475_v16 = vmul.f32 %v5915_v40, %v5679_v25 }
 0x240   :  { %v2235_v23 = vmul.f32 %v6577_v20, %v2233_v58  ;;  %v2237_v50 = vmul.f32 %v6578_v18, %v2233_v58  ;;  %v2239_v49 = vmul.f32 %v6579_v4, %v2233_v58  ;;  %v2752_v44 = vadd.f32 -1.0, %v2322_v19  ;;  %v6580_v18 = vld [vmem:[#allocation37_spill] sm:$0xff] }
 0x241   :  { %v2470_v8 = vadd.f32 %v2469_v31, %v2467_v41  ;;  %v2476_v27 = vadd.f32 %v2475_v16, %v5907_v62  ;;  %v2477_v38 = vmul.f32 %v5931_v28, %v5721_v22  ;;  %v2479_v53 = vmul.f32 %v5923_v59, %v5711_v54 }
 0x242   :  { %v2240_v6 = vmul.f32 200.0, %v2235_v23  ;;  %v2249_v32 = vmul.f32 200.0, %v2237_v50  ;;  %v2258_v60 = vmul.f32 200.0, %v2239_v49  ;;  %v2324_v55 = vmul.f32 0.5, %v2752_v44 }
 0x243   :  { %v6030_v15 = vadd.f32 %v5902_v21, %v2470_v8  ;;  %v6034_v61 = vadd.f32 %v2477_v38, %v2476_v27  ;;  %v2482_v21 = vadd.f32 %v5911_v46, %v2479_v53  ;;  %v2483_v33 = vmul.f32 %v5917_v43, %v5721_v22  ;;  %v6581_v46 = vld [vmem:[#allocation24_spill] sm:$0xff] }
 0x244   :  { %v2241_v45 = vand.u32 2147483647, %v2240_v6  ;;  %v2243_v14 = vmul.f32 0.5, %v2240_v6  ;;  %v2250_v63 = vand.u32 2147483647, %v2249_v32  ;;  %v2252_v7 = vmul.f32 0.5, %v2249_v32 }
 0x245   :  { %v2259_v35 = vand.u32 2147483647, %v2258_v60  ;;  %v2261_v56 = vmul.f32 0.5, %v2258_v60  ;;  %v6032_v58 = vclamps-f32 %v2324_v55, 1.0  ;;  %v2491_v50 = vmul.f32 %v5815_v51, %v6580_v18 }
 0x246   :  { %vm2242_vm4 = vcmp.lt.f32.partialorder %v2241_v45, 1.0  ;;  %v2244_v42 = vmul.f32 %v2243_v14, %v2240_v6  ;;  %v2749_v29 = vadd.f32 -0.5, %v2241_v45  ;;  %vm2251_vm6 = vcmp.lt.f32.partialorder %v2250_v63, 1.0 }
 0x247   :  { %v2253_v62 = vmul.f32 %v2252_v7, %v2249_v32  ;;  %v2750_v34 = vadd.f32 -0.5, %v2250_v63  ;;  %vm2260_vm10 = vcmp.lt.f32.partialorder %v2259_v35, 1.0  ;;  %v2262_v57 = vmul.f32 %v2261_v56, %v2258_v60  ;;  %v6582_v60 = vld [vmem:[#allocation15_spill] sm:$0xff] }
 0x248   :  { %v2246_v0 = vsel %vm2242_vm4, %v2244_v42, %v2749_v29  ;;  %v2751_v1 = vadd.f32 -0.5, %v2259_v35  ;;  %v6042_v23 = vand.u32 2147483647, %v6032_v58  ;;  %v6047_v49 = vadd.f32 %v2483_v33, %v2482_v21 }
 0x249   :  { %v2247_v3 = vmul.f32 %v2246_v0, %v5883_v11  ;;  %v2255_v13 = vsel %vm2251_vm6, %v2253_v62, %v2750_v34  ;;  %v2485_v19 = vmul.f32 %v5913_v47, %v5711_v54  ;;  %v2499_v31 = vmul.f32 %v5817_v39, %v6581_v46  ;;  %v6585_v62 = vld [vmem:[#allocation38_spill] sm:$0xff]  ;;  %v6586_v34 = vld [vmem:[#allocation23_spill] sm:$0xff] }
 0x24a   :  { %v2256_v41 = vmul.f32 %v2255_v13, %v5883_v11  ;;  %v2264_v20 = vsel %vm2260_vm10, %v2262_v57, %v2751_v1  ;;  %v2330_v16 = vmul.f32 -0.0012624911, %v6042_v23  ;;  %v2344_v6 = vsub.f32 1.0, %v6042_v23 }
 0x24b   :  { %v2265_v4 = vmul.f32 %v2264_v20, %v5883_v11  ;;  %v2487_v32 = vmul.f32 %v5925_v30, %v5679_v25  ;;  %v2357_v51 = vmul.f32 %v6032_v58, %v6032_v58  ;;  %v2493_v11 = vmul.f32 %v5915_v40, %v6581_v46 }
 0x24c   :  { %v2257_v22 = vadd.f32 %v2256_v41, %v2247_v3  ;;  %v2495_v54 = vmul.f32 %v5931_v28, %v6582_v60  ;;  %v2497_v39 = vmul.f32 %v5923_v59, %v6580_v18  ;;  %v2331_v8 = vadd.f32 0.00667009, %v2330_v16  ;;  %v6583_v59 = vld [vmem:[#allocation20_spill] sm:$0xff]  ;;  %v6587_v41 = vld [vmem:[#allocation18_spill] sm:$0xff] }
 0x24d   :  { %v6067_v27 = vmax.f32 %v2344_v6, 0.0  ;;  %v2488_v38 = vadd.f32 %v2487_v32, %v2485_v19  ;;  %v2494_v53 = vadd.f32 %v2493_v11, %v2491_v50  ;;  %v2501_v45 = vmul.f32 %v5917_v43, %v6582_v60  ;;  %v6584_v43 = vld [vmem:[#allocation2_spill] sm:$0xff]  ;;  %v6589_v16 = vld [vmem:[#allocation8_spill] sm:$0xff] }
 0x24e   :  { %v6065_v44 = vadd.f32 %v2265_v4, %v2257_v22  ;;  %v2500_v25 = vadd.f32 %v2499_v31, %v2497_v39  ;;  %v2332_v14 = vmul.f32 %v2331_v8, %v6042_v23  ;;  %v2507_v40 = vmul.f32 %v5822_v9, %v6582_v60  ;;  %v6588_v19 = vld [vmem:[#allocation10_spill] sm:$0xff] }
 0x24f   :  { %2939 = vrsqrt.f32 %v6067_v27  ;;  %v2358_v28 = vsub.f32 1.0, %v2357_v51  ;;  %v2490_v63 = vadd.f32 %v6583_v59, %v2488_v38  ;;  %v2496_v7 = vadd.f32 %v2495_v54, %v2494_v53 }
 0x250   :  { %v2754_v35 = vadd.f32 -0.017088126, %v2332_v14  ;;  %v2502_v56 = vadd.f32 %v2501_v45, %v2500_v25  ;;  %v2503_v55 = vmul.f32 %v5913_v47, %v6580_v18  ;;  %v2505_v42 = vmul.f32 %v5925_v30, %v6581_v46 }
 0x251   :  { %v2509_v29 = vmul.f32 %v6016_v36, %v6584_v43  ;;  %v2511_v9 = vmul.f32 %v6034_v61, %v6585_v62  ;;  %v2513_v57 = vmul.f32 %v2496_v7, %v6586_v34  ;;  %v2515_v0 = vmul.f32 %v6018_v17, %v6584_v43 }
 0x252   :  { %v2334_v1 = vmul.f32 %v2754_v35, %v6042_v23  ;;  %v2506_v3 = vadd.f32 %v2505_v42, %v2503_v55  ;;  %v2517_v47 = vmul.f32 %v6047_v49, %v6585_v62  ;;  %v2519_v13 = vmul.f32 %v2502_v56, %v6586_v34 }
 0x253   :  { %v2512_v30 = vadd.f32 %v2511_v9, %v2509_v29  ;;  %v2521_v21 = vmul.f32 %v6030_v15, %v6584_v43  ;;  %v2523_v33 = vmul.f32 %v2490_v63, %v6585_v62  ;;  %v2527_v20 = vmul.f32 %v6016_v36, %v6587_v41  ;;  %v6590_v43 = vld [vmem:[#allocation21_spill] sm:$0xff]  ;;  %v6591_v9 = vld [vmem:[#allocation11_spill] sm:$0xff] }
 0x254   :  { %v2335_v18 = vadd.f32 0.03089188, %v2334_v1  ;;  %v2508_v50 = vadd.f32 %v2507_v40, %v2506_v3  ;;  %v2518_v4 = vadd.f32 %v2517_v47, %v2515_v0  ;;  %v2529_v46 = vmul.f32 %v6034_v61, %v6588_v19 }
 0x255   :  { %v2514_v31 = vadd.f32 %v2513_v57, %v2512_v30  ;;  %v2524_v22 = vadd.f32 %v2523_v33, %v2521_v21  ;;  %v2531_v6 = vmul.f32 %v2496_v7, %v6589_v16  ;;  %v2533_v32 = vmul.f32 %v6018_v17, %v6587_v41  ;;  %v6592_v57 = vld [vmem:[#allocation17_spill] sm:$0xff] }
 0x256   :  { %v2336_v51 = vmul.f32 %v2335_v18, %v6042_v23  ;;  %v6102_v11 = vadd.f32 %v2519_v13, %v2518_v4  ;;  %v2525_v60 = vmul.f32 %v2508_v50, %v6586_v34  ;;  %v2530_v54 = vadd.f32 %v2529_v46, %v2527_v20 }
 0x257   :  { %v2535_v39 = vmul.f32 %v6047_v49, %v6588_v19  ;;  %v2537_v8 = vmul.f32 %v2502_v56, %v6589_v16  ;;  %v2539_v38 = vmul.f32 %v6030_v15, %v6587_v41  ;;  %v2541_v53 = vmul.f32 %v2490_v63, %v6588_v19 }
 0x258   :  { %v2755_v25 = vadd.f32 -0.050174303, %v2336_v51  ;;  %v6111_v45 = vadd.f32 %v2525_v60, %v2524_v22  ;;  %v6113_v14 = vadd.f32 %v2531_v6, %v2530_v54  ;;  %v2543_v40 = vmul.f32 %v2508_v50, %v6589_v16 }
 0x259   :  { %v2940_v59 = vpop.eup %2939  ;;  %v2359_v35 = vmax.f32 %v2358_v28, 1e-30  ;;  %v2536_v55 = vadd.f32 %v2535_v39, %v2533_v32  ;;  %v2542_v42 = vadd.f32 %v2541_v53, %v2539_v38  ;;  %v2545_v29 = vmul.f32 %v6016_v36, %v6590_v43 }
 0x25a   :  { %v2338_v62 = vmul.f32 %v2755_v25, %v6042_v23  ;;  %v2547_v34 = vmul.f32 %v6034_v61, %v6591_v9  ;;  %v2549_v0 = vmul.f32 %v2496_v7, %v6592_v57  ;;  %v2551_v1 = vmul.f32 %v6018_v17, %v6590_v43 }
 0x25b   :  { %vm2348_vm3 = vcmp.eq.f32.partialorder %v6067_v27, inf  ;;  %v2538_v3 = vadd.f32 %v2537_v8, %v2536_v55  ;;  %v6125_v47 = vadd.f32 %v2543_v40, %v2542_v42  ;;  %v2553_v28 = vmul.f32 %v6047_v49, %v6591_v9  ;;  %v6593_v55 = vld [vmem:[#allocation16_spill] sm:$0xff] }
 0x25c   :  { %v2339_v13 = vadd.f32 0.08897899, %v2338_v62  ;;  %v2347_v36 = vmul.f32 %v2940_v59, %v6067_v27  ;;  %v2548_v30 = vadd.f32 %v2547_v34, %v2545_v29  ;;  %v2555_v21 = vmul.f32 %v2502_v56, %v6592_v57 }
 0x25d   :  { %v2554_v61 = vadd.f32 %v2553_v28, %v2551_v1  ;;  %v2557_v7 = vmul.f32 %v6030_v15, %v6590_v43  ;;  %v2559_v17 = vmul.f32 %v2490_v63, %v6591_v9  ;;  %v2561_v33 = vmul.f32 %v2508_v50, %v6592_v57 }
 0x25e   :  { %v2340_v41 = vmul.f32 %v2339_v13, %v6042_v23  ;;  %v6136_v20 = vadd.f32 %v2549_v0, %v2548_v30  ;;  %v2563_v18 = vadd.f32 %v2538_v3, %v2514_v31  ;;  %v2614_v49 = vsub.f32 %v6113_v14, %v6102_v11  ;;  %v6594_v13 = vld [vmem:[#allocation13_spill] sm:$0xff] }
 0x25f   :  { %vm2350_vm5 = vcmp.eq.f32.partialorder %v6067_v27, 0.0  ;;  %v2351_v56 = vand.u32 2147483648, %v6067_v27  ;;  %v6142_v4 = vadd.f32 %v2555_v21, %v2554_v61  ;;  %v2560_v19 = vadd.f32 %v2559_v17, %v2557_v7 }
 0x260   :  { %v2756_v15 = vadd.f32 -0.2145988, %v2340_v41  ;;  %v2349_v63 = vsel %vm2348_vm3, %v6067_v27, %v2347_v36  ;;  %2941 = vrsqrt.f32 %v2359_v35  ;;  %v2612_v50 = vsub.f32 %v6111_v45, %v6136_v20 }
 0x261   :  { %v2562_v46 = vadd.f32 %v2561_v33, %v2560_v19  ;;  %v2610_v31 = vsub.f32 %v6142_v4, %v6125_v47  ;;  %v2352_v16 = vsel %vm2350_vm5, %v2351_v56, %v2349_v63  ;;  %vm2354_vm13 = vcmp.lt.f32.partialorder %v6032_v58, 0.0 }
 0x262   :  { %v2342_v22 = vmul.f32 %v2756_v15, %v6042_v23  ;;  %v21_v42 = vadd.f32 1.0, %v6593_v55  ;;  %vm25_vm6 = vcmp.ge.f32.partialorder %v6594_v13, 5.0 }
 0x263   :  { %v2564_v6 = vadd.f32 %v2563_v18, %v2562_v46  ;;  %vm26_vm10 = vmand %vm25_vm6, %vm15_vm9 }
 0x264   :  { %v2343_v32 = vadd.f32 1.5707963, %v2342_v22  ;;  %vm22_vm7 = vcmp.ge.f32.partialorder %v21_v42, 5.0 }
 0x265   :  { %v2760_v51 = vadd.f32 -1.0, %v2564_v6  ;;  %vm23_vm1 = vmand %vm22_vm7, %vm15_vm9 }
 0x266   :  { %v2353_v60 = vmul.f32 %v2352_v16, %v2343_v32 }
 0x267   :  { %v2566_v54 = vmul.f32 0.5, %v2760_v51 }
 0x268   :  { %v2355_v39 = vsub.f32 3.1415927, %v2353_v60 }
 0x269   :  { %v6153_v27 = vclamps-f32 %v2566_v54, 1.0 }
 0x26a   :  { %v2942_v8 = vpop.eup %2941  ;;  %v2356_v38 = vsel %vm2354_vm13, %v2355_v39, %v2353_v60 }
 0x26b   :  { %v2362_v53 = vmul.f32 %v2356_v38, %v2356_v38  ;;  %v6156_v25 = vand.u32 2147483647, %v6153_v27  ;;  %v2365_v59 = vmul.f32 %v2942_v8, %v2356_v38  ;;  %vm2361_vm8 = vcmp.lt.f32.partialorder %v2356_v38, 0.01 }
 0x26c   :  { %v2599_v10 = vmul.f32 %v6153_v27, %v6153_v27  ;;  %vm2596_vm0 = vcmp.lt.f32.partialorder %v6153_v27, 0.0 }
 0x26d   :  { %v2363_v40 = vmul.f32 0.16666667, %v2362_v53  ;;  %v2572_v23 = vmul.f32 -0.0012624911, %v6156_v25  ;;  %v2586_v35 = vsub.f32 1.0, %v6156_v25 }
 0x26e   :  { %v2600_v46 = vsub.f32 1.0, %v2599_v10 }
 0x26f   :  { %v2364_v58 = vadd.f32 1.0, %v2363_v40  ;;  %v2573_v43 = vadd.f32 0.00667009, %v2572_v23  ;;  %v2587_v29 = vmax.f32 %v2586_v35, 0.0 }
 0x270   :  { %v2601_v53 = vmax.f32 %v2600_v46, 1e-30 }
 0x271   :  { %v2366_v62 = vsel %vm2361_vm8, %v2364_v58, %v2365_v59  ;;  %v2574_v9 = vmul.f32 %v2573_v43, %v6156_v25  ;;  %2943 = vrsqrt.f32 %v2587_v29  ;;  %vm2590_vm2 = vcmp.eq.f32.partialorder %v2587_v29, inf }
 0x272   :  { %v2367_v34 = vmul.f32 0.5, %v2366_v62  ;;  %v2593_v35 = vand.u32 2147483648, %v2587_v29  ;;  %vm2592_vm11 = vcmp.eq.f32.partialorder %v2587_v29, 0.0  ;;  %2945 = vrsqrt.f32 %v2601_v53 }
 0x273   :  { %v2762_v57 = vadd.f32 -0.017088126, %v2574_v9 }
 0x274   :  { %v2369_v0 = vmul.f32 %v2368_v24, %v2367_v34  ;;  %v2371_v1 = vmul.f32 %v2370_v12, %v2367_v34  ;;  %v2373_v3 = vmul.f32 %v2372_v48, %v2367_v34  ;;  %v6595_v12 = vmov 0.0  }
 0x275   :  { %v2576_v28 = vmul.f32 %v2762_v57, %v6156_v25  ;;  %v24_v7 = vsel %vm23_vm1, 0.37878788, %v6595_v12  ;;  %v27_v47 = vsel %vm26_vm10, 0.3472222, %v6595_v12 }
 0x276   :  { %v2374_v36 = vmul.f32 200.0, %v2369_v0  ;;  %v2383_v30 = vmul.f32 200.0, %v2371_v1  ;;  %v2392_v21 = vmul.f32 200.0, %v2373_v3 }
 0x277   :  { %v2577_v61 = vadd.f32 0.03089188, %v2576_v28 }
 0x278   :  { %v2375_v37 = vand.u32 2147483647, %v2374_v36  ;;  %v2377_v24 = vmul.f32 0.5, %v2374_v36  ;;  %v2384_v5 = vand.u32 2147483647, %v2383_v30  ;;  %v2386_v26 = vmul.f32 0.5, %v2383_v30 }
 0x279   :  { %v2393_v2 = vand.u32 2147483647, %v2392_v21  ;;  %v2395_v52 = vmul.f32 0.5, %v2392_v21  ;;  %v2578_v48 = vmul.f32 %v2577_v61, %v6156_v25 }
 0x27a   :  { %vm2376_vm14 = vcmp.lt.f32.partialorder %v2375_v37, 1.0  ;;  %v2378_v17 = vmul.f32 %v2377_v24, %v2374_v36  ;;  %v2757_v33 = vadd.f32 -0.5, %v2375_v37  ;;  %vm2385_vm12 = vcmp.lt.f32.partialorder %v2384_v5, 1.0 }
 0x27b   :  { %v2387_v41 = vmul.f32 %v2386_v26, %v2383_v30  ;;  %v2758_v18 = vadd.f32 -0.5, %v2384_v5  ;;  %vm2394_vm15 = vcmp.lt.f32.partialorder %v2393_v2, 1.0  ;;  %v2396_v56 = vmul.f32 %v2395_v52, %v2392_v21  ;;  %v2944_v22 = vpop.eup %2943 }
 0x27c   :  { %v2380_v19 = vsel %vm2376_vm14, %v2378_v17, %v2757_v33  ;;  %v2759_v15 = vadd.f32 -0.5, %v2393_v2  ;;  %v2763_v63 = vadd.f32 -0.050174303, %v2578_v48  ;;  %v2589_v38 = vmul.f32 %v2944_v22, %v2587_v29  ;;  %v2946_v34 = vpop.eup %2945 }
 0x27d   :  { %v2381_v16 = vmul.f32 %v2380_v19, %v24_v7  ;;  %v2389_v6 = vsel %vm2385_vm12, %v2387_v41, %v2758_v18 }
 0x27e   :  { %v2390_v32 = vmul.f32 %v2389_v6, %v24_v7  ;;  %v2398_v51 = vsel %vm2394_vm15, %v2396_v56, %v2759_v15  ;;  %v2580_v60 = vmul.f32 %v2763_v63, %v6156_v25  ;;  %v2591_v42 = vsel %vm2590_vm2, %v2587_v29, %v2589_v38 }
 0x27f   :  { %v2382_v54 = vadd.f32 %v2381_v16, %v6065_v44  ;;  %v2399_v39 = vmul.f32 %v2398_v51, %v24_v7  ;;  %v2594_v43 = vsel %vm2592_vm11, %v2593_v35, %v2591_v42 }
 0x280   :  { %v2581_v8 = vadd.f32 0.08897899, %v2580_v60 }
 0x281   :  { %v2391_v40 = vadd.f32 %v2390_v32, %v2382_v54 }
 0x282   :  { %v2582_v59 = vmul.f32 %v2581_v8, %v6156_v25 }
 0x283   :  { %v2400_v23 = vadd.f32 %v2399_v39, %v2391_v40 }
 0x284   :  { %v2764_v55 = vadd.f32 -0.2145988, %v2582_v59 }
 0x286   :  { %v2584_v58 = vmul.f32 %v2764_v55, %v6156_v25 }
 0x288   :  { %v2585_v62 = vadd.f32 1.5707963, %v2584_v58 }
 0x28a   :  { %v2595_v9 = vmul.f32 %v2594_v43, %v2585_v62 }
 0x28c   :  { %v2597_v44 = vsub.f32 3.1415927, %v2595_v9 }
 0x28e   :  { %v2598_v57 = vsel %vm2596_vm0, %v2597_v44, %v2595_v9 }
 0x28f   :  { %v2604_v0 = vmul.f32 %v2598_v57, %v2598_v57  ;;  %v2607_v3 = vmul.f32 %v2946_v34, %v2598_v57  ;;  %vm2603_vm4 = vcmp.lt.f32.partialorder %v2598_v57, 0.01 }
 0x291   :  { %v2605_v1 = vmul.f32 0.16666667, %v2604_v0 }
 0x293   :  { %v2606_v28 = vadd.f32 1.0, %v2605_v1 }
 0x295   :  { %v2608_v36 = vsel %vm2603_vm4, %v2606_v28, %v2607_v3 }
 0x296   :  { %v2609_v30 = vmul.f32 0.5, %v2608_v36 }
 0x298   :  { %v2611_v25 = vmul.f32 %v2610_v31, %v2609_v30  ;;  %v2613_v27 = vmul.f32 %v2612_v50, %v2609_v30  ;;  %v2615_v29 = vmul.f32 %v2614_v49, %v2609_v30 }
 0x29a   :  { %v2616_v21 = vmul.f32 200.0, %v2611_v25  ;;  %v2625_v61 = vmul.f32 200.0, %v2613_v27  ;;  %v2634_v10 = vmul.f32 200.0, %v2615_v29 }
 0x29c   :  { %v2617_v37 = vand.u32 2147483647, %v2616_v21  ;;  %v2619_v24 = vmul.f32 0.5, %v2616_v21  ;;  %v2626_v5 = vand.u32 2147483647, %v2625_v61  ;;  %v2628_v26 = vmul.f32 0.5, %v2625_v61 }
 0x29d   :  { %v2635_v4 = vand.u32 2147483647, %v2634_v10  ;;  %v2637_v31 = vmul.f32 0.5, %v2634_v10 }
 0x29e   :  { %vm2618_vm3 = vcmp.lt.f32.partialorder %v2617_v37, 1.0  ;;  %v2620_v45 = vmul.f32 %v2619_v24, %v2616_v21  ;;  %v2765_v20 = vadd.f32 -0.5, %v2617_v37  ;;  %vm2627_vm5 = vcmp.lt.f32.partialorder %v2626_v5, 1.0 }
 0x29f   :  { %v2629_v11 = vmul.f32 %v2628_v26, %v2625_v61  ;;  %v2766_v14 = vadd.f32 -0.5, %v2626_v5  ;;  %vm2636_vm13 = vcmp.lt.f32.partialorder %v2635_v4, 1.0  ;;  %v2638_v49 = vmul.f32 %v2637_v31, %v2634_v10 }
 0x2a0   :  { %v2622_v50 = vsel %vm2618_vm3, %v2620_v45, %v2765_v20  ;;  %v2767_v13 = vadd.f32 -0.5, %v2635_v4 }
 0x2a1   :  { %v2623_v7 = vmul.f32 %v2622_v50, %v27_v47  ;;  %v2631_v2 = vsel %vm2627_vm5, %v2629_v11, %v2766_v14 }
 0x2a2   :  { %v2632_v52 = vmul.f32 %v2631_v2, %v27_v47  ;;  %v2640_v48 = vsel %vm2636_vm13, %v2638_v49, %v2767_v13 }
 0x2a3   :  { %v2624_v17 = vadd.f32 %v2623_v7, %v2400_v23  ;;  %v2641_v33 = vmul.f32 %v2640_v48, %v27_v47 }
 0x2a5   :  { %v2633_v41 = vadd.f32 %v2632_v52, %v2624_v17 }
 0x2a7   :  { %v2642_v12 = vadd.f32 %v2641_v33, %v2633_v41 }
 0x2a9   :  { %2643 = vst [vmem:[%s6202_s3] sm:$0xff] %v2642_v12 }

</bundles_post_ra>
